<compile_context>
chip_gen: v7x
topology: tpu7x:2x2x1
jax: 0.10.0
libtpu: 0.0.40
codegen_flags: <defaults>
</compile_context>

<pallas_src>
import math
import functools

import numpy as np
import jax
import jax.numpy as jnp
from jax.experimental import pallas as pl
from jax.experimental.pallas import tpu as pltpu

# ---- small, module-consistent hyper-parameters -------------------------------------
USR = 4        # len(usr_used)
HIDDEN = 32    # hidden_dim
NK = 8         # n_kernels
CIN = 3        # in_channels
OUT = 16       # out_dim (n_classes)
BATCH = 2
IMG = 32       # spatial size must be 32: fc1 expects 2*NK*5*5 features after 2x(conv5 + pool2)

LANE = 128     # lane-pad the conv output channels for dense stores
HEAD_TN = 8192 # N-tile for the fused hyper-head matmul


def _round_up(x, m):
    return ((x + m - 1) // m) * m


# ---- hyper-head segment bookkeeping (static python) ---------------------------------
SEG_ORDER = ["c1w", "c1b", "c2w", "c2b", "l1w", "l1b", "l2w", "l2b", "l3w", "l3b"]
SEG_SIZES = {
    "c1w": NK * CIN * 25, "c1b": NK,
    "c2w": 2 * NK * NK * 25, "c2b": 2 * NK,
    "l1w": 120 * 2 * NK * 25, "l1b": 120,
    "l2w": 84 * 120, "l2b": 84,
    "l3w": OUT * 84, "l3b": OUT,
}
SEG_OFF = {}
_off = 0
for _name in SEG_ORDER:
    SEG_OFF[_name] = _off
    _off += SEG_SIZES[_name]
HEAD_N = _off                                   # 63468 for these sizes
HEAD_NPAD = _round_up(HEAD_N, HEAD_TN)          # 65536 -> 8 grid steps

# conv geometry (valid 5x5 conv then 2x2/2 pool), spatial pixel counts padded to x8
H2_1, W2_1 = (IMG - 4) // 2, (IMG - 4) // 2     # 14, 14
NPIX1 = H2_1 * W2_1                             # 196
NPIX1_PAD = _round_up(NPIX1, 8)                 # 200
H2_2, W2_2 = (H2_1 - 4) // 2, (W2_1 - 4) // 2   # 5, 5
NPIX2 = H2_2 * W2_2                             # 25
NPIX2_PAD = _round_up(NPIX2, 8)                 # 32


# ------------------------------- Pallas kernels -------------------------------------
def _mlp_kernel(r_ref, w0_ref, b0_ref, w1_ref, b1_ref, w2_ref, b2_ref, o_ref):
    """Fused Linear -> ReLU -> Linear -> ReLU -> Linear on a (1, USR) input."""
    h = jnp.dot(r_ref[...], w0_ref[...], preferred_element_type=jnp.float32) + b0_ref[...]
    h = jnp.maximum(h, 0.0)
    h = jnp.dot(h, w1_ref[...], preferred_element_type=jnp.float32) + b1_ref[...]
    h = jnp.maximum(h, 0.0)
    o_ref[...] = jnp.dot(h, w2_ref[...], preferred_element_type=jnp.float32) + b2_ref[...]


def pallas_mlp(ray, mlp_params):
    w0, b0, w1, b1, w2, b2 = mlp_params
    full = lambda shape: pl.BlockSpec(shape, lambda i: (0, 0))
    return pl.pallas_call(
        _mlp_kernel,
        out_shape=jax.ShapeDtypeStruct((1, HIDDEN), jnp.float32),
        grid=(1,),
        in_specs=[full(ray.shape), full(w0.shape), full(b0.shape),
                  full(w1.shape), full(b1.shape), full(w2.shape), full(b2.shape)],
        out_specs=full((1, HIDDEN)),
    )(ray, w0, b0, w1, b1, w2, b2)


def _head_kernel(f_ref, w_ref, b_ref, o_ref):
    """One N-tile of the fused hyper-head matmul: feats(1,32) @ W(32,TN) + b."""
    f = f_ref[...].astype(jnp.bfloat16)     # bf16 weights, f32 accumulation
    acc = jnp.dot(f, w_ref[...], preferred_element_type=jnp.float32)
    o_ref[...] = acc + b_ref[...]


def pallas_heads(feats, head_w, head_b):
    return pl.pallas_call(
        _head_kernel,
        out_shape=jax.ShapeDtypeStruct((1, HEAD_NPAD), jnp.float32),
        grid=(HEAD_NPAD // HEAD_TN,),
        in_specs=[pl.BlockSpec((1, HIDDEN), lambda j: (0, 0)),
                  pl.BlockSpec((HIDDEN, HEAD_TN), lambda j: (0, j)),
                  pl.BlockSpec((1, HEAD_TN), lambda j: (0, j))],
        out_specs=pl.BlockSpec((1, HEAD_TN), lambda j: (0, j)),
        compiler_params=pltpu.CompilerParams(dimension_semantics=("parallel",)),
    )(feats, head_w, head_b)


def _conv_relu_pool_kernel(p_ref, w_ref, b_ref, o_ref, *, npix_pad):
    """im2col conv matmul + bias + ReLU + fused 2x2 maxpool (per batch element).

    p_ref rows are grouped as 4 blocks of `npix_pad` rows, one per pixel of each
    2x2 pool window, so the pool is a row-wise max of 4 tile-aligned static slices.
    """
    y = jnp.dot(p_ref[...], w_ref[...], preferred_element_type=jnp.float32) + b_ref[...]
    y = jnp.maximum(y, 0.0)
    q0 = y[0 * npix_pad:1 * npix_pad]
    q1 = y[1 * npix_pad:2 * npix_pad]
    q2 = y[2 * npix_pad:3 * npix_pad]
    q3 = y[3 * npix_pad:4 * npix_pad]
    o_ref[...] = jnp.maximum(jnp.maximum(q0, q1), jnp.maximum(q2, q3))


def pallas_conv_relu_pool(patches, w, b, npix_pad):
    """patches:(B, 4*npix_pad, Kf)  w:(Kf, LANE)  b:(1, LANE)  ->  (B, npix_pad, LANE)."""
    B, R, Kf = patches.shape
    cpad = w.shape[1]
    return pl.pallas_call(
        functools.partial(_conv_relu_pool_kernel, npix_pad=npix_pad),
        out_shape=jax.ShapeDtypeStruct((B, npix_pad, cpad), jnp.float32),
        grid=(B,),
        in_specs=[pl.BlockSpec((None, R, Kf), lambda bb: (bb, 0, 0)),
                  pl.BlockSpec((Kf, cpad), lambda bb: (0, 0)),
                  pl.BlockSpec((1, cpad), lambda bb: (0, 0))],
        out_specs=pl.BlockSpec((None, npix_pad, cpad), lambda bb: (bb, 0, 0)),
        compiler_params=pltpu.CompilerParams(dimension_semantics=("parallel",)),
    )(patches, w, b)


def _fc_ce_kernel(t_ref, w1_ref, b1_ref, w2_ref, b2_ref, w3_ref, b3_ref, y_ref,
                  logits_ref, loss_ref):
    """Fused fc1 -> ReLU -> fc2 -> ReLU -> fc3 -> mean cross-entropy."""
    z = jnp.dot(t_ref[...], w1_ref[...], preferred_element_type=jnp.float32) + b1_ref[...]
    z = jnp.maximum(z, 0.0)
    z = jnp.dot(z, w2_ref[...], preferred_element_type=jnp.float32) + b2_ref[...]
    z = jnp.maximum(z, 0.0)
    logits = jnp.dot(z, w3_ref[...], preferred_element_type=jnp.float32) + b3_ref[...]
    logits_ref[...] = logits
    m = jnp.max(logits, axis=-1, keepdims=True)
    lse = m + jnp.log(jnp.sum(jnp.exp(logits - m), axis=-1, keepdims=True))
    cls = jax.lax.broadcasted_iota(jnp.int32, logits.shape, 1)
    onehot = (cls == y_ref[...]).astype(jnp.float32)
    tgt = jnp.sum(logits * onehot, axis=-1, keepdims=True)
    per = lse - tgt                                           # (B, 1)
    loss_ref[...] = jnp.sum(per, axis=0, keepdims=True) * (1.0 / per.shape[0])


def pallas_fc_ce(t, w1, b1, w2, b2, w3, b3, y2d):
    B = t.shape[0]
    full = lambda shape: pl.BlockSpec(shape, lambda i: (0, 0))
    return pl.pallas_call(
        _fc_ce_kernel,
        out_shape=(jax.ShapeDtypeStruct((B, OUT), jnp.float32),
                   jax.ShapeDtypeStruct((1, 1), jnp.float32)),
        grid=(1,),
        in_specs=[full(t.shape), full(w1.shape), full(b1.shape),
                  full(w2.shape), full(b2.shape), full(w3.shape), full(b3.shape),
                  full(y2d.shape)],
        out_specs=(full((B, OUT)), full((1, 1))),
    )(t, w1, b1, w2, b2, w3, b3, y2d)


# ----------------------------------- glue -------------------------------------------
def im2col_grouped(x, k, npix_pad):
    """NHWC valid-conv patches, feature order (cin, kh, kw) to match PyTorch weights.

    The output-pixel rows are split into 4 groups (one per pixel of each 2x2 pool
    window), each group padded to `npix_pad` rows (multiple of 8), so the conv kernel
    can fuse the max-pool with tile-aligned static slices.
    Returns (B, 4*npix_pad, C*k*k).
    """
    B, H, W, C = x.shape
    Ho, Wo = H - k + 1, W - k + 1
    H2, W2 = Ho // 2, Wo // 2
    slabs = [x[:, i:i + Ho, j:j + Wo, :] for i in range(k) for j in range(k)]
    p = jnp.stack(slabs, axis=-1)                       # (B, Ho, Wo, C, k*k)
    Kf = C * k * k
    p = p.reshape(B, Ho, Wo, Kf)
    p = p.reshape(B, H2, 2, W2, 2, Kf)
    p = jnp.transpose(p, (0, 2, 4, 1, 3, 5))            # (B, 2, 2, H2, W2, Kf)
    p = p.reshape(B, 4, H2 * W2, Kf)
    p = jnp.pad(p, ((0, 0), (0, 0), (0, npix_pad - H2 * W2), (0, 0)))
    return p.reshape(B, 4 * npix_pad, Kf)


def init_linear(key, fan_in, fan_out):
    """PyTorch-style uniform(-1/sqrt(fan_in), 1/sqrt(fan_in)); stored as (in, out)."""
    kw, kb = jax.random.split(key)
    bound = 1.0 / math.sqrt(fan_in)
    w = jax.random.uniform(kw, (fan_in, fan_out), jnp.float32, -bound, bound)
    b = jax.random.uniform(kb, (fan_out,), jnp.float32, -bound, bound)
    return w, b


def _t_perm(rows, cols):
    """Column permutation p s.t. slab[p] == slab.reshape(rows, cols).T.reshape(-1)."""
    return np.arange(rows * cols).reshape(rows, cols).T.reshape(-1)


# permute the "weight" heads at init so generated matrices come out in (in, out) layout
HEAD_PERM = {
    "c1w": _t_perm(NK, CIN * 25),
    "c2w": _t_perm(2 * NK, NK * 25),
    "l1w": _t_perm(120, 2 * NK * 25),
    "l2w": _t_perm(84, 120),
    "l3w": _t_perm(OUT, 84),
}


def init_params(key):
    ks = jax.random.split(key, 13)
    p = {}
    w0, b0 = init_linear(ks[0], USR, HIDDEN)
    w1, b1 = init_linear(ks[1], HIDDEN, HIDDEN)
    w2, b2 = init_linear(ks[2], HIDDEN, HIDDEN)
    p["mlp"] = (w0, b0.reshape(1, -1), w1, b1.reshape(1, -1), w2, b2.reshape(1, -1))

    # hyper heads: PyTorch-equivalent init, column-permuted where needed, fused along N
    ws, bs = [], []
    for i, name in enumerate(SEG_ORDER):
        w, b = init_linear(ks[3 + i], HIDDEN, SEG_SIZES[name])
        if name in HEAD_PERM:
            perm = HEAD_PERM[name]
            w = w[:, perm]
            b = b[perm]
        ws.append(w)
        bs.append(b)
    w_cat = jnp.concatenate(ws, axis=1)                 # (HIDDEN, HEAD_N)
    b_cat = jnp.concatenate(bs, axis=0)                 # (HEAD_N,)
    pad = HEAD_NPAD - HEAD_N
    # bf16 head weights: this matmul is pure HBM-bandwidth bound; accumulation stays f32
    p["head_w"] = jnp.pad(w_cat, ((0, 0), (0, pad))).astype(jnp.bfloat16)
    p["head_b"] = jnp.pad(b_cat, (0, pad)).reshape(1, HEAD_NPAD).astype(jnp.float32)
    return p


def forward(params, x_nchw, y):
    # input_ray, as set in CNNHyper100.__init__ (uniform 1/len(usr_used))
    ray = jnp.full((1, USR), 1.0 / USR, jnp.float32)

    # 1) fused hypernet MLP
    feats = pallas_mlp(ray, params["mlp"])              # (1, HIDDEN)

    # 2) all 10 hyper heads as one matmul -> slab of generated parameters
    slab = pallas_heads(feats, params["head_w"], params["head_b"])   # (1, HEAD_NPAD)

    def head_seg(name, shape):
        o = SEG_OFF[name]
        return slab[0, o:o + SEG_SIZES[name]].reshape(shape)

    conv1_w = jnp.pad(head_seg("c1w", (CIN * 25, NK)), ((0, 0), (0, LANE - NK)))
    conv1_b = jnp.pad(head_seg("c1b", (1, NK)), ((0, 0), (0, LANE - NK)))
    conv2_w = jnp.pad(head_seg("c2w", (NK * 25, 2 * NK)), ((0, 0), (0, LANE - 2 * NK)))
    conv2_b = jnp.pad(head_seg("c2b", (1, 2 * NK)), ((0, 0), (0, LANE - 2 * NK)))
    fc1_w = head_seg("l1w", (2 * NK * 25, 120))
    fc1_b = head_seg("l1b", (1, 120))
    fc2_w = head_seg("l2w", (120, 84))
    fc2_b = head_seg("l2b", (1, 84))
    fc3_w = head_seg("l3w", (84, OUT))
    fc3_b = head_seg("l3b", (1, OUT))

    # 3)+4) target net convs: conv(5) -> relu -> pool(2), fused per Pallas call
    B = x_nchw.shape[0]
    xh = jnp.transpose(x_nchw, (0, 2, 3, 1))                          # NCHW -> NHWC
    p1 = im2col_grouped(xh, 5, NPIX1_PAD)                             # (B, 800, 75)
    a1 = pallas_conv_relu_pool(p1, conv1_w, conv1_b, NPIX1_PAD)       # (B, 200, 128)
    a1 = a1[:, :NPIX1, :NK].reshape(B, H2_1, W2_1, NK)                # (B, 14, 14, 8)

    p2 = im2col_grouped(a1, 5, NPIX2_PAD)                             # (B, 128, 200)
    a2 = pallas_conv_relu_pool(p2, conv2_w, conv2_b, NPIX2_PAD)       # (B, 32, 128)
    a2 = a2[:, :NPIX2, :2 * NK]                                       # (B, 25, 16)

    # flatten in PyTorch NCHW order: (B, C, H, W).view(B, -1)  (channel slowest)
    t = jnp.transpose(a2, (0, 2, 1)).reshape(B, 2 * NK * 25)          # (B, 400)

    # 5) fused fc1/fc2/fc3 + cross-entropy
    y2d = y.astype(jnp.int32).reshape(-1, 1)
    logits, loss2d = pallas_fc_ce(t, fc1_w, fc1_b, fc2_w, fc2_b, fc3_w, fc3_b, y2d)
    return logits, loss2d[0, 0]


if __name__ == "__main__":
    key = jax.random.PRNGKey(0)
    pkey, xkey, ykey = jax.random.split(key, 3)
    params = init_params(pkey)
    x = jax.random.normal(xkey, (BATCH, CIN, IMG, IMG), jnp.float32)  # NCHW like PyTorch
    y = jax.random.randint(ykey, (BATCH,), 0, OUT)

    logits, loss = jax.jit(forward)(params, x, y)
    jax.block_until_ready((logits, loss))
    assert logits.shape == (BATCH, OUT)
    assert bool(jnp.isfinite(loss))
    print("KERNEL_OK")
</pallas_src>

<mosaic_0001>
module attributes {stable_mosaic.version = 11 : i64} {
  func.func @_head_kernel(%arg0: i32, %arg1: memref<1x32xf32, #tpu.memory_space<vmem>>, %arg2: memref<32x8192xbf16, #tpu.memory_space<vmem>>, %arg3: memref<1x8192xf32, #tpu.memory_space<vmem>>, %arg4: memref<1x8192xf32, #tpu.memory_space<vmem>>) attributes {dimension_semantics = [#tpu.dimension_semantics<parallel>], iteration_bounds = array<i64: 8>, scalar_prefetch = 0 : i64, scratch_operands = 0 : i64, tpu.core_type = #tpu.core_type<tc>, window_params = [{pipeline_mode = #tpu.pipeline_mode<synchronous>, transform_indices = @transform_0, window_bounds = array<i64: 1, 32>}, {transform_indices = @transform_1, window_bounds = array<i64: 32, 8192>}, {transform_indices = @transform_2, window_bounds = array<i64: 1, 8192>}, {transform_indices = @transform_3, window_bounds = array<i64: 1, 8192>}]} {
    %c0 = arith.constant 0 : index
    %c0_0 = arith.constant 0 : index
    %0 = vector.load %arg1[%c0, %c0_0] : memref<1x32xf32, #tpu.memory_space<vmem>>, vector<1x32xf32>
    %1 = arith.truncf %0 : vector<1x32xf32> to vector<1x32xbf16>
    %c0_1 = arith.constant 0 : index
    %c0_2 = arith.constant 0 : index
    %2 = vector.load %arg2[%c0_1, %c0_2] : memref<32x8192xbf16, #tpu.memory_space<vmem>>, vector<32x8192xbf16>
    %cst = arith.constant dense<0.000000e+00> : vector<1x8192xf32>
    %3 = tpu.matmul %1, %2, %cst {dimension_numbers = #tpu.dot_dimension_numbers<[1], [0], [0], [1], [0, 0, 1, 1], [], []>} : vector<1x32xbf16>, vector<32x8192xbf16>, vector<1x8192xf32> -> vector<1x8192xf32>
    %c0_3 = arith.constant 0 : index
    %c0_4 = arith.constant 0 : index
    %4 = vector.load %arg3[%c0_3, %c0_4] : memref<1x8192xf32, #tpu.memory_space<vmem>>, vector<1x8192xf32>
    %5 = arith.addf %3, %4 : vector<1x8192xf32>
    %c0_5 = arith.constant 0 : index
    %c0_6 = arith.constant 0 : index
    %6 = vector.load %arg4[%c0_5, %c0_6] : memref<1x8192xf32, #tpu.memory_space<vmem>>, vector<1x8192xf32>
    tpu.vector_store %arg4[%c0_5, %c0_6], %5 {strides = array<i32>} : memref<1x8192xf32, #tpu.memory_space<vmem>>, vector<1x8192xf32>,
    return
  }
  func.func @transform_0(%arg0: i32) -> (i32, i32) {
    %c0_i32 = arith.constant 0 : i32
    %c0_i32_0 = arith.constant 0 : i32
    %c0_i32_1 = arith.constant 0 : i32
    return %c0_i32, %c0_i32_0 : i32, i32
  }
  func.func @transform_1(%arg0: i32) -> (i32, i32) {
    %c0_i32 = arith.constant 0 : i32
    %c0_i32_0 = arith.constant 0 : i32
    return %c0_i32, %arg0 : i32, i32
  }
  func.func @transform_2(%arg0: i32) -> (i32, i32) {
    %c0_i32 = arith.constant 0 : i32
    %c0_i32_0 = arith.constant 0 : i32
    return %c0_i32, %arg0 : i32, i32
  }
  func.func @transform_3(%arg0: i32) -> (i32, i32) {
    %c0_i32 = arith.constant 0 : i32
    %c0_i32_0 = arith.constant 0 : i32
    return %c0_i32, %arg0 : i32, i32
  }
}

module attributes {stable_mosaic.version = 11 : i64} {
  func.func @_mlp_kernel(%arg0: i32, %arg1: memref<1x4xf32, #tpu.memory_space<vmem>>, %arg2: memref<4x32xf32, #tpu.memory_space<vmem>>, %arg3: memref<1x32xf32, #tpu.memory_space<vmem>>, %arg4: memref<32x32xf32, #tpu.memory_space<vmem>>, %arg5: memref<1x32xf32, #tpu.memory_space<vmem>>, %arg6: memref<32x32xf32, #tpu.memory_space<vmem>>, %arg7: memref<1x32xf32, #tpu.memory_space<vmem>>, %arg8: memref<1x32xf32, #tpu.memory_space<vmem>>) attributes {dimension_semantics = [#tpu.dimension_semantics<arbitrary>], iteration_bounds = array<i64: 1>, scalar_prefetch = 0 : i64, scratch_operands = 0 : i64, tpu.core_type = #tpu.core_type<tc>, window_params = [{pipeline_mode = #tpu.pipeline_mode<synchronous>, transform_indices = @transform_0, window_bounds = array<i64: 1, 4>}, {pipeline_mode = #tpu.pipeline_mode<synchronous>, transform_indices = @transform_1, window_bounds = array<i64: 4, 32>}, {pipeline_mode = #tpu.pipeline_mode<synchronous>, transform_indices = @transform_2, window_bounds = array<i64: 1, 32>}, {pipeline_mode = #tpu.pipeline_mode<synchronous>, transform_indices = @transform_3, window_bounds = array<i64: 32, 32>}, {pipeline_mode = #tpu.pipeline_mode<synchronous>, transform_indices = @transform_4, window_bounds = array<i64: 1, 32>}, {pipeline_mode = #tpu.pipeline_mode<synchronous>, transform_indices = @transform_5, window_bounds = array<i64: 32, 32>}, {pipeline_mode = #tpu.pipeline_mode<synchronous>, transform_indices = @transform_6, window_bounds = array<i64: 1, 32>}, {pipeline_mode = #tpu.pipeline_mode<synchronous>, transform_indices = @transform_7, window_bounds = array<i64: 1, 32>}]} {
    %c0 = arith.constant 0 : index
    %c0_0 = arith.constant 0 : index
    %0 = vector.load %arg1[%c0, %c0_0] : memref<1x4xf32, #tpu.memory_space<vmem>>, vector<1x4xf32>
    %c0_1 = arith.constant 0 : index
    %c0_2 = arith.constant 0 : index
    %1 = vector.load %arg2[%c0_1, %c0_2] : memref<4x32xf32, #tpu.memory_space<vmem>>, vector<4x32xf32>
    %cst = arith.constant dense<0.000000e+00> : vector<1x32xf32>
    %2 = tpu.matmul %0, %1, %cst {dimension_numbers = #tpu.dot_dimension_numbers<[1], [0], [0], [1], [0, 0, 1, 1], [], []>} : vector<1x4xf32>, vector<4x32xf32>, vector<1x32xf32> -> vector<1x32xf32>
    %c0_3 = arith.constant 0 : index
    %c0_4 = arith.constant 0 : index
    %3 = vector.load %arg3[%c0_3, %c0_4] : memref<1x32xf32, #tpu.memory_space<vmem>>, vector<1x32xf32>
    %4 = arith.addf %2, %3 : vector<1x32xf32>
    %cst_5 = arith.constant 0.000000e+00 : f32
    %5 = vector.broadcast %cst_5 : f32 to vector<1x32xf32>
    %6 = arith.maximumf %4, %5 : vector<1x32xf32>
    %c0_6 = arith.constant 0 : index
    %c0_7 = arith.constant 0 : index
    %7 = vector.load %arg4[%c0_6, %c0_7] : memref<32x32xf32, #tpu.memory_space<vmem>>, vector<32x32xf32>
    %cst_8 = arith.constant dense<0.000000e+00> : vector<1x32xf32>
    %8 = tpu.matmul %6, %7, %cst_8 {dimension_numbers = #tpu.dot_dimension_numbers<[1], [0], [0], [1], [0, 0, 1, 1], [], []>} : vector<1x32xf32>, vector<32x32xf32>, vector<1x32xf32> -> vector<1x32xf32>
    %c0_9 = arith.constant 0 : index
    %c0_10 = arith.constant 0 : index
    %9 = vector.load %arg5[%c0_9, %c0_10] : memref<1x32xf32, #tpu.memory_space<vmem>>, vector<1x32xf32>
    %10 = arith.addf %8, %9 : vector<1x32xf32>
    %cst_11 = arith.constant 0.000000e+00 : f32
    %11 = vector.broadcast %cst_11 : f32 to vector<1x32xf32>
    %12 = arith.maximumf %10, %11 : vector<1x32xf32>
    %c0_12 = arith.constant 0 : index
    %c0_13 = arith.constant 0 : index
    %13 = vector.load %arg6[%c0_12, %c0_13] : memref<32x32xf32, #tpu.memory_space<vmem>>, vector<32x32xf32>
    %cst_14 = arith.constant dense<0.000000e+00> : vector<1x32xf32>
    %14 = tpu.matmul %12, %13, %cst_14 {dimension_numbers = #tpu.dot_dimension_numbers<[1], [0], [0], [1], [0, 0, 1, 1], [], []>} : vector<1x32xf32>, vector<32x32xf32>, vector<1x32xf32> -> vector<1x32xf32>
    %c0_15 = arith.constant 0 : index
    %c0_16 = arith.constant 0 : index
    %15 = vector.load %arg7[%c0_15, %c0_16] : memref<1x32xf32, #tpu.memory_space<vmem>>, vector<1x32xf32>
    %16 = arith.addf %14, %15 : vector<1x32xf32>
    %c0_17 = arith.constant 0 : index
    %c0_18 = arith.constant 0 : index
    %17 = vector.load %arg8[%c0_17, %c0_18] : memref<1x32xf32, #tpu.memory_space<vmem>>, vector<1x32xf32>
    tpu.vector_store %arg8[%c0_17, %c0_18], %16 {strides = array<i32>} : memref<1x32xf32, #tpu.memory_space<vmem>>, vector<1x32xf32>,
    return
  }
  func.func @transform_0(%arg0: i32) -> (i32, i32) {
    %c0_i32 = arith.constant 0 : i32
    %c0_i32_0 = arith.constant 0 : i32
    %c0_i32_1 = arith.constant 0 : i32
    return %c0_i32, %c0_i32_0 : i32, i32
  }
  func.func @transform_1(%arg0: i32) -> (i32, i32) {
    %c0_i32 = arith.constant 0 : i32
    %c0_i32_0 = arith.constant 0 : i32
    %c0_i32_1 = arith.constant 0 : i32
    return %c0_i32, %c0_i32_0 : i32, i32
  }
  func.func @transform_2(%arg0: i32) -> (i32, i32) {
    %c0_i32 = arith.constant 0 : i32
    %c0_i32_0 = arith.constant 0 : i32
    %c0_i32_1 = arith.constant 0 : i32
    return %c0_i32, %c0_i32_0 : i32, i32
  }
  func.func @transform_3(%arg0: i32) -> (i32, i32) {
    %c0_i32 = arith.constant 0 : i32
    %c0_i32_0 = arith.constant 0 : i32
    %c0_i32_1 = arith.constant 0 : i32
    return %c0_i32, %c0_i32_0 : i32, i32
  }
  func.func @transform_4(%arg0: i32) -> (i32, i32) {
    %c0_i32 = arith.constant 0 : i32
    %c0_i32_0 = arith.constant 0 : i32
    %c0_i32_1 = arith.constant 0 : i32
    return %c0_i32, %c0_i32_0 : i32, i32
  }
  func.func @transform_5(%arg0: i32) -> (i32, i32) {
    %c0_i32 = arith.constant 0 : i32
    %c0_i32_0 = arith.constant 0 : i32
    %c0_i32_1 = arith.constant 0 : i32
    return %c0_i32, %c0_i32_0 : i32, i32
  }
  func.func @transform_6(%arg0: i32) -> (i32, i32) {
    %c0_i32 = arith.constant 0 : i32
    %c0_i32_0 = arith.constant 0 : i32
    %c0_i32_1 = arith.constant 0 : i32
    return %c0_i32, %c0_i32_0 : i32, i32
  }
  func.func @transform_7(%arg0: i32) -> (i32, i32) {
    %c0_i32 = arith.constant 0 : i32
    %c0_i32_0 = arith.constant 0 : i32
    %c0_i32_1 = arith.constant 0 : i32
    return %c0_i32, %c0_i32_0 : i32, i32
  }
}

module attributes {stable_mosaic.version = 11 : i64} {
  func.func @_conv_relu_pool_kernel(%arg0: i32, %arg1: memref<1x800x75xf32, #tpu.memory_space<vmem>>, %arg2: memref<75x128xf32, #tpu.memory_space<vmem>>, %arg3: memref<1x128xf32, #tpu.memory_space<vmem>>, %arg4: memref<1x200x128xf32, #tpu.memory_space<vmem>>) attributes {dimension_semantics = [#tpu.dimension_semantics<parallel>], iteration_bounds = array<i64: 2>, scalar_prefetch = 0 : i64, scratch_operands = 0 : i64, tpu.core_type = #tpu.core_type<tc>, window_params = [{transform_indices = @transform_0, window_bounds = array<i64: 1, 800, 75>}, {pipeline_mode = #tpu.pipeline_mode<synchronous>, transform_indices = @transform_1, window_bounds = array<i64: 75, 128>}, {pipeline_mode = #tpu.pipeline_mode<synchronous>, transform_indices = @transform_2, window_bounds = array<i64: 1, 128>}, {transform_indices = @transform_3, window_bounds = array<i64: 1, 200, 128>}]} {
    %c0 = arith.constant 0 : index
    %c0_0 = arith.constant 0 : index
    %c0_1 = arith.constant 0 : index
    %0 = vector.load %arg1[%c0, %c0_0, %c0_1] : memref<1x800x75xf32, #tpu.memory_space<vmem>>, vector<1x800x75xf32>
    %1 = vector.shape_cast %0 : vector<1x800x75xf32> to vector<800x75xf32>
    %c0_2 = arith.constant 0 : index
    %c0_3 = arith.constant 0 : index
    %2 = vector.load %arg2[%c0_2, %c0_3] : memref<75x128xf32, #tpu.memory_space<vmem>>, vector<75x128xf32>
    %cst = arith.constant dense<0.000000e+00> : vector<800x128xf32>
    %3 = tpu.matmul %1, %2, %cst {dimension_numbers = #tpu.dot_dimension_numbers<[1], [0], [0], [1], [0, 0, 1, 1], [], []>} : vector<800x75xf32>, vector<75x128xf32>, vector<800x128xf32> -> vector<800x128xf32>
    %c0_4 = arith.constant 0 : index
    %c0_5 = arith.constant 0 : index
    %4 = vector.load %arg3[%c0_4, %c0_5] : memref<1x128xf32, #tpu.memory_space<vmem>>, vector<1x128xf32>
    %5 = vector.broadcast %4 : vector<1x128xf32> to vector<800x128xf32>
    %6 = arith.addf %3, %5 : vector<800x128xf32>
    %cst_6 = arith.constant 0.000000e+00 : f32
    %7 = vector.broadcast %cst_6 : f32 to vector<800x128xf32>
    %8 = arith.maximumf %6, %7 : vector<800x128xf32>
    %9 = vector.extract_strided_slice %8 {offsets = [0, 0], sizes = [200, 128], strides = [1, 1]} : vector<800x128xf32> to vector<200x128xf32>
    %10 = vector.extract_strided_slice %8 {offsets = [200, 0], sizes = [200, 128], strides = [1, 1]} : vector<800x128xf32> to vector<200x128xf32>
    %11 = vector.extract_strided_slice %8 {offsets = [400, 0], sizes = [200, 128], strides = [1, 1]} : vector<800x128xf32> to vector<200x128xf32>
    %12 = vector.extract_strided_slice %8 {offsets = [600, 0], sizes = [200, 128], strides = [1, 1]} : vector<800x128xf32> to vector<200x128xf32>
    %13 = arith.maximumf %9, %10 : vector<200x128xf32>
    %14 = arith.maximumf %11, %12 : vector<200x128xf32>
    %15 = arith.maximumf %13, %14 : vector<200x128xf32>
    %c0_7 = arith.constant 0 : index
    %c0_8 = arith.constant 0 : index
    %c0_9 = arith.constant 0 : index
    %16 = vector.load %arg4[%c0_7, %c0_8, %c0_9] : memref<1x200x128xf32, #tpu.memory_space<vmem>>, vector<1x200x128xf32>
    %17 = vector.shape_cast %16 : vector<1x200x128xf32> to vector<200x128xf32>
    %18 = vector.shape_cast %15 : vector<200x128xf32> to vector<1x200x128xf32>
    tpu.vector_store %arg4[%c0_7, %c0_8, %c0_9], %18 {strides = array<i32>} : memref<1x200x128xf32, #tpu.memory_space<vmem>>, vector<1x200x128xf32>,
    return
  }
  func.func @transform_0(%arg0: i32) -> (i32, i32, i32) {
    %c0_i32 = arith.constant 0 : i32
    %c0_i32_0 = arith.constant 0 : i32
    %c0_i32_1 = arith.constant 0 : i32
    return %arg0, %c0_i32, %c0_i32_0 : i32, i32, i32
  }
  func.func @transform_1(%arg0: i32) -> (i32, i32) {
    %c0_i32 = arith.constant 0 : i32
    %c0_i32_0 = arith.constant 0 : i32
    %c0_i32_1 = arith.constant 0 : i32
    return %c0_i32, %c0_i32_0 : i32, i32
  }
  func.func @transform_2(%arg0: i32) -> (i32, i32) {
    %c0_i32 = arith.constant 0 : i32
    %c0_i32_0 = arith.constant 0 : i32
    %c0_i32_1 = arith.constant 0 : i32
    return %c0_i32, %c0_i32_0 : i32, i32
  }
  func.func @transform_3(%arg0: i32) -> (i32, i32, i32) {
    %c0_i32 = arith.constant 0 : i32
    %c0_i32_0 = arith.constant 0 : i32
    %c0_i32_1 = arith.constant 0 : i32
    return %arg0, %c0_i32, %c0_i32_0 : i32, i32, i32
  }
}

module attributes {stable_mosaic.version = 11 : i64} {
  func.func @_conv_relu_pool_kernel(%arg0: i32, %arg1: memref<1x128x200xf32, #tpu.memory_space<vmem>>, %arg2: memref<200x128xf32, #tpu.memory_space<vmem>>, %arg3: memref<1x128xf32, #tpu.memory_space<vmem>>, %arg4: memref<1x32x128xf32, #tpu.memory_space<vmem>>) attributes {dimension_semantics = [#tpu.dimension_semantics<parallel>], iteration_bounds = array<i64: 2>, scalar_prefetch = 0 : i64, scratch_operands = 0 : i64, tpu.core_type = #tpu.core_type<tc>, window_params = [{transform_indices = @transform_0, window_bounds = array<i64: 1, 128, 200>}, {pipeline_mode = #tpu.pipeline_mode<synchronous>, transform_indices = @transform_1, window_bounds = array<i64: 200, 128>}, {pipeline_mode = #tpu.pipeline_mode<synchronous>, transform_indices = @transform_2, window_bounds = array<i64: 1, 128>}, {transform_indices = @transform_3, window_bounds = array<i64: 1, 32, 128>}]} {
    %c0 = arith.constant 0 : index
    %c0_0 = arith.constant 0 : index
    %c0_1 = arith.constant 0 : index
    %0 = vector.load %arg1[%c0, %c0_0, %c0_1] : memref<1x128x200xf32, #tpu.memory_space<vmem>>, vector<1x128x200xf32>
    %1 = vector.shape_cast %0 : vector<1x128x200xf32> to vector<128x200xf32>
    %c0_2 = arith.constant 0 : index
    %c0_3 = arith.constant 0 : index
    %2 = vector.load %arg2[%c0_2, %c0_3] : memref<200x128xf32, #tpu.memory_space<vmem>>, vector<200x128xf32>
    %cst = arith.constant dense<0.000000e+00> : vector<128x128xf32>
    %3 = tpu.matmul %1, %2, %cst {dimension_numbers = #tpu.dot_dimension_numbers<[1], [0], [0], [1], [0, 0, 1, 1], [], []>} : vector<128x200xf32>, vector<200x128xf32>, vector<128x128xf32> -> vector<128x128xf32>
    %c0_4 = arith.constant 0 : index
    %c0_5 = arith.constant 0 : index
    %4 = vector.load %arg3[%c0_4, %c0_5] : memref<1x128xf32, #tpu.memory_space<vmem>>, vector<1x128xf32>
    %5 = vector.broadcast %4 : vector<1x128xf32> to vector<128x128xf32>
    %6 = arith.addf %3, %5 : vector<128x128xf32>
    %cst_6 = arith.constant 0.000000e+00 : f32
    %7 = vector.broadcast %cst_6 : f32 to vector<128x128xf32>
    %8 = arith.maximumf %6, %7 : vector<128x128xf32>
    %9 = vector.extract_strided_slice %8 {offsets = [0, 0], sizes = [32, 128], strides = [1, 1]} : vector<128x128xf32> to vector<32x128xf32>
    %10 = vector.extract_strided_slice %8 {offsets = [32, 0], sizes = [32, 128], strides = [1, 1]} : vector<128x128xf32> to vector<32x128xf32>
    %11 = vector.extract_strided_slice %8 {offsets = [64, 0], sizes = [32, 128], strides = [1, 1]} : vector<128x128xf32> to vector<32x128xf32>
    %12 = vector.extract_strided_slice %8 {offsets = [96, 0], sizes = [32, 128], strides = [1, 1]} : vector<128x128xf32> to vector<32x128xf32>
    %13 = arith.maximumf %9, %10 : vector<32x128xf32>
    %14 = arith.maximumf %11, %12 : vector<32x128xf32>
    %15 = arith.maximumf %13, %14 : vector<32x128xf32>
    %c0_7 = arith.constant 0 : index
    %c0_8 = arith.constant 0 : index
    %c0_9 = arith.constant 0 : index
    %16 = vector.load %arg4[%c0_7, %c0_8, %c0_9] : memref<1x32x128xf32, #tpu.memory_space<vmem>>, vector<1x32x128xf32>
    %17 = vector.shape_cast %16 : vector<1x32x128xf32> to vector<32x128xf32>
    %18 = vector.shape_cast %15 : vector<32x128xf32> to vector<1x32x128xf32>
    tpu.vector_store %arg4[%c0_7, %c0_8, %c0_9], %18 {strides = array<i32>} : memref<1x32x128xf32, #tpu.memory_space<vmem>>, vector<1x32x128xf32>,
    return
  }
  func.func @transform_0(%arg0: i32) -> (i32, i32, i32) {
    %c0_i32 = arith.constant 0 : i32
    %c0_i32_0 = arith.constant 0 : i32
    %c0_i32_1 = arith.constant 0 : i32
    return %arg0, %c0_i32, %c0_i32_0 : i32, i32, i32
  }
  func.func @transform_1(%arg0: i32) -> (i32, i32) {
    %c0_i32 = arith.constant 0 : i32
    %c0_i32_0 = arith.constant 0 : i32
    %c0_i32_1 = arith.constant 0 : i32
    return %c0_i32, %c0_i32_0 : i32, i32
  }
  func.func @transform_2(%arg0: i32) -> (i32, i32) {
    %c0_i32 = arith.constant 0 : i32
    %c0_i32_0 = arith.constant 0 : i32
    %c0_i32_1 = arith.constant 0 : i32
    return %c0_i32, %c0_i32_0 : i32, i32
  }
  func.func @transform_3(%arg0: i32) -> (i32, i32, i32) {
    %c0_i32 = arith.constant 0 : i32
    %c0_i32_0 = arith.constant 0 : i32
    %c0_i32_1 = arith.constant 0 : i32
    return %arg0, %c0_i32, %c0_i32_0 : i32, i32, i32
  }
}

module attributes {stable_mosaic.version = 11 : i64} {
  func.func @_fc_ce_kernel(%arg0: i32, %arg1: memref<2x400xf32, #tpu.memory_space<vmem>>, %arg2: memref<400x120xf32, #tpu.memory_space<vmem>>, %arg3: memref<1x120xf32, #tpu.memory_space<vmem>>, %arg4: memref<120x84xf32, #tpu.memory_space<vmem>>, %arg5: memref<1x84xf32, #tpu.memory_space<vmem>>, %arg6: memref<84x16xf32, #tpu.memory_space<vmem>>, %arg7: memref<1x16xf32, #tpu.memory_space<vmem>>, %arg8: memref<2x1xi32, #tpu.memory_space<vmem>>, %arg9: memref<2x16xf32, #tpu.memory_space<vmem>>, %arg10: memref<1x1xf32, #tpu.memory_space<vmem>>) attributes {dimension_semantics = [#tpu.dimension_semantics<arbitrary>], iteration_bounds = array<i64: 1>, scalar_prefetch = 0 : i64, scratch_operands = 0 : i64, tpu.core_type = #tpu.core_type<tc>, window_params = [{pipeline_mode = #tpu.pipeline_mode<synchronous>, transform_indices = @transform_0, window_bounds = array<i64: 2, 400>}, {pipeline_mode = #tpu.pipeline_mode<synchronous>, transform_indices = @transform_1, window_bounds = array<i64: 400, 120>}, {pipeline_mode = #tpu.pipeline_mode<synchronous>, transform_indices = @transform_2, window_bounds = array<i64: 1, 120>}, {pipeline_mode = #tpu.pipeline_mode<synchronous>, transform_indices = @transform_3, window_bounds = array<i64: 120, 84>}, {pipeline_mode = #tpu.pipeline_mode<synchronous>, transform_indices = @transform_4, window_bounds = array<i64: 1, 84>}, {pipeline_mode = #tpu.pipeline_mode<synchronous>, transform_indices = @transform_5, window_bounds = array<i64: 84, 16>}, {pipeline_mode = #tpu.pipeline_mode<synchronous>, transform_indices = @transform_6, window_bounds = array<i64: 1, 16>}, {pipeline_mode = #tpu.pipeline_mode<synchronous>, transform_indices = @transform_7, window_bounds = array<i64: 2, 1>}, {pipeline_mode = #tpu.pipeline_mode<synchronous>, transform_indices = @transform_8, window_bounds = array<i64: 2, 16>}, {pipeline_mode = #tpu.pipeline_mode<synchronous>, transform_indices = @transform_9, window_bounds = array<i64: 1, 1>}]} {
    %c0 = arith.constant 0 : index
    %c0_0 = arith.constant 0 : index
    %0 = vector.load %arg1[%c0, %c0_0] : memref<2x400xf32, #tpu.memory_space<vmem>>, vector<2x400xf32>
    %c0_1 = arith.constant 0 : index
    %c0_2 = arith.constant 0 : index
    %1 = vector.load %arg2[%c0_1, %c0_2] : memref<400x120xf32, #tpu.memory_space<vmem>>, vector<400x120xf32>
    %cst = arith.constant dense<0.000000e+00> : vector<2x120xf32>
    %2 = tpu.matmul %0, %1, %cst {dimension_numbers = #tpu.dot_dimension_numbers<[1], [0], [0], [1], [0, 0, 1, 1], [], []>} : vector<2x400xf32>, vector<400x120xf32>, vector<2x120xf32> -> vector<2x120xf32>
    %c0_3 = arith.constant 0 : index
    %c0_4 = arith.constant 0 : index
    %3 = vector.load %arg3[%c0_3, %c0_4] : memref<1x120xf32, #tpu.memory_space<vmem>>, vector<1x120xf32>
    %4 = vector.broadcast %3 : vector<1x120xf32> to vector<2x120xf32>
    %5 = arith.addf %2, %4 : vector<2x120xf32>
    %cst_5 = arith.constant 0.000000e+00 : f32
    %6 = vector.broadcast %cst_5 : f32 to vector<2x120xf32>
    %7 = arith.maximumf %5, %6 : vector<2x120xf32>
    %c0_6 = arith.constant 0 : index
    %c0_7 = arith.constant 0 : index
    %8 = vector.load %arg4[%c0_6, %c0_7] : memref<120x84xf32, #tpu.memory_space<vmem>>, vector<120x84xf32>
    %cst_8 = arith.constant dense<0.000000e+00> : vector<2x84xf32>
    %9 = tpu.matmul %7, %8, %cst_8 {dimension_numbers = #tpu.dot_dimension_numbers<[1], [0], [0], [1], [0, 0, 1, 1], [], []>} : vector<2x120xf32>, vector<120x84xf32>, vector<2x84xf32> -> vector<2x84xf32>
    %c0_9 = arith.constant 0 : index
    %c0_10 = arith.constant 0 : index
    %10 = vector.load %arg5[%c0_9, %c0_10] : memref<1x84xf32, #tpu.memory_space<vmem>>, vector<1x84xf32>
    %11 = vector.broadcast %10 : vector<1x84xf32> to vector<2x84xf32>
    %12 = arith.addf %9, %11 : vector<2x84xf32>
    %cst_11 = arith.constant 0.000000e+00 : f32
    %13 = vector.broadcast %cst_11 : f32 to vector<2x84xf32>
    %14 = arith.maximumf %12, %13 : vector<2x84xf32>
    %c0_12 = arith.constant 0 : index
    %c0_13 = arith.constant 0 : index
    %15 = vector.load %arg6[%c0_12, %c0_13] : memref<84x16xf32, #tpu.memory_space<vmem>>, vector<84x16xf32>
    %cst_14 = arith.constant dense<0.000000e+00> : vector<2x16xf32>
    %16 = tpu.matmul %14, %15, %cst_14 {dimension_numbers = #tpu.dot_dimension_numbers<[1], [0], [0], [1], [0, 0, 1, 1], [], []>} : vector<2x84xf32>, vector<84x16xf32>, vector<2x16xf32> -> vector<2x16xf32>
    %c0_15 = arith.constant 0 : index
    %c0_16 = arith.constant 0 : index
    %17 = vector.load %arg7[%c0_15, %c0_16] : memref<1x16xf32, #tpu.memory_space<vmem>>, vector<1x16xf32>
    %18 = vector.broadcast %17 : vector<1x16xf32> to vector<2x16xf32>
    %19 = arith.addf %16, %18 : vector<2x16xf32>
    %c0_17 = arith.constant 0 : index
    %c0_18 = arith.constant 0 : index
    %20 = vector.load %arg9[%c0_17, %c0_18] : memref<2x16xf32, #tpu.memory_space<vmem>>, vector<2x16xf32>
    tpu.vector_store %arg9[%c0_17, %c0_18], %19 {strides = array<i32>} : memref<2x16xf32, #tpu.memory_space<vmem>>, vector<2x16xf32>,
    %cst_19 = arith.constant dense<0xFF800000> : vector<2xf32>
    %21 = vector.multi_reduction <maximumf>, %19, %cst_19 [1] : vector<2x16xf32> to vector<2xf32>
    %22 = vector.shape_cast %21 : vector<2xf32> to vector<2x1xf32>
    %23 = vector.broadcast %22 : vector<2x1xf32> to vector<2x16xf32>
    %24 = arith.subf %19, %23 : vector<2x16xf32>
    %25 = math.exp %24 : vector<2x16xf32>
    %cst_20 = arith.constant dense<0.000000e+00> : vector<2xf32>
    %26 = vector.multi_reduction <add>, %25, %cst_20 [1] : vector<2x16xf32> to vector<2xf32>
    %27 = vector.shape_cast %26 : vector<2xf32> to vector<2x1xf32>
    %28 = math.log %27 : vector<2x1xf32>
    %29 = arith.addf %22, %28 : vector<2x1xf32>
    %30 = tpu.iota {dimensions = array<i32: 1>} : vector<2x16xi32>
    %c0_21 = arith.constant 0 : index
    %c0_22 = arith.constant 0 : index
    %31 = vector.load %arg8[%c0_21, %c0_22] : memref<2x1xi32, #tpu.memory_space<vmem>>, vector<2x1xi32>
    %32 = vector.broadcast %31 : vector<2x1xi32> to vector<2x16xi32>
    %33 = arith.cmpi eq, %30, %32 : vector<2x16xi32>
    %34 = arith.extui %33 : vector<2x16xi1> to vector<2x16xi32>
    %35 = arith.sitofp %34 : vector<2x16xi32> to vector<2x16xf32>
    %36 = arith.mulf %19, %35 : vector<2x16xf32>
    %cst_23 = arith.constant dense<0.000000e+00> : vector<2xf32>
    %37 = vector.multi_reduction <add>, %36, %cst_23 [1] : vector<2x16xf32> to vector<2xf32>
    %38 = vector.shape_cast %37 : vector<2xf32> to vector<2x1xf32>
    %39 = arith.subf %29, %38 : vector<2x1xf32>
    %cst_24 = arith.constant dense<0.000000e+00> : vector<1xf32>
    %40 = vector.multi_reduction <add>, %39, %cst_24 [0] : vector<2x1xf32> to vector<1xf32>
    %41 = vector.shape_cast %40 : vector<1xf32> to vector<1x1xf32>
    %cst_25 = arith.constant 5.000000e-01 : f32
    %42 = vector.broadcast %cst_25 : f32 to vector<1x1xf32>
    %43 = arith.mulf %41, %42 : vector<1x1xf32>
    %c0_26 = arith.constant 0 : index
    %c0_27 = arith.constant 0 : index
    %44 = vector.load %arg10[%c0_26, %c0_27] : memref<1x1xf32, #tpu.memory_space<vmem>>, vector<1x1xf32>
    tpu.vector_store %arg10[%c0_26, %c0_27], %43 {strides = array<i32>} : memref<1x1xf32, #tpu.memory_space<vmem>>, vector<1x1xf32>,
    return
  }
  func.func @transform_0(%arg0: i32) -> (i32, i32) {
    %c0_i32 = arith.constant 0 : i32
    %c0_i32_0 = arith.constant 0 : i32
    %c0_i32_1 = arith.constant 0 : i32
    return %c0_i32, %c0_i32_0 : i32, i32
  }
  func.func @transform_1(%arg0: i32) -> (i32, i32) {
    %c0_i32 = arith.constant 0 : i32
    %c0_i32_0 = arith.constant 0 : i32
    %c0_i32_1 = arith.constant 0 : i32
    return %c0_i32, %c0_i32_0 : i32, i32
  }
  func.func @transform_2(%arg0: i32) -> (i32, i32) {
    %c0_i32 = arith.constant 0 : i32
    %c0_i32_0 = arith.constant 0 : i32
    %c0_i32_1 = arith.constant 0 : i32
    return %c0_i32, %c0_i32_0 : i32, i32
  }
  func.func @transform_3(%arg0: i32) -> (i32, i32) {
    %c0_i32 = arith.constant 0 : i32
    %c0_i32_0 = arith.constant 0 : i32
    %c0_i32_1 = arith.constant 0 : i32
    return %c0_i32, %c0_i32_0 : i32, i32
  }
  func.func @transform_4(%arg0: i32) -> (i32, i32) {
    %c0_i32 = arith.constant 0 : i32
    %c0_i32_0 = arith.constant 0 : i32
    %c0_i32_1 = arith.constant 0 : i32
    return %c0_i32, %c0_i32_0 : i32, i32
  }
  func.func @transform_5(%arg0: i32) -> (i32, i32) {
    %c0_i32 = arith.constant 0 : i32
    %c0_i32_0 = arith.constant 0 : i32
    %c0_i32_1 = arith.constant 0 : i32
    return %c0_i32, %c0_i32_0 : i32, i32
  }
  func.func @transform_6(%arg0: i32) -> (i32, i32) {
    %c0_i32 = arith.constant 0 : i32
    %c0_i32_0 = arith.constant 0 : i32
    %c0_i32_1 = arith.constant 0 : i32
    return %c0_i32, %c0_i32_0 : i32, i32
  }
  func.func @transform_7(%arg0: i32) -> (i32, i32) {
    %c0_i32 = arith.constant 0 : i32
    %c0_i32_0 = arith.constant 0 : i32
    %c0_i32_1 = arith.constant 0 : i32
    return %c0_i32, %c0_i32_0 : i32, i32
  }
  func.func @transform_8(%arg0: i32) -> (i32, i32) {
    %c0_i32 = arith.constant 0 : i32
    %c0_i32_0 = arith.constant 0 : i32
    %c0_i32_1 = arith.constant 0 : i32
    return %c0_i32, %c0_i32_0 : i32, i32
  }
  func.func @transform_9(%arg0: i32) -> (i32, i32) {
    %c0_i32 = arith.constant 0 : i32
    %c0_i32_0 = arith.constant 0 : i32
    %c0_i32_1 = arith.constant 0 : i32
    return %c0_i32, %c0_i32_0 : i32, i32
  }
}

</mosaic_0001>

<bundles_post_ra>
// kernel: forward.6
= control target key start
LH: loop header
LB: loop body
LE: loop exit
PB: predicated region body
PF: predicated region fallthrough
CT: control target
= control target key end

     0   :  { %s3670_s12 = smov 0   ;;  %s3672_s13 = smov 0   ;;  %s4370_s0 = inlined_call_operand.vmem [shape: f32[1,32], index: 0, kind: input, shape index: {}]   ;;  %s4371_s1 = inlined_call_operand.vmem [shape: bf16[32,65536], index: 1, kind: input, shape index: {}]   ;;  %s4372_s2 = inlined_call_operand.vmem [shape: f32[1,65536], index: 2, kind: input, shape index: {}]   ;;  %s4373_s3 = inlined_call_operand.vmem [shape: f32[1,65536], index: 3, kind: output, shape index: {}]  }
   0x1   :  { %s3674_s14 = smov 0  }
   0x2 LB: > { %s3424_s15 = sadd.s32 4294967295, %s3646_s14   ;;  %s3687_s16 = sadd.s32 1, %s3646_s14   ;;  %s3646_s14 = sphi %s3674_s14, %s4376_s14   ;;  %s3642_s13 = sphi %s3672_s13, %s4375_s13   ;;  %s3638_s12 = sphi %s3670_s12, %s4374_s12  }
   0x3   : > { %s38_s17 = ssub.s32 %s3646_s14, %s3687_s16  ;;  %s41_s18 = sadd.s32 1, %s3642_s13 }
   0x4   : > { %p39_p0 = scmp.eq.s32.totalorder %s38_s17, 0  ;;  %p48_p1 = scmp.ne.s32.totalorder %s3642_s13, %s3638_s12 }
   0x5   : > { %p49_p2 = scmp.eq.s32.totalorder %s3646_s14, 0  ;;  %p3427_p4 = scmp.ge.s32.totalorder %s3646_s14, 8 }
   0x6   : > { %s3696_s19 = scalar_select %p39_p0, %s3642_s13, %s41_s18  }
   0x7   : > { %p50_p3 = por %p49_p2, %p48_p1  ;;  %129 = sbr.rel (%p3427_p4) target bundleno = 82 (0x52), region = 20 }
   0xe   : > { %132 = sbr.rel (!%p50_p3) target bundleno = 82 (0x52), region = 24  ;;  %s134_s20 = sand.u32 (%p50_p3), 1, %s3642_s13  }
   0xf   : > { %s3597_s21 = sshll.u32 (%p50_p3), %s3646_s14, 8  ;;  %s3428_s22 = sshll.u32 (%p50_p3), %s134_s20, 10 }
  0x10   : > { %s3704_s25 = scalar_lea.vmem (%p50_p3), %s4371_s1, %s3597_s21  ;;  %s3709_s26 = scalar_lea.vmem (%p50_p3), [#allocation2], %s3428_s22 }
  0x11   : > { %v152_v0 = vld [vmem:[%s3704_s25] sm:$0xff] (%p50_p3)  ;;  %v154_v1 = vld [vmem:[%s3704_s25 + $0x8] sm:$0xff] (%p50_p3)  ;;  %v156_v2 = vld [vmem:[%s3704_s25 + $0x10] sm:$0xff] (%p50_p3) }
  0x12   : > { %153 = vst [vmem:[%s3709_s26] sm:$0xff] (%p50_p3), %v152_v0  ;;  %155 = vst [vmem:[%s3709_s26 + $0x8] sm:$0xff] (%p50_p3), %v154_v1  ;;  %v158_v3 = vld [vmem:[%s3704_s25 + $0x18] sm:$0xff] (%p50_p3)  ;;  %v160_v4 = vld [vmem:[%s3704_s25 + $0x20] sm:$0xff] (%p50_p3) }
  0x13   : > { %157 = vst [vmem:[%s3709_s26 + $0x10] sm:$0xff] (%p50_p3), %v156_v2  ;;  %v162_v5 = vld [vmem:[%s3704_s25 + $0x28] sm:$0xff] (%p50_p3)  ;;  %159 = vst [vmem:[%s3709_s26 + $0x18] sm:$0xff] (%p50_p3), %v158_v3  ;;  %v164_v6 = vld [vmem:[%s3704_s25 + $0x30] sm:$0xff] (%p50_p3) }
  0x14   : > { %161 = vst [vmem:[%s3709_s26 + $0x20] sm:$0xff] (%p50_p3), %v160_v4  ;;  %163 = vst [vmem:[%s3709_s26 + $0x28] sm:$0xff] (%p50_p3), %v162_v5  ;;  %v166_v7 = vld [vmem:[%s3704_s25 + $0x38] sm:$0xff] (%p50_p3)  ;;  %v168_v8 = vld [vmem:[%s3704_s25 + $0x40] sm:$0xff] (%p50_p3) }
  0x15   : > { %165 = vst [vmem:[%s3709_s26 + $0x30] sm:$0xff] %v164_v6  ;;  %167 = vst [vmem:[%s3709_s26 + $0x38] sm:$0xff] %v166_v7  ;;  %v170_v9 = vld [vmem:[%s3704_s25 + $0x48] sm:$0xff]  ;;  %v172_v10 = vld [vmem:[%s3704_s25 + $0x50] sm:$0xff] }
  0x16   : > { %169 = vst [vmem:[%s3709_s26 + $0x40] sm:$0xff] %v168_v8  ;;  %v174_v11 = vld [vmem:[%s3704_s25 + $0x58] sm:$0xff]  ;;  %171 = vst [vmem:[%s3709_s26 + $0x48] sm:$0xff] %v170_v9  ;;  %v176_v12 = vld [vmem:[%s3704_s25 + $0x60] sm:$0xff] }
  0x17   : > { %173 = vst [vmem:[%s3709_s26 + $0x50] sm:$0xff] %v172_v10  ;;  %175 = vst [vmem:[%s3709_s26 + $0x58] sm:$0xff] %v174_v11  ;;  %v178_v13 = vld [vmem:[%s3704_s25 + $0x68] sm:$0xff]  ;;  %v180_v14 = vld [vmem:[%s3704_s25 + $0x70] sm:$0xff] }
  0x18   : > { %177 = vst [vmem:[%s3709_s26 + $0x60] sm:$0xff] %v176_v12  ;;  %179 = vst [vmem:[%s3709_s26 + $0x68] sm:$0xff] %v178_v13  ;;  %v182_v15 = vld [vmem:[%s3704_s25 + $0x78] sm:$0xff]  ;;  %v184_v16 = vld [vmem:[%s3704_s25 + $0x80] sm:$0xff] }
  0x19   : > { %181 = vst [vmem:[%s3709_s26 + $0x70] sm:$0xff] %v180_v14  ;;  %v186_v17 = vld [vmem:[%s3704_s25 + $0x88] sm:$0xff]  ;;  %183 = vst [vmem:[%s3709_s26 + $0x78] sm:$0xff] %v182_v15  ;;  %v188_v18 = vld [vmem:[%s3704_s25 + $0x90] sm:$0xff] }
  0x1a   : > { %185 = vst [vmem:[%s3709_s26 + $0x80] sm:$0xff] %v184_v16  ;;  %187 = vst [vmem:[%s3709_s26 + $0x88] sm:$0xff] %v186_v17  ;;  %v190_v19 = vld [vmem:[%s3704_s25 + $0x98] sm:$0xff]  ;;  %v192_v20 = vld [vmem:[%s3704_s25 + $0xa0] sm:$0xff] }
  0x1b   : > { %189 = vst [vmem:[%s3709_s26 + $0x90] sm:$0xff] %v188_v18  ;;  %191 = vst [vmem:[%s3709_s26 + $0x98] sm:$0xff] %v190_v19  ;;  %v194_v21 = vld [vmem:[%s3704_s25 + $0xa8] sm:$0xff]  ;;  %v196_v22 = vld [vmem:[%s3704_s25 + $0xb0] sm:$0xff] }
  0x1c   : > { %193 = vst [vmem:[%s3709_s26 + $0xa0] sm:$0xff] %v192_v20  ;;  %v198_v23 = vld [vmem:[%s3704_s25 + $0xb8] sm:$0xff]  ;;  %195 = vst [vmem:[%s3709_s26 + $0xa8] sm:$0xff] %v194_v21  ;;  %v200_v24 = vld [vmem:[%s3704_s25 + $0xc0] sm:$0xff] }
  0x1d   : > { %197 = vst [vmem:[%s3709_s26 + $0xb0] sm:$0xff] %v196_v22  ;;  %199 = vst [vmem:[%s3709_s26 + $0xb8] sm:$0xff] %v198_v23  ;;  %v202_v25 = vld [vmem:[%s3704_s25 + $0xc8] sm:$0xff]  ;;  %v204_v26 = vld [vmem:[%s3704_s25 + $0xd0] sm:$0xff] }
  0x1e   : > { %201 = vst [vmem:[%s3709_s26 + $0xc0] sm:$0xff] %v200_v24  ;;  %203 = vst [vmem:[%s3709_s26 + $0xc8] sm:$0xff] %v202_v25  ;;  %v206_v27 = vld [vmem:[%s3704_s25 + $0xd8] sm:$0xff]  ;;  %v208_v28 = vld [vmem:[%s3704_s25 + $0xe0] sm:$0xff] }
  0x1f   : > { %205 = vst [vmem:[%s3709_s26 + $0xd0] sm:$0xff] %v204_v26  ;;  %v210_v29 = vld [vmem:[%s3704_s25 + $0xe8] sm:$0xff]  ;;  %207 = vst [vmem:[%s3709_s26 + $0xd8] sm:$0xff] %v206_v27  ;;  %v212_v30 = vld [vmem:[%s3704_s25 + $0xf0] sm:$0xff] }
  0x20   : > { %209 = vst [vmem:[%s3709_s26 + $0xe0] sm:$0xff] %v208_v28  ;;  %211 = vst [vmem:[%s3709_s26 + $0xe8] sm:$0xff] %v210_v29  ;;  %v214_v31 = vld [vmem:[%s3704_s25 + $0xf8] sm:$0xff]  ;;  %v216_v32 = vld [vmem:[%s3704_s25 + $0x800] sm:$0xff] }
  0x21   : > { %213 = vst [vmem:[%s3709_s26 + $0xf0] sm:$0xff] %v212_v30  ;;  %215 = vst [vmem:[%s3709_s26 + $0xf8] sm:$0xff] %v214_v31  ;;  %v218_v33 = vld [vmem:[%s3704_s25 + $0x808] sm:$0xff]  ;;  %v220_v34 = vld [vmem:[%s3704_s25 + $0x810] sm:$0xff] }
  0x22   : > { %217 = vst [vmem:[%s3709_s26 + $0x100] sm:$0xff] %v216_v32  ;;  %v222_v35 = vld [vmem:[%s3704_s25 + $0x818] sm:$0xff]  ;;  %219 = vst [vmem:[%s3709_s26 + $0x108] sm:$0xff] %v218_v33  ;;  %v224_v36 = vld [vmem:[%s3704_s25 + $0x820] sm:$0xff] }
  0x23   : > { %221 = vst [vmem:[%s3709_s26 + $0x110] sm:$0xff] %v220_v34  ;;  %223 = vst [vmem:[%s3709_s26 + $0x118] sm:$0xff] %v222_v35  ;;  %v226_v37 = vld [vmem:[%s3704_s25 + $0x828] sm:$0xff]  ;;  %v228_v38 = vld [vmem:[%s3704_s25 + $0x830] sm:$0xff] }
  0x24   : > { %225 = vst [vmem:[%s3709_s26 + $0x120] sm:$0xff] %v224_v36  ;;  %227 = vst [vmem:[%s3709_s26 + $0x128] sm:$0xff] %v226_v37  ;;  %v230_v39 = vld [vmem:[%s3704_s25 + $0x838] sm:$0xff]  ;;  %v232_v40 = vld [vmem:[%s3704_s25 + $0x840] sm:$0xff] }
  0x25   : > { %229 = vst [vmem:[%s3709_s26 + $0x130] sm:$0xff] %v228_v38  ;;  %v234_v41 = vld [vmem:[%s3704_s25 + $0x848] sm:$0xff]  ;;  %231 = vst [vmem:[%s3709_s26 + $0x138] sm:$0xff] %v230_v39  ;;  %v236_v42 = vld [vmem:[%s3704_s25 + $0x850] sm:$0xff] }
  0x26   : > { %233 = vst [vmem:[%s3709_s26 + $0x140] sm:$0xff] %v232_v40  ;;  %235 = vst [vmem:[%s3709_s26 + $0x148] sm:$0xff] %v234_v41  ;;  %v238_v43 = vld [vmem:[%s3704_s25 + $0x858] sm:$0xff]  ;;  %v240_v44 = vld [vmem:[%s3704_s25 + $0x860] sm:$0xff] }
  0x27   : > { %237 = vst [vmem:[%s3709_s26 + $0x150] sm:$0xff] %v236_v42  ;;  %239 = vst [vmem:[%s3709_s26 + $0x158] sm:$0xff] %v238_v43  ;;  %v242_v45 = vld [vmem:[%s3704_s25 + $0x868] sm:$0xff]  ;;  %v244_v46 = vld [vmem:[%s3704_s25 + $0x870] sm:$0xff] }
  0x28   : > { %241 = vst [vmem:[%s3709_s26 + $0x160] sm:$0xff] %v240_v44  ;;  %v246_v47 = vld [vmem:[%s3704_s25 + $0x878] sm:$0xff]  ;;  %243 = vst [vmem:[%s3709_s26 + $0x168] sm:$0xff] %v242_v45  ;;  %v248_v48 = vld [vmem:[%s3704_s25 + $0x880] sm:$0xff] }
  0x29   : > { %245 = vst [vmem:[%s3709_s26 + $0x170] sm:$0xff] %v244_v46  ;;  %247 = vst [vmem:[%s3709_s26 + $0x178] sm:$0xff] %v246_v47  ;;  %v250_v49 = vld [vmem:[%s3704_s25 + $0x888] sm:$0xff]  ;;  %v252_v50 = vld [vmem:[%s3704_s25 + $0x890] sm:$0xff] }
  0x2a   : > { %249 = vst [vmem:[%s3709_s26 + $0x180] sm:$0xff] %v248_v48  ;;  %251 = vst [vmem:[%s3709_s26 + $0x188] sm:$0xff] %v250_v49  ;;  %v254_v51 = vld [vmem:[%s3704_s25 + $0x898] sm:$0xff]  ;;  %v256_v52 = vld [vmem:[%s3704_s25 + $0x8a0] sm:$0xff] }
  0x2b   : > { %253 = vst [vmem:[%s3709_s26 + $0x190] sm:$0xff] %v252_v50  ;;  %v258_v53 = vld [vmem:[%s3704_s25 + $0x8a8] sm:$0xff]  ;;  %255 = vst [vmem:[%s3709_s26 + $0x198] sm:$0xff] %v254_v51  ;;  %v260_v54 = vld [vmem:[%s3704_s25 + $0x8b0] sm:$0xff] }
  0x2c   : > { %257 = vst [vmem:[%s3709_s26 + $0x1a0] sm:$0xff] %v256_v52  ;;  %259 = vst [vmem:[%s3709_s26 + $0x1a8] sm:$0xff] %v258_v53  ;;  %v262_v55 = vld [vmem:[%s3704_s25 + $0x8b8] sm:$0xff]  ;;  %v264_v56 = vld [vmem:[%s3704_s25 + $0x8c0] sm:$0xff] }
  0x2d   : > { %261 = vst [vmem:[%s3709_s26 + $0x1b0] sm:$0xff] %v260_v54  ;;  %263 = vst [vmem:[%s3709_s26 + $0x1b8] sm:$0xff] %v262_v55  ;;  %v266_v57 = vld [vmem:[%s3704_s25 + $0x8c8] sm:$0xff]  ;;  %v268_v58 = vld [vmem:[%s3704_s25 + $0x8d0] sm:$0xff] }
  0x2e   : > { %265 = vst [vmem:[%s3709_s26 + $0x1c0] sm:$0xff] %v264_v56  ;;  %v270_v59 = vld [vmem:[%s3704_s25 + $0x8d8] sm:$0xff]  ;;  %267 = vst [vmem:[%s3709_s26 + $0x1c8] sm:$0xff] %v266_v57  ;;  %v272_v60 = vld [vmem:[%s3704_s25 + $0x8e0] sm:$0xff] }
  0x2f   : > { %269 = vst [vmem:[%s3709_s26 + $0x1d0] sm:$0xff] %v268_v58  ;;  %271 = vst [vmem:[%s3709_s26 + $0x1d8] sm:$0xff] %v270_v59  ;;  %v274_v61 = vld [vmem:[%s3704_s25 + $0x8e8] sm:$0xff]  ;;  %v276_v62 = vld [vmem:[%s3704_s25 + $0x8f0] sm:$0xff] }
  0x30   : > { %273 = vst [vmem:[%s3709_s26 + $0x1e0] sm:$0xff] %v272_v60  ;;  %275 = vst [vmem:[%s3709_s26 + $0x1e8] sm:$0xff] %v274_v61  ;;  %v278_v63 = vld [vmem:[%s3704_s25 + $0x8f8] sm:$0xff]  ;;  %v280_v0 = vld [vmem:[%s3704_s25 + $0x1000] sm:$0xff] }
  0x31   : > { %277 = vst [vmem:[%s3709_s26 + $0x1f0] sm:$0xff] %v276_v62  ;;  %v282_v1 = vld [vmem:[%s3704_s25 + $0x1008] sm:$0xff]  ;;  %279 = vst [vmem:[%s3709_s26 + $0x1f8] sm:$0xff] %v278_v63  ;;  %v284_v2 = vld [vmem:[%s3704_s25 + $0x1010] sm:$0xff] }
  0x32   : > { %281 = vst [vmem:[%s3709_s26 + $0x200] sm:$0xff] %v280_v0  ;;  %283 = vst [vmem:[%s3709_s26 + $0x208] sm:$0xff] %v282_v1  ;;  %v286_v3 = vld [vmem:[%s3704_s25 + $0x1018] sm:$0xff]  ;;  %v288_v4 = vld [vmem:[%s3704_s25 + $0x1020] sm:$0xff] }
  0x33   : > { %285 = vst [vmem:[%s3709_s26 + $0x210] sm:$0xff] %v284_v2  ;;  %287 = vst [vmem:[%s3709_s26 + $0x218] sm:$0xff] %v286_v3  ;;  %v290_v5 = vld [vmem:[%s3704_s25 + $0x1028] sm:$0xff]  ;;  %v292_v6 = vld [vmem:[%s3704_s25 + $0x1030] sm:$0xff] }
  0x34   : > { %289 = vst [vmem:[%s3709_s26 + $0x220] sm:$0xff] %v288_v4  ;;  %v294_v7 = vld [vmem:[%s3704_s25 + $0x1038] sm:$0xff]  ;;  %291 = vst [vmem:[%s3709_s26 + $0x228] sm:$0xff] %v290_v5  ;;  %v296_v8 = vld [vmem:[%s3704_s25 + $0x1040] sm:$0xff] }
  0x35   : > { %293 = vst [vmem:[%s3709_s26 + $0x230] sm:$0xff] %v292_v6  ;;  %295 = vst [vmem:[%s3709_s26 + $0x238] sm:$0xff] %v294_v7  ;;  %v298_v9 = vld [vmem:[%s3704_s25 + $0x1048] sm:$0xff]  ;;  %v300_v10 = vld [vmem:[%s3704_s25 + $0x1050] sm:$0xff] }
  0x36   : > { %297 = vst [vmem:[%s3709_s26 + $0x240] sm:$0xff] %v296_v8  ;;  %299 = vst [vmem:[%s3709_s26 + $0x248] sm:$0xff] %v298_v9  ;;  %v302_v11 = vld [vmem:[%s3704_s25 + $0x1058] sm:$0xff]  ;;  %v304_v12 = vld [vmem:[%s3704_s25 + $0x1060] sm:$0xff] }
  0x37   : > { %301 = vst [vmem:[%s3709_s26 + $0x250] sm:$0xff] %v300_v10  ;;  %v306_v13 = vld [vmem:[%s3704_s25 + $0x1068] sm:$0xff]  ;;  %303 = vst [vmem:[%s3709_s26 + $0x258] sm:$0xff] %v302_v11  ;;  %v308_v14 = vld [vmem:[%s3704_s25 + $0x1070] sm:$0xff] }
  0x38   : > { %305 = vst [vmem:[%s3709_s26 + $0x260] sm:$0xff] %v304_v12  ;;  %307 = vst [vmem:[%s3709_s26 + $0x268] sm:$0xff] %v306_v13  ;;  %v310_v15 = vld [vmem:[%s3704_s25 + $0x1078] sm:$0xff]  ;;  %v312_v16 = vld [vmem:[%s3704_s25 + $0x1080] sm:$0xff] }
  0x39   : > { %309 = vst [vmem:[%s3709_s26 + $0x270] sm:$0xff] %v308_v14  ;;  %311 = vst [vmem:[%s3709_s26 + $0x278] sm:$0xff] %v310_v15  ;;  %v314_v17 = vld [vmem:[%s3704_s25 + $0x1088] sm:$0xff]  ;;  %v316_v18 = vld [vmem:[%s3704_s25 + $0x1090] sm:$0xff] }
  0x3a   : > { %313 = vst [vmem:[%s3709_s26 + $0x280] sm:$0xff] %v312_v16  ;;  %v318_v19 = vld [vmem:[%s3704_s25 + $0x1098] sm:$0xff]  ;;  %315 = vst [vmem:[%s3709_s26 + $0x288] sm:$0xff] %v314_v17  ;;  %v320_v20 = vld [vmem:[%s3704_s25 + $0x10a0] sm:$0xff] }
  0x3b   : > { %317 = vst [vmem:[%s3709_s26 + $0x290] sm:$0xff] %v316_v18  ;;  %319 = vst [vmem:[%s3709_s26 + $0x298] sm:$0xff] %v318_v19  ;;  %v322_v21 = vld [vmem:[%s3704_s25 + $0x10a8] sm:$0xff]  ;;  %v324_v22 = vld [vmem:[%s3704_s25 + $0x10b0] sm:$0xff] }
  0x3c   : > { %321 = vst [vmem:[%s3709_s26 + $0x2a0] sm:$0xff] %v320_v20  ;;  %323 = vst [vmem:[%s3709_s26 + $0x2a8] sm:$0xff] %v322_v21  ;;  %v326_v23 = vld [vmem:[%s3704_s25 + $0x10b8] sm:$0xff]  ;;  %v328_v24 = vld [vmem:[%s3704_s25 + $0x10c0] sm:$0xff] }
  0x3d   : > { %325 = vst [vmem:[%s3709_s26 + $0x2b0] sm:$0xff] %v324_v22  ;;  %v330_v25 = vld [vmem:[%s3704_s25 + $0x10c8] sm:$0xff]  ;;  %327 = vst [vmem:[%s3709_s26 + $0x2b8] sm:$0xff] %v326_v23  ;;  %v332_v26 = vld [vmem:[%s3704_s25 + $0x10d0] sm:$0xff] }
  0x3e   : > { %329 = vst [vmem:[%s3709_s26 + $0x2c0] sm:$0xff] %v328_v24  ;;  %331 = vst [vmem:[%s3709_s26 + $0x2c8] sm:$0xff] %v330_v25  ;;  %v334_v27 = vld [vmem:[%s3704_s25 + $0x10d8] sm:$0xff]  ;;  %v336_v28 = vld [vmem:[%s3704_s25 + $0x10e0] sm:$0xff] }
  0x3f   : > { %333 = vst [vmem:[%s3709_s26 + $0x2d0] sm:$0xff] %v332_v26  ;;  %335 = vst [vmem:[%s3709_s26 + $0x2d8] sm:$0xff] %v334_v27  ;;  %v338_v29 = vld [vmem:[%s3704_s25 + $0x10e8] sm:$0xff]  ;;  %v340_v30 = vld [vmem:[%s3704_s25 + $0x10f0] sm:$0xff] }
  0x40   : > { %337 = vst [vmem:[%s3709_s26 + $0x2e0] sm:$0xff] %v336_v28  ;;  %v342_v31 = vld [vmem:[%s3704_s25 + $0x10f8] sm:$0xff]  ;;  %339 = vst [vmem:[%s3709_s26 + $0x2e8] sm:$0xff] %v338_v29  ;;  %v344_v32 = vld [vmem:[%s3704_s25 + $0x1800] sm:$0xff] }
  0x41   : > { %341 = vst [vmem:[%s3709_s26 + $0x2f0] sm:$0xff] %v340_v30  ;;  %343 = vst [vmem:[%s3709_s26 + $0x2f8] sm:$0xff] %v342_v31  ;;  %v346_v33 = vld [vmem:[%s3704_s25 + $0x1808] sm:$0xff]  ;;  %v348_v34 = vld [vmem:[%s3704_s25 + $0x1810] sm:$0xff] }
  0x42   : > { %345 = vst [vmem:[%s3709_s26 + $0x300] sm:$0xff] %v344_v32  ;;  %347 = vst [vmem:[%s3709_s26 + $0x308] sm:$0xff] %v346_v33  ;;  %v350_v35 = vld [vmem:[%s3704_s25 + $0x1818] sm:$0xff]  ;;  %v352_v36 = vld [vmem:[%s3704_s25 + $0x1820] sm:$0xff] }
  0x43   : > { %349 = vst [vmem:[%s3709_s26 + $0x310] sm:$0xff] %v348_v34  ;;  %v354_v37 = vld [vmem:[%s3704_s25 + $0x1828] sm:$0xff]  ;;  %351 = vst [vmem:[%s3709_s26 + $0x318] sm:$0xff] %v350_v35  ;;  %v356_v38 = vld [vmem:[%s3704_s25 + $0x1830] sm:$0xff] }
  0x44   : > { %353 = vst [vmem:[%s3709_s26 + $0x320] sm:$0xff] %v352_v36  ;;  %355 = vst [vmem:[%s3709_s26 + $0x328] sm:$0xff] %v354_v37  ;;  %v358_v39 = vld [vmem:[%s3704_s25 + $0x1838] sm:$0xff]  ;;  %v360_v40 = vld [vmem:[%s3704_s25 + $0x1840] sm:$0xff] }
  0x45   : > { %357 = vst [vmem:[%s3709_s26 + $0x330] sm:$0xff] %v356_v38  ;;  %359 = vst [vmem:[%s3709_s26 + $0x338] sm:$0xff] %v358_v39  ;;  %v362_v41 = vld [vmem:[%s3704_s25 + $0x1848] sm:$0xff]  ;;  %v364_v42 = vld [vmem:[%s3704_s25 + $0x1850] sm:$0xff] }
  0x46   : > { %361 = vst [vmem:[%s3709_s26 + $0x340] sm:$0xff] %v360_v40  ;;  %v366_v43 = vld [vmem:[%s3704_s25 + $0x1858] sm:$0xff]  ;;  %363 = vst [vmem:[%s3709_s26 + $0x348] sm:$0xff] %v362_v41  ;;  %v368_v44 = vld [vmem:[%s3704_s25 + $0x1860] sm:$0xff] }
  0x47   : > { %365 = vst [vmem:[%s3709_s26 + $0x350] sm:$0xff] %v364_v42  ;;  %367 = vst [vmem:[%s3709_s26 + $0x358] sm:$0xff] %v366_v43  ;;  %v370_v45 = vld [vmem:[%s3704_s25 + $0x1868] sm:$0xff]  ;;  %v372_v46 = vld [vmem:[%s3704_s25 + $0x1870] sm:$0xff] }
  0x48   : > { %369 = vst [vmem:[%s3709_s26 + $0x360] sm:$0xff] %v368_v44  ;;  %371 = vst [vmem:[%s3709_s26 + $0x368] sm:$0xff] %v370_v45  ;;  %v374_v47 = vld [vmem:[%s3704_s25 + $0x1878] sm:$0xff]  ;;  %v376_v48 = vld [vmem:[%s3704_s25 + $0x1880] sm:$0xff] }
  0x49   : > { %373 = vst [vmem:[%s3709_s26 + $0x370] sm:$0xff] %v372_v46  ;;  %v378_v49 = vld [vmem:[%s3704_s25 + $0x1888] sm:$0xff]  ;;  %375 = vst [vmem:[%s3709_s26 + $0x378] sm:$0xff] %v374_v47  ;;  %v380_v50 = vld [vmem:[%s3704_s25 + $0x1890] sm:$0xff] }
  0x4a   : > { %377 = vst [vmem:[%s3709_s26 + $0x380] sm:$0xff] %v376_v48  ;;  %379 = vst [vmem:[%s3709_s26 + $0x388] sm:$0xff] %v378_v49  ;;  %v382_v51 = vld [vmem:[%s3704_s25 + $0x1898] sm:$0xff]  ;;  %v384_v52 = vld [vmem:[%s3704_s25 + $0x18a0] sm:$0xff] }
  0x4b   : > { %381 = vst [vmem:[%s3709_s26 + $0x390] sm:$0xff] %v380_v50  ;;  %383 = vst [vmem:[%s3709_s26 + $0x398] sm:$0xff] %v382_v51  ;;  %v386_v53 = vld [vmem:[%s3704_s25 + $0x18a8] sm:$0xff]  ;;  %v388_v54 = vld [vmem:[%s3704_s25 + $0x18b0] sm:$0xff] }
  0x4c   : > { %385 = vst [vmem:[%s3709_s26 + $0x3a0] sm:$0xff] %v384_v52  ;;  %v390_v55 = vld [vmem:[%s3704_s25 + $0x18b8] sm:$0xff]  ;;  %387 = vst [vmem:[%s3709_s26 + $0x3a8] sm:$0xff] %v386_v53  ;;  %v392_v56 = vld [vmem:[%s3704_s25 + $0x18c0] sm:$0xff] }
  0x4d   : > { %389 = vst [vmem:[%s3709_s26 + $0x3b0] sm:$0xff] %v388_v54  ;;  %391 = vst [vmem:[%s3709_s26 + $0x3b8] sm:$0xff] %v390_v55  ;;  %v394_v57 = vld [vmem:[%s3704_s25 + $0x18c8] sm:$0xff]  ;;  %v396_v58 = vld [vmem:[%s3704_s25 + $0x18d0] sm:$0xff] }
  0x4e   : > { %393 = vst [vmem:[%s3709_s26 + $0x3c0] sm:$0xff] %v392_v56  ;;  %395 = vst [vmem:[%s3709_s26 + $0x3c8] sm:$0xff] %v394_v57  ;;  %v398_v59 = vld [vmem:[%s3704_s25 + $0x18d8] sm:$0xff]  ;;  %v400_v60 = vld [vmem:[%s3704_s25 + $0x18e0] sm:$0xff] }
  0x4f   : > { %397 = vst [vmem:[%s3709_s26 + $0x3d0] sm:$0xff] %v396_v58  ;;  %v402_v61 = vld [vmem:[%s3704_s25 + $0x18e8] sm:$0xff]  ;;  %399 = vst [vmem:[%s3709_s26 + $0x3d8] sm:$0xff] %v398_v59  ;;  %v404_v62 = vld [vmem:[%s3704_s25 + $0x18f0] sm:$0xff] }
  0x50   : > { %401 = vst [vmem:[%s3709_s26 + $0x3e0] sm:$0xff] %v400_v60  ;;  %403 = vst [vmem:[%s3709_s26 + $0x3e8] sm:$0xff] %v402_v61  ;;  %v406_v63 = vld [vmem:[%s3704_s25 + $0x18f8] sm:$0xff] }
  0x51   : > { %405 = vst [vmem:[%s3709_s26 + $0x3f0] sm:$0xff] %v404_v62  ;;  %407 = vst [vmem:[%s3709_s26 + $0x3f8] sm:$0xff] %v406_v63 }
  0x52 PF: > { %p3431_p5 = scmp.ge.s32.totalorder %s3646_s14, 1  ;;  %p420_p6 = scmp.lt.s32.totalorder %s3646_s14, 9 }
  0x54   : > { %p421_p7 = pnand %p3431_p5, %p420_p6 }
  0x55   : > { %s427_s27 = sand.u32 (!%p421_p7), 1, %s3638_s12   ;;  %v3648_v0 = vmov (!%p421_p7), 0   ;;  %v465_v20 = vld [vmem:[%s4370_s0] sm:$0x1] (!%p421_p7)  ;;  %vm1571_vm0 = vcmask (!%p421_p7), 261120   ;;  %s3433_s5 = sshll.u32 (!%p421_p7), %s3424_s15, 6 }
  0x56   : > { %424 = sbr.rel (%p421_p7) target bundleno = 446 (0x1be), region = 51  ;;  %s3432_s28 = sshll.u32 (!%p421_p7), %s427_s27, 10  ;;  %1607 = vmatprep.mubr.bf16.mxu0 (!%p421_p7), %v3648_v0  ;;  %1648 = vmatprep.mubr.bf16.mxu1 (!%p421_p7), %v3648_v0  ;;  %v3988_v26 = vpack.c.bf16 (!%p421_p7), %v465_v20, %v465_v20 }
  0x57   : > { %s3969_s29 = scalar_lea.vmem (!%p421_p7), [#allocation2], %s3432_s28  ;;  %p455_p8 = scmp.lt.s32.totalorder (!%p421_p7), %s3433_s5, 511 }
  0x58   : > { %v467_v1 = vld [vmem:[%s3969_s29] sm:$0xff] (!%p421_p7)  ;;  %v468_v3 = vld [vmem:[%s3969_s29 + $0x8] sm:$0xff] (!%p421_p7)  ;;  %v469_v14 = vld [vmem:[%s3969_s29 + $0x10] sm:$0xff] (!%p421_p7) }
  0x59   : > { %v499_v2 = vld [vmem:[%s3969_s29 + $0x100] sm:$0xff] (!%p421_p7)  ;;  %v500_v5 = vld [vmem:[%s3969_s29 + $0x108] sm:$0xff] (!%p421_p7)  ;;  %v501_v16 = vld [vmem:[%s3969_s29 + $0x110] sm:$0xff] (!%p421_p7) }
  0x5a   : > { %v3436_v4 = vcombine.high (!%p421_p7), %v467_v1, %v499_v2  ;;  %v3435_v6 = vcombine.low (!%p421_p7), %v467_v1, %v499_v2  ;;  %v531_v7 = vld [vmem:[%s3969_s29 + $0x200] sm:$0xff] (!%p421_p7)  ;;  %v3438_v9 = vcombine.high (!%p421_p7), %v468_v3, %v500_v5  ;;  %v3437_v10 = vcombine.low (!%p421_p7), %v468_v3, %v500_v5  ;;  %v532_v12 = vld [vmem:[%s3969_s29 + $0x208] sm:$0xff] (!%p421_p7)  ;;  %v470_v17 = vld [vmem:[%s3969_s29 + $0x18] sm:$0xff] (!%p421_p7) }
  0x5b   : > { %v563_v8 = vld [vmem:[%s3969_s29 + $0x300] sm:$0xff] (!%p421_p7)  ;;  %v564_v13 = vld [vmem:[%s3969_s29 + $0x308] sm:$0xff] (!%p421_p7)  ;;  %v502_v18 = vld [vmem:[%s3969_s29 + $0x118] sm:$0xff] (!%p421_p7)  ;;  %v3440_v22 = vcombine.high (!%p421_p7), %v469_v14, %v501_v16  ;;  %v3439_v29 = vcombine.low (!%p421_p7), %v469_v14, %v501_v16 }
  0x5c   : > { %v3500_v11 = vcombine.high (!%p421_p7), %v531_v7, %v563_v8  ;;  %1575 = vmatprep.subr.bf16.mxu0 (!%p421_p7), %v3436_v4  ;;  %v3502_v15 = vcombine.high (!%p421_p7), %v532_v12, %v564_v13  ;;  %1616 = vmatprep.subr.bf16.mxu1 (!%p421_p7), %v3438_v9  ;;  %v3499_v19 = vcombine.low (!%p421_p7), %v531_v7, %v563_v8  ;;  %v533_v24 = vld [vmem:[%s3969_s29 + $0x210] sm:$0xff] (!%p421_p7)  ;;  %v534_v27 = vld [vmem:[%s3969_s29 + $0x218] sm:$0xff] (!%p421_p7)  ;;  %v471_v33 = vld [vmem:[%s3969_s29 + $0x20] sm:$0xff] (!%p421_p7) }
  0x5d   : > { %1576 = vmatpush1.bf16.msra.mxu0 %v3435_v6  ;;  %1617 = vmatpush1.bf16.msra.mxu1 %v3437_v10  ;;  %v3501_v21 = vcombine.low %v532_v12, %v564_v13  ;;  %v3442_v23 = vcombine.high %v470_v17, %v502_v18  ;;  %v565_v25 = vld [vmem:[%s3969_s29 + $0x310] sm:$0xff]  ;;  %v566_v28 = vld [vmem:[%s3969_s29 + $0x318] sm:$0xff]  ;;  %v3441_v30 = vcombine.low %v470_v17, %v502_v18  ;;  %v503_v34 = vld [vmem:[%s3969_s29 + $0x120] sm:$0xff]  ;;  %s4378_s5 = smov (!%p455_p8, %s3433_s5), 511 }
  0x5e   : > { %1577 = vmatprep.subr.bf16.mxu0 %v3500_v11  ;;  %1618 = vmatprep.subr.bf16.mxu1 %v3502_v15  ;;  %v3504_v31 = vcombine.high %v533_v24, %v565_v25  ;;  %v3506_v32 = vcombine.high %v534_v27, %v566_v28  ;;  %v472_v35 = vld [vmem:[%s3969_s29 + $0x28] sm:$0xff]  ;;  %v3503_v37 = vcombine.low %v533_v24, %v565_v25  ;;  %v535_v41 = vld [vmem:[%s3969_s29 + $0x220] sm:$0xff]  ;;  %v473_v49 = vld [vmem:[%s3969_s29 + $0x30] sm:$0xff]  ;;  %s4206_s8 = scalar_lea.vmem %s4372_s2, %s4378_s5  ;;  %s4250_s11 = scalar_lea.vmem %s4373_s3, %s4378_s5 }
  0x5f   : > { %v504_v36 = vld [vmem:[%s3969_s29 + $0x128] sm:$0xff]  ;;  %v3505_v38 = vcombine.low %v534_v27, %v566_v28  ;;  %v3444_v39 = vcombine.high %v471_v33, %v503_v34  ;;  %v567_v42 = vld [vmem:[%s3969_s29 + $0x320] sm:$0xff]  ;;  %v3443_v45 = vcombine.low %v471_v33, %v503_v34  ;;  %v505_v50 = vld [vmem:[%s3969_s29 + $0x130] sm:$0xff] }
  0x60   : > { %v3446_v40 = vcombine.high %v472_v35, %v504_v36  ;;  %v536_v43 = vld [vmem:[%s3969_s29 + $0x228] sm:$0xff]  ;;  %v3445_v46 = vcombine.low %v472_v35, %v504_v36  ;;  %v3508_v47 = vcombine.high %v535_v41, %v567_v42  ;;  %v474_v51 = vld [vmem:[%s3969_s29 + $0x38] sm:$0xff]  ;;  %v3507_v53 = vcombine.low %v535_v41, %v567_v42  ;;  %v537_v57 = vld [vmem:[%s3969_s29 + $0x230] sm:$0xff] }
  0x61   : > { %1578 = vmatpush1.bf16.msra.mxu0 %v3499_v19  ;;  %1619 = vmatpush1.bf16.msra.mxu1 %v3501_v21  ;;  %v568_v44 = vld [vmem:[%s3969_s29 + $0x328] sm:$0xff]  ;;  %v506_v52 = vld [vmem:[%s3969_s29 + $0x138] sm:$0xff]  ;;  %v3448_v55 = vcombine.high %v473_v49, %v505_v50  ;;  %v569_v58 = vld [vmem:[%s3969_s29 + $0x330] sm:$0xff]  ;;  %v3447_v61 = vcombine.low %v473_v49, %v505_v50 }
  0x62   : > { %1657 = vmatprep.subr.bf16.mxu0 %v3440_v22  ;;  %1698 = vmatprep.subr.bf16.mxu1 %v3442_v23  ;;  %v3510_v48 = vcombine.high %v536_v43, %v568_v44  ;;  %v3509_v54 = vcombine.low %v536_v43, %v568_v44  ;;  %v3450_v56 = vcombine.high %v474_v51, %v506_v52  ;;  %v538_v59 = vld [vmem:[%s3969_s29 + $0x238] sm:$0xff]  ;;  %v475_v2 = vld [vmem:[%s3969_s29 + $0x40] sm:$0xff]  ;;  %v476_v4 = vld [vmem:[%s3969_s29 + $0x48] sm:$0xff] }
  0x63   : > { %v570_v60 = vld [vmem:[%s3969_s29 + $0x338] sm:$0xff]  ;;  %v3449_v62 = vcombine.low %v474_v51, %v506_v52  ;;  %v3512_v63 = vcombine.high %v537_v57, %v569_v58  ;;  %v507_v3 = vld [vmem:[%s3969_s29 + $0x140] sm:$0xff]  ;;  %v508_v5 = vld [vmem:[%s3969_s29 + $0x148] sm:$0xff]  ;;  %v3511_v6 = vcombine.low %v537_v57, %v569_v58 }
  0x64   : > { %3563 = vmatmul.mubr.msk.bf16.vlgmr.msra.gmra.mrb[0].mxu0 %vm1571_vm0, %v3988_v26  ;;  %3564 = vmatmul.mubr.msk.bf16.vlgmr.msra.gmra.mrb[0].mxu1 %vm1571_vm0, %v3988_v26  ;;  %v3514_v1 = vcombine.high %v538_v59, %v570_v60  ;;  %v3513_v7 = vcombine.low %v538_v59, %v570_v60  ;;  %v3452_v8 = vcombine.high %v475_v2, %v507_v3  ;;  %v539_v10 = vld [vmem:[%s3969_s29 + $0x240] sm:$0xff]  ;;  %v540_v12 = vld [vmem:[%s3969_s29 + $0x248] sm:$0xff]  ;;  %v477_v18 = vld [vmem:[%s3969_s29 + $0x50] sm:$0xff] }
  0x65   : > { %1658 = vmatpush1.bf16.msra.mxu0 %v3439_v29  ;;  %1699 = vmatpush1.bf16.msra.mxu1 %v3441_v30  ;;  %v3454_v9 = vcombine.high %v476_v4, %v508_v5  ;;  %v571_v11 = vld [vmem:[%s3969_s29 + $0x340] sm:$0xff]  ;;  %v572_v13 = vld [vmem:[%s3969_s29 + $0x348] sm:$0xff]  ;;  %v3451_v14 = vcombine.low %v475_v2, %v507_v3  ;;  %v3453_v15 = vcombine.low %v476_v4, %v508_v5  ;;  %v509_v19 = vld [vmem:[%s3969_s29 + $0x150] sm:$0xff] }
  0x66   : > { %1659 = vmatprep.subr.bf16.mxu0 %v3504_v31  ;;  %1700 = vmatprep.subr.bf16.mxu1 %v3506_v32  ;;  %v3516_v16 = vcombine.high %v539_v10, %v571_v11  ;;  %v3518_v17 = vcombine.high %v540_v12, %v572_v13  ;;  %v478_v20 = vld [vmem:[%s3969_s29 + $0x58] sm:$0xff]  ;;  %v3515_v22 = vcombine.low %v539_v10, %v571_v11  ;;  %v541_v27 = vld [vmem:[%s3969_s29 + $0x250] sm:$0xff]  ;;  %v479_v35 = vld [vmem:[%s3969_s29 + $0x60] sm:$0xff] }
  0x67   : > { %1689 = vmatprep.mubr.bf16.mxu0 %v3648_v0  ;;  %1730 = vmatprep.mubr.bf16.mxu1 %v3648_v0  ;;  %v510_v21 = vld [vmem:[%s3969_s29 + $0x158] sm:$0xff]  ;;  %v3517_v23 = vcombine.low %v540_v12, %v572_v13  ;;  %v3456_v24 = vcombine.high %v477_v18, %v509_v19  ;;  %v573_v28 = vld [vmem:[%s3969_s29 + $0x350] sm:$0xff]  ;;  %v3455_v31 = vcombine.low %v477_v18, %v509_v19  ;;  %v511_v36 = vld [vmem:[%s3969_s29 + $0x160] sm:$0xff] }
  0x68   : > { %v3458_v25 = vcombine.high %v478_v20, %v510_v21  ;;  %v542_v29 = vld [vmem:[%s3969_s29 + $0x258] sm:$0xff]  ;;  %v3457_v32 = vcombine.low %v478_v20, %v510_v21  ;;  %v3520_v33 = vcombine.high %v541_v27, %v573_v28  ;;  %v3460_v41 = vcombine.high %v479_v35, %v511_v36  ;;  %v543_v43 = vld [vmem:[%s3969_s29 + $0x260] sm:$0xff]  ;;  %v481_v51 = vld [vmem:[%s3969_s29 + $0x70] sm:$0xff] }
  0x69   : > { %1660 = vmatpush1.bf16.msra.mxu0 %v3503_v37  ;;  %1701 = vmatpush1.bf16.msra.mxu1 %v3505_v38  ;;  %v574_v30 = vld [vmem:[%s3969_s29 + $0x358] sm:$0xff]  ;;  %v480_v37 = vld [vmem:[%s3969_s29 + $0x68] sm:$0xff]  ;;  %v575_v44 = vld [vmem:[%s3969_s29 + $0x360] sm:$0xff] }
  0x6a   : > { %1739 = vmatprep.subr.bf16.mxu0 %v3444_v39  ;;  %1780 = vmatprep.subr.bf16.mxu1 %v3446_v40  ;;  %v3522_v34 = vcombine.high %v542_v29, %v574_v30  ;;  %v512_v38 = vld [vmem:[%s3969_s29 + $0x168] sm:$0xff]  ;;  %v3519_v39 = vcombine.low %v541_v27, %v573_v28  ;;  %v3521_v40 = vcombine.low %v542_v29, %v574_v30  ;;  %v513_v52 = vld [vmem:[%s3969_s29 + $0x170] sm:$0xff]  ;;  %v483_v4 = vld [vmem:[%s3969_s29 + $0x80] sm:$0xff] }
  0x6b   : > { %v3462_v42 = vcombine.high %v480_v37, %v512_v38  ;;  %v3524_v49 = vcombine.high %v543_v43, %v575_v44  ;;  %v3464_v57 = vcombine.high %v481_v51, %v513_v52  ;;  %v545_v59 = vld [vmem:[%s3969_s29 + $0x270] sm:$0xff]  ;;  %v515_v5 = vld [vmem:[%s3969_s29 + $0x180] sm:$0xff] }
  0x6c   : > { %3565 = vmatmul.mubr.msk.bf16.vlgmr.msra.gmra.mrb[4].mxu0 %vm1571_vm0, %v3988_v26  ;;  %3566 = vmatmul.mubr.msk.bf16.vlgmr.msra.gmra.mrb[4].mxu1 %vm1571_vm0, %v3988_v26  ;;  %v577_v60 = vld [vmem:[%s3969_s29 + $0x370] sm:$0xff]  ;;  %v3468_v10 = vcombine.high %v483_v4, %v515_v5  ;;  %v547_v12 = vld [vmem:[%s3969_s29 + $0x280] sm:$0xff] }
  0x6d   : > { %1740 = vmatpush1.bf16.msra.mxu0 %v3443_v45  ;;  %1781 = vmatpush1.bf16.msra.mxu1 %v3445_v46  ;;  %v544_v45 = vld [vmem:[%s3969_s29 + $0x268] sm:$0xff]  ;;  %v3528_v2 = vcombine.high %v545_v59, %v577_v60  ;;  %v579_v13 = vld [vmem:[%s3969_s29 + $0x380] sm:$0xff]  ;;  %v485_v20 = vld [vmem:[%s3969_s29 + $0x90] sm:$0xff] }
  0x6e   : > { %1741 = vmatprep.subr.bf16.mxu0 %v3508_v47  ;;  %1782 = vmatprep.subr.bf16.mxu1 %v3510_v48  ;;  %v576_v46 = vld [vmem:[%s3969_s29 + $0x368] sm:$0xff]  ;;  %v3459_v47 = vcombine.low %v479_v35, %v511_v36  ;;  %v3461_v48 = vcombine.low %v480_v37, %v512_v38  ;;  %v3532_v18 = vcombine.high %v547_v12, %v579_v13  ;;  %v517_v21 = vld [vmem:[%s3969_s29 + $0x190] sm:$0xff]  ;;  %v487_v37 = vld [vmem:[%s3969_s29 + $0xa0] sm:$0xff] }
  0x6f   : > { %1771 = vmatprep.mubr.bf16.mxu0 %v3648_v0  ;;  %1812 = vmatprep.mubr.bf16.mxu1 %v3648_v0  ;;  %v3526_v50 = vcombine.high %v544_v45, %v576_v46  ;;  %v3472_v27 = vcombine.high %v485_v20, %v517_v21  ;;  %v549_v29 = vld [vmem:[%s3969_s29 + $0x290] sm:$0xff]  ;;  %v519_v38 = vld [vmem:[%s3969_s29 + $0x1a0] sm:$0xff] }
  0x70   : > { %v581_v30 = vld [vmem:[%s3969_s29 + $0x390] sm:$0xff] }
  0x71   : > { %1742 = vmatpush1.bf16.msra.mxu0 %v3507_v53  ;;  %1783 = vmatpush1.bf16.msra.mxu1 %v3509_v54  ;;  %v482_v53 = vld [vmem:[%s3969_s29 + $0x78] sm:$0xff]  ;;  %v3536_v35 = vcombine.high %v549_v29, %v581_v30 }
  0x72   : > { %1821 = vmatprep.subr.bf16.mxu0 %v3448_v55  ;;  %1862 = vmatprep.subr.bf16.mxu1 %v3450_v56  ;;  %v514_v54 = vld [vmem:[%s3969_s29 + $0x178] sm:$0xff]  ;;  %v3523_v55 = vcombine.low %v543_v43, %v575_v44  ;;  %v3525_v56 = vcombine.low %v544_v45, %v576_v46  ;;  %v3476_v43 = vcombine.high %v487_v37, %v519_v38  ;;  %v551_v45 = vld [vmem:[%s3969_s29 + $0x2a0] sm:$0xff] }
  0x73   : > { %v3466_v58 = vcombine.high %v482_v53, %v514_v54  ;;  %v583_v46 = vld [vmem:[%s3969_s29 + $0x3a0] sm:$0xff] }
  0x74   : > { %3567 = vmatmul.mubr.msk.bf16.vlgmr.msra.gmra.mrb[8].mxu0 %vm1571_vm0, %v3988_v26  ;;  %3568 = vmatmul.mubr.msk.bf16.vlgmr.msra.gmra.mrb[8].mxu1 %vm1571_vm0, %v3988_v26 }
  0x75   : > { %1822 = vmatpush1.bf16.msra.mxu0 %v3447_v61  ;;  %1863 = vmatpush1.bf16.msra.mxu1 %v3449_v62  ;;  %v546_v61 = vld [vmem:[%s3969_s29 + $0x278] sm:$0xff] }
  0x76   : > { %1823 = vmatprep.subr.bf16.mxu0 %v3512_v63  ;;  %1864 = vmatprep.subr.bf16.mxu1 %v3514_v1  ;;  %v578_v62 = vld [vmem:[%s3969_s29 + $0x378] sm:$0xff]  ;;  %v3463_v63 = vcombine.low %v481_v51, %v513_v52  ;;  %v3465_v1 = vcombine.low %v482_v53, %v514_v54  ;;  %v3540_v51 = vcombine.high %v551_v45, %v583_v46  ;;  %v489_v53 = vld [vmem:[%s3969_s29 + $0xb0] sm:$0xff] }
  0x77   : > { %1853 = vmatprep.mubr.bf16.mxu0 %v3648_v0  ;;  %1894 = vmatprep.mubr.bf16.mxu1 %v3648_v0  ;;  %v3530_v3 = vcombine.high %v546_v61, %v578_v62  ;;  %v521_v54 = vld [vmem:[%s3969_s29 + $0x1b0] sm:$0xff] }
  0x79   : > { %1824 = vmatpush1.bf16.msra.mxu0 %v3511_v6  ;;  %1865 = vmatpush1.bf16.msra.mxu1 %v3513_v7  ;;  %v484_v6 = vld [vmem:[%s3969_s29 + $0x88] sm:$0xff] }
  0x7a   : > { %1903 = vmatprep.subr.bf16.mxu0 %v3452_v8  ;;  %1944 = vmatprep.subr.bf16.mxu1 %v3454_v9  ;;  %v516_v7 = vld [vmem:[%s3969_s29 + $0x188] sm:$0xff]  ;;  %v3527_v8 = vcombine.low %v545_v59, %v577_v60  ;;  %v3529_v9 = vcombine.low %v546_v61, %v578_v62  ;;  %v3480_v59 = vcombine.high %v489_v53, %v521_v54  ;;  %v553_v61 = vld [vmem:[%s3969_s29 + $0x2b0] sm:$0xff] }
  0x7b   : > { %v3470_v11 = vcombine.high %v484_v6, %v516_v7  ;;  %v585_v62 = vld [vmem:[%s3969_s29 + $0x3b0] sm:$0xff] }
  0x7c   : > { %3569 = vmatmul.mubr.msk.bf16.vlgmr.msra.gmra.mrb[12].mxu0 %vm1571_vm0, %v3988_v26  ;;  %3570 = vmatmul.mubr.msk.bf16.vlgmr.msra.gmra.mrb[12].mxu1 %vm1571_vm0, %v3988_v26 }
  0x7d   : > { %1904 = vmatpush1.bf16.msra.mxu0 %v3451_v14  ;;  %1945 = vmatpush1.bf16.msra.mxu1 %v3453_v15  ;;  %v548_v14 = vld [vmem:[%s3969_s29 + $0x288] sm:$0xff] }
  0x7e   : > { %1905 = vmatprep.subr.bf16.mxu0 %v3516_v16  ;;  %1946 = vmatprep.subr.bf16.mxu1 %v3518_v17  ;;  %v580_v15 = vld [vmem:[%s3969_s29 + $0x388] sm:$0xff]  ;;  %v3467_v16 = vcombine.low %v483_v4, %v515_v5  ;;  %v3469_v17 = vcombine.low %v484_v6, %v516_v7  ;;  %v3544_v4 = vcombine.high %v553_v61, %v585_v62  ;;  %v491_v6 = vld [vmem:[%s3969_s29 + $0xc0] sm:$0xff] }
  0x7f   : > { %1935 = vmatprep.mubr.bf16.mxu0 %v3648_v0  ;;  %1976 = vmatprep.mubr.bf16.mxu1 %v3648_v0  ;;  %v3534_v19 = vcombine.high %v548_v14, %v580_v15  ;;  %v523_v7 = vld [vmem:[%s3969_s29 + $0x1c0] sm:$0xff] }
  0x81   : > { %1906 = vmatpush1.bf16.msra.mxu0 %v3515_v22  ;;  %1947 = vmatpush1.bf16.msra.mxu1 %v3517_v23  ;;  %v486_v22 = vld [vmem:[%s3969_s29 + $0x98] sm:$0xff] }
  0x82   : > { %1985 = vmatprep.subr.bf16.mxu0 %v3456_v24  ;;  %2026 = vmatprep.subr.bf16.mxu1 %v3458_v25  ;;  %v518_v23 = vld [vmem:[%s3969_s29 + $0x198] sm:$0xff]  ;;  %v3531_v24 = vcombine.low %v547_v12, %v579_v13  ;;  %v3533_v25 = vcombine.low %v548_v14, %v580_v15  ;;  %v3484_v12 = vcombine.high %v491_v6, %v523_v7  ;;  %v555_v14 = vld [vmem:[%s3969_s29 + $0x2c0] sm:$0xff] }
  0x83   : > { %v3474_v28 = vcombine.high %v486_v22, %v518_v23  ;;  %v587_v15 = vld [vmem:[%s3969_s29 + $0x3c0] sm:$0xff] }
  0x84   : > { %3571 = vmatmul.mubr.msk.bf16.vlgmr.msra.gmra.mrb[16].mxu0 %vm1571_vm0, %v3988_v26  ;;  %3572 = vmatmul.mubr.msk.bf16.vlgmr.msra.gmra.mrb[16].mxu1 %vm1571_vm0, %v3988_v26 }
  0x85   : > { %1986 = vmatpush1.bf16.msra.mxu0 %v3455_v31  ;;  %2027 = vmatpush1.bf16.msra.mxu1 %v3457_v32  ;;  %v550_v31 = vld [vmem:[%s3969_s29 + $0x298] sm:$0xff] }
  0x86   : > { %1987 = vmatprep.subr.bf16.mxu0 %v3520_v33  ;;  %2028 = vmatprep.subr.bf16.mxu1 %v3522_v34  ;;  %v582_v32 = vld [vmem:[%s3969_s29 + $0x398] sm:$0xff]  ;;  %v3471_v33 = vcombine.low %v485_v20, %v517_v21  ;;  %v3473_v34 = vcombine.low %v486_v22, %v518_v23  ;;  %v3548_v20 = vcombine.high %v555_v14, %v587_v15  ;;  %v493_v22 = vld [vmem:[%s3969_s29 + $0xd0] sm:$0xff] }
  0x87   : > { %2017 = vmatprep.mubr.bf16.mxu0 %v3648_v0  ;;  %2058 = vmatprep.mubr.bf16.mxu1 %v3648_v0  ;;  %v3538_v36 = vcombine.high %v550_v31, %v582_v32  ;;  %v525_v23 = vld [vmem:[%s3969_s29 + $0x1d0] sm:$0xff] }
  0x89   : > { %1988 = vmatpush1.bf16.msra.mxu0 %v3519_v39  ;;  %2029 = vmatpush1.bf16.msra.mxu1 %v3521_v40  ;;  %v488_v39 = vld [vmem:[%s3969_s29 + $0xa8] sm:$0xff] }
  0x8a   : > { %2067 = vmatprep.subr.bf16.mxu0 %v3460_v41  ;;  %2108 = vmatprep.subr.bf16.mxu1 %v3462_v42  ;;  %v520_v40 = vld [vmem:[%s3969_s29 + $0x1a8] sm:$0xff]  ;;  %v3535_v41 = vcombine.low %v549_v29, %v581_v30  ;;  %v3537_v42 = vcombine.low %v550_v31, %v582_v32  ;;  %v3488_v29 = vcombine.high %v493_v22, %v525_v23  ;;  %v557_v31 = vld [vmem:[%s3969_s29 + $0x2d0] sm:$0xff] }
  0x8b   : > { %v3478_v44 = vcombine.high %v488_v39, %v520_v40  ;;  %v589_v32 = vld [vmem:[%s3969_s29 + $0x3d0] sm:$0xff] }
  0x8c   : > { %3573 = vmatmul.mubr.msk.bf16.vlgmr.msra.gmra.mrb[20].mxu0 %vm1571_vm0, %v3988_v26  ;;  %3574 = vmatmul.mubr.msk.bf16.vlgmr.msra.gmra.mrb[20].mxu1 %vm1571_vm0, %v3988_v26 }
  0x8d   : > { %2068 = vmatpush1.bf16.msra.mxu0 %v3459_v47  ;;  %2109 = vmatpush1.bf16.msra.mxu1 %v3461_v48  ;;  %v552_v47 = vld [vmem:[%s3969_s29 + $0x2a8] sm:$0xff] }
  0x8e   : > { %2069 = vmatprep.subr.bf16.mxu0 %v3524_v49  ;;  %2110 = vmatprep.subr.bf16.mxu1 %v3526_v50  ;;  %v584_v48 = vld [vmem:[%s3969_s29 + $0x3a8] sm:$0xff]  ;;  %v3475_v49 = vcombine.low %v487_v37, %v519_v38  ;;  %v3477_v50 = vcombine.low %v488_v39, %v520_v40  ;;  %v3552_v37 = vcombine.high %v557_v31, %v589_v32  ;;  %v495_v39 = vld [vmem:[%s3969_s29 + $0xe0] sm:$0xff] }
  0x8f   : > { %2099 = vmatprep.mubr.bf16.mxu0 %v3648_v0  ;;  %2140 = vmatprep.mubr.bf16.mxu1 %v3648_v0  ;;  %v3542_v52 = vcombine.high %v552_v47, %v584_v48  ;;  %v527_v40 = vld [vmem:[%s3969_s29 + $0x1e0] sm:$0xff] }
  0x91   : > { %2070 = vmatpush1.bf16.msra.mxu0 %v3523_v55  ;;  %2111 = vmatpush1.bf16.msra.mxu1 %v3525_v56  ;;  %v490_v55 = vld [vmem:[%s3969_s29 + $0xb8] sm:$0xff] }
  0x92   : > { %2149 = vmatprep.subr.bf16.mxu0 %v3464_v57  ;;  %2190 = vmatprep.subr.bf16.mxu1 %v3466_v58  ;;  %v522_v56 = vld [vmem:[%s3969_s29 + $0x1b8] sm:$0xff]  ;;  %v3539_v57 = vcombine.low %v551_v45, %v583_v46  ;;  %v3541_v58 = vcombine.low %v552_v47, %v584_v48  ;;  %v3492_v45 = vcombine.high %v495_v39, %v527_v40  ;;  %v559_v47 = vld [vmem:[%s3969_s29 + $0x2e0] sm:$0xff] }
  0x93   : > { %v3482_v60 = vcombine.high %v490_v55, %v522_v56  ;;  %v591_v48 = vld [vmem:[%s3969_s29 + $0x3e0] sm:$0xff] }
  0x94   : > { %3575 = vmatmul.mubr.msk.bf16.vlgmr.msra.gmra.mrb[24].mxu0 %vm1571_vm0, %v3988_v26  ;;  %3576 = vmatmul.mubr.msk.bf16.vlgmr.msra.gmra.mrb[24].mxu1 %vm1571_vm0, %v3988_v26 }
  0x95   : > { %2150 = vmatpush1.bf16.msra.mxu0 %v3463_v63  ;;  %2191 = vmatpush1.bf16.msra.mxu1 %v3465_v1  ;;  %v554_v63 = vld [vmem:[%s3969_s29 + $0x2b8] sm:$0xff] }
  0x96   : > { %2151 = vmatprep.subr.bf16.mxu0 %v3528_v2  ;;  %2192 = vmatprep.subr.bf16.mxu1 %v3530_v3  ;;  %v586_v1 = vld [vmem:[%s3969_s29 + $0x3b8] sm:$0xff]  ;;  %v3479_v2 = vcombine.low %v489_v53, %v521_v54  ;;  %v3481_v3 = vcombine.low %v490_v55, %v522_v56  ;;  %v3556_v53 = vcombine.high %v559_v47, %v591_v48  ;;  %v497_v55 = vld [vmem:[%s3969_s29 + $0xf0] sm:$0xff] }
  0x97   : > { %2181 = vmatprep.mubr.bf16.mxu0 %v3648_v0  ;;  %2222 = vmatprep.mubr.bf16.mxu1 %v3648_v0  ;;  %v3546_v5 = vcombine.high %v554_v63, %v586_v1  ;;  %v529_v56 = vld [vmem:[%s3969_s29 + $0x1f0] sm:$0xff] }
  0x99   : > { %2152 = vmatpush1.bf16.msra.mxu0 %v3527_v8  ;;  %2193 = vmatpush1.bf16.msra.mxu1 %v3529_v9  ;;  %v492_v8 = vld [vmem:[%s3969_s29 + $0xc8] sm:$0xff] }
  0x9a   : > { %2231 = vmatprep.subr.bf16.mxu0 %v3468_v10  ;;  %2272 = vmatprep.subr.bf16.mxu1 %v3470_v11  ;;  %v524_v9 = vld [vmem:[%s3969_s29 + $0x1c8] sm:$0xff]  ;;  %v3543_v10 = vcombine.low %v553_v61, %v585_v62  ;;  %v3545_v11 = vcombine.low %v554_v63, %v586_v1  ;;  %v3496_v61 = vcombine.high %v497_v55, %v529_v56  ;;  %v561_v63 = vld [vmem:[%s3969_s29 + $0x2f0] sm:$0xff] }
  0x9b   : > { %v3486_v13 = vcombine.high %v492_v8, %v524_v9  ;;  %v593_v1 = vld [vmem:[%s3969_s29 + $0x3f0] sm:$0xff] }
  0x9c   : > { %3577 = vmatmul.mubr.msk.bf16.vlgmr.msra.gmra.mrb[28].mxu0 %vm1571_vm0, %v3988_v26  ;;  %3578 = vmatmul.mubr.msk.bf16.vlgmr.msra.gmra.mrb[28].mxu1 %vm1571_vm0, %v3988_v26 }
  0x9d   : > { %2232 = vmatpush1.bf16.msra.mxu0 %v3467_v16  ;;  %2273 = vmatpush1.bf16.msra.mxu1 %v3469_v17  ;;  %v556_v16 = vld [vmem:[%s3969_s29 + $0x2c8] sm:$0xff] }
  0x9e   : > { %2233 = vmatprep.subr.bf16.mxu0 %v3532_v18  ;;  %2274 = vmatprep.subr.bf16.mxu1 %v3534_v19  ;;  %v588_v17 = vld [vmem:[%s3969_s29 + $0x3c8] sm:$0xff]  ;;  %v3483_v18 = vcombine.low %v491_v6, %v523_v7  ;;  %v3485_v19 = vcombine.low %v492_v8, %v524_v9  ;;  %v3560_v6 = vcombine.high %v561_v63, %v593_v1 }
  0x9f   : > { %2263 = vmatprep.mubr.bf16.mxu0 %v3648_v0  ;;  %2304 = vmatprep.mubr.bf16.mxu1 %v3648_v0  ;;  %v3550_v21 = vcombine.high %v556_v16, %v588_v17  ;;  %v3559_v8 = vcombine.low %v561_v63, %v593_v1 }
  0xa1   : > { %2234 = vmatpush1.bf16.msra.mxu0 %v3531_v24  ;;  %2275 = vmatpush1.bf16.msra.mxu1 %v3533_v25  ;;  %v494_v24 = vld [vmem:[%s3969_s29 + $0xd8] sm:$0xff] }
  0xa2   : > { %2313 = vmatprep.subr.bf16.mxu0 %v3472_v27  ;;  %2354 = vmatprep.subr.bf16.mxu1 %v3474_v28  ;;  %v526_v25 = vld [vmem:[%s3969_s29 + $0x1d8] sm:$0xff]  ;;  %v3547_v27 = vcombine.low %v555_v14, %v587_v15  ;;  %v3549_v28 = vcombine.low %v556_v16, %v588_v17  ;;  %v595_v14 = vld [vmem:[%s4206_s8] sm:$0xff] }
  0xa3   : > { %v3490_v30 = vcombine.high %v494_v24, %v526_v25 }
  0xa4   : > { %3579 = vmatmul.mubr.msk.bf16.vlgmr.msra.gmra.mrb[32].mxu0 %vm1571_vm0, %v3988_v26  ;;  %3580 = vmatmul.mubr.msk.bf16.vlgmr.msra.gmra.mrb[32].mxu1 %vm1571_vm0, %v3988_v26 }
  0xa5   : > { %2314 = vmatpush1.bf16.msra.mxu0 %v3471_v33  ;;  %2355 = vmatpush1.bf16.msra.mxu1 %v3473_v34  ;;  %v558_v33 = vld [vmem:[%s3969_s29 + $0x2d8] sm:$0xff] }
  0xa6   : > { %2315 = vmatprep.subr.bf16.mxu0 %v3536_v35  ;;  %2356 = vmatprep.subr.bf16.mxu1 %v3538_v36  ;;  %v590_v34 = vld [vmem:[%s3969_s29 + $0x3d8] sm:$0xff]  ;;  %v3487_v35 = vcombine.low %v493_v22, %v525_v23  ;;  %v3489_v36 = vcombine.low %v494_v24, %v526_v25 }
  0xa7   : > { %2345 = vmatprep.mubr.bf16.mxu0 %v3648_v0  ;;  %2386 = vmatprep.mubr.bf16.mxu1 %v3648_v0  ;;  %v3554_v38 = vcombine.high %v558_v33, %v590_v34 }
  0xa9   : > { %2316 = vmatpush1.bf16.msra.mxu0 %v3535_v41  ;;  %2357 = vmatpush1.bf16.msra.mxu1 %v3537_v42  ;;  %v496_v41 = vld [vmem:[%s3969_s29 + $0xe8] sm:$0xff] }
  0xaa   : > { %2395 = vmatprep.subr.bf16.mxu0 %v3476_v43  ;;  %2436 = vmatprep.subr.bf16.mxu1 %v3478_v44  ;;  %v528_v42 = vld [vmem:[%s3969_s29 + $0x1e8] sm:$0xff]  ;;  %v3551_v43 = vcombine.low %v557_v31, %v589_v32  ;;  %v3553_v44 = vcombine.low %v558_v33, %v590_v34 }
  0xab   : > { %v3494_v46 = vcombine.high %v496_v41, %v528_v42 }
  0xac   : > { %3581 = vmatmul.mubr.msk.bf16.vlgmr.msra.gmra.mrb[36].mxu0 %vm1571_vm0, %v3988_v26  ;;  %3582 = vmatmul.mubr.msk.bf16.vlgmr.msra.gmra.mrb[36].mxu1 %vm1571_vm0, %v3988_v26 }
  0xad   : > { %2396 = vmatpush1.bf16.msra.mxu0 %v3475_v49  ;;  %2437 = vmatpush1.bf16.msra.mxu1 %v3477_v50  ;;  %v560_v49 = vld [vmem:[%s3969_s29 + $0x2e8] sm:$0xff] }
  0xae   : > { %2397 = vmatprep.subr.bf16.mxu0 %v3540_v51  ;;  %2438 = vmatprep.subr.bf16.mxu1 %v3542_v52  ;;  %v592_v50 = vld [vmem:[%s3969_s29 + $0x3e8] sm:$0xff]  ;;  %v3491_v51 = vcombine.low %v495_v39, %v527_v40  ;;  %v3493_v52 = vcombine.low %v496_v41, %v528_v42 }
  0xaf   : > { %2427 = vmatprep.mubr.bf16.mxu0 %v3648_v0  ;;  %2468 = vmatprep.mubr.bf16.mxu1 %v3648_v0  ;;  %v3558_v54 = vcombine.high %v560_v49, %v592_v50 }
  0xb1   : > { %2398 = vmatpush1.bf16.msra.mxu0 %v3539_v57  ;;  %2439 = vmatpush1.bf16.msra.mxu1 %v3541_v58  ;;  %v498_v57 = vld [vmem:[%s3969_s29 + $0xf8] sm:$0xff] }
  0xb2   : > { %2477 = vmatprep.subr.bf16.mxu0 %v3480_v59  ;;  %2518 = vmatprep.subr.bf16.mxu1 %v3482_v60  ;;  %v530_v58 = vld [vmem:[%s3969_s29 + $0x1f8] sm:$0xff]  ;;  %v3555_v59 = vcombine.low %v559_v47, %v591_v48  ;;  %v3557_v60 = vcombine.low %v560_v49, %v592_v50 }
  0xb3   : > { %v3498_v62 = vcombine.high %v498_v57, %v530_v58 }
  0xb4   : > { %3583 = vmatmul.mubr.msk.bf16.vlgmr.msra.gmra.mrb[40].mxu0 %vm1571_vm0, %v3988_v26  ;;  %3584 = vmatmul.mubr.msk.bf16.vlgmr.msra.gmra.mrb[40].mxu1 %vm1571_vm0, %v3988_v26 }
  0xb5   : > { %2478 = vmatpush1.bf16.msra.mxu0 %v3479_v2  ;;  %2519 = vmatpush1.bf16.msra.mxu1 %v3481_v3  ;;  %v562_v2 = vld [vmem:[%s3969_s29 + $0x2f8] sm:$0xff] }
  0xb6   : > { %2479 = vmatprep.subr.bf16.mxu0 %v3544_v4  ;;  %2520 = vmatprep.subr.bf16.mxu1 %v3546_v5  ;;  %v594_v3 = vld [vmem:[%s3969_s29 + $0x3f8] sm:$0xff]  ;;  %v3495_v4 = vcombine.low %v497_v55, %v529_v56  ;;  %v3497_v5 = vcombine.low %v498_v57, %v530_v58  ;;  %v596_v57 = vld [vmem:[%s4206_s8 + $0x8] sm:$0xff] }
  0xb7   : > { %2509 = vmatprep.mubr.bf16.mxu0 %v3648_v0  ;;  %2550 = vmatprep.mubr.bf16.mxu1 %v3648_v0  ;;  %v3562_v7 = vcombine.high %v562_v2, %v594_v3  ;;  %v3561_v9 = vcombine.low %v562_v2, %v594_v3 }
  0xb9   : > { %2480 = vmatpush1.bf16.msra.mxu0 %v3543_v10  ;;  %2521 = vmatpush1.bf16.msra.mxu1 %v3545_v11  ;;  %v1251_v10 = vlaneseq }
  0xba   : > { %2559 = vmatprep.subr.bf16.mxu0 %v3484_v12  ;;  %2600 = vmatprep.subr.bf16.mxu1 %v3486_v13  ;;  %v3649_v12 = vmov 1966171168  }
  0xbb   : > { %v1252_v11 = vshrl.u32 %v1251_v10, 7  ;;  %v2956_v13 = vunpack.c.l.s4 %v3649_v12 }
  0xbc   : > { %3585 = vmatmul.mubr.msk.bf16.vlgmr.msra.gmra.mrb[44].mxu0 %vm1571_vm0, %v3988_v26  ;;  %3586 = vmatmul.mubr.msk.bf16.vlgmr.msra.gmra.mrb[44].mxu1 %vm1571_vm0, %v3988_v26 }
  0xbd   : > { %2560 = vmatpush1.bf16.msra.mxu0 %v3483_v18  ;;  %2601 = vmatpush1.bf16.msra.mxu1 %v3485_v19  ;;  %v4213_v15 = vsub.s32 1, %v1252_v11  ;;  %v4215_v16 = vsub.s32 3, %v1252_v11  ;;  %v2957_v18 = vunpack.c.0.s8 %v2956_v13  ;;  %v4225_v33 = vsub.s32 6, %v1252_v11 }
  0xbe   : > { %2561 = vmatprep.subr.bf16.mxu0 %v3548_v20  ;;  %2602 = vmatprep.subr.bf16.mxu1 %v3550_v21  ;;  %v4227_v34 = vsub.s32 5, %v1252_v11 }
  0xbf   : > { %2591 = vmatprep.mubr.bf16.mxu0 %v3648_v0  ;;  %2632 = vmatprep.mubr.bf16.mxu1 %v3648_v0  ;;  %v1258_v20 = vrot.slane %v595_v14, %v4213_v15  ;;  %v1266_v21 = vrot.slane %v595_v14, %v4215_v16 }
  0xc1   : > { %2562 = vmatpush1.bf16.msra.mxu0 %v3547_v27  ;;  %2603 = vmatpush1.bf16.msra.mxu1 %v3549_v28  ;;  %v4221_v27 = vsub.s32 %v2957_v18, %v1252_v11  ;;  %v4223_v28 = vsub.s32 4, %v1252_v11 }
  0xc2   : > { %2641 = vmatprep.subr.bf16.mxu0 %v3488_v29  ;;  %2682 = vmatprep.subr.bf16.mxu1 %v3490_v30 }
  0xc3   : > { %v1270_v42 = vrot.slane %v595_v14, %v4223_v28 }
  0xc4   : > { %3587 = vmatmul.mubr.msk.bf16.vlgmr.msra.gmra.mrb[48].mxu0 %vm1571_vm0, %v3988_v26  ;;  %3588 = vmatmul.mubr.msk.bf16.vlgmr.msra.gmra.mrb[48].mxu1 %vm1571_vm0, %v3988_v26 }
  0xc5   : > { %2642 = vmatpush1.bf16.msra.mxu0 %v3487_v35  ;;  %2683 = vmatpush1.bf16.msra.mxu1 %v3489_v36 }
  0xc6   : > { %2643 = vmatprep.subr.bf16.mxu0 %v3552_v37  ;;  %2684 = vmatprep.subr.bf16.mxu1 %v3554_v38  ;;  %v4229_v38 = vsub.s32 7, %v1252_v11 }
  0xc7   : > { %2673 = vmatprep.mubr.bf16.mxu0 %v3648_v0  ;;  %2714 = vmatprep.mubr.bf16.mxu1 %v3648_v0 }
  0xc8   : > { %v1282_v47 = vrot.slane %v595_v14, %v4229_v38 }
  0xc9   : > { %2644 = vmatpush1.bf16.msra.mxu0 %v3551_v43  ;;  %2685 = vmatpush1.bf16.msra.mxu1 %v3553_v44  ;;  %v1278_v44 = vrot.slane %v595_v14, %v4225_v33 }
  0xca   : > { %2723 = vmatprep.subr.bf16.mxu0 %v3492_v45  ;;  %2764 = vmatprep.subr.bf16.mxu1 %v3494_v46  ;;  %v1274_v45 = vrot.slane %v595_v14, %v4227_v34 }
  0xcc   : > { %3589 = vmatmul.mubr.msk.bf16.vlgmr.msra.gmra.mrb[52].mxu0 %vm1571_vm0, %v3988_v26  ;;  %3590 = vmatmul.mubr.msk.bf16.vlgmr.msra.gmra.mrb[52].mxu1 %vm1571_vm0, %v3988_v26 }
  0xcd   : > { %2724 = vmatpush1.bf16.msra.mxu0 %v3491_v51  ;;  %2765 = vmatpush1.bf16.msra.mxu1 %v3493_v52 }
  0xce   : > { %2725 = vmatprep.subr.bf16.mxu0 %v3556_v53  ;;  %2766 = vmatprep.subr.bf16.mxu1 %v3558_v54 }
  0xcf   : > { %2755 = vmatprep.mubr.bf16.mxu0 %v3648_v0  ;;  %2796 = vmatprep.mubr.bf16.mxu1 %v3648_v0 }
  0xd1   : > { %2726 = vmatpush1.bf16.msra.mxu0 %v3555_v59  ;;  %2767 = vmatpush1.bf16.msra.mxu1 %v3557_v60 }
  0xd2   : > { %2805 = vmatprep.subr.bf16.mxu0 %v3496_v61  ;;  %2846 = vmatprep.subr.bf16.mxu1 %v3498_v62 }
  0xd4   : > { %3591 = vmatmul.mubr.msk.bf16.vlgmr.msra.gmra.mrb[56].mxu0 %vm1571_vm0, %v3988_v26  ;;  %3592 = vmatmul.mubr.msk.bf16.vlgmr.msra.gmra.mrb[56].mxu1 %vm1571_vm0, %v3988_v26 }
  0xd5   : > { %2806 = vmatpush1.bf16.msra.mxu0 %v3495_v4  ;;  %2847 = vmatpush1.bf16.msra.mxu1 %v3497_v5  ;;  %v1290_v4 = vrot.slane %v596_v57, %v4213_v15 }
  0xd6   : > { %2807 = vmatprep.subr.bf16.mxu0 %v3560_v6  ;;  %2848 = vmatprep.subr.bf16.mxu1 %v3562_v7  ;;  %v1298_v6 = vrot.slane %v596_v57, %v4215_v16 }
  0xd7   : > { %2837 = vmatprep.mubr.bf16.mxu0 %v3648_v0  ;;  %2878 = vmatprep.mubr.bf16.mxu1 %v3648_v0  ;;  %v4208_v0 = vsub.s32 0, %v1252_v11 }
  0xd9   : > { %2808 = vmatpush1.bf16.msra.mxu0 %v3559_v8  ;;  %2849 = vmatpush1.bf16.msra.mxu1 %v3561_v9  ;;  %v1254_v17 = vrot.slane %v595_v14, %v4208_v0  ;;  %v1286_v1 = vrot.slane %v596_v57, %v4208_v0 }
  0xdc   : > { %3593 = vmatmul.mubr.msk.bf16.vlgmr.msra.gmra.mrb[60].mxu0 %vm1571_vm0, %v3988_v26  ;;  %3594 = vmatmul.mubr.msk.bf16.vlgmr.msra.gmra.mrb[60].mxu1 %vm1571_vm0, %v3988_v26  ;;  %v4211_v26 = vsub.s32 2, %v1252_v11 }
  0xde   : > { %v1262_v19 = vrot.slane %v595_v14, %v4211_v26  ;;  %v1294_v3 = vrot.slane %v596_v57, %v4211_v26 }
 0x137   : > { %v1609_v22 = vpop.f32.mrb[0].mxu0  ;;  %v1650_v24 = vpop.f32.mrb[0].mxu1 }
 0x138   : > { %v1610_v23 = vadd.f32 %v1609_v22, %v1254_v17  ;;  %v1611_v25 = vpop.f32.mrb[1].mxu0  ;;  %v1651_v29 = vadd.f32 %v1650_v24, %v1262_v19  ;;  %v1652_v31 = vpop.f32.mrb[1].mxu1 }
 0x139   : > { %v1612_v30 = vadd.f32 %v1611_v25, %v1258_v20  ;;  %v1613_v32 = vpop.f32.mrb[2].mxu0  ;;  %v1653_v35 = vadd.f32 %v1652_v31, %v1266_v21  ;;  %v1654_v36 = vpop.f32.mrb[2].mxu1 }
 0x13a   : > { %v1614_v37 = vpop.f32.mrb[3].mxu0  ;;  %v1655_v40 = vpop.f32.mrb[3].mxu1  ;;  %v1310_v32 = vrot.slane %v596_v57, %v4225_v33 }
 0x13b   : > { %v2951_v39 = vcombine.low %v1610_v23, %v1612_v30  ;;  %v2952_v41 = vcombine.low %v1651_v29, %v1653_v35  ;;  %v1302_v30 = vrot.slane %v596_v57, %v4223_v28  ;;  %v1306_v35 = vrot.slane %v596_v57, %v4227_v34 }
 0x13c   : > { %v1314_v37 = vrot.slane %v596_v57, %v4229_v38 }
 0x13d   : > { %v2961_v43 = vrot.slane %v2951_v39, %v4221_v27  ;;  %v2968_v46 = vrot.slane %v2952_v41, %v4221_v27 }
 0x13f   : > { %v1691_v48 = vpop.f32.mrb[4].mxu0  ;;  %v2983_v49 = vcombine.low %v2961_v43, %v2968_v46  ;;  %v1732_v51 = vpop.f32.mrb[4].mxu1 }
 0x140   : > { %v1692_v50 = vadd.f32 %v1691_v48, %v1270_v42  ;;  %v1693_v52 = vpop.f32.mrb[5].mxu0  ;;  %v1733_v53 = vadd.f32 %v1732_v51, %v1278_v44  ;;  %v1734_v55 = vpop.f32.mrb[5].mxu1  ;;  %v597_v48 = vld [vmem:[%s4206_s8 + $0x10] sm:$0xff] }
 0x141   : > { %v1694_v54 = vadd.f32 %v1693_v52, %v1274_v45  ;;  %v1695_v56 = vpop.f32.mrb[6].mxu0  ;;  %v1735_v58 = vadd.f32 %v1734_v55, %v1282_v47  ;;  %v1736_v59 = vpop.f32.mrb[6].mxu1  ;;  %v2991_v18 = vrot.slane %v2983_v49, %v4221_v27  ;;  %v1318_v55 = vrot.slane %v597_v48, %v4208_v0 }
 0x142   : > { %v1696_v60 = vpop.f32.mrb[7].mxu0  ;;  %v1737_v62 = vpop.f32.mrb[7].mxu1  ;;  %v1326_v57 = vrot.slane %v597_v48, %v4211_v26 }
 0x143   : > { %v2953_v61 = vcombine.low %v1692_v50, %v1694_v54  ;;  %v2954_v63 = vcombine.low %v1733_v53, %v1735_v58  ;;  %v1322_v58 = vrot.slane %v597_v48, %v4213_v15  ;;  %v1330_v60 = vrot.slane %v597_v48, %v4215_v16 }
 0x145   : > { %v2975_v2 = vrot.slane %v2953_v61, %v4221_v27  ;;  %v2982_v5 = vrot.slane %v2954_v63, %v4221_v27 }
 0x147   : > { %v1773_v7 = vpop.f32.mrb[8].mxu0  ;;  %v2984_v8 = vcombine.low %v2975_v2, %v2982_v5  ;;  %v1814_v10 = vpop.f32.mrb[8].mxu1 }
 0x148   : > { %v1774_v9 = vadd.f32 %v1773_v7, %v1286_v1  ;;  %v1775_v11 = vpop.f32.mrb[9].mxu0  ;;  %v1815_v12 = vadd.f32 %v1814_v10, %v1294_v3  ;;  %v1816_v14 = vpop.f32.mrb[9].mxu1 }
 0x149   : > { %v1776_v13 = vadd.f32 %v1775_v11, %v1290_v4  ;;  %v1777_v17 = vpop.f32.mrb[10].mxu0  ;;  %v2998_v19 = vrot.slane %v2984_v8, %v4221_v27  ;;  %v1817_v20 = vadd.f32 %v1816_v14, %v1298_v6  ;;  %v1818_v21 = vpop.f32.mrb[10].mxu1 }
 0x14a   : > { %v1778_v22 = vpop.f32.mrb[11].mxu0  ;;  %v1819_v24 = vpop.f32.mrb[11].mxu1  ;;  %v1338_v21 = vrot.slane %v597_v48, %v4227_v34 }
 0x14b   : > { %v3000_v23 = vcombine.low %v1774_v9, %v1776_v13  ;;  %v2999_v25 = vcombine.low %v2991_v18, %v2998_v19  ;;  %v3001_v29 = vcombine.low %v1815_v12, %v1817_v20  ;;  %v1334_v18 = vrot.slane %v597_v48, %v4223_v28 }
 0x14c   : > { %v1342_v20 = vrot.slane %v597_v48, %v4225_v33 }
 0x14d   : > { %v3010_v31 = vrot.slane %v3000_v23, %v4221_v27  ;;  %3351 = vst [vmem:[%s4250_s11] sm:$0xff] %v2999_v25  ;;  %v3017_v36 = vrot.slane %v3001_v29, %v4221_v27  ;;  %v1346_v23 = vrot.slane %v597_v48, %v4229_v38 }
 0x14f   : > { %v1855_v39 = vpop.f32.mrb[12].mxu0  ;;  %v3032_v40 = vcombine.low %v3010_v31, %v3017_v36  ;;  %v1896_v42 = vpop.f32.mrb[12].mxu1 }
 0x150   : > { %v1856_v41 = vadd.f32 %v1855_v39, %v1302_v30  ;;  %v1857_v43 = vpop.f32.mrb[13].mxu0  ;;  %v1897_v44 = vadd.f32 %v1896_v42, %v1310_v32  ;;  %v1898_v46 = vpop.f32.mrb[13].mxu1  ;;  %v598_v39 = vld [vmem:[%s4206_s8 + $0x18] sm:$0xff] }
 0x151   : > { %v1858_v45 = vadd.f32 %v1857_v43, %v1306_v35  ;;  %v1859_v47 = vpop.f32.mrb[14].mxu0  ;;  %v1899_v49 = vadd.f32 %v1898_v46, %v1314_v37  ;;  %v1900_v50 = vpop.f32.mrb[14].mxu1  ;;  %v3040_v7 = vrot.slane %v3032_v40, %v4221_v27  ;;  %v1350_v46 = vrot.slane %v598_v39, %v4208_v0 }
 0x152   : > { %v1860_v51 = vpop.f32.mrb[15].mxu0  ;;  %v1901_v53 = vpop.f32.mrb[15].mxu1  ;;  %v1358_v48 = vrot.slane %v598_v39, %v4211_v26 }
 0x153   : > { %v3002_v52 = vcombine.low %v1856_v41, %v1858_v45  ;;  %v3003_v54 = vcombine.low %v1897_v44, %v1899_v49  ;;  %v1354_v49 = vrot.slane %v598_v39, %v4213_v15  ;;  %v1362_v51 = vrot.slane %v598_v39, %v4215_v16 }
 0x155   : > { %v3024_v56 = vrot.slane %v3002_v52, %v4221_v27  ;;  %v3031_v59 = vrot.slane %v3003_v54, %v4221_v27 }
 0x157   : > { %v1937_v61 = vpop.f32.mrb[16].mxu0  ;;  %v3033_v62 = vcombine.low %v3024_v56, %v3031_v59  ;;  %v1978_v1 = vpop.f32.mrb[16].mxu1 }
 0x158   : > { %v1938_v63 = vadd.f32 %v1937_v61, %v1318_v55  ;;  %v1939_v2 = vpop.f32.mrb[17].mxu0  ;;  %v1979_v3 = vadd.f32 %v1978_v1, %v1326_v57  ;;  %v1980_v5 = vpop.f32.mrb[17].mxu1 }
 0x159   : > { %v1940_v4 = vadd.f32 %v1939_v2, %v1322_v58  ;;  %v1941_v6 = vpop.f32.mrb[18].mxu0  ;;  %v3047_v8 = vrot.slane %v3033_v62, %v4221_v27  ;;  %v1981_v9 = vadd.f32 %v1980_v5, %v1330_v60  ;;  %v1982_v10 = vpop.f32.mrb[18].mxu1 }
 0x15a   : > { %v1942_v11 = vpop.f32.mrb[19].mxu0  ;;  %v1983_v13 = vpop.f32.mrb[19].mxu1  ;;  %v1370_v10 = vrot.slane %v598_v39, %v4227_v34 }
 0x15b   : > { %v3049_v12 = vcombine.low %v1938_v63, %v1940_v4  ;;  %v3048_v14 = vcombine.low %v3040_v7, %v3047_v8  ;;  %v3050_v17 = vcombine.low %v1979_v3, %v1981_v9  ;;  %v1366_v7 = vrot.slane %v598_v39, %v4223_v28 }
 0x15c   : > { %v1374_v9 = vrot.slane %v598_v39, %v4225_v33 }
 0x15d   : > { %v3059_v19 = vrot.slane %v3049_v12, %v4221_v27  ;;  %3352 = vst [vmem:[%s4250_s11 + $0x8] sm:$0xff] %v3048_v14  ;;  %v3066_v22 = vrot.slane %v3050_v17, %v4221_v27  ;;  %v1378_v12 = vrot.slane %v598_v39, %v4229_v38 }
 0x15f   : > { %v2019_v24 = vpop.f32.mrb[20].mxu0  ;;  %v3081_v25 = vcombine.low %v3059_v19, %v3066_v22  ;;  %v2060_v30 = vpop.f32.mrb[20].mxu1 }
 0x160   : > { %v2020_v29 = vadd.f32 %v2019_v24, %v1334_v18  ;;  %v2021_v31 = vpop.f32.mrb[21].mxu0  ;;  %v2061_v32 = vadd.f32 %v2060_v30, %v1342_v20  ;;  %v2062_v36 = vpop.f32.mrb[21].mxu1  ;;  %v599_v24 = vld [vmem:[%s4206_s8 + $0x20] sm:$0xff] }
 0x161   : > { %v2022_v35 = vadd.f32 %v2021_v31, %v1338_v21  ;;  %v2023_v37 = vpop.f32.mrb[22].mxu0  ;;  %v2063_v40 = vadd.f32 %v2062_v36, %v1346_v23  ;;  %v2064_v41 = vpop.f32.mrb[22].mxu1  ;;  %v3089_v61 = vrot.slane %v3081_v25, %v4221_v27  ;;  %v1382_v36 = vrot.slane %v599_v24, %v4208_v0 }
 0x162   : > { %v2024_v42 = vpop.f32.mrb[23].mxu0  ;;  %v2065_v44 = vpop.f32.mrb[23].mxu1  ;;  %v1390_v39 = vrot.slane %v599_v24, %v4211_v26 }
 0x163   : > { %v3051_v43 = vcombine.low %v2020_v29, %v2022_v35  ;;  %v3052_v45 = vcombine.low %v2061_v32, %v2063_v40  ;;  %v1386_v40 = vrot.slane %v599_v24, %v4213_v15  ;;  %v1394_v42 = vrot.slane %v599_v24, %v4215_v16 }
 0x165   : > { %v3073_v47 = vrot.slane %v3051_v43, %v4221_v27  ;;  %v3080_v50 = vrot.slane %v3052_v45, %v4221_v27 }
 0x167   : > { %v2101_v52 = vpop.f32.mrb[24].mxu0  ;;  %v3082_v53 = vcombine.low %v3073_v47, %v3080_v50  ;;  %v2142_v55 = vpop.f32.mrb[24].mxu1 }
 0x168   : > { %v2102_v54 = vadd.f32 %v2101_v52, %v1350_v46  ;;  %v2103_v56 = vpop.f32.mrb[25].mxu0  ;;  %v2143_v57 = vadd.f32 %v2142_v55, %v1358_v48  ;;  %v2144_v59 = vpop.f32.mrb[25].mxu1 }
 0x169   : > { %v2104_v58 = vadd.f32 %v2103_v56, %v1354_v49  ;;  %v2105_v60 = vpop.f32.mrb[26].mxu0  ;;  %v3096_v62 = vrot.slane %v3082_v53, %v4221_v27  ;;  %v2145_v63 = vadd.f32 %v2144_v59, %v1362_v51  ;;  %v2146_v1 = vpop.f32.mrb[26].mxu1 }
 0x16a   : > { %v2106_v2 = vpop.f32.mrb[27].mxu0  ;;  %v2147_v4 = vpop.f32.mrb[27].mxu1  ;;  %v1402_v1 = vrot.slane %v599_v24, %v4227_v34 }
 0x16b   : > { %v3098_v3 = vcombine.low %v2102_v54, %v2104_v58  ;;  %v3097_v5 = vcombine.low %v3089_v61, %v3096_v62  ;;  %v3099_v6 = vcombine.low %v2143_v57, %v2145_v63  ;;  %v1398_v61 = vrot.slane %v599_v24, %v4223_v28 }
 0x16c   : > { %v1406_v63 = vrot.slane %v599_v24, %v4225_v33 }
 0x16d   : > { %v3108_v8 = vrot.slane %v3098_v3, %v4221_v27  ;;  %3353 = vst [vmem:[%s4250_s11 + $0x10] sm:$0xff] %v3097_v5  ;;  %v3115_v11 = vrot.slane %v3099_v6, %v4221_v27  ;;  %v1410_v3 = vrot.slane %v599_v24, %v4229_v38 }
 0x16f   : > { %v2183_v13 = vpop.f32.mrb[28].mxu0  ;;  %v3130_v14 = vcombine.low %v3108_v8, %v3115_v11  ;;  %v2224_v18 = vpop.f32.mrb[28].mxu1 }
 0x170   : > { %v2184_v17 = vadd.f32 %v2183_v13, %v1366_v7  ;;  %v2185_v19 = vpop.f32.mrb[29].mxu0  ;;  %v2225_v20 = vadd.f32 %v2224_v18, %v1374_v9  ;;  %v2226_v22 = vpop.f32.mrb[29].mxu1  ;;  %v600_v13 = vld [vmem:[%s4206_s8 + $0x28] sm:$0xff] }
 0x171   : > { %v2186_v21 = vadd.f32 %v2185_v19, %v1370_v10  ;;  %v2187_v23 = vpop.f32.mrb[30].mxu0  ;;  %v2227_v25 = vadd.f32 %v2226_v22, %v1378_v12  ;;  %v2228_v29 = vpop.f32.mrb[30].mxu1  ;;  %v3138_v52 = vrot.slane %v3130_v14, %v4221_v27  ;;  %v1414_v22 = vrot.slane %v600_v13, %v4208_v0 }
 0x172   : > { %v2188_v30 = vpop.f32.mrb[31].mxu0  ;;  %v2229_v32 = vpop.f32.mrb[31].mxu1  ;;  %v1422_v24 = vrot.slane %v600_v13, %v4211_v26 }
 0x173   : > { %v3100_v31 = vcombine.low %v2184_v17, %v2186_v21  ;;  %v3101_v35 = vcombine.low %v2225_v20, %v2227_v25  ;;  %v1418_v25 = vrot.slane %v600_v13, %v4213_v15  ;;  %v1426_v30 = vrot.slane %v600_v13, %v4215_v16 }
 0x175   : > { %v3122_v37 = vrot.slane %v3100_v31, %v4221_v27  ;;  %v3129_v41 = vrot.slane %v3101_v35, %v4221_v27 }
 0x177   : > { %v2265_v43 = vpop.f32.mrb[32].mxu0  ;;  %v3131_v44 = vcombine.low %v3122_v37, %v3129_v41  ;;  %v2306_v46 = vpop.f32.mrb[32].mxu1 }
 0x178   : > { %v2266_v45 = vadd.f32 %v2265_v43, %v1382_v36  ;;  %v2267_v47 = vpop.f32.mrb[33].mxu0  ;;  %v2307_v48 = vadd.f32 %v2306_v46, %v1390_v39  ;;  %v2308_v50 = vpop.f32.mrb[33].mxu1 }
 0x179   : > { %v2268_v49 = vadd.f32 %v2267_v47, %v1386_v40  ;;  %v2269_v51 = vpop.f32.mrb[34].mxu0  ;;  %v3145_v53 = vrot.slane %v3131_v44, %v4221_v27  ;;  %v2309_v54 = vadd.f32 %v2308_v50, %v1394_v42  ;;  %v2310_v55 = vpop.f32.mrb[34].mxu1 }
 0x17a   : > { %v2270_v56 = vpop.f32.mrb[35].mxu0  ;;  %v2311_v58 = vpop.f32.mrb[35].mxu1  ;;  %v1434_v55 = vrot.slane %v600_v13, %v4227_v34 }
 0x17b   : > { %v3147_v57 = vcombine.low %v2266_v45, %v2268_v49  ;;  %v3146_v59 = vcombine.low %v3138_v52, %v3145_v53  ;;  %v3148_v60 = vcombine.low %v2307_v48, %v2309_v54  ;;  %v1430_v52 = vrot.slane %v600_v13, %v4223_v28 }
 0x17c   : > { %v1438_v54 = vrot.slane %v600_v13, %v4225_v33 }
 0x17d   : > { %v3157_v62 = vrot.slane %v3147_v57, %v4221_v27  ;;  %3354 = vst [vmem:[%s4250_s11 + $0x18] sm:$0xff] %v3146_v59  ;;  %v3164_v2 = vrot.slane %v3148_v60, %v4221_v27  ;;  %v1442_v57 = vrot.slane %v600_v13, %v4229_v38 }
 0x17f   : > { %v2347_v4 = vpop.f32.mrb[36].mxu0  ;;  %v3179_v5 = vcombine.low %v3157_v62, %v3164_v2  ;;  %v2388_v7 = vpop.f32.mrb[36].mxu1 }
 0x180   : > { %v2348_v6 = vadd.f32 %v2347_v4, %v1398_v61  ;;  %v2349_v8 = vpop.f32.mrb[37].mxu0  ;;  %v2389_v9 = vadd.f32 %v2388_v7, %v1406_v63  ;;  %v2390_v11 = vpop.f32.mrb[37].mxu1  ;;  %v601_v4 = vld [vmem:[%s4206_s8 + $0x30] sm:$0xff] }
 0x181   : > { %v2350_v10 = vadd.f32 %v2349_v8, %v1402_v1  ;;  %v2351_v12 = vpop.f32.mrb[38].mxu0  ;;  %v2391_v14 = vadd.f32 %v2390_v11, %v1410_v3  ;;  %v2392_v17 = vpop.f32.mrb[38].mxu1  ;;  %v3187_v43 = vrot.slane %v3179_v5, %v4221_v27  ;;  %v1446_v11 = vrot.slane %v601_v4, %v4208_v0 }
 0x182   : > { %v2352_v18 = vpop.f32.mrb[39].mxu0  ;;  %v2393_v20 = vpop.f32.mrb[39].mxu1  ;;  %v1454_v13 = vrot.slane %v601_v4, %v4211_v26 }
 0x183   : > { %v3149_v19 = vcombine.low %v2348_v6, %v2350_v10  ;;  %v3150_v21 = vcombine.low %v2389_v9, %v2391_v14  ;;  %v1450_v14 = vrot.slane %v601_v4, %v4213_v15  ;;  %v1458_v18 = vrot.slane %v601_v4, %v4215_v16 }
 0x185   : > { %v3171_v23 = vrot.slane %v3149_v19, %v4221_v27  ;;  %v3178_v29 = vrot.slane %v3150_v21, %v4221_v27 }
 0x187   : > { %v2429_v31 = vpop.f32.mrb[40].mxu0  ;;  %v3180_v32 = vcombine.low %v3171_v23, %v3178_v29  ;;  %v2470_v36 = vpop.f32.mrb[40].mxu1 }
 0x188   : > { %v2430_v35 = vadd.f32 %v2429_v31, %v1414_v22  ;;  %v2431_v37 = vpop.f32.mrb[41].mxu0  ;;  %v2471_v39 = vadd.f32 %v2470_v36, %v1422_v24  ;;  %v2472_v41 = vpop.f32.mrb[41].mxu1 }
 0x189   : > { %v2432_v40 = vadd.f32 %v2431_v37, %v1418_v25  ;;  %v2433_v42 = vpop.f32.mrb[42].mxu0  ;;  %v3194_v44 = vrot.slane %v3180_v32, %v4221_v27  ;;  %v2473_v45 = vadd.f32 %v2472_v41, %v1426_v30  ;;  %v2474_v46 = vpop.f32.mrb[42].mxu1 }
 0x18a   : > { %v2434_v47 = vpop.f32.mrb[43].mxu0  ;;  %v2475_v49 = vpop.f32.mrb[43].mxu1  ;;  %v1466_v46 = vrot.slane %v601_v4, %v4227_v34 }
 0x18b   : > { %v3196_v48 = vcombine.low %v2430_v35, %v2432_v40  ;;  %v3195_v50 = vcombine.low %v3187_v43, %v3194_v44  ;;  %v3197_v51 = vcombine.low %v2471_v39, %v2473_v45  ;;  %v1462_v43 = vrot.slane %v601_v4, %v4223_v28 }
 0x18c   : > { %v1470_v45 = vrot.slane %v601_v4, %v4225_v33 }
 0x18d   : > { %v3206_v53 = vrot.slane %v3196_v48, %v4221_v27  ;;  %3355 = vst [vmem:[%s4250_s11 + $0x20] sm:$0xff] %v3195_v50  ;;  %v3213_v56 = vrot.slane %v3197_v51, %v4221_v27  ;;  %v1474_v48 = vrot.slane %v601_v4, %v4229_v38 }
 0x18f   : > { %v2511_v58 = vpop.f32.mrb[44].mxu0  ;;  %v3228_v59 = vcombine.low %v3206_v53, %v3213_v56  ;;  %v2552_v61 = vpop.f32.mrb[44].mxu1 }
 0x190   : > { %v2512_v60 = vadd.f32 %v2511_v58, %v1430_v52  ;;  %v2513_v62 = vpop.f32.mrb[45].mxu0  ;;  %v2553_v63 = vadd.f32 %v2552_v61, %v1438_v54  ;;  %v2554_v2 = vpop.f32.mrb[45].mxu1  ;;  %v602_v58 = vld [vmem:[%s4206_s8 + $0x38] sm:$0xff] }
 0x191   : > { %v2514_v1 = vadd.f32 %v2513_v62, %v1434_v55  ;;  %v2515_v3 = vpop.f32.mrb[46].mxu0  ;;  %v2555_v5 = vadd.f32 %v2554_v2, %v1442_v57  ;;  %v2556_v6 = vpop.f32.mrb[46].mxu1  ;;  %v3236_v31 = vrot.slane %v3228_v59, %v4221_v27  ;;  %v1478_v2 = vrot.slane %v602_v58, %v4208_v0 }
 0x192   : > { %v2516_v7 = vpop.f32.mrb[47].mxu0  ;;  %v2557_v9 = vpop.f32.mrb[47].mxu1  ;;  %v1486_v4 = vrot.slane %v602_v58, %v4211_v26 }
 0x193   : > { %v3198_v8 = vcombine.low %v2512_v60, %v2514_v1  ;;  %v3199_v10 = vcombine.low %v2553_v63, %v2555_v5  ;;  %v1482_v5 = vrot.slane %v602_v58, %v4213_v15  ;;  %v1490_v7 = vrot.slane %v602_v58, %v4215_v16 }
 0x195   : > { %v3220_v12 = vrot.slane %v3198_v8, %v4221_v27  ;;  %v3227_v17 = vrot.slane %v3199_v10, %v4221_v27 }
 0x197   : > { %v2593_v19 = vpop.f32.mrb[48].mxu0  ;;  %v3229_v20 = vcombine.low %v3220_v12, %v3227_v17  ;;  %v2634_v22 = vpop.f32.mrb[48].mxu1 }
 0x198   : > { %v2594_v21 = vadd.f32 %v2593_v19, %v1446_v11  ;;  %v2595_v23 = vpop.f32.mrb[49].mxu0  ;;  %v2635_v24 = vadd.f32 %v2634_v22, %v1454_v13  ;;  %v2636_v29 = vpop.f32.mrb[49].mxu1 }
 0x199   : > { %v2596_v25 = vadd.f32 %v2595_v23, %v1450_v14  ;;  %v2597_v30 = vpop.f32.mrb[50].mxu0  ;;  %v3243_v32 = vrot.slane %v3229_v20, %v4221_v27  ;;  %v2637_v35 = vadd.f32 %v2636_v29, %v1458_v18  ;;  %v2638_v36 = vpop.f32.mrb[50].mxu1  ;;  %v1502_v29 = vrot.slane %v602_v58, %v4225_v33 }
 0x19a   : > { %v2598_v37 = vpop.f32.mrb[51].mxu0  ;;  %v2639_v40 = vpop.f32.mrb[51].mxu1  ;;  %v1498_v30 = vrot.slane %v602_v58, %v4227_v34 }
 0x19b   : > { %v3245_v39 = vcombine.low %v2594_v21, %v2596_v25  ;;  %v3244_v41 = vcombine.low %v3236_v31, %v3243_v32  ;;  %v3246_v42 = vcombine.low %v2635_v24, %v2637_v35  ;;  %v1494_v24 = vrot.slane %v602_v58, %v4223_v28 }
 0x19c   : > { %v1506_v32 = vrot.slane %v602_v58, %v4229_v38 }
 0x19d   : > { %v3255_v44 = vrot.slane %v3245_v39, %v4221_v27  ;;  %3356 = vst [vmem:[%s4250_s11 + $0x28] sm:$0xff] %v3244_v41  ;;  %v3262_v47 = vrot.slane %v3246_v42, %v4221_v27 }
 0x19f   : > { %v2675_v49 = vpop.f32.mrb[52].mxu0  ;;  %v3277_v50 = vcombine.low %v3255_v44, %v3262_v47  ;;  %v2716_v52 = vpop.f32.mrb[52].mxu1 }
 0x1a0   : > { %v2676_v51 = vadd.f32 %v2675_v49, %v1462_v43  ;;  %v2677_v53 = vpop.f32.mrb[53].mxu0  ;;  %v2717_v54 = vadd.f32 %v2716_v52, %v1470_v45  ;;  %v2718_v56 = vpop.f32.mrb[53].mxu1 }
 0x1a1   : > { %v2678_v55 = vadd.f32 %v2677_v53, %v1466_v46  ;;  %v2679_v57 = vpop.f32.mrb[54].mxu0  ;;  %v2719_v59 = vadd.f32 %v2718_v56, %v1474_v48  ;;  %v2720_v60 = vpop.f32.mrb[54].mxu1  ;;  %v3285_v18 = vrot.slane %v3277_v50, %v4221_v27 }
 0x1a2   : > { %v2680_v61 = vpop.f32.mrb[55].mxu0  ;;  %v2721_v63 = vpop.f32.mrb[55].mxu1 }
 0x1a3   : > { %v3247_v62 = vcombine.low %v2676_v51, %v2678_v55  ;;  %v3248_v1 = vcombine.low %v2717_v54, %v2719_v59 }
 0x1a5   : > { %v3269_v3 = vrot.slane %v3247_v62, %v4221_v27  ;;  %v3276_v6 = vrot.slane %v3248_v1, %v4221_v27 }
 0x1a7   : > { %v2757_v8 = vpop.f32.mrb[56].mxu0  ;;  %v3278_v9 = vcombine.low %v3269_v3, %v3276_v6  ;;  %v2798_v11 = vpop.f32.mrb[56].mxu1 }
 0x1a8   : > { %v2758_v10 = vadd.f32 %v2757_v8, %v1478_v2  ;;  %v2759_v12 = vpop.f32.mrb[57].mxu0  ;;  %v2799_v13 = vadd.f32 %v2798_v11, %v1486_v4  ;;  %v2800_v17 = vpop.f32.mrb[57].mxu1 }
 0x1a9   : > { %v2760_v14 = vadd.f32 %v2759_v12, %v1482_v5  ;;  %v2761_v0 = vpop.f32.mrb[58].mxu0  ;;  %v3292_v26 = vrot.slane %v3278_v9, %v4221_v27  ;;  %v2801_v19 = vadd.f32 %v2800_v17, %v1490_v7  ;;  %v2802_v15 = vpop.f32.mrb[58].mxu1 }
 0x1aa   : > { %v2762_v20 = vpop.f32.mrb[59].mxu0  ;;  %v2803_v22 = vpop.f32.mrb[59].mxu1 }
 0x1ab   : > { %v3294_v21 = vcombine.low %v2758_v10, %v2760_v14  ;;  %v3293_v16 = vcombine.low %v3285_v18, %v3292_v26  ;;  %v3295_v23 = vcombine.low %v2799_v13, %v2801_v19 }
 0x1ad   : > { %v3304_v25 = vrot.slane %v3294_v21, %v4221_v27  ;;  %3357 = vst [vmem:[%s4250_s11 + $0x30] sm:$0xff] %v3293_v16  ;;  %v3311_v31 = vrot.slane %v3295_v23, %v4221_v27 }
 0x1af   : > { %v2839_v35 = vpop.f32.mrb[60].mxu0  ;;  %v3326_v36 = vcombine.low %v3304_v25, %v3311_v31  ;;  %v2880_v39 = vpop.f32.mrb[60].mxu1 }
 0x1b0   : > { %v2840_v37 = vadd.f32 %v2839_v35, %v1494_v24  ;;  %v2841_v40 = vpop.f32.mrb[61].mxu0  ;;  %v2881_v41 = vadd.f32 %v2880_v39, %v1502_v29  ;;  %v2882_v28 = vpop.f32.mrb[61].mxu1 }
 0x1b1   : > { %v2842_v42 = vadd.f32 %v2841_v40, %v1498_v30  ;;  %v2843_v43 = vpop.f32.mrb[62].mxu0  ;;  %v2883_v44 = vadd.f32 %v2882_v28, %v1506_v32  ;;  %v2884_v45 = vpop.f32.mrb[62].mxu1  ;;  %v3334_v50 = vrot.slane %v3326_v36, %v4221_v27 }
 0x1b2   : > { %v2844_v33 = vpop.f32.mrb[63].mxu0  ;;  %v2885_v34 = vpop.f32.mrb[63].mxu1 }
 0x1b3   : > { %v3296_v46 = vcombine.low %v2840_v37, %v2842_v42  ;;  %v3297_v47 = vcombine.low %v2881_v41, %v2883_v44 }
 0x1b5   : > { %v3318_v48 = vrot.slane %v3296_v46, %v4221_v27  ;;  %v3325_v38 = vrot.slane %v3297_v47, %v4221_v27 }
 0x1b7   : > { %v3327_v49 = vcombine.low %v3318_v48, %v3325_v38 }
 0x1b9   : > { %v3341_v51 = vrot.slane %v3327_v49, %v4221_v27 }
 0x1bb   : > { %v3342_v52 = vcombine.low %v3334_v50, %v3341_v51 }
 0x1bd   : > { %3358 = vst [vmem:[%s4250_s11 + $0x38] sm:$0xff] %v3342_v52 }
 0x1be PF: > { %p10_p9 = scmp.ge.s32.totalorder %s3687_s16, 10   ;;  %s4374_s12 = smov %s3642_s13 }
 0x1bf   : > { %s4375_s13 = smov %s3696_s19  ;;  %s4376_s14 = smov %s3687_s16 }
 0x1c0   :  { %12 = sbr.rel (!%p10_p9) target bundleno = 2 (0x2), region = 93 }

// kernel: forward.5
= control target key start
LH: loop header
LB: loop body
LE: loop exit
PB: predicated region body
PF: predicated region fallthrough
CT: control target
= control target key end

     0   :  { %vm33_vm0 = vcmask 1043456   ;;  %vm29_vm1 = vcmask 31744   ;;  %v330_v0 = vmov 0.0   ;;  %vm331_vm2 = vmmov 0   ;;  %s415_s1 = inlined_call_operand.vmem [shape: f32[4,32], index: 1, kind: input, shape index: {}]   ;;  %s416_s0 = inlined_call_operand.vmem [shape: f32[1,4], index: 0, kind: input, shape index: {}]   ;;  %s417_s3 = inlined_call_operand.vmem [shape: f32[32,32], index: 3, kind: input, shape index: {}]   ;;  %s418_s5 = inlined_call_operand.vmem [shape: f32[32,32], index: 5, kind: input, shape index: {}]   ;;  %s419_s2 = inlined_call_operand.vmem [shape: f32[1,32], index: 2, kind: input, shape index: {}]   ;;  %s420_s4 = inlined_call_operand.vmem [shape: f32[1,32], index: 4, kind: input, shape index: {}]   ;;  %s421_s6 = inlined_call_operand.vmem [shape: f32[1,32], index: 6, kind: input, shape index: {}]   ;;  %s422_s7 = inlined_call_operand.vmem [shape: f32[1,32], index: 7, kind: output, shape index: {}]  }
   0x1   :  { %288 = vmatprep.subr.mxu0 %v330_v0  ;;  %v27_v1 = vld [vmem:[%s415_s1] sm:$0xf]  ;;  %290 = vmatprep.mubr.msk.f32.mxu0 %vm331_vm2, %v330_v0  ;;  %v332_v4 = vmov 0.0|0.0   ;;  %v109_v5 = vld [vmem:[%s417_s3 + $0x8] sm:$0xff]  ;;  %v110_v7 = vld [vmem:[%s417_s3 + $0x10] sm:$0xff]  ;;  %vm113_vm3 = vcmask 261120  }
   0x2   :  { %v26_v2 = vld [vmem:[%s416_s0] sm:$0x1]  ;;  %289 = vmatpush3.msk.msra.mxu0 %vm33_vm0, %v27_v1  ;;  %315 = vmatprep.subr.bf16.mxu1 %v332_v4  ;;  %v111_v8 = vld [vmem:[%s417_s3 + $0x18] sm:$0xff]  ;;  %v189_v11 = vld [vmem:[%s418_s5 + $0x8] sm:$0xff]  ;;  %vm266_vm4 = vcmask 253952  }
   0x3   :  { %v108_v3 = vld [vmem:[%s417_s3] sm:$0xff]  ;;  %291 = vmatmul.mubr.msk.f32.vlgmr.msra.gmra.mrb[0].mxu0 %vm29_vm1, %v26_v2  ;;  %301 = vmatprep.mubr.msk.f32.mxu1 %vm331_vm2, %v330_v0  ;;  %v319_v9 = vpack.c.bf16 %v111_v8, %v110_v7  ;;  %v190_v18 = vld [vmem:[%s418_s5 + $0x10] sm:$0xff]  ;;  %v191_v19 = vld [vmem:[%s418_s5 + $0x18] sm:$0xff] }
   0x4   :  { %v316_v6 = vpack.c.bf16 %v109_v5, %v108_v3  ;;  %321 = vmatprep.subr.bf16.mxu0 %v332_v4  ;;  %312 = vmatprep.mubr.msk.f32.mxu0 %vm331_vm2, %v330_v0  ;;  %v188_v10 = vld [vmem:[%s418_s5] sm:$0xff]  ;;  %v325_v20 = vpack.c.bf16 %v191_v19, %v190_v18 }
   0x5   :  { %v322_v12 = vpack.c.bf16 %v189_v11, %v188_v10  ;;  %v28_v13 = vld [vmem:[%s419_s2] sm:$0x1] }
   0x6   :  { %317 = vmatpush3.bf16.msra.mxu1 %v316_v6  ;;  %v112_v21 = vld [vmem:[%s420_s4] sm:$0x1] }
   0x7   :  { %318 = vmatprep.subr.bf16.mxu1 %v332_v4  ;;  %323 = vmatpush3.bf16.msra.mxu0 %v322_v12  ;;  %v192_v26 = vld [vmem:[%s421_s6] sm:$0x1] }
   0x8   :  { %324 = vmatprep.subr.bf16.mxu0 %v332_v4 }
   0xa   :  { %320 = vmatpush3.bf16.msra.mxu1 %v319_v9 }
   0xb   :  { %326 = vmatpush3.bf16.msra.mxu0 %v325_v20 }
  0xd6   :  { %v103_v14 = vpop.f32.mrb[0].mxu0 }
  0xd7   :  { %v104_v15 = vadd.f32 %v103_v14, %v28_v13  ;;  %v292_v16 = vpop.f32.mrb[1].mxu0 }
  0xd9   :  { %v107_v17 = vmax.f32 %v104_v15, 0.0 }
  0xdb   :  { %302 = vmatmul.mubr.msk.f32.vlgmr.msra.gmra.mrb[0].mxu1 %vm113_vm3, %v107_v17 }
 0x1ae   :  { %v183_v22 = vpop.f32.mrb[0].mxu1 }
 0x1af   :  { %v184_v23 = vadd.f32 %v183_v22, %v112_v21  ;;  %v303_v24 = vpop.f32.mrb[1].mxu1 }
 0x1b1   :  { %v187_v25 = vmax.f32 %v184_v23, 0.0 }
 0x1b3   :  { %313 = vmatmul.mubr.msk.f32.vlgmr.msra.gmra.mrb[2].mxu0 %vm113_vm3, %v187_v25 }
 0x286   :  { %v262_v27 = vpop.f32.mrb[2].mxu0 }
 0x287   :  { %v263_v28 = vadd.f32 %v262_v27, %v192_v26  ;;  %v314_v29 = vpop.f32.mrb[3].mxu0 }
 0x289   :  { %267 = vst.msk [vmem:[%s422_s7] sm:$0x1] %vm266_vm4, %v263_v28 }

// kernel: squeeze.6
= control target key start
LH: loop header
LB: loop body
LE: loop exit
PB: predicated region body
PF: predicated region fallthrough
CT: control target
= control target key end

     0   :  { %s204_s10 = smov 120   ;;  %s205_s11 = smov 104   ;;  %vm3_vm0 = vcmask 64512   ;;  %s449_s0 = inlined_call_operand.vmem [shape: f32[600], index: 0, kind: input, shape index: {}]   ;;  %s450_s1 = inlined_call_operand.vmem [shape: f32[75,8], index: 1, kind: output, shape index: {}]  }
   0x1   :  { %v8_v0 = vld [vmem:[%s449_s0] sm:$0x1f]   ;;  %s206_s16 = smov 112   ;;  %s207_s17 = smov 96  }
   0x2   :  { %v28_v1 = vld [vmem:[%s449_s0] sm:$0x1f]   ;;  %9 = vrot.lane.b32.xlu0 %v8_v0, %s204_s10  ;;  %s208_s22 = smov 88   ;;  %s209_s23 = smov 80  }
   0x3   :  { %29 = vrot.lane.b32.xlu1 %v28_v1, %s205_s11  ;;  %v18_v2 = vld [vmem:[%s449_s0] sm:$0x1f]   ;;  %s210_s28 = smov 72   ;;  %s211_s29 = smov 64  }
   0x4   :  { %v38_v3 = vld [vmem:[%s449_s0] sm:$0x1f]   ;;  %s212_s13 = smov 56   ;;  %s213_s14 = smov 48  }
   0x5   :  { %v48_v4 = vld [vmem:[%s449_s0] sm:$0x1f]   ;;  %s214_s19 = smov 40   ;;  %s215_s20 = smov 32  }
   0x6   :  { %19 = vrot.lane.b32.xlu0 %v18_v2, %s206_s16  ;;  %v58_v5 = vld [vmem:[%s449_s0] sm:$0x1f]   ;;  %s216_s25 = smov 24   ;;  %s217_s26 = smov 16  }
   0x7   :  { %39 = vrot.lane.b32.xlu1 %v38_v3, %s207_s17  ;;  %v68_v6 = vld [vmem:[%s449_s0] sm:$0x1f]  }
   0x8   :  { %v78_v7 = vld [vmem:[%s449_s0] sm:$0x1f]  }
   0x9   :  { %v88_v8 = vld [vmem:[%s449_s0] sm:$0x1f]  }
   0xa   :  { %49 = vrot.lane.b32.xlu0 %v48_v4, %s208_s22  ;;  %v98_v9 = vld [vmem:[%s449_s0] sm:$0x1f]  }
   0xb   :  { %59 = vrot.lane.b32.xlu1 %v58_v5, %s209_s23  ;;  %v2_v10 = vld [vmem:[%s449_s0] sm:$0x1f]  }
   0xc   :  { %4 = vst.msk [vmem:[%s450_s1] ss:$16 sm:$0x3] %vm3_vm0, %v2_v10   ;;  %5 = vst.msk [vmem:[%s450_s1] ss:$16 sm:$0xc] %vm3_vm0, %v2_v10  }
   0xd   :  { %148 = vst.msk [vmem:[%s450_s1 + $0x3c] sm:$0x10] %vm3_vm0, %v2_v10   ;;  %v108_v11 = vld [vmem:[%s449_s0] sm:$0xf]  }
   0xe   :  { %69 = vrot.lane.b32.xlu0 %v68_v6, %s210_s28  ;;  %v116_v12 = vld [vmem:[%s449_s0] sm:$0xf]  }
   0xf   :  { %79 = vrot.lane.b32.xlu1 %v78_v7, %s211_s29  ;;  %v124_v13 = vld [vmem:[%s449_s0] sm:$0xf]  }
  0x10   :  { %v132_v14 = vld [vmem:[%s449_s0] sm:$0xf]  }
  0x11   :  { %v140_v15 = vld [vmem:[%s449_s0] sm:$0xf]   ;;  %s218_s0 = smov 8  }
  0x12   :  { %89 = vrot.lane.b32.xlu0 %v88_v8, %s212_s13 }
  0x13   :  { %99 = vrot.lane.b32.xlu1 %v98_v9, %s213_s14 }
  0x16   :  { %109 = vrot.lane.b32.xlu0 %v108_v11, %s214_s19 }
  0x17   :  { %117 = vrot.lane.b32.xlu1 %v116_v12, %s215_s20 }
  0x1a   :  { %125 = vrot.lane.b32.xlu0 %v124_v13, %s216_s25 }
  0x1b   :  { %133 = vrot.lane.b32.xlu1 %v132_v14, %s217_s26 }
  0x1e   :  { %141 = vrot.lane.b32.xlu0 %v140_v15, %s218_s0 }
  0x74   :  { %v10_v16 = vpop.permute.xlu0 %9  }
  0x75   :  { %v30_v17 = vpop.permute.xlu1 %29   ;;  %149 = vst.msk [vmem:[%s450_s1 + $0x1] ss:$16 sm:$0x3] %vm3_vm0, %v10_v16   ;;  %150 = vst.msk [vmem:[%s450_s1 + $0x1] ss:$16 sm:$0xc] %vm3_vm0, %v10_v16  }
  0x76   :  { %151 = vst.msk [vmem:[%s450_s1 + $0x3d] sm:$0x10] %vm3_vm0, %v10_v16   ;;  %155 = vst.msk [vmem:[%s450_s1 + $0x3] ss:$16 sm:$0x3] %vm3_vm0, %v30_v17  }
  0x77   :  { %156 = vst.msk [vmem:[%s450_s1 + $0x3] ss:$16 sm:$0xc] %vm3_vm0, %v30_v17   ;;  %157 = vst.msk [vmem:[%s450_s1 + $0x3f] sm:$0x10] %vm3_vm0, %v30_v17  }
  0x78   :  { %v20_v18 = vpop.permute.xlu0 %19  }
  0x79   :  { %v40_v19 = vpop.permute.xlu1 %39   ;;  %152 = vst.msk [vmem:[%s450_s1 + $0x2] ss:$16 sm:$0x3] %vm3_vm0, %v20_v18   ;;  %153 = vst.msk [vmem:[%s450_s1 + $0x2] ss:$16 sm:$0xc] %vm3_vm0, %v20_v18  }
  0x7a   :  { %154 = vst.msk [vmem:[%s450_s1 + $0x3e] sm:$0x10] %vm3_vm0, %v20_v18   ;;  %158 = vst.msk [vmem:[%s450_s1 + $0x4] ss:$16 sm:$0x3] %vm3_vm0, %v40_v19  }
  0x7b   :  { %159 = vst.msk [vmem:[%s450_s1 + $0x4] ss:$16 sm:$0xc] %vm3_vm0, %v40_v19   ;;  %160 = vst.msk [vmem:[%s450_s1 + $0x40] sm:$0x10] %vm3_vm0, %v40_v19  }
  0x7c   :  { %v50_v20 = vpop.permute.xlu0 %49  }
  0x7d   :  { %v60_v21 = vpop.permute.xlu1 %59   ;;  %161 = vst.msk [vmem:[%s450_s1 + $0x5] ss:$16 sm:$0x3] %vm3_vm0, %v50_v20   ;;  %162 = vst.msk [vmem:[%s450_s1 + $0x5] ss:$16 sm:$0xc] %vm3_vm0, %v50_v20  }
  0x7e   :  { %163 = vst.msk [vmem:[%s450_s1 + $0x41] sm:$0x10] %vm3_vm0, %v50_v20   ;;  %164 = vst.msk [vmem:[%s450_s1 + $0x6] ss:$16 sm:$0x3] %vm3_vm0, %v60_v21  }
  0x7f   :  { %165 = vst.msk [vmem:[%s450_s1 + $0x6] ss:$16 sm:$0xc] %vm3_vm0, %v60_v21   ;;  %166 = vst.msk [vmem:[%s450_s1 + $0x42] sm:$0x10] %vm3_vm0, %v60_v21  }
  0x80   :  { %v70_v22 = vpop.permute.xlu0 %69  }
  0x81   :  { %v80_v23 = vpop.permute.xlu1 %79   ;;  %167 = vst.msk [vmem:[%s450_s1 + $0x7] ss:$16 sm:$0x3] %vm3_vm0, %v70_v22   ;;  %168 = vst.msk [vmem:[%s450_s1 + $0x7] ss:$16 sm:$0xc] %vm3_vm0, %v70_v22  }
  0x82   :  { %169 = vst.msk [vmem:[%s450_s1 + $0x43] sm:$0x10] %vm3_vm0, %v70_v22   ;;  %170 = vst.msk [vmem:[%s450_s1 + $0x8] ss:$16 sm:$0x3] %vm3_vm0, %v80_v23  }
  0x83   :  { %171 = vst.msk [vmem:[%s450_s1 + $0x8] ss:$16 sm:$0xc] %vm3_vm0, %v80_v23   ;;  %172 = vst.msk [vmem:[%s450_s1 + $0x44] sm:$0x10] %vm3_vm0, %v80_v23  }
  0x84   :  { %v90_v24 = vpop.permute.xlu0 %89  }
  0x85   :  { %v100_v25 = vpop.permute.xlu1 %99   ;;  %173 = vst.msk [vmem:[%s450_s1 + $0x9] ss:$16 sm:$0x3] %vm3_vm0, %v90_v24   ;;  %174 = vst.msk [vmem:[%s450_s1 + $0x9] ss:$16 sm:$0xc] %vm3_vm0, %v90_v24  }
  0x86   :  { %175 = vst.msk [vmem:[%s450_s1 + $0x45] sm:$0x10] %vm3_vm0, %v90_v24   ;;  %176 = vst.msk [vmem:[%s450_s1 + $0xa] ss:$16 sm:$0x3] %vm3_vm0, %v100_v25  }
  0x87   :  { %177 = vst.msk [vmem:[%s450_s1 + $0xa] ss:$16 sm:$0xc] %vm3_vm0, %v100_v25   ;;  %178 = vst.msk [vmem:[%s450_s1 + $0x46] sm:$0x10] %vm3_vm0, %v100_v25  }
  0x88   :  { %v110_v26 = vpop.permute.xlu0 %109  }
  0x89   :  { %v118_v27 = vpop.permute.xlu1 %117   ;;  %179 = vst.msk [vmem:[%s450_s1 + $0xb] ss:$16 sm:$0x3] %vm3_vm0, %v110_v26   ;;  %180 = vst.msk [vmem:[%s450_s1 + $0xb] ss:$16 sm:$0xc] %vm3_vm0, %v110_v26  }
  0x8a   :  { %181 = vst.msk [vmem:[%s450_s1 + $0xc] ss:$16 sm:$0x3] %vm3_vm0, %v118_v27   ;;  %182 = vst.msk [vmem:[%s450_s1 + $0xc] ss:$16 sm:$0xc] %vm3_vm0, %v118_v27  }
  0x8c   :  { %v126_v28 = vpop.permute.xlu0 %125  }
  0x8d   :  { %v134_v29 = vpop.permute.xlu1 %133   ;;  %183 = vst.msk [vmem:[%s450_s1 + $0xd] ss:$16 sm:$0x3] %vm3_vm0, %v126_v28   ;;  %184 = vst.msk [vmem:[%s450_s1 + $0xd] ss:$16 sm:$0xc] %vm3_vm0, %v126_v28  }
  0x8e   :  { %185 = vst.msk [vmem:[%s450_s1 + $0xe] ss:$16 sm:$0x3] %vm3_vm0, %v134_v29   ;;  %186 = vst.msk [vmem:[%s450_s1 + $0xe] ss:$16 sm:$0xc] %vm3_vm0, %v134_v29  }
  0x90   :  { %v142_v30 = vpop.permute.xlu0 %141  }
  0x91   :  { %187 = vst.msk [vmem:[%s450_s1 + $0xf] ss:$16 sm:$0x3] %vm3_vm0, %v142_v30   ;;  %188 = vst.msk [vmem:[%s450_s1 + $0xf] ss:$16 sm:$0xc] %vm3_vm0, %v142_v30  }

// kernel: forward.7
= control target key start
LH: loop header
LB: loop body
LE: loop exit
PB: predicated region body
PF: predicated region fallthrough
CT: control target
= control target key end

     0   :  { %s1876_s12 = smov 0   ;;  %s2573_s0 = inlined_call_operand.vmem [shape: f32[2,800,75], index: 0, kind: input, shape index: {}]   ;;  %s2574_s1 = inlined_call_operand.vmem [shape: f32[75,128], index: 1, kind: input, shape index: {}]   ;;  %s2575_s2 = inlined_call_operand.vmem [shape: f32[1,128], index: 2, kind: input, shape index: {}]   ;;  %s2576_s3 = inlined_call_operand.vmem [shape: f32[2,200,128], index: 3, kind: output, shape index: {}]  }
   0x1 LB: > { %s1413_s13 = sadd.s32 4294967295, %s1853_s12   ;;  %p1417_p0 = scmp.ge.s32.totalorder %s1853_s12, 1  ;;  %s1853_s12 = sphi %s1876_s12, %s13_s12  }
   0x2   : > { %p137_p1 = scmp.lt.s32.totalorder %s1853_s12, 3 }
   0x4   : > { %p138_p2 = pnand %p1417_p0, %p137_p1 }
   0x6   : > { %141 = sbr.rel (%p138_p2) target bundleno = 362 (0x16a), region = 32 }
   0xd   : > { %v271_v0 = vld [vmem:[%s2574_s1] sm:$0xff]  ;;  %v272_v1 = vld [vmem:[%s2574_s1 + $0x8] sm:$0xff]  ;;  %v273_v2 = vld [vmem:[%s2574_s1 + $0x10] sm:$0xff]  ;;  %p161_p3 = scmp.lt.s32.totalorder %s1413_s13, 1  ;;  %vm288_vm0 = vcmask 613376   ;;  %vm589_vm1 = vcmask 1042432  }
   0xe   : > { %v1804_v3 = vpack.c.bf16 %v272_v1, %v271_v0  ;;  %v274_v4 = vld [vmem:[%s2574_s1 + $0x18] sm:$0xff]  ;;  %v275_v6 = vld [vmem:[%s2574_s1 + $0x20] sm:$0xff]  ;;  %v276_v7 = vld [vmem:[%s2574_s1 + $0x28] sm:$0xff]  ;;  %vm1855_vm2 = vmmov 1  }
   0xf   : > { %v1808_v5 = vpack.c.bf16 %v274_v4, %v273_v2  ;;  %s2628_s13 = smov (!%p161_p3, %s1413_s13), 1  ;;  %v1812_v8 = vpack.c.bf16 %v276_v7, %v275_v6  ;;  %v277_v9 = vld [vmem:[%s2574_s1 + $0x30] sm:$0xff]  ;;  %v278_v10 = vld [vmem:[%s2574_s1 + $0x38] sm:$0xff]  ;;  %v279_v14 = vld [vmem:[%s2574_s1 + $0x40] sm:$0xff] }
  0x10   : > { %1805 = vmatprep.subr.bf16.mxu0 %v1804_v3  ;;  %1826 = vmatprep.subr.bf16.mxu1 %v1804_v3  ;;  %s1836_s26 = smul.u32 800, %s2628_s13  ;;  %v1816_v13 = vpack.c.bf16 %v278_v10, %v277_v9  ;;  %v280_v15 = vld [vmem:[%s2574_s1 + $0x48] sm:$0x7]  ;;  %vm1821_vm3 = vmpackc.low %vm589_vm1, %vm1855_vm2 }
  0x11   : > { %1807 = vmatpush3.bf16.msra.mxu0 %v1804_v3  ;;  %1831 = vmatpush3.bf16.msra.mxu1 %v1804_v3  ;;  %v1820_v16 = vpack.c.bf16 %v280_v15, %v279_v14  ;;  %s1837_s15 = smul.u32 200, %s2628_s13 }
  0x12   : > { %1809 = vmatprep.subr.bf16.mxu0 %v1808_v5  ;;  %1827 = vmatprep.subr.bf16.mxu1 %v1808_v5  ;;  %s1914_s6 = scalar_lea.vmem %s2573_s0, %s1836_s26 }
  0x13   : > { %v171_v11 = vld [vmem:[%s1914_s6] sm:$0xff]  ;;  %v221_v12 = vld [vmem:[%s1914_s6 + $0x190] sm:$0xff]  ;;  %v172_v17 = vld [vmem:[%s1914_s6 + $0x8] sm:$0xff]  ;;  %s2359_s17 = scalar_lea.vmem %s2576_s3, %s1837_s15 }
  0x14   : > { %1654 = vmatprep.mubr.msk.f32.mxu0 %vm288_vm0, %v171_v11  ;;  %1729 = vmatprep.mubr.msk.f32.mxu1 %vm288_vm0, %v221_v12  ;;  %v222_v18 = vld [vmem:[%s1914_s6 + $0x198] sm:$0xff]  ;;  %v173_v19 = vld [vmem:[%s1914_s6 + $0x10] sm:$0xff]  ;;  %v223_v20 = vld [vmem:[%s1914_s6 + $0x1a0] sm:$0xff] }
  0x15   : > { %1811 = vmatpush3.bf16.msra.mxu0 %v1808_v5  ;;  %1832 = vmatpush3.bf16.msra.mxu1 %v1808_v5  ;;  %v174_v21 = vld [vmem:[%s1914_s6 + $0x18] sm:$0xff]  ;;  %v224_v22 = vld [vmem:[%s1914_s6 + $0x1a8] sm:$0xff]  ;;  %v175_v23 = vld [vmem:[%s1914_s6 + $0x20] sm:$0xff] }
  0x16   : > { %1813 = vmatprep.subr.bf16.mxu0 %v1812_v8  ;;  %1828 = vmatprep.subr.bf16.mxu1 %v1812_v8  ;;  %v225_v24 = vld [vmem:[%s1914_s6 + $0x1b0] sm:$0xff]  ;;  %v176_v25 = vld [vmem:[%s1914_s6 + $0x28] sm:$0xff]  ;;  %v226_v26 = vld [vmem:[%s1914_s6 + $0x1b8] sm:$0xff] }
  0x17   : > { %v177_v27 = vld [vmem:[%s1914_s6 + $0x30] sm:$0xff]  ;;  %v227_v28 = vld [vmem:[%s1914_s6 + $0x1c0] sm:$0xff]  ;;  %v178_v29 = vld [vmem:[%s1914_s6 + $0x38] sm:$0xff] }
  0x18   : > { %v228_v30 = vld [vmem:[%s1914_s6 + $0x1c8] sm:$0xff]  ;;  %v179_v31 = vld [vmem:[%s1914_s6 + $0x40] sm:$0xff]  ;;  %v229_v32 = vld [vmem:[%s1914_s6 + $0x1d0] sm:$0xff] }
  0x19   : > { %1815 = vmatpush3.bf16.msra.mxu0 %v1812_v8  ;;  %1833 = vmatpush3.bf16.msra.mxu1 %v1812_v8  ;;  %v180_v33 = vld [vmem:[%s1914_s6 + $0x48] sm:$0xff]  ;;  %v230_v34 = vld [vmem:[%s1914_s6 + $0x1d8] sm:$0xff]  ;;  %v181_v35 = vld [vmem:[%s1914_s6 + $0x50] sm:$0xff] }
  0x1a   : > { %1817 = vmatprep.subr.bf16.mxu0 %v1816_v13  ;;  %1829 = vmatprep.subr.bf16.mxu1 %v1816_v13  ;;  %v231_v36 = vld [vmem:[%s1914_s6 + $0x1e0] sm:$0xff]  ;;  %v182_v37 = vld [vmem:[%s1914_s6 + $0x58] sm:$0xff]  ;;  %v232_v38 = vld [vmem:[%s1914_s6 + $0x1e8] sm:$0xff] }
  0x1b   : > { %v183_v39 = vld [vmem:[%s1914_s6 + $0x60] sm:$0xff]  ;;  %v233_v40 = vld [vmem:[%s1914_s6 + $0x1f0] sm:$0xff]  ;;  %v184_v41 = vld [vmem:[%s1914_s6 + $0x68] sm:$0xff] }
  0x1c   : > { %v234_v42 = vld [vmem:[%s1914_s6 + $0x1f8] sm:$0xff]  ;;  %v185_v43 = vld [vmem:[%s1914_s6 + $0x70] sm:$0xff]  ;;  %v235_v44 = vld [vmem:[%s1914_s6 + $0x200] sm:$0xff] }
  0x1d   : > { %1819 = vmatpush3.bf16.msra.mxu0 %v1816_v13  ;;  %1834 = vmatpush3.bf16.msra.mxu1 %v1816_v13  ;;  %v186_v45 = vld [vmem:[%s1914_s6 + $0x78] sm:$0xff]  ;;  %v236_v46 = vld [vmem:[%s1914_s6 + $0x208] sm:$0xff]  ;;  %v187_v47 = vld [vmem:[%s1914_s6 + $0x80] sm:$0xff] }
  0x1e   : > { %1822 = vmatprep.subr.msk.bf16.mxu0 %vm1821_vm3, %v1820_v16  ;;  %1830 = vmatprep.subr.msk.bf16.mxu1 %vm1821_vm3, %v1820_v16  ;;  %v237_v48 = vld [vmem:[%s1914_s6 + $0x210] sm:$0xff]  ;;  %v188_v49 = vld [vmem:[%s1914_s6 + $0x88] sm:$0xff]  ;;  %v238_v50 = vld [vmem:[%s1914_s6 + $0x218] sm:$0xff] }
  0x1f   : > { %v189_v51 = vld [vmem:[%s1914_s6 + $0x90] sm:$0xff]  ;;  %v239_v52 = vld [vmem:[%s1914_s6 + $0x220] sm:$0xff]  ;;  %v190_v53 = vld [vmem:[%s1914_s6 + $0x98] sm:$0xff] }
  0x20   : > { %v240_v54 = vld [vmem:[%s1914_s6 + $0x228] sm:$0xff]  ;;  %v191_v55 = vld [vmem:[%s1914_s6 + $0xa0] sm:$0xff]  ;;  %v241_v56 = vld [vmem:[%s1914_s6 + $0x230] sm:$0xff] }
  0x21   : > { %1825 = vmatpush3.bf16.msk.msra.mxu0 %vm1821_vm3, %v1820_v16  ;;  %1835 = vmatpush3.bf16.msk.msra.mxu1 %vm1821_vm3, %v1820_v16  ;;  %v192_v57 = vld [vmem:[%s1914_s6 + $0xa8] sm:$0xff]  ;;  %v242_v58 = vld [vmem:[%s1914_s6 + $0x238] sm:$0xff]  ;;  %v193_v59 = vld [vmem:[%s1914_s6 + $0xb0] sm:$0xff] }
  0x22   : > { %v243_v60 = vld [vmem:[%s1914_s6 + $0x240] sm:$0xff]  ;;  %v194_v61 = vld [vmem:[%s1914_s6 + $0xb8] sm:$0xff]  ;;  %v244_v62 = vld [vmem:[%s1914_s6 + $0x248] sm:$0xff] }
  0x23   : > { %v195_v63 = vld [vmem:[%s1914_s6 + $0xc0] sm:$0xff]  ;;  %v245_v0 = vld [vmem:[%s1914_s6 + $0x250] sm:$0xff]  ;;  %v196_v1 = vld [vmem:[%s1914_s6 + $0xc8] sm:$0xff] }
  0x24   : > { %1655 = vmatmul.mubr.msk.f32.vlgmr.msra.gmra.mrb[0].mxu0 %vm288_vm0, %v172_v17  ;;  %1730 = vmatmul.mubr.msk.f32.vlgmr.msra.gmra.mrb[0].mxu1 %vm288_vm0, %v222_v18  ;;  %v246_v2 = vld [vmem:[%s1914_s6 + $0x258] sm:$0xff]  ;;  %v197_v3 = vld [vmem:[%s1914_s6 + $0xd0] sm:$0xff]  ;;  %v247_v4 = vld [vmem:[%s1914_s6 + $0x260] sm:$0xff] }
  0x25   : > { %1657 = vmatprep.mubr.msk.f32.mxu0 %vm288_vm0, %v173_v19  ;;  %1732 = vmatprep.mubr.msk.f32.mxu1 %vm288_vm0, %v223_v20  ;;  %v198_v5 = vld [vmem:[%s1914_s6 + $0xd8] sm:$0xff]  ;;  %v248_v6 = vld [vmem:[%s1914_s6 + $0x268] sm:$0xff]  ;;  %v199_v7 = vld [vmem:[%s1914_s6 + $0xe0] sm:$0xff] }
  0x26   : > { %v249_v8 = vld [vmem:[%s1914_s6 + $0x270] sm:$0xff]  ;;  %v200_v9 = vld [vmem:[%s1914_s6 + $0xe8] sm:$0xff]  ;;  %v250_v10 = vld [vmem:[%s1914_s6 + $0x278] sm:$0xff] }
  0x27   : > { %v201_v11 = vld [vmem:[%s1914_s6 + $0xf0] sm:$0xff]  ;;  %v251_v12 = vld [vmem:[%s1914_s6 + $0x280] sm:$0xff]  ;;  %v202_v13 = vld [vmem:[%s1914_s6 + $0xf8] sm:$0xff] }
  0x28   : > { %1658 = vmatmul.mubr.msk.f32.gmra.mrb[2].mxu0 %vm288_vm0, %v174_v21  ;;  %1733 = vmatmul.mubr.msk.f32.gmra.mrb[2].mxu1 %vm288_vm0, %v224_v22  ;;  %v252_v14 = vld [vmem:[%s1914_s6 + $0x288] sm:$0xff]  ;;  %v203_v15 = vld [vmem:[%s1914_s6 + $0x100] sm:$0xff]  ;;  %v253_v16 = vld [vmem:[%s1914_s6 + $0x290] sm:$0xff] }
  0x29   : > { %1660 = vmatprep.mubr.msk.f32.mxu0 %vm288_vm0, %v175_v23  ;;  %1735 = vmatprep.mubr.msk.f32.mxu1 %vm288_vm0, %v225_v24  ;;  %v204_v17 = vld [vmem:[%s1914_s6 + $0x108] sm:$0xff]  ;;  %v254_v18 = vld [vmem:[%s1914_s6 + $0x298] sm:$0xff]  ;;  %v205_v19 = vld [vmem:[%s1914_s6 + $0x110] sm:$0xff] }
  0x2a   : > { %v255_v20 = vld [vmem:[%s1914_s6 + $0x2a0] sm:$0xff]  ;;  %v206_v21 = vld [vmem:[%s1914_s6 + $0x118] sm:$0xff]  ;;  %v256_v22 = vld [vmem:[%s1914_s6 + $0x2a8] sm:$0xff] }
  0x2b   : > { %v207_v23 = vld [vmem:[%s1914_s6 + $0x120] sm:$0xff]  ;;  %v257_v24 = vld [vmem:[%s1914_s6 + $0x2b0] sm:$0xff] }
  0x2c   : > { %1661 = vmatmul.mubr.msk.f32.gmra.mrb[4].mxu0 %vm288_vm0, %v176_v25  ;;  %1736 = vmatmul.mubr.msk.f32.gmra.mrb[4].mxu1 %vm288_vm0, %v226_v26  ;;  %v208_v25 = vld [vmem:[%s1914_s6 + $0x128] sm:$0xff]  ;;  %v258_v26 = vld [vmem:[%s1914_s6 + $0x2b8] sm:$0xff] }
  0x2d   : > { %1663 = vmatprep.mubr.msk.f32.mxu0 %vm288_vm0, %v177_v27  ;;  %1738 = vmatprep.mubr.msk.f32.mxu1 %vm288_vm0, %v227_v28  ;;  %v209_v27 = vld [vmem:[%s1914_s6 + $0x130] sm:$0xff]  ;;  %v259_v28 = vld [vmem:[%s1914_s6 + $0x2c0] sm:$0xff] }
  0x30   : > { %1664 = vmatmul.mubr.msk.f32.gmra.mrb[6].mxu0 %vm288_vm0, %v178_v29  ;;  %1739 = vmatmul.mubr.msk.f32.gmra.mrb[6].mxu1 %vm288_vm0, %v228_v30  ;;  %v210_v29 = vld [vmem:[%s1914_s6 + $0x138] sm:$0xff]  ;;  %v260_v30 = vld [vmem:[%s1914_s6 + $0x2c8] sm:$0xff] }
  0x31   : > { %1666 = vmatprep.mubr.msk.f32.mxu0 %vm288_vm0, %v179_v31  ;;  %1741 = vmatprep.mubr.msk.f32.mxu1 %vm288_vm0, %v229_v32  ;;  %v211_v31 = vld [vmem:[%s1914_s6 + $0x140] sm:$0xff]  ;;  %v261_v32 = vld [vmem:[%s1914_s6 + $0x2d0] sm:$0xff] }
  0x34   : > { %1667 = vmatmul.mubr.msk.f32.gmra.mrb[8].mxu0 %vm288_vm0, %v180_v33  ;;  %1742 = vmatmul.mubr.msk.f32.gmra.mrb[8].mxu1 %vm288_vm0, %v230_v34  ;;  %v212_v33 = vld [vmem:[%s1914_s6 + $0x148] sm:$0xff]  ;;  %v262_v34 = vld [vmem:[%s1914_s6 + $0x2d8] sm:$0xff] }
  0x35   : > { %1669 = vmatprep.mubr.msk.f32.mxu0 %vm288_vm0, %v181_v35  ;;  %1744 = vmatprep.mubr.msk.f32.mxu1 %vm288_vm0, %v231_v36  ;;  %v213_v35 = vld [vmem:[%s1914_s6 + $0x150] sm:$0xff]  ;;  %v263_v36 = vld [vmem:[%s1914_s6 + $0x2e0] sm:$0xff] }
  0x38   : > { %1670 = vmatmul.mubr.msk.f32.gmra.mrb[10].mxu0 %vm288_vm0, %v182_v37  ;;  %1745 = vmatmul.mubr.msk.f32.gmra.mrb[10].mxu1 %vm288_vm0, %v232_v38  ;;  %v214_v37 = vld [vmem:[%s1914_s6 + $0x158] sm:$0xff]  ;;  %v264_v38 = vld [vmem:[%s1914_s6 + $0x2e8] sm:$0xff] }
  0x39   : > { %1672 = vmatprep.mubr.msk.f32.mxu0 %vm288_vm0, %v183_v39  ;;  %1747 = vmatprep.mubr.msk.f32.mxu1 %vm288_vm0, %v233_v40  ;;  %v215_v39 = vld [vmem:[%s1914_s6 + $0x160] sm:$0xff]  ;;  %v265_v40 = vld [vmem:[%s1914_s6 + $0x2f0] sm:$0xff] }
  0x3c   : > { %1673 = vmatmul.mubr.msk.f32.gmra.mrb[12].mxu0 %vm288_vm0, %v184_v41  ;;  %1748 = vmatmul.mubr.msk.f32.gmra.mrb[12].mxu1 %vm288_vm0, %v234_v42  ;;  %v216_v41 = vld [vmem:[%s1914_s6 + $0x168] sm:$0xff]  ;;  %v266_v42 = vld [vmem:[%s1914_s6 + $0x2f8] sm:$0xff] }
  0x3d   : > { %1675 = vmatprep.mubr.msk.f32.mxu0 %vm288_vm0, %v185_v43  ;;  %1750 = vmatprep.mubr.msk.f32.mxu1 %vm288_vm0, %v235_v44  ;;  %v217_v43 = vld [vmem:[%s1914_s6 + $0x170] sm:$0xff]  ;;  %v267_v44 = vld [vmem:[%s1914_s6 + $0x300] sm:$0xff] }
  0x40   : > { %1676 = vmatmul.mubr.msk.f32.gmra.mrb[14].mxu0 %vm288_vm0, %v186_v45  ;;  %1751 = vmatmul.mubr.msk.f32.gmra.mrb[14].mxu1 %vm288_vm0, %v236_v46  ;;  %v218_v45 = vld [vmem:[%s1914_s6 + $0x178] sm:$0xff]  ;;  %v268_v46 = vld [vmem:[%s1914_s6 + $0x308] sm:$0xff] }
  0x41   : > { %1678 = vmatprep.mubr.msk.f32.mxu0 %vm288_vm0, %v187_v47  ;;  %1753 = vmatprep.mubr.msk.f32.mxu1 %vm288_vm0, %v237_v48  ;;  %v219_v47 = vld [vmem:[%s1914_s6 + $0x180] sm:$0xff]  ;;  %v269_v48 = vld [vmem:[%s1914_s6 + $0x310] sm:$0xff] }
  0x44   : > { %1679 = vmatmul.mubr.msk.f32.gmra.mrb[16].mxu0 %vm288_vm0, %v188_v49  ;;  %1754 = vmatmul.mubr.msk.f32.gmra.mrb[16].mxu1 %vm288_vm0, %v238_v50  ;;  %v220_v49 = vld [vmem:[%s1914_s6 + $0x188] sm:$0xff]  ;;  %v270_v50 = vld [vmem:[%s1914_s6 + $0x318] sm:$0xff] }
  0x45   : > { %1681 = vmatprep.mubr.msk.f32.mxu0 %vm288_vm0, %v189_v51  ;;  %1756 = vmatprep.mubr.msk.f32.mxu1 %vm288_vm0, %v239_v52 }
  0x48   : > { %1682 = vmatmul.mubr.msk.f32.gmra.mrb[18].mxu0 %vm288_vm0, %v190_v53  ;;  %1757 = vmatmul.mubr.msk.f32.gmra.mrb[18].mxu1 %vm288_vm0, %v240_v54 }
  0x49   : > { %1684 = vmatprep.mubr.msk.f32.mxu0 %vm288_vm0, %v191_v55  ;;  %1759 = vmatprep.mubr.msk.f32.mxu1 %vm288_vm0, %v241_v56 }
  0x4c   : > { %1685 = vmatmul.mubr.msk.f32.gmra.mrb[20].mxu0 %vm288_vm0, %v192_v57  ;;  %1760 = vmatmul.mubr.msk.f32.gmra.mrb[20].mxu1 %vm288_vm0, %v242_v58 }
  0x4d   : > { %1687 = vmatprep.mubr.msk.f32.mxu0 %vm288_vm0, %v193_v59  ;;  %1762 = vmatprep.mubr.msk.f32.mxu1 %vm288_vm0, %v243_v60 }
  0x50   : > { %1688 = vmatmul.mubr.msk.f32.gmra.mrb[22].mxu0 %vm288_vm0, %v194_v61  ;;  %1763 = vmatmul.mubr.msk.f32.gmra.mrb[22].mxu1 %vm288_vm0, %v244_v62 }
  0x51   : > { %1690 = vmatprep.mubr.msk.f32.mxu0 %vm288_vm0, %v195_v63  ;;  %1765 = vmatprep.mubr.msk.f32.mxu1 %vm288_vm0, %v245_v0 }
  0x54   : > { %1691 = vmatmul.mubr.msk.f32.gmra.mrb[24].mxu0 %vm288_vm0, %v196_v1  ;;  %1766 = vmatmul.mubr.msk.f32.gmra.mrb[24].mxu1 %vm288_vm0, %v246_v2 }
  0x55   : > { %1693 = vmatprep.mubr.msk.f32.mxu0 %vm288_vm0, %v197_v3  ;;  %1768 = vmatprep.mubr.msk.f32.mxu1 %vm288_vm0, %v247_v4 }
  0x58   : > { %1694 = vmatmul.mubr.msk.f32.gmra.mrb[26].mxu0 %vm288_vm0, %v198_v5  ;;  %1769 = vmatmul.mubr.msk.f32.gmra.mrb[26].mxu1 %vm288_vm0, %v248_v6 }
  0x59   : > { %1696 = vmatprep.mubr.msk.f32.mxu0 %vm288_vm0, %v199_v7  ;;  %1771 = vmatprep.mubr.msk.f32.mxu1 %vm288_vm0, %v249_v8 }
  0x5c   : > { %1697 = vmatmul.mubr.msk.f32.gmra.mrb[28].mxu0 %vm288_vm0, %v200_v9  ;;  %1772 = vmatmul.mubr.msk.f32.gmra.mrb[28].mxu1 %vm288_vm0, %v250_v10 }
  0x5d   : > { %1699 = vmatprep.mubr.msk.f32.mxu0 %vm288_vm0, %v201_v11  ;;  %1774 = vmatprep.mubr.msk.f32.mxu1 %vm288_vm0, %v251_v12 }
  0x60   : > { %1700 = vmatmul.mubr.msk.f32.gmra.mrb[30].mxu0 %vm288_vm0, %v202_v13  ;;  %1775 = vmatmul.mubr.msk.f32.gmra.mrb[30].mxu1 %vm288_vm0, %v252_v14 }
  0x61   : > { %1702 = vmatprep.mubr.msk.f32.mxu0 %vm288_vm0, %v203_v15  ;;  %1777 = vmatprep.mubr.msk.f32.mxu1 %vm288_vm0, %v253_v16  ;;  %v2133_v15 = vld [vmem:[%s2575_s2] ss:$0 sm:$0xff] }
  0x64   : > { %1703 = vmatmul.mubr.msk.f32.gmra.mrb[32].mxu0 %vm288_vm0, %v204_v17  ;;  %1778 = vmatmul.mubr.msk.f32.gmra.mrb[32].mxu1 %vm288_vm0, %v254_v18 }
  0x65   : > { %1705 = vmatprep.mubr.msk.f32.mxu0 %vm288_vm0, %v205_v19  ;;  %1780 = vmatprep.mubr.msk.f32.mxu1 %vm288_vm0, %v255_v20 }
  0x68   : > { %1706 = vmatmul.mubr.msk.f32.gmra.mrb[34].mxu0 %vm288_vm0, %v206_v21  ;;  %1781 = vmatmul.mubr.msk.f32.gmra.mrb[34].mxu1 %vm288_vm0, %v256_v22 }
  0x69   : > { %1708 = vmatprep.mubr.msk.f32.mxu0 %vm288_vm0, %v207_v23  ;;  %1783 = vmatprep.mubr.msk.f32.mxu1 %vm288_vm0, %v257_v24 }
  0x6c   : > { %1709 = vmatmul.mubr.msk.f32.gmra.mrb[36].mxu0 %vm288_vm0, %v208_v25  ;;  %1784 = vmatmul.mubr.msk.f32.gmra.mrb[36].mxu1 %vm288_vm0, %v258_v26 }
  0x6d   : > { %1711 = vmatprep.mubr.msk.f32.mxu0 %vm288_vm0, %v209_v27  ;;  %1786 = vmatprep.mubr.msk.f32.mxu1 %vm288_vm0, %v259_v28 }
  0x70   : > { %1712 = vmatmul.mubr.msk.f32.gmra.mrb[38].mxu0 %vm288_vm0, %v210_v29  ;;  %1787 = vmatmul.mubr.msk.f32.gmra.mrb[38].mxu1 %vm288_vm0, %v260_v30 }
  0x71   : > { %1714 = vmatprep.mubr.msk.f32.mxu0 %vm288_vm0, %v211_v31  ;;  %1789 = vmatprep.mubr.msk.f32.mxu1 %vm288_vm0, %v261_v32 }
  0x74   : > { %1715 = vmatmul.mubr.msk.f32.gmra.mrb[40].mxu0 %vm288_vm0, %v212_v33  ;;  %1790 = vmatmul.mubr.msk.f32.gmra.mrb[40].mxu1 %vm288_vm0, %v262_v34 }
  0x75   : > { %1717 = vmatprep.mubr.msk.f32.mxu0 %vm288_vm0, %v213_v35  ;;  %1792 = vmatprep.mubr.msk.f32.mxu1 %vm288_vm0, %v263_v36 }
  0x78   : > { %1718 = vmatmul.mubr.msk.f32.gmra.mrb[42].mxu0 %vm288_vm0, %v214_v37  ;;  %1793 = vmatmul.mubr.msk.f32.gmra.mrb[42].mxu1 %vm288_vm0, %v264_v38 }
  0x79   : > { %1720 = vmatprep.mubr.msk.f32.mxu0 %vm288_vm0, %v215_v39  ;;  %1795 = vmatprep.mubr.msk.f32.mxu1 %vm288_vm0, %v265_v40 }
  0x7c   : > { %1721 = vmatmul.mubr.msk.f32.gmra.mrb[44].mxu0 %vm288_vm0, %v216_v41  ;;  %1796 = vmatmul.mubr.msk.f32.gmra.mrb[44].mxu1 %vm288_vm0, %v266_v42 }
  0x7d   : > { %1723 = vmatprep.mubr.msk.f32.mxu0 %vm288_vm0, %v217_v43  ;;  %1798 = vmatprep.mubr.msk.f32.mxu1 %vm288_vm0, %v267_v44 }
  0x80   : > { %1724 = vmatmul.mubr.msk.f32.gmra.mrb[46].mxu0 %vm288_vm0, %v218_v45  ;;  %1799 = vmatmul.mubr.msk.f32.gmra.mrb[46].mxu1 %vm288_vm0, %v268_v46 }
  0x81   : > { %1726 = vmatprep.mubr.msk.f32.mxu0 %vm288_vm0, %v219_v47  ;;  %1801 = vmatprep.mubr.msk.f32.mxu1 %vm288_vm0, %v269_v48 }
  0x84   : > { %1727 = vmatmul.mubr.msk.f32.gmra.mrb[48].mxu0 %vm288_vm0, %v220_v49  ;;  %1802 = vmatmul.mubr.msk.f32.gmra.mrb[48].mxu1 %vm288_vm0, %v270_v50 }
  0xf7   : > { %v1656_v51 = vpop.f32.mrb[0].mxu0  ;;  %v1731_v52 = vpop.f32.mrb[0].mxu1 }
  0xf8   : > { %v659_v53 = vpop.f32.mrb[1].mxu0  ;;  %v909_v54 = vpop.f32.mrb[1].mxu1  ;;  %v2144_v20 = vadd.f32 %v1656_v51, %v2133_v15  ;;  %v2147_v21 = vadd.f32 %v1731_v52, %v2133_v15 }
  0xf9   : > { %v2150_v22 = vadd.f32 %v2133_v15, %v659_v53  ;;  %v2157_v25 = vadd.f32 %v2133_v15, %v909_v54 }
  0xfb   : > { %v1659_v55 = vpop.f32.mrb[2].mxu0  ;;  %v1734_v56 = vpop.f32.mrb[2].mxu1  ;;  %v1158_v34 = vmax.f32 %v2150_v22, 0.0 }
  0xfc   : > { %v669_v57 = vpop.f32.mrb[3].mxu0  ;;  %v919_v58 = vpop.f32.mrb[3].mxu1  ;;  %v2160_v26 = vadd.f32 %v1659_v55, %v2133_v15  ;;  %v2167_v29 = vadd.f32 %v1734_v56, %v2133_v15 }
  0xfd   : > { %v2171_v31 = vadd.f32 %v2133_v15, %v669_v57  ;;  %v2174_v32 = vadd.f32 %v2133_v15, %v919_v58 }
  0xff   : > { %v1662_v59 = vpop.f32.mrb[4].mxu0  ;;  %v1737_v60 = vpop.f32.mrb[4].mxu1 }
 0x100   : > { %v679_v61 = vpop.f32.mrb[5].mxu0  ;;  %v929_v62 = vpop.f32.mrb[5].mxu1  ;;  %v2179_v35 = vadd.f32 %v1662_v59, %v2133_v15  ;;  %v2182_v36 = vadd.f32 %v1737_v60, %v2133_v15 }
 0x101   : > { %v2191_v41 = vadd.f32 %v2133_v15, %v679_v61  ;;  %v2194_v42 = vadd.f32 %v2133_v15, %v929_v62 }
 0x103   : > { %v1665_v63 = vpop.f32.mrb[6].mxu0  ;;  %v1740_v0 = vpop.f32.mrb[6].mxu1 }
 0x104   : > { %v689_v1 = vpop.f32.mrb[7].mxu0  ;;  %v939_v2 = vpop.f32.mrb[7].mxu1  ;;  %v2202_v46 = vadd.f32 %v1665_v63, %v2133_v15  ;;  %v2205_v47 = vadd.f32 %v1740_v0, %v2133_v15 }
 0x105   : > { %v2208_v48 = vadd.f32 %v2133_v15, %v689_v1  ;;  %v2213_v51 = vadd.f32 %v2133_v15, %v939_v2 }
 0x107   : > { %v1668_v3 = vpop.f32.mrb[8].mxu0  ;;  %v1743_v4 = vpop.f32.mrb[8].mxu1 }
 0x108   : > { %v699_v5 = vpop.f32.mrb[9].mxu0  ;;  %v949_v6 = vpop.f32.mrb[9].mxu1  ;;  %v2216_v52 = vadd.f32 %v1668_v3, %v2133_v15  ;;  %v2221_v55 = vadd.f32 %v1743_v4, %v2133_v15 }
 0x109   : > { %v2224_v56 = vadd.f32 %v2133_v15, %v699_v5  ;;  %v2233_v61 = vadd.f32 %v2133_v15, %v949_v6 }
 0x10b   : > { %v1671_v7 = vpop.f32.mrb[10].mxu0  ;;  %v1746_v8 = vpop.f32.mrb[10].mxu1 }
 0x10c   : > { %v709_v9 = vpop.f32.mrb[11].mxu0  ;;  %v959_v10 = vpop.f32.mrb[11].mxu1  ;;  %v2236_v62 = vadd.f32 %v1671_v7, %v2133_v15  ;;  %v2246_v4 = vadd.f32 %v1746_v8, %v2133_v15 }
 0x10d   : > { %v2251_v7 = vadd.f32 %v2133_v15, %v709_v9  ;;  %v2254_v54 = vadd.f32 %v2133_v15, %v959_v10 }
 0x10f   : > { %v2122_v11 = vpop.f32.mrb[12].mxu0  ;;  %v2124_v12 = vpop.f32.mrb[12].mxu1 }
 0x110   : > { %v2126_v13 = vpop.f32.mrb[13].mxu0  ;;  %v2128_v14 = vpop.f32.mrb[13].mxu1  ;;  %v2260_v2 = vadd.f32 %v2122_v11, %v2133_v15  ;;  %v2264_v8 = vadd.f32 %v2124_v12, %v2133_v15 }
 0x111   : > { %v2274_v53 = vadd.f32 %v2133_v15, %v2126_v13  ;;  %v2278_v11 = vadd.f32 %v2133_v15, %v2128_v14 }
 0x113   : > { %v2135_v16 = vpop.f32.mrb[14].mxu0  ;;  %v2137_v17 = vpop.f32.mrb[14].mxu1 }
 0x114   : > { %v2139_v18 = vpop.f32.mrb[15].mxu0  ;;  %v2141_v19 = vpop.f32.mrb[15].mxu1  ;;  %v2287_v45 = vadd.f32 %v2135_v16, %v2133_v15  ;;  %v2291_v10 = vadd.f32 %v2137_v17, %v2133_v15 }
 0x115   : > { %v2295_v13 = vadd.f32 %v2133_v15, %v2139_v18  ;;  %v2301_v40 = vadd.f32 %v2133_v15, %v2141_v19 }
 0x116   : > { %2580 = vst [vmem:[#allocation2_spill] sm:$0xff] %v2291_v10 }
 0x117   : > { %v2152_v23 = vpop.f32.mrb[16].mxu0  ;;  %v2154_v24 = vpop.f32.mrb[16].mxu1 }
 0x118   : > { %v2162_v27 = vpop.f32.mrb[17].mxu0  ;;  %v2164_v28 = vpop.f32.mrb[17].mxu1  ;;  %v2305_v16 = vadd.f32 %v2152_v23, %v2133_v15  ;;  %v2311_v18 = vadd.f32 %v2154_v24, %v2133_v15 }
 0x119   : > { %v2315_v9 = vadd.f32 %v2133_v15, %v2162_v27  ;;  %v2330_v50 = vadd.f32 %v2133_v15, %v2164_v28 }
 0x11a   : > { %2581 = vst [vmem:[#allocation3_spill] sm:$0xff] %v2305_v16  ;;  %2582 = vst [vmem:[#allocation4_spill] sm:$0xff] %v2311_v18 }
 0x11b   : > { %v2184_v37 = vpop.f32.mrb[18].mxu0  ;;  %v2186_v38 = vpop.f32.mrb[18].mxu1 }
 0x11c   : > { %v2196_v43 = vpop.f32.mrb[19].mxu0  ;;  %v2198_v44 = vpop.f32.mrb[19].mxu1  ;;  %v2339_v30 = vadd.f32 %v2184_v37, %v2133_v15  ;;  %v2343_v24 = vadd.f32 %v2186_v38, %v2133_v15 }
 0x11d   : > { %v2354_v38 = vadd.f32 %v2133_v15, %v2196_v43 }
 0x11f   : > { %v2226_v57 = vpop.f32.mrb[20].mxu0  ;;  %v2228_v58 = vpop.f32.mrb[20].mxu1 }
 0x120   : > { %v2238_v63 = vpop.f32.mrb[21].mxu0  ;;  %v2240_v0 = vpop.f32.mrb[21].mxu1 }
 0x123   : > { %v2266_v5 = vpop.f32.mrb[22].mxu0  ;;  %v2268_v6 = vpop.f32.mrb[22].mxu1 }
 0x124   : > { %v2280_v1 = vpop.f32.mrb[23].mxu0  ;;  %v2282_v12 = vpop.f32.mrb[23].mxu1 }
 0x127   : > { %v1692_v14 = vpop.f32.mrb[24].mxu0  ;;  %v1767_v19 = vpop.f32.mrb[24].mxu1 }
 0x128   : > { %v785_v59 = vadd.f32 %v1692_v14, %v2133_v15  ;;  %v1035_v3 = vadd.f32 %v1767_v19, %v2133_v15  ;;  %v2321_v33 = vpop.f32.mrb[25].mxu0  ;;  %v2323_v17 = vpop.f32.mrb[25].mxu1 }
 0x129   : > { %2583 = vst [vmem:[#allocation5_spill] sm:$0xff] %v2321_v33  ;;  %2584 = vst [vmem:[#allocation6_spill] sm:$0xff] %v2323_v17 }
 0x12a   : > { %v1183_v19 = vmax.f32 %v785_v59, 0.0  ;;  %v1233_v60 = vmax.f32 %v1035_v3, 0.0  ;;  %v2585_v59 = vmax.f32 %v2157_v25, 0.0 }
 0x12b   : > { %v1695_v28 = vpop.f32.mrb[26].mxu0  ;;  %v1770_v27 = vpop.f32.mrb[26].mxu1 }
 0x12c   : > { %v1258_v23 = vmax.f32 %v1158_v34, %v1183_v19  ;;  %v1283_v3 = vmax.f32 %v2585_v59, %v1233_v60  ;;  %v795_v49 = vadd.f32 %v1695_v28, %v2133_v15  ;;  %v1045_v14 = vadd.f32 %v1770_v27, %v2133_v15  ;;  %v789_v39 = vpop.f32.mrb[27].mxu0  ;;  %v1039_v17 = vpop.f32.mrb[27].mxu1 }
 0x12d   : > { %v790_v22 = vadd.f32 %v2133_v15, %v789_v39  ;;  %v1040_v25 = vadd.f32 %v2133_v15, %v1039_v17  ;;  %v2365_v34 = vadd.f32 %v2133_v15, %v2198_v44  ;;  %v2586_v39 = vmax.f32 %v2171_v31, 0.0 }
 0x12e   : > { %v1308_v60 = vmax.f32 %v1258_v23, %v1283_v3  ;;  %v1185_v27 = vmax.f32 %v795_v49, 0.0  ;;  %v1235_v19 = vmax.f32 %v1045_v14, 0.0  ;;  %v2587_v17 = vmax.f32 %v2174_v32, 0.0 }
 0x12f   : > { %v1184_v59 = vmax.f32 %v790_v22, 0.0  ;;  %v1234_v37 = vmax.f32 %v1040_v25, 0.0  ;;  %v1698_v33 = vpop.f32.mrb[28].mxu0  ;;  %v1773_v18 = vpop.f32.mrb[28].mxu1  ;;  %v2588_v3 = vmax.f32 %v2144_v20, 0.0  ;;  %v2589_v25 = vmax.f32 %v2147_v21, 0.0 }
 0x130   : > { %1333 = vst [vmem:[%s2359_s17] sm:$0xff] %v1308_v60  ;;  %v1260_v16 = vmax.f32 %v2586_v39, %v1185_v27  ;;  %v1285_v10 = vmax.f32 %v2587_v17, %v1235_v19  ;;  %v805_v44 = vadd.f32 %v1698_v33, %v2133_v15  ;;  %v1055_v49 = vadd.f32 %v1773_v18, %v2133_v15  ;;  %v799_v23 = vpop.f32.mrb[29].mxu0  ;;  %v1049_v14 = vpop.f32.mrb[29].mxu1 }
 0x131   : > { %v1259_v22 = vmax.f32 %v2588_v3, %v1184_v59  ;;  %v1284_v28 = vmax.f32 %v2589_v25, %v1234_v37  ;;  %v800_v60 = vadd.f32 %v2133_v15, %v799_v23  ;;  %v1050_v31 = vadd.f32 %v2133_v15, %v1049_v14 }
 0x132   : > { %v1176_v32 = vmax.f32 %v2354_v38, 0.0  ;;  %v1310_v27 = vmax.f32 %v1260_v16, %v1285_v10  ;;  %v1187_v33 = vmax.f32 %v805_v44, 0.0  ;;  %v1237_v19 = vmax.f32 %v1055_v49, 0.0 }
 0x133   : > { %v1226_v18 = vmax.f32 %v2365_v34, 0.0  ;;  %v1309_v39 = vmax.f32 %v1259_v22, %v1284_v28  ;;  %v1186_v17 = vmax.f32 %v800_v60, 0.0  ;;  %v1236_v43 = vmax.f32 %v1050_v31, 0.0  ;;  %v1701_v20 = vpop.f32.mrb[30].mxu0  ;;  %v1776_v59 = vpop.f32.mrb[30].mxu1 }
 0x134   : > { %1335 = vst [vmem:[%s2359_s17 + $0x10] sm:$0xff] %v1310_v27  ;;  %v2590_v21 = vmax.f32 %v2191_v41, 0.0  ;;  %v2591_v23 = vmax.f32 %v2194_v42, 0.0  ;;  %v815_v3 = vadd.f32 %v1701_v20, %v2133_v15  ;;  %v1065_v10 = vadd.f32 %v1776_v59, %v2133_v15  ;;  %v809_v16 = vpop.f32.mrb[31].mxu0  ;;  %v1059_v44 = vpop.f32.mrb[31].mxu1 }
 0x135   : > { %1334 = vst [vmem:[%s2359_s17 + $0x8] sm:$0xff] %v1309_v39  ;;  %v2592_v28 = vmax.f32 %v2160_v26, 0.0  ;;  %v2593_v22 = vmax.f32 %v2167_v29, 0.0  ;;  %v810_v41 = vadd.f32 %v2133_v15, %v809_v16  ;;  %v1060_v60 = vadd.f32 %v2133_v15, %v1059_v44 }
 0x136   : > { %v1262_v37 = vmax.f32 %v2590_v21, %v1187_v33  ;;  %v1287_v14 = vmax.f32 %v2591_v23, %v1237_v19  ;;  %v2400_v42 = vadd.f32 %v2226_v57, %v2133_v15  ;;  %v1189_v27 = vmax.f32 %v815_v3, 0.0 }
 0x137   : > { %v1261_v49 = vmax.f32 %v2592_v28, %v1186_v17  ;;  %v1286_v25 = vmax.f32 %v2593_v22, %v1236_v43  ;;  %v1239_v33 = vmax.f32 %v1065_v10, 0.0  ;;  %v2404_v19 = vadd.f32 %v2228_v58, %v2133_v15  ;;  %v1704_v43 = vpop.f32.mrb[32].mxu0  ;;  %v1779_v17 = vpop.f32.mrb[32].mxu1 }
 0x138   : > { %v1312_v31 = vmax.f32 %v1262_v37, %v1287_v14  ;;  %v1188_v39 = vmax.f32 %v810_v41, 0.0  ;;  %v1238_v29 = vmax.f32 %v1060_v60, 0.0  ;;  %v2594_v20 = vmax.f32 %v2208_v48, 0.0  ;;  %v819_v14 = vpop.f32.mrb[33].mxu0  ;;  %v1069_v3 = vpop.f32.mrb[33].mxu1 }
 0x139   : > { %v1311_v26 = vmax.f32 %v1261_v49, %v1286_v25  ;;  %v2595_v57 = vmax.f32 %v2213_v51, 0.0  ;;  %v825_v37 = vadd.f32 %v1704_v43, %v2133_v15  ;;  %v1075_v23 = vadd.f32 %v1779_v17, %v2133_v15 }
 0x13a   : > { %1337 = vst [vmem:[%s2359_s17 + $0x20] sm:$0xff] %v1312_v31  ;;  %v1264_v59 = vmax.f32 %v2594_v20, %v1189_v27  ;;  %v2596_v58 = vmax.f32 %v2179_v35, 0.0  ;;  %v2597_v16 = vmax.f32 %v2182_v36, 0.0  ;;  %v820_v48 = vadd.f32 %v2133_v15, %v819_v14 }
 0x13b   : > { %v1289_v21 = vmax.f32 %v2595_v57, %v1239_v33  ;;  %1336 = vst [vmem:[%s2359_s17 + $0x18] sm:$0xff] %v1311_v26  ;;  %v1070_v28 = vadd.f32 %v2133_v15, %v1069_v3  ;;  %v2422_v51 = vadd.f32 %v2133_v15, %v2238_v63  ;;  %v1191_v22 = vmax.f32 %v825_v37, 0.0  ;;  %v1707_v31 = vpop.f32.mrb[34].mxu0  ;;  %v1782_v27 = vpop.f32.mrb[34].mxu1 }
 0x13c   : > { %v1263_v10 = vmax.f32 %v2596_v58, %v1188_v39  ;;  %v1288_v44 = vmax.f32 %v2597_v16, %v1238_v29  ;;  %v1241_v25 = vmax.f32 %v1075_v23, 0.0  ;;  %v2426_v41 = vadd.f32 %v2133_v15, %v2240_v0  ;;  %v829_v17 = vpop.f32.mrb[35].mxu0  ;;  %v1079_v20 = vpop.f32.mrb[35].mxu1 }
 0x13d   : > { %v1314_v49 = vmax.f32 %v1264_v59, %v1289_v21  ;;  %v1190_v60 = vmax.f32 %v820_v48, 0.0  ;;  %v1240_v36 = vmax.f32 %v1070_v28, 0.0  ;;  %v2598_v33 = vmax.f32 %v2224_v56, 0.0 }
 0x13e   : > { %v1313_v35 = vmax.f32 %v1263_v10, %v1288_v44  ;;  %v2599_v63 = vmax.f32 %v2233_v61, 0.0  ;;  %v835_v29 = vadd.f32 %v1707_v31, %v2133_v15  ;;  %v1085_v43 = vadd.f32 %v1782_v27, %v2133_v15 }
 0x13f   : > { %1339 = vst [vmem:[%s2359_s17 + $0x30] sm:$0xff] %v1314_v49  ;;  %v1266_v26 = vmax.f32 %v2598_v33, %v1191_v22  ;;  %v2600_v0 = vmax.f32 %v2202_v46, 0.0  ;;  %v2601_v57 = vmax.f32 %v2205_v47, 0.0  ;;  %v830_v56 = vadd.f32 %v2133_v15, %v829_v17  ;;  %v1710_v46 = vpop.f32.mrb[36].mxu0  ;;  %v1785_v48 = vpop.f32.mrb[36].mxu1 }
 0x140   : > { %v1291_v39 = vmax.f32 %v2599_v63, %v1241_v25  ;;  %1338 = vst [vmem:[%s2359_s17 + $0x28] sm:$0xff] %v1313_v35  ;;  %v1080_v37 = vadd.f32 %v2133_v15, %v1079_v20  ;;  %v1179_v61 = vmax.f32 %v2400_v42, 0.0  ;;  %v1193_v14 = vmax.f32 %v835_v29, 0.0 }
 0x141   : > { %v1265_v59 = vmax.f32 %v2600_v0, %v1190_v60  ;;  %v1290_v21 = vmax.f32 %v2601_v57, %v1240_v36  ;;  %v1243_v3 = vmax.f32 %v1085_v43, 0.0  ;;  %v1229_v58 = vmax.f32 %v2404_v19, 0.0  ;;  %v839_v60 = vpop.f32.mrb[37].mxu0  ;;  %v1089_v36 = vpop.f32.mrb[37].mxu1 }
 0x142   : > { %v1316_v23 = vmax.f32 %v1266_v26, %v1291_v39  ;;  %v1192_v16 = vmax.f32 %v830_v56, 0.0  ;;  %v1242_v44 = vmax.f32 %v1080_v37, 0.0  ;;  %v2602_v47 = vmax.f32 %v2251_v7, 0.0 }
 0x143   : > { %v1315_v10 = vmax.f32 %v1265_v59, %v1290_v21  ;;  %v2603_v49 = vmax.f32 %v2254_v54, 0.0  ;;  %v845_v25 = vadd.f32 %v1710_v46, %v2133_v15  ;;  %v1095_v35 = vadd.f32 %v1785_v48, %v2133_v15  ;;  %v1788_v57 = vpop.f32.mrb[38].mxu1 }
 0x144   : > { %1341 = vst [vmem:[%s2359_s17 + $0x40] sm:$0xff] %v1316_v23  ;;  %v1268_v28 = vmax.f32 %v2602_v47, %v1193_v14  ;;  %v2604_v31 = vmax.f32 %v2216_v52, 0.0  ;;  %v2605_v33 = vmax.f32 %v2221_v55, 0.0  ;;  %v840_v7 = vadd.f32 %v2133_v15, %v839_v60  ;;  %v1713_v52 = vpop.f32.mrb[38].mxu0 }
 0x145   : > { %v1293_v22 = vmax.f32 %v2603_v49, %v1243_v3  ;;  %1340 = vst [vmem:[%s2359_s17 + $0x38] sm:$0xff] %v1315_v10  ;;  %v1090_v63 = vadd.f32 %v2133_v15, %v1089_v36  ;;  %v1178_v54 = vmax.f32 %v2422_v51, 0.0  ;;  %v1195_v29 = vmax.f32 %v845_v25, 0.0  ;;  %v849_v3 = vpop.f32.mrb[39].mxu0  ;;  %v1099_v10 = vpop.f32.mrb[39].mxu1 }
 0x146   : > { %v1267_v27 = vmax.f32 %v2604_v31, %v1192_v16  ;;  %v1292_v26 = vmax.f32 %v2605_v33, %v1242_v44  ;;  %v1245_v43 = vmax.f32 %v1095_v35, 0.0  ;;  %v1228_v17 = vmax.f32 %v2426_v41, 0.0  ;;  %v2626_v41 = vld [vmem:[#allocation6_spill] sm:$0xff] }
 0x147   : > { %v1318_v39 = vmax.f32 %v1268_v28, %v1293_v22  ;;  %v1194_v0 = vmax.f32 %v840_v7, 0.0  ;;  %v1244_v59 = vmax.f32 %v1090_v63, 0.0  ;;  %v2606_v55 = vmax.f32 %v2274_v53, 0.0  ;;  %v1716_v60 = vpop.f32.mrb[40].mxu0  ;;  %v1791_v36 = vpop.f32.mrb[40].mxu1 }
 0x148   : > { %v1317_v20 = vmax.f32 %v1267_v27, %v1292_v26  ;;  %v2607_v56 = vmax.f32 %v2278_v11, 0.0  ;;  %v855_v23 = vadd.f32 %v1713_v52, %v2133_v15  ;;  %v1105_v14 = vadd.f32 %v1788_v57, %v2133_v15  ;;  %v859_v63 = vpop.f32.mrb[41].mxu0 }
 0x149   : > { %1343 = vst [vmem:[%s2359_s17 + $0x50] sm:$0xff] %v1318_v39  ;;  %v1270_v21 = vmax.f32 %v2606_v55, %v1195_v29  ;;  %v2608_v16 = vmax.f32 %v2236_v62, 0.0  ;;  %v2609_v46 = vmax.f32 %v2246_v4, 0.0  ;;  %v850_v53 = vadd.f32 %v2133_v15, %v849_v3  ;;  %v1109_v39 = vpop.f32.mrb[41].mxu1 }
 0x14a   : > { %v1295_v37 = vmax.f32 %v2607_v56, %v1245_v43  ;;  %1342 = vst [vmem:[%s2359_s17 + $0x48] sm:$0xff] %v1317_v20  ;;  %v1100_v47 = vadd.f32 %v2133_v15, %v1099_v10  ;;  %v2476_v11 = vadd.f32 %v2266_v5, %v2133_v15  ;;  %v1197_v49 = vmax.f32 %v855_v23, 0.0 }
 0x14b   : > { %v1269_v44 = vmax.f32 %v2608_v16, %v1194_v0  ;;  %v1294_v48 = vmax.f32 %v2609_v46, %v1244_v59  ;;  %v1247_v22 = vmax.f32 %v1105_v14, 0.0  ;;  %v2480_v25 = vadd.f32 %v2268_v6, %v2133_v15  ;;  %v1719_v56 = vpop.f32.mrb[42].mxu0 }
 0x14c   : > { %v1320_v28 = vmax.f32 %v1270_v21, %v1295_v37  ;;  %v1196_v35 = vmax.f32 %v850_v53, 0.0  ;;  %v1246_v4 = vmax.f32 %v1100_v47, 0.0  ;;  %v2610_v31 = vmax.f32 %v2295_v13, 0.0  ;;  %v1794_v37 = vpop.f32.mrb[42].mxu1  ;;  %v2617_v53 = vld [vmem:[#allocation2_spill] sm:$0xff] }
 0x14d   : > { %v1319_v62 = vmax.f32 %v1269_v44, %v1294_v48  ;;  %v2611_v5 = vmax.f32 %v2301_v40, 0.0  ;;  %v865_v26 = vadd.f32 %v1716_v60, %v2133_v15  ;;  %v1115_v7 = vadd.f32 %v1791_v36, %v2133_v15  ;;  %v869_v44 = vpop.f32.mrb[43].mxu0  ;;  %v1119_v46 = vpop.f32.mrb[43].mxu1 }
 0x14e   : > { %1345 = vst [vmem:[%s2359_s17 + $0x60] sm:$0xff] %v1320_v28  ;;  %v1272_v27 = vmax.f32 %v2610_v31, %v1197_v49  ;;  %v2612_v6 = vmax.f32 %v2260_v2, 0.0  ;;  %v2613_v43 = vmax.f32 %v2264_v8, 0.0  ;;  %v860_v13 = vadd.f32 %v2133_v15, %v859_v63 }
 0x14f   : > { %v1297_v33 = vmax.f32 %v2611_v5, %v1247_v22  ;;  %1344 = vst [vmem:[%s2359_s17 + $0x58] sm:$0xff] %v1319_v62  ;;  %v1110_v0 = vadd.f32 %v2133_v15, %v1109_v39  ;;  %v2498_v40 = vadd.f32 %v2133_v15, %v2280_v1  ;;  %v1199_v52 = vmax.f32 %v865_v26, 0.0 }
 0x150   : > { %v1271_v29 = vmax.f32 %v2612_v6, %v1196_v35  ;;  %v1296_v20 = vmax.f32 %v2613_v43, %v1246_v4  ;;  %v1249_v57 = vmax.f32 %v1115_v7, 0.0  ;;  %v2502_v55 = vadd.f32 %v2133_v15, %v2282_v12  ;;  %v2619_v6 = vld [vmem:[#allocation3_spill] sm:$0xff] }
 0x151   : > { %v1322_v59 = vmax.f32 %v1272_v27, %v1297_v33  ;;  %v1198_v21 = vmax.f32 %v860_v13, 0.0  ;;  %v1248_v8 = vmax.f32 %v1110_v0, 0.0  ;;  %v2614_v23 = vmax.f32 %v2315_v9, 0.0  ;;  %v1797_v27 = vpop.f32.mrb[44].mxu1 }
 0x152   : > { %v1321_v2 = vmax.f32 %v1271_v29, %v1296_v20  ;;  %v2615_v1 = vmax.f32 %v2330_v50, 0.0  ;;  %v875_v10 = vadd.f32 %v1719_v56, %v2133_v15  ;;  %v1125_v16 = vadd.f32 %v1794_v37, %v2133_v15  ;;  %v1129_v39 = vpop.f32.mrb[45].mxu1  ;;  %v2621_v20 = vld [vmem:[#allocation4_spill] sm:$0xff] }
 0x153   : > { %1347 = vst [vmem:[%s2359_s17 + $0x70] sm:$0xff] %v1322_v59  ;;  %v1274_v14 = vmax.f32 %v2614_v23, %v1199_v52  ;;  %v2616_v12 = vmax.f32 %v2287_v45, 0.0  ;;  %v2618_v47 = vmax.f32 %v2617_v53, 0.0  ;;  %v870_v9 = vadd.f32 %v2133_v15, %v869_v44  ;;  %v1722_v45 = vpop.f32.mrb[44].mxu0  ;;  %v2623_v52 = vld [vmem:[#allocation5_spill] sm:$0xff]  ;;  %v1800_v37 = vpop.f32.mrb[46].mxu1 }
 0x154   : > { %v1299_v3 = vmax.f32 %v2615_v1, %v1249_v57  ;;  %1346 = vst [vmem:[%s2359_s17 + $0x68] sm:$0xff] %v1321_v2  ;;  %v1120_v49 = vadd.f32 %v2133_v15, %v1119_v46  ;;  %v1181_v50 = vmax.f32 %v2476_v11, 0.0  ;;  %v1201_v62 = vmax.f32 %v875_v10, 0.0  ;;  %v879_v63 = vpop.f32.mrb[45].mxu0  ;;  %v1139_v10 = vpop.f32.mrb[47].mxu1 }
 0x155   : > { %v1273_v48 = vmax.f32 %v2616_v12, %v1198_v21  ;;  %v1298_v28 = vmax.f32 %v2618_v47, %v1248_v8  ;;  %v1251_v35 = vmax.f32 %v1125_v16, 0.0  ;;  %v1180_v4 = vmax.f32 %v2498_v40, 0.0  ;;  %v1725_v56 = vpop.f32.mrb[46].mxu0 }
 0x156   : > { %v1324_v22 = vmax.f32 %v1274_v14, %v1299_v3  ;;  %v1200_v36 = vmax.f32 %v870_v9, 0.0  ;;  %v1250_v31 = vmax.f32 %v1120_v49, 0.0  ;;  %v1276_v5 = vmax.f32 %v1176_v32, %v1201_v62  ;;  %v889_v3 = vpop.f32.mrb[47].mxu0 }
 0x157   : > { %v1323_v60 = vmax.f32 %v1273_v48, %v1298_v28  ;;  %v1301_v33 = vmax.f32 %v1226_v18, %v1251_v35  ;;  %v885_v26 = vadd.f32 %v1722_v45, %v2133_v15  ;;  %v1135_v7 = vadd.f32 %v1797_v27, %v2133_v15  ;;  %v1803_v62 = vpop.f32.mrb[48].mxu1 }
 0x158   : > { %1349 = vst [vmem:[%s2359_s17 + $0x80] sm:$0xff] %v1324_v22  ;;  %v2620_v29 = vmax.f32 %v2619_v6, 0.0  ;;  %v2622_v13 = vmax.f32 %v2621_v20, 0.0  ;;  %v880_v38 = vadd.f32 %v2133_v15, %v879_v63  ;;  %v1130_v32 = vadd.f32 %v2133_v15, %v1129_v39  ;;  %v1149_v45 = vpop.f32.mrb[49].mxu1 }
 0x159   : > { %1348 = vst [vmem:[%s2359_s17 + $0x78] sm:$0xff] %v1323_v60  ;;  %v1230_v34 = vmax.f32 %v2502_v55, 0.0  ;;  %v1326_v18 = vmax.f32 %v1276_v5, %v1301_v33  ;;  %v1203_v40 = vmax.f32 %v885_v26, 0.0  ;;  %v1253_v59 = vmax.f32 %v1135_v7, 0.0 }
 0x15a   : > { %v1275_v43 = vmax.f32 %v2620_v29, %v1200_v36  ;;  %v1300_v0 = vmax.f32 %v2622_v13, %v1250_v31  ;;  %v780_v57 = vadd.f32 %v2133_v15, %v2623_v52  ;;  %v1202_v21 = vmax.f32 %v880_v38, 0.0 }
 0x15b   : > { %v1252_v8 = vmax.f32 %v1130_v32, 0.0  ;;  %1351 = vst [vmem:[%s2359_s17 + $0x90] sm:$0xff] %v1326_v18  ;;  %v1278_v23 = vmax.f32 %v1178_v54, %v1203_v40  ;;  %v1303_v14 = vmax.f32 %v1228_v17, %v1253_v59  ;;  %v895_v55 = vadd.f32 %v1725_v56, %v2133_v15 }
 0x15c   : > { %v1325_v2 = vmax.f32 %v1275_v43, %v1300_v0  ;;  %v1145_v1 = vadd.f32 %v1800_v37, %v2133_v15  ;;  %v2624_v16 = vmax.f32 %v2339_v30, 0.0  ;;  %v2625_v46 = vmax.f32 %v2343_v24, 0.0  ;;  %v1728_v30 = vpop.f32.mrb[48].mxu0 }
 0x15d   : > { %v890_v51 = vadd.f32 %v2133_v15, %v889_v3  ;;  %v1140_v54 = vadd.f32 %v2133_v15, %v1139_v10  ;;  %v1030_v17 = vadd.f32 %v2133_v15, %v2626_v41  ;;  %v1328_v48 = vmax.f32 %v1278_v23, %v1303_v14  ;;  %v899_v31 = vpop.f32.mrb[49].mxu0 }
 0x15e   : > { %1350 = vst [vmem:[%s2359_s17 + $0x88] sm:$0xff] %v1325_v2  ;;  %v1277_v44 = vmax.f32 %v2624_v16, %v1202_v21  ;;  %v1302_v12 = vmax.f32 %v2625_v46, %v1252_v8  ;;  %v1205_v53 = vmax.f32 %v895_v55, 0.0  ;;  %v1255_v47 = vmax.f32 %v1145_v1, 0.0 }
 0x15f   : > { %v1182_v28 = vmax.f32 %v780_v57, 0.0  ;;  %v1204_v49 = vmax.f32 %v890_v51, 0.0  ;;  %v1254_v22 = vmax.f32 %v1140_v54, 0.0  ;;  %1353 = vst [vmem:[%s2359_s17 + $0xa0] sm:$0xff] %v1328_v48  ;;  %v905_v60 = vadd.f32 %v1728_v30, %v2133_v15 }
 0x160   : > { %v1327_v9 = vmax.f32 %v1277_v44, %v1302_v12  ;;  %v1280_v24 = vmax.f32 %v1180_v4, %v1205_v53  ;;  %v1305_v35 = vmax.f32 %v1230_v34, %v1255_v47  ;;  %v1155_v36 = vadd.f32 %v1803_v62, %v2133_v15 }
 0x161   : > { %v1279_v27 = vmax.f32 %v1179_v61, %v1204_v49  ;;  %v1304_v5 = vmax.f32 %v1229_v58, %v1254_v22  ;;  %v900_v33 = vadd.f32 %v2133_v15, %v899_v31  ;;  %v1150_v4 = vadd.f32 %v2133_v15, %v1149_v45 }
 0x162   : > { %1352 = vst [vmem:[%s2359_s17 + $0x98] sm:$0xff] %v1327_v9  ;;  %v1232_v26 = vmax.f32 %v1030_v17, 0.0  ;;  %v1330_v7 = vmax.f32 %v1280_v24, %v1305_v35  ;;  %v1207_v63 = vmax.f32 %v905_v60, 0.0  ;;  %v1257_v39 = vmax.f32 %v1155_v36, 0.0 }
 0x163   : > { %v1231_v6 = vmax.f32 %v2480_v25, 0.0  ;;  %v1329_v29 = vmax.f32 %v1279_v27, %v1304_v5  ;;  %v1206_v43 = vmax.f32 %v900_v33, 0.0  ;;  %v1256_v42 = vmax.f32 %v1150_v4, 0.0 }
 0x164   : > { %1355 = vst [vmem:[%s2359_s17 + $0xb0] sm:$0xff] %v1330_v7  ;;  %v1282_v61 = vmax.f32 %v1182_v28, %v1207_v63  ;;  %v1307_v20 = vmax.f32 %v1232_v26, %v1257_v39 }
 0x165   : > { %1354 = vst [vmem:[%s2359_s17 + $0xa8] sm:$0xff] %v1329_v29  ;;  %v1281_v19 = vmax.f32 %v1181_v50, %v1206_v43  ;;  %v1306_v58 = vmax.f32 %v1231_v6, %v1256_v42 }
 0x166   : > { %v1332_v15 = vmax.f32 %v1282_v61, %v1307_v20 }
 0x167   : > { %v1331_v13 = vmax.f32 %v1281_v19, %v1306_v58 }
 0x168   : > { %1357 = vst [vmem:[%s2359_s17 + $0xc0] sm:$0xff] %v1332_v15 }
 0x169   : > { %1356 = vst [vmem:[%s2359_s17 + $0xb8] sm:$0xff] %v1331_v13 }
 0x16a PF: > { %s13_s12 = sadd.s32 1, %s1853_s12  }
 0x16b   : > { %p10_p4 = scmp.ge.s32.totalorder %s13_s12, 4  }
 0x16d   :  { %12 = sbr.rel (!%p10_p4) target bundleno = 1 (0x1), region = 62 }

// kernel: squeeze.7
= control target key start
LH: loop header
LB: loop body
LE: loop exit
PB: predicated region body
PF: predicated region fallthrough
CT: control target
= control target key end

     0   :  { %vm3_vm0 = vcmask 130048   ;;  %s341_s10 = smov 112   ;;  %s342_s27 = smov 96   ;;  %s615_s0 = inlined_call_operand.vmem [shape: f32[3200], index: 0, kind: input, shape index: {}]   ;;  %s616_s1 = inlined_call_operand.vmem [shape: f32[200,16], index: 1, kind: output, shape index: {}]  }
   0x1   :  { %v269_v0 = vld [vmem:[%s615_s0 + $0x10] sm:$0xff]   ;;  %v25_v1 = vld [vmem:[%s615_s0] sm:$0xff]   ;;  %v266_v2 = vld [vmem:[%s615_s0 + $0x8] sm:$0xff]   ;;  %s343_s30 = smov 80   ;;  %s344_s4 = smov 64  }
   0x2   :  { %44 = vrot.lane.b32.xlu1 %v269_v0, %s341_s10  ;;  %26 = vrot.lane.b32.xlu0 %v25_v1, %s341_s10  ;;  %4 = vst.msk [vmem:[%s616_s1] ss:$8 sm:$0xf] %vm3_vm0, %v25_v1   ;;  %5 = vst.msk [vmem:[%s616_s1] ss:$8 sm:$0xf0] %vm3_vm0, %v25_v1  }
   0x3   :  { %260 = vst.msk [vmem:[%s616_s1 + $0x80] ss:$8 sm:$0xf] %vm3_vm0, %v269_v0   ;;  %261 = vst.msk [vmem:[%s616_s1 + $0x80] ss:$8 sm:$0xf0] %vm3_vm0, %v269_v0  }
   0x4   :  { %v272_v3 = vld [vmem:[%s615_s0 + $0x18] sm:$0x1]   ;;  %257 = vst.msk [vmem:[%s616_s1 + $0x40] ss:$8 sm:$0xf] %vm3_vm0, %v266_v2   ;;  %s345_s7 = smov 48  }
   0x5   :  { %258 = vst.msk [vmem:[%s616_s1 + $0x40] ss:$8 sm:$0xf0] %vm3_vm0, %v266_v2   ;;  %v282_v4 = vld [vmem:[%s615_s0 + $0x18] sm:$0x1]   ;;  %s346_s14 = smov 32  }
   0x6   :  { %53 = vrot.lane.b32.xlu1 %v272_v3, %s341_s10  ;;  %35 = vrot.lane.b32.xlu0 %v266_v2, %s341_s10  ;;  %v292_v5 = vld [vmem:[%s615_s0 + $0x18] sm:$0x1]   ;;  %s347_s17 = smov 16  }
   0x7   :  { %v302_v6 = vld [vmem:[%s615_s0 + $0x18] sm:$0x1]  }
   0x8   :  { %v312_v7 = vld [vmem:[%s615_s0 + $0x18] sm:$0x1]  }
   0x9   :  { %v262_v8 = vld [vmem:[%s615_s0 + $0x18] sm:$0x1]  }
   0xa   :  { %68 = vrot.lane.b32.xlu1 %v266_v2, %s342_s27  ;;  %59 = vrot.lane.b32.xlu0 %v25_v1, %s342_s27  ;;  %263 = vst.msk [vmem:[%s616_s1 + $0xc0] sm:$0x1] %vm3_vm0, %v262_v8   ;;  %v322_v9 = vld [vmem:[%s615_s0 + $0x18] sm:$0x1]  }
   0xb   :  { %v332_v10 = vld [vmem:[%s615_s0 + $0x18] sm:$0x1]  }
   0xe   :  { %86 = vrot.lane.b32.xlu1 %v282_v4, %s342_s27  ;;  %77 = vrot.lane.b32.xlu0 %v269_v0, %s342_s27 }
  0x12   :  { %101 = vrot.lane.b32.xlu1 %v266_v2, %s343_s30  ;;  %92 = vrot.lane.b32.xlu0 %v25_v1, %s343_s30 }
  0x16   :  { %119 = vrot.lane.b32.xlu1 %v292_v5, %s343_s30  ;;  %110 = vrot.lane.b32.xlu0 %v269_v0, %s343_s30 }
  0x1a   :  { %134 = vrot.lane.b32.xlu1 %v266_v2, %s344_s4  ;;  %125 = vrot.lane.b32.xlu0 %v25_v1, %s344_s4 }
  0x1e   :  { %152 = vrot.lane.b32.xlu1 %v302_v6, %s344_s4  ;;  %143 = vrot.lane.b32.xlu0 %v269_v0, %s344_s4 }
  0x22   :  { %167 = vrot.lane.b32.xlu1 %v266_v2, %s345_s7  ;;  %158 = vrot.lane.b32.xlu0 %v25_v1, %s345_s7 }
  0x26   :  { %185 = vrot.lane.b32.xlu1 %v312_v7, %s345_s7  ;;  %176 = vrot.lane.b32.xlu0 %v269_v0, %s345_s7 }
  0x2a   :  { %200 = vrot.lane.b32.xlu1 %v266_v2, %s346_s14  ;;  %191 = vrot.lane.b32.xlu0 %v25_v1, %s346_s14 }
  0x2e   :  { %218 = vrot.lane.b32.xlu1 %v322_v9, %s346_s14  ;;  %209 = vrot.lane.b32.xlu0 %v269_v0, %s346_s14 }
  0x32   :  { %233 = vrot.lane.b32.xlu1 %v266_v2, %s347_s17  ;;  %224 = vrot.lane.b32.xlu0 %v25_v1, %s347_s17 }
  0x36   :  { %251 = vrot.lane.b32.xlu1 %v332_v10, %s347_s17  ;;  %242 = vrot.lane.b32.xlu0 %v269_v0, %s347_s17 }
  0x74   :  { %v45_v11 = vpop.permute.xlu1 %44   ;;  %v27_v12 = vpop.permute.xlu0 %26  }
  0x75   :  { %270 = vst.msk [vmem:[%s616_s1 + $0x81] ss:$8 sm:$0xf] %vm3_vm0, %v45_v11   ;;  %271 = vst.msk [vmem:[%s616_s1 + $0x81] ss:$8 sm:$0xf0] %vm3_vm0, %v45_v11  }
  0x76   :  { %264 = vst.msk [vmem:[%s616_s1 + $0x1] ss:$8 sm:$0xf] %vm3_vm0, %v27_v12   ;;  %265 = vst.msk [vmem:[%s616_s1 + $0x1] ss:$8 sm:$0xf0] %vm3_vm0, %v27_v12  }
  0x78   :  { %v54_v13 = vpop.permute.xlu1 %53   ;;  %v36_v14 = vpop.permute.xlu0 %35  }
  0x79   :  { %273 = vst.msk [vmem:[%s616_s1 + $0xc1] sm:$0x1] %vm3_vm0, %v54_v13   ;;  %267 = vst.msk [vmem:[%s616_s1 + $0x41] ss:$8 sm:$0xf] %vm3_vm0, %v36_v14  }
  0x7a   :  { %268 = vst.msk [vmem:[%s616_s1 + $0x41] ss:$8 sm:$0xf0] %vm3_vm0, %v36_v14  }
  0x7c   :  { %v69_v15 = vpop.permute.xlu1 %68   ;;  %v60_v16 = vpop.permute.xlu0 %59  }
  0x7d   :  { %277 = vst.msk [vmem:[%s616_s1 + $0x42] ss:$8 sm:$0xf] %vm3_vm0, %v69_v15   ;;  %278 = vst.msk [vmem:[%s616_s1 + $0x42] ss:$8 sm:$0xf0] %vm3_vm0, %v69_v15  }
  0x7e   :  { %274 = vst.msk [vmem:[%s616_s1 + $0x2] ss:$8 sm:$0xf] %vm3_vm0, %v60_v16   ;;  %275 = vst.msk [vmem:[%s616_s1 + $0x2] ss:$8 sm:$0xf0] %vm3_vm0, %v60_v16  }
  0x80   :  { %v87_v17 = vpop.permute.xlu1 %86   ;;  %v78_v18 = vpop.permute.xlu0 %77  }
  0x81   :  { %283 = vst.msk [vmem:[%s616_s1 + $0xc2] sm:$0x1] %vm3_vm0, %v87_v17   ;;  %280 = vst.msk [vmem:[%s616_s1 + $0x82] ss:$8 sm:$0xf] %vm3_vm0, %v78_v18  }
  0x82   :  { %281 = vst.msk [vmem:[%s616_s1 + $0x82] ss:$8 sm:$0xf0] %vm3_vm0, %v78_v18  }
  0x84   :  { %v102_v19 = vpop.permute.xlu1 %101   ;;  %v93_v20 = vpop.permute.xlu0 %92  }
  0x85   :  { %287 = vst.msk [vmem:[%s616_s1 + $0x43] ss:$8 sm:$0xf] %vm3_vm0, %v102_v19   ;;  %288 = vst.msk [vmem:[%s616_s1 + $0x43] ss:$8 sm:$0xf0] %vm3_vm0, %v102_v19  }
  0x86   :  { %284 = vst.msk [vmem:[%s616_s1 + $0x3] ss:$8 sm:$0xf] %vm3_vm0, %v93_v20   ;;  %285 = vst.msk [vmem:[%s616_s1 + $0x3] ss:$8 sm:$0xf0] %vm3_vm0, %v93_v20  }
  0x88   :  { %v120_v21 = vpop.permute.xlu1 %119   ;;  %v111_v22 = vpop.permute.xlu0 %110  }
  0x89   :  { %293 = vst.msk [vmem:[%s616_s1 + $0xc3] sm:$0x1] %vm3_vm0, %v120_v21   ;;  %290 = vst.msk [vmem:[%s616_s1 + $0x83] ss:$8 sm:$0xf] %vm3_vm0, %v111_v22  }
  0x8a   :  { %291 = vst.msk [vmem:[%s616_s1 + $0x83] ss:$8 sm:$0xf0] %vm3_vm0, %v111_v22  }
  0x8c   :  { %v135_v23 = vpop.permute.xlu1 %134   ;;  %v126_v24 = vpop.permute.xlu0 %125  }
  0x8d   :  { %297 = vst.msk [vmem:[%s616_s1 + $0x44] ss:$8 sm:$0xf] %vm3_vm0, %v135_v23   ;;  %298 = vst.msk [vmem:[%s616_s1 + $0x44] ss:$8 sm:$0xf0] %vm3_vm0, %v135_v23  }
  0x8e   :  { %294 = vst.msk [vmem:[%s616_s1 + $0x4] ss:$8 sm:$0xf] %vm3_vm0, %v126_v24   ;;  %295 = vst.msk [vmem:[%s616_s1 + $0x4] ss:$8 sm:$0xf0] %vm3_vm0, %v126_v24  }
  0x90   :  { %v153_v25 = vpop.permute.xlu1 %152   ;;  %v144_v26 = vpop.permute.xlu0 %143  }
  0x91   :  { %303 = vst.msk [vmem:[%s616_s1 + $0xc4] sm:$0x1] %vm3_vm0, %v153_v25   ;;  %300 = vst.msk [vmem:[%s616_s1 + $0x84] ss:$8 sm:$0xf] %vm3_vm0, %v144_v26  }
  0x92   :  { %301 = vst.msk [vmem:[%s616_s1 + $0x84] ss:$8 sm:$0xf0] %vm3_vm0, %v144_v26  }
  0x94   :  { %v168_v27 = vpop.permute.xlu1 %167   ;;  %v159_v28 = vpop.permute.xlu0 %158  }
  0x95   :  { %307 = vst.msk [vmem:[%s616_s1 + $0x45] ss:$8 sm:$0xf] %vm3_vm0, %v168_v27   ;;  %308 = vst.msk [vmem:[%s616_s1 + $0x45] ss:$8 sm:$0xf0] %vm3_vm0, %v168_v27  }
  0x96   :  { %304 = vst.msk [vmem:[%s616_s1 + $0x5] ss:$8 sm:$0xf] %vm3_vm0, %v159_v28   ;;  %305 = vst.msk [vmem:[%s616_s1 + $0x5] ss:$8 sm:$0xf0] %vm3_vm0, %v159_v28  }
  0x98   :  { %v186_v29 = vpop.permute.xlu1 %185   ;;  %v177_v30 = vpop.permute.xlu0 %176  }
  0x99   :  { %313 = vst.msk [vmem:[%s616_s1 + $0xc5] sm:$0x1] %vm3_vm0, %v186_v29   ;;  %310 = vst.msk [vmem:[%s616_s1 + $0x85] ss:$8 sm:$0xf] %vm3_vm0, %v177_v30  }
  0x9a   :  { %311 = vst.msk [vmem:[%s616_s1 + $0x85] ss:$8 sm:$0xf0] %vm3_vm0, %v177_v30  }
  0x9c   :  { %v201_v31 = vpop.permute.xlu1 %200   ;;  %v192_v32 = vpop.permute.xlu0 %191  }
  0x9d   :  { %317 = vst.msk [vmem:[%s616_s1 + $0x46] ss:$8 sm:$0xf] %vm3_vm0, %v201_v31   ;;  %318 = vst.msk [vmem:[%s616_s1 + $0x46] ss:$8 sm:$0xf0] %vm3_vm0, %v201_v31  }
  0x9e   :  { %314 = vst.msk [vmem:[%s616_s1 + $0x6] ss:$8 sm:$0xf] %vm3_vm0, %v192_v32   ;;  %315 = vst.msk [vmem:[%s616_s1 + $0x6] ss:$8 sm:$0xf0] %vm3_vm0, %v192_v32  }
  0xa0   :  { %v219_v33 = vpop.permute.xlu1 %218   ;;  %v210_v34 = vpop.permute.xlu0 %209  }
  0xa1   :  { %323 = vst.msk [vmem:[%s616_s1 + $0xc6] sm:$0x1] %vm3_vm0, %v219_v33   ;;  %320 = vst.msk [vmem:[%s616_s1 + $0x86] ss:$8 sm:$0xf] %vm3_vm0, %v210_v34  }
  0xa2   :  { %321 = vst.msk [vmem:[%s616_s1 + $0x86] ss:$8 sm:$0xf0] %vm3_vm0, %v210_v34  }
  0xa4   :  { %v234_v35 = vpop.permute.xlu1 %233   ;;  %v225_v36 = vpop.permute.xlu0 %224  }
  0xa5   :  { %327 = vst.msk [vmem:[%s616_s1 + $0x47] ss:$8 sm:$0xf] %vm3_vm0, %v234_v35   ;;  %328 = vst.msk [vmem:[%s616_s1 + $0x47] ss:$8 sm:$0xf0] %vm3_vm0, %v234_v35  }
  0xa6   :  { %324 = vst.msk [vmem:[%s616_s1 + $0x7] ss:$8 sm:$0xf] %vm3_vm0, %v225_v36   ;;  %325 = vst.msk [vmem:[%s616_s1 + $0x7] ss:$8 sm:$0xf0] %vm3_vm0, %v225_v36  }
  0xa8   :  { %v252_v37 = vpop.permute.xlu1 %251   ;;  %v243_v38 = vpop.permute.xlu0 %242  }
  0xa9   :  { %333 = vst.msk [vmem:[%s616_s1 + $0xc7] sm:$0x1] %vm3_vm0, %v252_v37   ;;  %330 = vst.msk [vmem:[%s616_s1 + $0x87] ss:$8 sm:$0xf] %vm3_vm0, %v243_v38  }
  0xaa   :  { %331 = vst.msk [vmem:[%s616_s1 + $0x87] ss:$8 sm:$0xf0] %vm3_vm0, %v243_v38  }

// kernel: forward.8
= control target key start
LH: loop header
LB: loop body
LE: loop exit
PB: predicated region body
PF: predicated region fallthrough
CT: control target
= control target key end

     0   :  { %s648_s12 = smov 0   ;;  %s827_s0 = inlined_call_operand.vmem [shape: f32[2,128,200], index: 0, kind: input, shape index: {}]   ;;  %s828_s1 = inlined_call_operand.vmem [shape: f32[200,128], index: 1, kind: input, shape index: {}]   ;;  %s829_s2 = inlined_call_operand.vmem [shape: f32[1,128], index: 2, kind: input, shape index: {}]   ;;  %s830_s3 = inlined_call_operand.vmem [shape: f32[2,32,128], index: 3, kind: output, shape index: {}]  }
   0x1 LB: > { %s516_s13 = sadd.s32 4294967295, %s624_s12   ;;  %p520_p0 = scmp.ge.s32.totalorder %s624_s12, 1  ;;  %s624_s12 = sphi %s648_s12, %s13_s12  }
   0x2   : > { %p137_p1 = scmp.lt.s32.totalorder %s624_s12, 3 }
   0x4   : > { %p138_p2 = pnand %p520_p0, %p137_p1 }
   0x5   : > { %v203_v0 = vld [vmem:[%s828_s1] sm:$0xff] (!%p138_p2)  ;;  %v204_v1 = vld [vmem:[%s828_s1 + $0x8] sm:$0xff] (!%p138_p2)  ;;  %v205_v2 = vld [vmem:[%s828_s1 + $0x10] sm:$0xff] (!%p138_p2)  ;;  %p161_p3 = scmp.lt.s32.totalorder (!%p138_p2), %s516_s13, 1  ;;  %v626_v3 = vmov (!%p138_p2), 0.0|0.0   ;;  %vm235_vm0 = vcmask (!%p138_p2), 588800  }
   0x6   : > { %141 = sbr.rel (%p138_p2) target bundleno = 306 (0x132), region = 32  ;;  %546 = vmatprep.subr.bf16.mxu0 (!%p138_p2), %v626_v3  ;;  %582 = vmatprep.subr.bf16.mxu1 (!%p138_p2), %v626_v3  ;;  %v547_v4 = vpack.c.bf16 (!%p138_p2), %v204_v1, %v203_v0  ;;  %v206_v5 = vld [vmem:[%s828_s1 + $0x18] sm:$0xff] (!%p138_p2)  ;;  %v207_v7 = vld [vmem:[%s828_s1 + $0x20] sm:$0xff] (!%p138_p2)  ;;  %v208_v8 = vld [vmem:[%s828_s1 + $0x28] sm:$0xff] (!%p138_p2)  ;;  %v627_v39 = vmov (!%p138_p2), 0.0  }
   0x7   : > { %v550_v6 = vpack.c.bf16 (!%p138_p2), %v206_v5, %v205_v2  ;;  %v553_v9 = vpack.c.bf16 (!%p138_p2), %v208_v8, %v207_v7  ;;  %v209_v10 = vld [vmem:[%s828_s1 + $0x30] sm:$0xff] (!%p138_p2)  ;;  %v210_v11 = vld [vmem:[%s828_s1 + $0x38] sm:$0xff] (!%p138_p2)  ;;  %v211_v15 = vld [vmem:[%s828_s1 + $0x40] sm:$0xff] (!%p138_p2) }
   0x8   : > { %548 = vmatpush1.bf16.msra.mxu0 (!%p138_p2), %v547_v4  ;;  %595 = vmatpush1.bf16.msra.mxu1 (!%p138_p2), %v547_v4  ;;  %v556_v14 = vpack.c.bf16 (!%p138_p2), %v210_v11, %v209_v10  ;;  %v212_v16 = vld [vmem:[%s828_s1 + $0x48] sm:$0xff] (!%p138_p2)  ;;  %v213_v18 = vld [vmem:[%s828_s1 + $0x50] sm:$0xff] (!%p138_p2)  ;;  %v214_v19 = vld [vmem:[%s828_s1 + $0x58] sm:$0xff] (!%p138_p2) }
   0x9   : > { %549 = vmatprep.subr.bf16.mxu0 (!%p138_p2), %v626_v3  ;;  %583 = vmatprep.subr.bf16.mxu1 (!%p138_p2), %v626_v3  ;;  %v559_v17 = vpack.c.bf16 (!%p138_p2), %v212_v16, %v211_v15  ;;  %v562_v20 = vpack.c.bf16 (!%p138_p2), %v214_v19, %v213_v18  ;;  %v215_v21 = vld [vmem:[%s828_s1 + $0x60] sm:$0xff] (!%p138_p2)  ;;  %v216_v22 = vld [vmem:[%s828_s1 + $0x68] sm:$0xff] (!%p138_p2)  ;;  %v217_v24 = vld [vmem:[%s828_s1 + $0x70] sm:$0xff] (!%p138_p2) }
   0xa   : > { %v565_v23 = vpack.c.bf16 (!%p138_p2), %v216_v22, %v215_v21  ;;  %v218_v25 = vld [vmem:[%s828_s1 + $0x78] sm:$0xff] (!%p138_p2)  ;;  %v219_v27 = vld [vmem:[%s828_s1 + $0x80] sm:$0xff] (!%p138_p2)  ;;  %v220_v28 = vld [vmem:[%s828_s1 + $0x88] sm:$0xff] (!%p138_p2) }
   0xb   : > { %v568_v26 = vpack.c.bf16 (!%p138_p2), %v218_v25, %v217_v24  ;;  %v571_v29 = vpack.c.bf16 (!%p138_p2), %v220_v28, %v219_v27  ;;  %v221_v30 = vld [vmem:[%s828_s1 + $0x90] sm:$0xff] (!%p138_p2)  ;;  %v222_v31 = vld [vmem:[%s828_s1 + $0x98] sm:$0xff] (!%p138_p2)  ;;  %v223_v33 = vld [vmem:[%s828_s1 + $0xa0] sm:$0xff] (!%p138_p2) }
   0xc   : > { %551 = vmatpush1.bf16.msra.mxu0 (!%p138_p2), %v550_v6  ;;  %596 = vmatpush1.bf16.msra.mxu1 (!%p138_p2), %v550_v6  ;;  %v574_v32 = vpack.c.bf16 (!%p138_p2), %v222_v31, %v221_v30  ;;  %v224_v34 = vld [vmem:[%s828_s1 + $0xa8] sm:$0xff] (!%p138_p2)  ;;  %v225_v36 = vld [vmem:[%s828_s1 + $0xb0] sm:$0xff] (!%p138_p2)  ;;  %v226_v37 = vld [vmem:[%s828_s1 + $0xb8] sm:$0xff] (!%p138_p2) }
   0xd   : > { %s832_s13 = smov (!%p161_p3, %s516_s13), 1  ;;  %552 = vmatprep.subr.bf16.mxu0 %v626_v3  ;;  %584 = vmatprep.subr.bf16.mxu1 %v626_v3  ;;  %v577_v35 = vpack.c.bf16 %v224_v34, %v223_v33  ;;  %v580_v38 = vpack.c.bf16 %v226_v37, %v225_v36  ;;  %v227_v40 = vld [vmem:[%s828_s1 + $0xc0] sm:$0xff] }
   0xe   : > { %s544_s26 = sshll.u32 %s832_s13, 8  ;;  %v525_v19 = vld [vmem:[%s829_s2] ss:$0 sm:$0xff] }
   0xf   : > { %s684_s29 = scalar_lea.vmem %s827_s0, %s544_s26 }
  0x10   : > { %v172_v12 = vld [vmem:[%s684_s29 + $0x8] sm:$0xff]  ;;  %554 = vmatpush1.bf16.msra.mxu0 %v553_v9  ;;  %597 = vmatpush1.bf16.msra.mxu1 %v553_v9  ;;  %v171_v41 = vld [vmem:[%s684_s29] sm:$0xff]  ;;  %v174_v43 = vld [vmem:[%s684_s29 + $0x18] sm:$0xff] }
  0x11   : > { %v188_v13 = vld [vmem:[%s684_s29 + $0x88] sm:$0xff]  ;;  %526 = vmatprep.mubr.msk.f32.mxu0 %vm235_vm0, %v172_v12  ;;  %555 = vmatprep.subr.bf16.mxu0 %v626_v3  ;;  %v187_v42 = vld [vmem:[%s684_s29 + $0x80] sm:$0xff]  ;;  %v190_v44 = vld [vmem:[%s684_s29 + $0x98] sm:$0xff] }
  0x12   : > { %534 = vmatprep.mubr.msk.f32.mxu1 %vm235_vm0, %v188_v13  ;;  %585 = vmatprep.subr.bf16.mxu1 %v626_v3  ;;  %v173_v45 = vld [vmem:[%s684_s29 + $0x10] sm:$0xff]  ;;  %v176_v47 = vld [vmem:[%s684_s29 + $0x28] sm:$0xff]  ;;  %v175_v49 = vld [vmem:[%s684_s29 + $0x20] sm:$0xff] }
  0x13   : > { %v189_v46 = vld [vmem:[%s684_s29 + $0x90] sm:$0xff]  ;;  %v192_v48 = vld [vmem:[%s684_s29 + $0xa8] sm:$0xff]  ;;  %v191_v50 = vld [vmem:[%s684_s29 + $0xa0] sm:$0xff] }
  0x14   : > { %557 = vmatpush1.bf16.msra.mxu0 %v556_v14  ;;  %598 = vmatpush1.bf16.msra.mxu1 %v556_v14  ;;  %v178_v51 = vld [vmem:[%s684_s29 + $0x38] sm:$0xff]  ;;  %v177_v53 = vld [vmem:[%s684_s29 + $0x30] sm:$0xff]  ;;  %v180_v55 = vld [vmem:[%s684_s29 + $0x48] sm:$0xff] }
  0x15   : > { %558 = vmatprep.subr.bf16.mxu0 %v626_v3  ;;  %586 = vmatprep.subr.bf16.mxu1 %v626_v3  ;;  %v194_v52 = vld [vmem:[%s684_s29 + $0xb8] sm:$0xff]  ;;  %v193_v54 = vld [vmem:[%s684_s29 + $0xb0] sm:$0xff]  ;;  %v196_v56 = vld [vmem:[%s684_s29 + $0xc8] sm:$0xff] }
  0x16   : > { %v179_v57 = vld [vmem:[%s684_s29 + $0x40] sm:$0xff]  ;;  %v182_v59 = vld [vmem:[%s684_s29 + $0x58] sm:$0xff]  ;;  %v181_v61 = vld [vmem:[%s684_s29 + $0x50] sm:$0xff] }
  0x17   : > { %v195_v58 = vld [vmem:[%s684_s29 + $0xc0] sm:$0xff]  ;;  %v198_v60 = vld [vmem:[%s684_s29 + $0xd8] sm:$0xff]  ;;  %v197_v62 = vld [vmem:[%s684_s29 + $0xd0] sm:$0xff] }
  0x18   : > { %560 = vmatpush1.bf16.msra.mxu0 %v559_v17  ;;  %599 = vmatpush1.bf16.msra.mxu1 %v559_v17  ;;  %v184_v63 = vld [vmem:[%s684_s29 + $0x68] sm:$0xff]  ;;  %v183_v1 = vld [vmem:[%s684_s29 + $0x60] sm:$0xff]  ;;  %v202_v4 = vld [vmem:[%s684_s29 + $0xf8] sm:$0xff] }
  0x19   : > { %561 = vmatprep.subr.bf16.mxu0 %v626_v3  ;;  %587 = vmatprep.subr.bf16.mxu1 %v626_v3  ;;  %v200_v0 = vld [vmem:[%s684_s29 + $0xe8] sm:$0xff]  ;;  %v199_v2 = vld [vmem:[%s684_s29 + $0xe0] sm:$0xff]  ;;  %v185_v5 = vld [vmem:[%s684_s29 + $0x70] sm:$0xff] }
  0x1a   : > { %v201_v6 = vld [vmem:[%s684_s29 + $0xf0] sm:$0xff] }
  0x1c   : > { %563 = vmatpush1.bf16.msra.mxu0 %v562_v20  ;;  %600 = vmatpush1.bf16.msra.mxu1 %v562_v20 }
  0x1d   : > { %564 = vmatprep.subr.bf16.mxu0 %v626_v3  ;;  %588 = vmatprep.subr.bf16.mxu1 %v626_v3 }
  0x20   : > { %566 = vmatpush1.bf16.msra.mxu0 %v565_v23  ;;  %601 = vmatpush1.bf16.msra.mxu1 %v565_v23 }
  0x21   : > { %567 = vmatprep.subr.bf16.mxu0 %v626_v3  ;;  %589 = vmatprep.subr.bf16.mxu1 %v626_v3 }
  0x24   : > { %569 = vmatpush1.bf16.msra.mxu0 %v568_v26  ;;  %602 = vmatpush1.bf16.msra.mxu1 %v568_v26 }
  0x25   : > { %570 = vmatprep.subr.bf16.mxu0 %v626_v3  ;;  %590 = vmatprep.subr.bf16.mxu1 %v626_v3 }
  0x28   : > { %572 = vmatpush1.bf16.msra.mxu0 %v571_v29  ;;  %603 = vmatpush1.bf16.msra.mxu1 %v571_v29 }
  0x29   : > { %573 = vmatprep.subr.bf16.mxu0 %v626_v3  ;;  %591 = vmatprep.subr.bf16.mxu1 %v626_v3 }
  0x2c   : > { %575 = vmatpush1.bf16.msra.mxu0 %v574_v32  ;;  %604 = vmatpush1.bf16.msra.mxu1 %v574_v32 }
  0x2d   : > { %576 = vmatprep.subr.bf16.mxu0 %v626_v3  ;;  %592 = vmatprep.subr.bf16.mxu1 %v626_v3 }
  0x30   : > { %578 = vmatpush1.bf16.msra.mxu0 %v577_v35  ;;  %605 = vmatpush1.bf16.msra.mxu1 %v577_v35 }
  0x31   : > { %579 = vmatprep.subr.bf16.mxu0 %v626_v3  ;;  %593 = vmatprep.subr.bf16.mxu1 %v626_v3  ;;  %v186_v3 = vld [vmem:[%s684_s29 + $0x78] sm:$0xff]  ;;  %s545_s29 = sshll.u32 %s832_s13, 5 }
  0x32   : > { %s818_s23 = scalar_lea.vmem %s830_s3, %s545_s29 }
  0x34   : > { %581 = vmatpush1.bf16.msra.mxu0 %v580_v38  ;;  %606 = vmatpush1.bf16.msra.mxu1 %v580_v38 }
  0x35   : > { %332 = vmatprep.subr.mxu0 %v627_v39  ;;  %594 = vmatprep.subr.mxu1 %v627_v39 }
  0x38   : > { %333 = vmatpush1.msra.mxu0 %v227_v40  ;;  %607 = vmatpush1.msra.mxu1 %v227_v40 }
  0x39   : > { %349 = vmatmul.mubr.f32.vlgmr.msra.gmra.mrb[0].mxu0 %v171_v41  ;;  %389 = vmatmul.mubr.f32.vlgmr.msra.gmra.mrb[0].mxu1 %v187_v42 }
  0x3a   : > { %527 = vmatprep.mubr.msk.f32.mxu0 %vm235_vm0, %v174_v43  ;;  %535 = vmatprep.mubr.msk.f32.mxu1 %vm235_vm0, %v190_v44 }
  0x3d   : > { %354 = vmatmul.mubr.f32.gmra.mrb[2].mxu0 %v173_v45  ;;  %394 = vmatmul.mubr.f32.gmra.mrb[2].mxu1 %v189_v46 }
  0x3e   : > { %528 = vmatprep.mubr.msk.f32.mxu0 %vm235_vm0, %v176_v47  ;;  %536 = vmatprep.mubr.msk.f32.mxu1 %vm235_vm0, %v192_v48 }
  0x41   : > { %359 = vmatmul.mubr.f32.gmra.mrb[4].mxu0 %v175_v49  ;;  %399 = vmatmul.mubr.f32.gmra.mrb[4].mxu1 %v191_v50 }
  0x42   : > { %529 = vmatprep.mubr.msk.f32.mxu0 %vm235_vm0, %v178_v51  ;;  %537 = vmatprep.mubr.msk.f32.mxu1 %vm235_vm0, %v194_v52 }
  0x45   : > { %364 = vmatmul.mubr.f32.gmra.mrb[6].mxu0 %v177_v53  ;;  %404 = vmatmul.mubr.f32.gmra.mrb[6].mxu1 %v193_v54 }
  0x46   : > { %530 = vmatprep.mubr.msk.f32.mxu0 %vm235_vm0, %v180_v55  ;;  %538 = vmatprep.mubr.msk.f32.mxu1 %vm235_vm0, %v196_v56 }
  0x49   : > { %369 = vmatmul.mubr.f32.gmra.mrb[8].mxu0 %v179_v57  ;;  %409 = vmatmul.mubr.f32.gmra.mrb[8].mxu1 %v195_v58 }
  0x4a   : > { %531 = vmatprep.mubr.msk.f32.mxu0 %vm235_vm0, %v182_v59  ;;  %539 = vmatprep.mubr.msk.f32.mxu1 %vm235_vm0, %v198_v60 }
  0x4d   : > { %374 = vmatmul.mubr.f32.gmra.mrb[10].mxu0 %v181_v61  ;;  %414 = vmatmul.mubr.f32.gmra.mrb[10].mxu1 %v197_v62 }
  0x4e   : > { %532 = vmatprep.mubr.msk.f32.mxu0 %vm235_vm0, %v184_v63  ;;  %540 = vmatprep.mubr.msk.f32.mxu1 %vm235_vm0, %v200_v0 }
  0x51   : > { %379 = vmatmul.mubr.f32.gmra.mrb[12].mxu0 %v183_v1  ;;  %419 = vmatmul.mubr.f32.gmra.mrb[12].mxu1 %v199_v2 }
  0x52   : > { %533 = vmatprep.mubr.msk.f32.mxu0 %vm235_vm0, %v186_v3  ;;  %541 = vmatprep.mubr.msk.f32.mxu1 %vm235_vm0, %v202_v4 }
  0x55   : > { %384 = vmatmul.mubr.f32.gmra.mrb[14].mxu0 %v185_v5  ;;  %424 = vmatmul.mubr.f32.gmra.mrb[14].mxu1 %v201_v6 }
 0x10c   : > { %v350_v7 = vpop.f32.mrb[0].mxu0  ;;  %v390_v8 = vpop.f32.mrb[0].mxu1 }
 0x10d   : > { %v352_v9 = vpop.f32.mrb[1].mxu0  ;;  %v392_v10 = vpop.f32.mrb[1].mxu1  ;;  %v351_v24 = vadd.f32 %v525_v19, %v350_v7  ;;  %v391_v25 = vadd.f32 %v525_v19, %v390_v8 }
 0x10f   : > { %v429_v32 = vmax.f32 %v351_v24, 0.0  ;;  %v437_v34 = vmax.f32 %v391_v25, 0.0 }
 0x110   : > { %v355_v11 = vpop.f32.mrb[2].mxu0  ;;  %v395_v12 = vpop.f32.mrb[2].mxu1 }
 0x111   : > { %v357_v13 = vpop.f32.mrb[3].mxu0  ;;  %v397_v14 = vpop.f32.mrb[3].mxu1  ;;  %v356_v33 = vadd.f32 %v525_v19, %v355_v11  ;;  %v396_v35 = vadd.f32 %v525_v19, %v395_v12 }
 0x113   : > { %v430_v46 = vmax.f32 %v356_v33, 0.0  ;;  %v438_v49 = vmax.f32 %v396_v35, 0.0 }
 0x114   : > { %v360_v15 = vpop.f32.mrb[4].mxu0  ;;  %v400_v16 = vpop.f32.mrb[4].mxu1 }
 0x115   : > { %v362_v17 = vpop.f32.mrb[5].mxu0  ;;  %v402_v18 = vpop.f32.mrb[5].mxu1  ;;  %v361_v47 = vadd.f32 %v525_v19, %v360_v15  ;;  %v401_v48 = vadd.f32 %v525_v19, %v400_v16 }
 0x117   : > { %v431_v61 = vmax.f32 %v361_v47, 0.0  ;;  %v439_v62 = vmax.f32 %v401_v48, 0.0 }
 0x118   : > { %v365_v20 = vpop.f32.mrb[6].mxu0  ;;  %v405_v21 = vpop.f32.mrb[6].mxu1 }
 0x119   : > { %v367_v22 = vpop.f32.mrb[7].mxu0  ;;  %v407_v23 = vpop.f32.mrb[7].mxu1  ;;  %v366_v63 = vadd.f32 %v525_v19, %v365_v20  ;;  %v406_v0 = vadd.f32 %v525_v19, %v405_v21 }
 0x11b   : > { %v432_v12 = vmax.f32 %v366_v63, 0.0  ;;  %v440_v13 = vmax.f32 %v406_v0, 0.0 }
 0x11c   : > { %v370_v26 = vpop.f32.mrb[8].mxu0  ;;  %v410_v27 = vpop.f32.mrb[8].mxu1 }
 0x11d   : > { %v371_v28 = vadd.f32 %v525_v19, %v370_v26  ;;  %v411_v29 = vadd.f32 %v525_v19, %v410_v27  ;;  %v372_v30 = vpop.f32.mrb[9].mxu0  ;;  %v412_v31 = vpop.f32.mrb[9].mxu1 }
 0x11f   : > { %v433_v36 = vmax.f32 %v371_v28, 0.0  ;;  %v441_v37 = vmax.f32 %v411_v29, 0.0 }
 0x120   : > { %v375_v38 = vpop.f32.mrb[10].mxu0  ;;  %v415_v39 = vpop.f32.mrb[10].mxu1 }
 0x121   : > { %v445_v40 = vmax.f32 %v429_v32, %v433_v36  ;;  %v449_v41 = vmax.f32 %v437_v34, %v441_v37  ;;  %v376_v42 = vadd.f32 %v525_v19, %v375_v38  ;;  %v416_v43 = vadd.f32 %v525_v19, %v415_v39  ;;  %v377_v44 = vpop.f32.mrb[11].mxu0  ;;  %v417_v45 = vpop.f32.mrb[11].mxu1 }
 0x123   : > { %v453_v50 = vmax.f32 %v445_v40, %v449_v41  ;;  %v434_v51 = vmax.f32 %v376_v42, 0.0  ;;  %v442_v52 = vmax.f32 %v416_v43, 0.0 }
 0x124   : > { %v380_v53 = vpop.f32.mrb[12].mxu0  ;;  %v420_v54 = vpop.f32.mrb[12].mxu1 }
 0x125   : > { %457 = vst [vmem:[%s818_s23] sm:$0xff] %v453_v50  ;;  %v446_v55 = vmax.f32 %v430_v46, %v434_v51  ;;  %v450_v56 = vmax.f32 %v438_v49, %v442_v52  ;;  %v381_v57 = vadd.f32 %v525_v19, %v380_v53  ;;  %v421_v58 = vadd.f32 %v525_v19, %v420_v54  ;;  %v382_v59 = vpop.f32.mrb[13].mxu0  ;;  %v422_v60 = vpop.f32.mrb[13].mxu1 }
 0x127   : > { %v454_v1 = vmax.f32 %v446_v55, %v450_v56  ;;  %v435_v2 = vmax.f32 %v381_v57, 0.0  ;;  %v443_v3 = vmax.f32 %v421_v58, 0.0 }
 0x128   : > { %v385_v4 = vpop.f32.mrb[14].mxu0  ;;  %v425_v5 = vpop.f32.mrb[14].mxu1 }
 0x129   : > { %458 = vst [vmem:[%s818_s23 + $0x8] sm:$0xff] %v454_v1  ;;  %v447_v6 = vmax.f32 %v431_v61, %v435_v2  ;;  %v451_v7 = vmax.f32 %v439_v62, %v443_v3  ;;  %v386_v8 = vadd.f32 %v525_v19, %v385_v4  ;;  %v426_v9 = vadd.f32 %v525_v19, %v425_v5  ;;  %v387_v10 = vpop.f32.mrb[15].mxu0  ;;  %v427_v11 = vpop.f32.mrb[15].mxu1 }
 0x12b   : > { %v455_v14 = vmax.f32 %v447_v6, %v451_v7  ;;  %v436_v15 = vmax.f32 %v386_v8, 0.0  ;;  %v444_v16 = vmax.f32 %v426_v9, 0.0 }
 0x12d   : > { %459 = vst [vmem:[%s818_s23 + $0x10] sm:$0xff] %v455_v14  ;;  %v448_v17 = vmax.f32 %v432_v12, %v436_v15  ;;  %v452_v18 = vmax.f32 %v440_v13, %v444_v16 }
 0x12f   : > { %v456_v20 = vmax.f32 %v448_v17, %v452_v18 }
 0x131   : > { %460 = vst [vmem:[%s818_s23 + $0x18] sm:$0xff] %v456_v20 }
 0x132 PF: > { %s13_s12 = sadd.s32 1, %s624_s12  }
 0x133   : > { %p10_p4 = scmp.ge.s32.totalorder %s13_s12, 4  }
 0x135   :  { %12 = sbr.rel (!%p10_p4) target bundleno = 1 (0x1), region = 62 }

// kernel: squeeze.8
= control target key start
LH: loop header
LB: loop body
LE: loop exit
PB: predicated region body
PF: predicated region fallthrough
CT: control target
= control target key end

     0   :  { %s1887_s10 = smov 120   ;;  %vm85_vm0 = vcmask 130048   ;;  %s1888_s2 = smov 112   ;;  %vm177_vm1 = vcmask 195584   ;;  %vm269_vm2 = vcmask 261120   ;;  %vm361_vm3 = vcmask 326656   ;;  %s3888_s0 = inlined_call_operand.vmem [shape: f32[48000], index: 0, kind: input, shape index: {}]   ;;  %s3889_s1 = inlined_call_operand.vmem [shape: f32[400,120], index: 1, kind: output, shape index: {}]  }
   0x1   :  { %v1390_v0 = vld [vmem:[%s3888_s0 + $0xfe] ss:$15 sm:$0xff]   ;;  %v1380_v1 = vld [vmem:[%s3888_s0 + $0xe] ss:$15 sm:$0xff]   ;;  %v1395_v2 = vld [vmem:[%s3888_s0 + $0x176] sm:$0x1]  }
   0x2   :  { %63 = vrot.lane.b32.xlu1 %v1390_v0, %s1887_s10  ;;  %37 = vrot.lane.b32.xlu0 %v1380_v1, %s1887_s10  ;;  %v1385_v3 = vld [vmem:[%s3888_s0 + $0x86] ss:$15 sm:$0xff]   ;;  %v1407_v4 = vld [vmem:[%s3888_s0 + $0x85] ss:$15 sm:$0xff]   ;;  %s1889_s19 = smov 104   ;;  %s1890_s7 = smov 96  }
   0x3   :  { %v1408_v5 = vld [vmem:[%s3888_s0 + $0x86] ss:$15 sm:$0xff]   ;;  %v1397_v6 = vld [vmem:[%s3888_s0 + $0xd] ss:$15 sm:$0xff]   ;;  %v1398_v7 = vld [vmem:[%s3888_s0 + $0xe] ss:$15 sm:$0xff]  }
   0x4   :  { %v112_v8 = vsel %vm85_vm0, %v1408_v5, %v1407_v4  ;;  %v86_v9 = vsel %vm85_vm0, %v1398_v7, %v1397_v6  ;;  %v1427_v10 = vld [vmem:[%s3888_s0 + $0x175] sm:$0x1]   ;;  %v1428_v11 = vld [vmem:[%s3888_s0 + $0x176] sm:$0x1]   ;;  %v1417_v12 = vld [vmem:[%s3888_s0 + $0xfd] ss:$15 sm:$0xff]  }
   0x5   :  { %v1418_v13 = vld [vmem:[%s3888_s0 + $0xfe] ss:$15 sm:$0xff]   ;;  %v164_v14 = vsel %vm85_vm0, %v1428_v11, %v1427_v10  ;;  %v1442_v17 = vld [vmem:[%s3888_s0 + $0x85] ss:$15 sm:$0xff]   ;;  %v1431_v18 = vld [vmem:[%s3888_s0 + $0xc] ss:$15 sm:$0xff]  }
   0x6   :  { %76 = vrot.lane.b32.xlu1 %v1395_v2, %s1887_s10  ;;  %50 = vrot.lane.b32.xlu0 %v1385_v3, %s1887_s10  ;;  %v138_v15 = vsel %vm85_vm0, %v1418_v13, %v1417_v12  ;;  %v1441_v16 = vld [vmem:[%s3888_s0 + $0x84] ss:$15 sm:$0xff]   ;;  %v1461_v22 = vld [vmem:[%s3888_s0 + $0x174] sm:$0x1]   ;;  %s1891_s24 = smov 88   ;;  %vm453_vm4 = vcmask 392192  }
   0x7   :  { %v1432_v19 = vld [vmem:[%s3888_s0 + $0xd] ss:$15 sm:$0xff]   ;;  %v204_v20 = vsel %vm177_vm1, %v1442_v17, %v1441_v16  ;;  %v1462_v23 = vld [vmem:[%s3888_s0 + $0x175] sm:$0x1]   ;;  %v1452_v25 = vld [vmem:[%s3888_s0 + $0xfd] ss:$15 sm:$0xff]  }
   0x8   :  { %v178_v21 = vsel %vm177_vm1, %v1432_v19, %v1431_v18  ;;  %v1451_v24 = vld [vmem:[%s3888_s0 + $0xfc] ss:$15 sm:$0xff]   ;;  %v256_v26 = vsel %vm177_vm1, %v1462_v23, %v1461_v22  ;;  %v1475_v28 = vld [vmem:[%s3888_s0 + $0x83] ss:$15 sm:$0xff]   ;;  %v1476_v29 = vld [vmem:[%s3888_s0 + $0x84] ss:$15 sm:$0xff]  }
   0x9   :  { %v230_v27 = vsel %vm177_vm1, %v1452_v25, %v1451_v24  ;;  %v1465_v30 = vld [vmem:[%s3888_s0 + $0xb] ss:$15 sm:$0xff]   ;;  %v1466_v31 = vld [vmem:[%s3888_s0 + $0xc] ss:$15 sm:$0xff]   ;;  %v296_v32 = vsel %vm269_vm2, %v1476_v29, %v1475_v28  ;;  %v1495_v34 = vld [vmem:[%s3888_s0 + $0x173] sm:$0x1]  }
   0xa   :  { %113 = vrot.lane.b32.xlu1 %v112_v8, %s1888_s2  ;;  %87 = vrot.lane.b32.xlu0 %v86_v9, %s1888_s2  ;;  %v270_v33 = vsel %vm269_vm2, %v1466_v31, %v1465_v30  ;;  %v1496_v35 = vld [vmem:[%s3888_s0 + $0x174] sm:$0x1]   ;;  %v1485_v36 = vld [vmem:[%s3888_s0 + $0xfb] ss:$15 sm:$0xff]   ;;  %s1892_s12 = smov 80   ;;  %vm545_vm5 = vcmask 457728  }
   0xb   :  { %v1486_v37 = vld [vmem:[%s3888_s0 + $0xfc] ss:$15 sm:$0xff]   ;;  %v348_v38 = vsel %vm269_vm2, %v1496_v35, %v1495_v34  ;;  %v1510_v41 = vld [vmem:[%s3888_s0 + $0x83] ss:$15 sm:$0xff]   ;;  %v1499_v42 = vld [vmem:[%s3888_s0 + $0xa] ss:$15 sm:$0xff]  }
   0xc   :  { %v322_v39 = vsel %vm269_vm2, %v1486_v37, %v1485_v36  ;;  %v1509_v40 = vld [vmem:[%s3888_s0 + $0x82] ss:$15 sm:$0xff]   ;;  %v1529_v46 = vld [vmem:[%s3888_s0 + $0x172] sm:$0x1]   ;;  %v1530_v47 = vld [vmem:[%s3888_s0 + $0x173] sm:$0x1]  }
   0xd   :  { %v1500_v43 = vld [vmem:[%s3888_s0 + $0xb] ss:$15 sm:$0xff]   ;;  %v388_v44 = vsel %vm361_vm3, %v1510_v41, %v1509_v40  ;;  %v1520_v49 = vld [vmem:[%s3888_s0 + $0xfb] ss:$15 sm:$0xff]   ;;  %v440_v50 = vsel %vm361_vm3, %v1530_v47, %v1529_v46  ;;  %v1563_v58 = vld [vmem:[%s3888_s0 + $0x171] sm:$0x1]  }
   0xe   :  { %165 = vrot.lane.b32.xlu1 %v164_v14, %s1888_s2  ;;  %139 = vrot.lane.b32.xlu0 %v138_v15, %s1888_s2  ;;  %v362_v45 = vsel %vm361_vm3, %v1500_v43, %v1499_v42  ;;  %v1519_v48 = vld [vmem:[%s3888_s0 + $0xfa] ss:$15 sm:$0xff]   ;;  %v1543_v52 = vld [vmem:[%s3888_s0 + $0x81] ss:$15 sm:$0xff]   ;;  %s1893_s29 = smov 72   ;;  %vm637_vm6 = vcmask 523264  }
   0xf   :  { %v414_v51 = vsel %vm361_vm3, %v1520_v49, %v1519_v48  ;;  %v1544_v53 = vld [vmem:[%s3888_s0 + $0x82] ss:$15 sm:$0xff]   ;;  %v1533_v54 = vld [vmem:[%s3888_s0 + $0x9] ss:$15 sm:$0xff]   ;;  %v1534_v55 = vld [vmem:[%s3888_s0 + $0xa] ss:$15 sm:$0xff]  }
  0x10   :  { %v480_v56 = vsel %vm453_vm4, %v1544_v53, %v1543_v52  ;;  %v454_v57 = vsel %vm453_vm4, %v1534_v55, %v1533_v54  ;;  %v1564_v59 = vld [vmem:[%s3888_s0 + $0x172] sm:$0x1]   ;;  %v1553_v60 = vld [vmem:[%s3888_s0 + $0xf9] ss:$15 sm:$0xff]   ;;  %v1554_v61 = vld [vmem:[%s3888_s0 + $0xfa] ss:$15 sm:$0xff]  }
  0x11   :  { %v532_v62 = vsel %vm453_vm4, %v1564_v59, %v1563_v58  ;;  %v506_v63 = vsel %vm453_vm4, %v1554_v61, %v1553_v60  ;;  %v1577_v0 = vld [vmem:[%s3888_s0 + $0x80] ss:$15 sm:$0xff]   ;;  %v1578_v1 = vld [vmem:[%s3888_s0 + $0x81] ss:$15 sm:$0xff]   ;;  %v1567_v2 = vld [vmem:[%s3888_s0 + $0x8] ss:$15 sm:$0xff]  }
  0x12   :  { %205 = vrot.lane.b32.xlu1 %v204_v20, %s1889_s19  ;;  %179 = vrot.lane.b32.xlu0 %v178_v21, %s1889_s19  ;;  %v1568_v3 = vld [vmem:[%s3888_s0 + $0x9] ss:$15 sm:$0xff]   ;;  %v572_v4 = vsel %vm545_vm5, %v1578_v1, %v1577_v0  ;;  %v1597_v6 = vld [vmem:[%s3888_s0 + $0x170] sm:$0x1]   ;;  %s1894_s17 = smov 64   ;;  %vm549_vm7 = vcmask 588800  }
  0x13   :  { %v546_v5 = vsel %vm545_vm5, %v1568_v3, %v1567_v2  ;;  %v1598_v7 = vld [vmem:[%s3888_s0 + $0x171] sm:$0x1]   ;;  %v1587_v8 = vld [vmem:[%s3888_s0 + $0xf8] ss:$15 sm:$0xff]   ;;  %v1588_v9 = vld [vmem:[%s3888_s0 + $0xf9] ss:$15 sm:$0xff]  }
  0x14   :  { %v624_v10 = vsel %vm545_vm5, %v1598_v7, %v1597_v6  ;;  %v598_v11 = vsel %vm545_vm5, %v1588_v9, %v1587_v8  ;;  %v1611_v12 = vld [vmem:[%s3888_s0 + $0x7f] ss:$15 sm:$0xff]   ;;  %v1612_v13 = vld [vmem:[%s3888_s0 + $0x80] ss:$15 sm:$0xff]   ;;  %v1601_v14 = vld [vmem:[%s3888_s0 + $0x7] ss:$15 sm:$0xff]  }
  0x15   :  { %v1602_v15 = vld [vmem:[%s3888_s0 + $0x8] ss:$15 sm:$0xff]   ;;  %v664_v16 = vsel %vm637_vm6, %v1612_v13, %v1611_v12  ;;  %v1631_v18 = vld [vmem:[%s3888_s0 + $0x16f] sm:$0x1]   ;;  %v1632_v19 = vld [vmem:[%s3888_s0 + $0x170] sm:$0x1]  }
  0x16   :  { %257 = vrot.lane.b32.xlu1 %v256_v26, %s1889_s19  ;;  %231 = vrot.lane.b32.xlu0 %v230_v27, %s1889_s19  ;;  %v638_v17 = vsel %vm637_vm6, %v1602_v15, %v1601_v14  ;;  %v1621_v20 = vld [vmem:[%s3888_s0 + $0xf7] ss:$15 sm:$0xff]   ;;  %v1622_v21 = vld [vmem:[%s3888_s0 + $0xf8] ss:$15 sm:$0xff]   ;;  %v716_v22 = vsel %vm637_vm6, %v1632_v19, %v1631_v18  ;;  %s1895_s5 = smov 56   ;;  %vm457_vm8 = vcmask 654336  }
  0x17   :  { %v690_v23 = vsel %vm637_vm6, %v1622_v21, %v1621_v20  ;;  %v1645_v24 = vld [vmem:[%s3888_s0 + $0x7e] ss:$15 sm:$0xff]   ;;  %v1646_v25 = vld [vmem:[%s3888_s0 + $0x7f] ss:$15 sm:$0xff]   ;;  %v1635_v26 = vld [vmem:[%s3888_s0 + $0x6] ss:$15 sm:$0xff]  }
  0x18   :  { %v1636_v27 = vld [vmem:[%s3888_s0 + $0x7] ss:$15 sm:$0xff]   ;;  %v756_v28 = vsel %vm549_vm7, %v1646_v25, %v1645_v24  ;;  %v1665_v30 = vld [vmem:[%s3888_s0 + $0x16e] sm:$0x1]   ;;  %v1666_v31 = vld [vmem:[%s3888_s0 + $0x16f] sm:$0x1]  }
  0x19   :  { %v730_v29 = vsel %vm549_vm7, %v1636_v27, %v1635_v26  ;;  %v808_v34 = vsel %vm549_vm7, %v1666_v31, %v1665_v30  ;;  %v1679_v36 = vld [vmem:[%s3888_s0 + $0x7d] ss:$15 sm:$0xff]   ;;  %v1680_v37 = vld [vmem:[%s3888_s0 + $0x7e] ss:$15 sm:$0xff]   ;;  %v1700_v43 = vld [vmem:[%s3888_s0 + $0x16e] sm:$0x1]  }
  0x1a   :  { %297 = vrot.lane.b32.xlu1 %v296_v32, %s1890_s7  ;;  %271 = vrot.lane.b32.xlu0 %v270_v33, %s1890_s7  ;;  %v1655_v32 = vld [vmem:[%s3888_s0 + $0xf6] ss:$15 sm:$0xff]   ;;  %v1656_v33 = vld [vmem:[%s3888_s0 + $0xf7] ss:$15 sm:$0xff]   ;;  %v848_v40 = vsel %vm457_vm8, %v1680_v37, %v1679_v36  ;;  %s1896_s22 = smov 48   ;;  %vm365_vm9 = vcmask 719872  }
  0x1b   :  { %v782_v35 = vsel %vm549_vm7, %v1656_v33, %v1655_v32  ;;  %v1699_v42 = vld [vmem:[%s3888_s0 + $0x16d] sm:$0x1]   ;;  %v1713_v48 = vld [vmem:[%s3888_s0 + $0x7c] ss:$15 sm:$0xff]   ;;  %v1714_v49 = vld [vmem:[%s3888_s0 + $0x7d] ss:$15 sm:$0xff]  }
  0x1c   :  { %v900_v46 = vsel %vm457_vm8, %v1700_v43, %v1699_v42  ;;  %v940_v52 = vsel %vm365_vm9, %v1714_v49, %v1713_v48  ;;  %v1733_v54 = vld [vmem:[%s3888_s0 + $0x16c] sm:$0x1]   ;;  %v1734_v55 = vld [vmem:[%s3888_s0 + $0x16d] sm:$0x1]   ;;  %s1897_s10 = smov 40   ;;  %vm273_vm10 = vcmask 785408  }
  0x1d   :  { %v992_v58 = vsel %vm365_vm9, %v1734_v55, %v1733_v54  ;;  %v1747_v60 = vld [vmem:[%s3888_s0 + $0x7b] ss:$15 sm:$0xff]   ;;  %v1748_v61 = vld [vmem:[%s3888_s0 + $0x7c] ss:$15 sm:$0xff]   ;;  %v1768_v3 = vld [vmem:[%s3888_s0 + $0x16c] sm:$0x1]  }
  0x1e   :  { %349 = vrot.lane.b32.xlu1 %v348_v38, %s1890_s7  ;;  %323 = vrot.lane.b32.xlu0 %v322_v39, %s1890_s7  ;;  %v1669_v38 = vld [vmem:[%s3888_s0 + $0x5] ss:$15 sm:$0xff]   ;;  %v1670_v39 = vld [vmem:[%s3888_s0 + $0x6] ss:$15 sm:$0xff]   ;;  %v1032_v0 = vsel %vm273_vm10, %v1748_v61, %v1747_v60  ;;  %s1898_s27 = smov 32   ;;  %vm181_vm11 = vcmask 850944  }
  0x1f   :  { %v822_v41 = vsel %vm457_vm8, %v1670_v39, %v1669_v38  ;;  %v1767_v2 = vld [vmem:[%s3888_s0 + $0x16b] sm:$0x1]   ;;  %v1781_v8 = vld [vmem:[%s3888_s0 + $0x7a] ss:$15 sm:$0xff]   ;;  %v1782_v9 = vld [vmem:[%s3888_s0 + $0x7b] ss:$15 sm:$0xff]  }
  0x20   :  { %v1084_v6 = vsel %vm273_vm10, %v1768_v3, %v1767_v2  ;;  %v1124_v12 = vsel %vm181_vm11, %v1782_v9, %v1781_v8  ;;  %v1801_v14 = vld [vmem:[%s3888_s0 + $0x16a] sm:$0x1]   ;;  %v1802_v15 = vld [vmem:[%s3888_s0 + $0x16b] sm:$0x1]   ;;  %s1899_s15 = smov 24   ;;  %vm89_vm12 = vcmask 916480  }
  0x21   :  { %v1176_v18 = vsel %vm181_vm11, %v1802_v15, %v1801_v14  ;;  %v1815_v20 = vld [vmem:[%s3888_s0 + $0x79] ss:$15 sm:$0xff]   ;;  %v1816_v21 = vld [vmem:[%s3888_s0 + $0x7a] ss:$15 sm:$0xff]   ;;  %vm3_vm13 = vcmask 982016   ;;  %s1900_s9 = smov 16  }
  0x22   :  { %389 = vrot.lane.b32.xlu1 %v388_v44, %s1891_s24  ;;  %363 = vrot.lane.b32.xlu0 %v362_v45, %s1891_s24  ;;  %v1689_v44 = vld [vmem:[%s3888_s0 + $0xf5] ss:$15 sm:$0xff]   ;;  %v1690_v45 = vld [vmem:[%s3888_s0 + $0xf6] ss:$15 sm:$0xff]   ;;  %v1216_v24 = vsel %vm89_vm12, %v1816_v21, %v1815_v20  ;;  %vm98_vm14 = vcmask 982912   ;;  %vm190_vm15 = vcmask 982848  }
  0x23   :  { %v874_v47 = vsel %vm457_vm8, %v1690_v45, %v1689_v44  ;;  %v1835_v26 = vld [vmem:[%s3888_s0 + $0x169] sm:$0x1]   ;;  %v1836_v27 = vld [vmem:[%s3888_s0 + $0x16a] sm:$0x1]   ;;  %v1368_v31 = vld [vmem:[%s3888_s0 + $0x78] ss:$15 sm:$0xff]  }
  0x24   :  { %v2_v30 = vld [vmem:[%s3888_s0] ss:$15 sm:$0xff]   ;;  %v1373_v32 = vld [vmem:[%s3888_s0 + $0xf0] ss:$15 sm:$0xff]   ;;  %v1378_v33 = vld [vmem:[%s3888_s0 + $0x168] sm:$0x1]  }
  0x25   :  { %4 = vst.msk [vmem:[%s3889_s1] ss:$16 sm:$0x3] %vm3_vm13, %v2_v30   ;;  %5 = vst.msk [vmem:[%s3889_s1] ss:$16 sm:$0xc] %vm3_vm13, %v2_v30  }
  0x26   :  { %441 = vrot.lane.b32.xlu1 %v440_v50, %s1891_s24  ;;  %415 = vrot.lane.b32.xlu0 %v414_v51, %s1891_s24  ;;  %v1703_v50 = vld [vmem:[%s3888_s0 + $0x4] ss:$15 sm:$0xff]   ;;  %v1704_v51 = vld [vmem:[%s3888_s0 + $0x5] ss:$15 sm:$0xff]  }
  0x27   :  { %v914_v53 = vsel %vm365_vm9, %v1704_v51, %v1703_v50  ;;  %6 = vst.msk [vmem:[%s3889_s1] ss:$16 sm:$0x30] %vm3_vm13, %v2_v30   ;;  %7 = vst.msk [vmem:[%s3889_s1] ss:$16 sm:$0xc0] %vm3_vm13, %v2_v30  }
  0x28   :  { %1369 = vst.msk [vmem:[%s3889_s1 + $0x80] ss:$16 sm:$0x3] %vm3_vm13, %v1368_v31   ;;  %1370 = vst.msk [vmem:[%s3889_s1 + $0x80] ss:$16 sm:$0xc] %vm3_vm13, %v1368_v31  }
  0x29   :  { %1371 = vst.msk [vmem:[%s3889_s1 + $0x80] ss:$16 sm:$0x30] %vm3_vm13, %v1368_v31   ;;  %1372 = vst.msk [vmem:[%s3889_s1 + $0x80] ss:$16 sm:$0xc0] %vm3_vm13, %v1368_v31  }
  0x2a   :  { %481 = vrot.lane.b32.xlu1 %v480_v56, %s1892_s12  ;;  %455 = vrot.lane.b32.xlu0 %v454_v57, %s1892_s12  ;;  %v1723_v56 = vld [vmem:[%s3888_s0 + $0xf4] ss:$15 sm:$0xff]   ;;  %v1724_v57 = vld [vmem:[%s3888_s0 + $0xf5] ss:$15 sm:$0xff]  }
  0x2b   :  { %v966_v59 = vsel %vm365_vm9, %v1724_v57, %v1723_v56  ;;  %1374 = vst.msk [vmem:[%s3889_s1 + $0x100] ss:$16 sm:$0x3] %vm3_vm13, %v1373_v32   ;;  %1375 = vst.msk [vmem:[%s3889_s1 + $0x100] ss:$16 sm:$0xc] %vm3_vm13, %v1373_v32  }
  0x2c   :  { %1376 = vst.msk [vmem:[%s3889_s1 + $0x100] ss:$16 sm:$0x30] %vm3_vm13, %v1373_v32   ;;  %1377 = vst.msk [vmem:[%s3889_s1 + $0x100] ss:$16 sm:$0xc0] %vm3_vm13, %v1373_v32  }
  0x2d   :  { %v1848_v36 = vld [vmem:[%s3888_s0 + $0x78] ss:$15 sm:$0xff]   ;;  %1379 = vst.msk [vmem:[%s3889_s1 + $0x180] sm:$0x1] %vm3_vm13, %v1378_v33   ;;  %v1849_v37 = vld [vmem:[%s3888_s0 + $0x79] ss:$15 sm:$0xff]  }
  0x2e   :  { %533 = vrot.lane.b32.xlu1 %v532_v62, %s1892_s12  ;;  %507 = vrot.lane.b32.xlu0 %v506_v63, %s1892_s12  ;;  %v1737_v62 = vld [vmem:[%s3888_s0 + $0x3] ss:$15 sm:$0xff]   ;;  %v1738_v63 = vld [vmem:[%s3888_s0 + $0x4] ss:$15 sm:$0xff]  }
  0x2f   :  { %v1006_v1 = vsel %vm273_vm10, %v1738_v63, %v1737_v62  ;;  %v1277_v38 = vld [vmem:[%s3888_s0] ss:$15 sm:$0xff]   ;;  %v1839_v39 = vld [vmem:[%s3888_s0 + $0x1] ss:$15 sm:$0xff]   ;;  %v1868_v42 = vld [vmem:[%s3888_s0 + $0x168] sm:$0x1]  }
  0x30   :  { %v1869_v43 = vld [vmem:[%s3888_s0 + $0x169] sm:$0x1]   ;;  %v1858_v44 = vld [vmem:[%s3888_s0 + $0xf0] ss:$15 sm:$0xff]   ;;  %v1859_v45 = vld [vmem:[%s3888_s0 + $0xf1] ss:$15 sm:$0xff]  }
  0x32   :  { %573 = vrot.lane.b32.xlu1 %v572_v4, %s1893_s29  ;;  %547 = vrot.lane.b32.xlu0 %v546_v5, %s1893_s29  ;;  %v1757_v4 = vld [vmem:[%s3888_s0 + $0xf3] ss:$15 sm:$0xff]   ;;  %v1758_v5 = vld [vmem:[%s3888_s0 + $0xf4] ss:$15 sm:$0xff]  }
  0x33   :  { %v1058_v7 = vsel %vm273_vm10, %v1758_v5, %v1757_v4 }
  0x36   :  { %625 = vrot.lane.b32.xlu1 %v624_v10, %s1893_s29  ;;  %599 = vrot.lane.b32.xlu0 %v598_v11, %s1893_s29  ;;  %v1771_v10 = vld [vmem:[%s3888_s0 + $0x2] ss:$15 sm:$0xff]   ;;  %v1772_v11 = vld [vmem:[%s3888_s0 + $0x3] ss:$15 sm:$0xff]  }
  0x37   :  { %v1098_v13 = vsel %vm181_vm11, %v1772_v11, %v1771_v10 }
  0x3a   :  { %665 = vrot.lane.b32.xlu1 %v664_v16, %s1894_s17  ;;  %639 = vrot.lane.b32.xlu0 %v638_v17, %s1894_s17  ;;  %v1791_v16 = vld [vmem:[%s3888_s0 + $0xf2] ss:$15 sm:$0xff]   ;;  %v1792_v17 = vld [vmem:[%s3888_s0 + $0xf3] ss:$15 sm:$0xff]  }
  0x3b   :  { %v1150_v19 = vsel %vm181_vm11, %v1792_v17, %v1791_v16 }
  0x3e   :  { %717 = vrot.lane.b32.xlu1 %v716_v22, %s1894_s17  ;;  %691 = vrot.lane.b32.xlu0 %v690_v23, %s1894_s17  ;;  %v1805_v22 = vld [vmem:[%s3888_s0 + $0x1] ss:$15 sm:$0xff]   ;;  %v1806_v23 = vld [vmem:[%s3888_s0 + $0x2] ss:$15 sm:$0xff]  }
  0x3f   :  { %v1190_v25 = vsel %vm89_vm12, %v1806_v23, %v1805_v22 }
  0x42   :  { %757 = vrot.lane.b32.xlu1 %v756_v28, %s1895_s5  ;;  %731 = vrot.lane.b32.xlu0 %v730_v29, %s1895_s5  ;;  %v1825_v28 = vld [vmem:[%s3888_s0 + $0xf1] ss:$15 sm:$0xff]   ;;  %v1826_v29 = vld [vmem:[%s3888_s0 + $0xf2] ss:$15 sm:$0xff]   ;;  %s1901_s0 = smov 8  }
  0x46   :  { %809 = vrot.lane.b32.xlu1 %v808_v34, %s1895_s5  ;;  %783 = vrot.lane.b32.xlu0 %v782_v35, %s1895_s5  ;;  %v1268_v34 = vsel %vm89_vm12, %v1836_v27, %v1835_v26  ;;  %v1242_v35 = vsel %vm89_vm12, %v1826_v29, %v1825_v28 }
  0x4a   :  { %849 = vrot.lane.b32.xlu1 %v848_v40, %s1896_s22  ;;  %823 = vrot.lane.b32.xlu0 %v822_v41, %s1896_s22  ;;  %v1307_v40 = vsel %vm3_vm13, %v1849_v37, %v1848_v36  ;;  %v1281_v41 = vsel %vm3_vm13, %v1839_v39, %v1277_v38 }
  0x4e   :  { %901 = vrot.lane.b32.xlu1 %v900_v46, %s1896_s22  ;;  %875 = vrot.lane.b32.xlu0 %v874_v47, %s1896_s22  ;;  %v1359_v46 = vsel %vm3_vm13, %v1869_v43, %v1868_v42  ;;  %v1333_v47 = vsel %vm3_vm13, %v1859_v45, %v1858_v44 }
  0x52   :  { %941 = vrot.lane.b32.xlu1 %v940_v52, %s1897_s10  ;;  %915 = vrot.lane.b32.xlu0 %v914_v53, %s1897_s10 }
  0x56   :  { %993 = vrot.lane.b32.xlu1 %v992_v58, %s1897_s10  ;;  %967 = vrot.lane.b32.xlu0 %v966_v59, %s1897_s10 }
  0x5a   :  { %1033 = vrot.lane.b32.xlu1 %v1032_v0, %s1898_s27  ;;  %1007 = vrot.lane.b32.xlu0 %v1006_v1, %s1898_s27 }
  0x5e   :  { %1085 = vrot.lane.b32.xlu1 %v1084_v6, %s1898_s27  ;;  %1059 = vrot.lane.b32.xlu0 %v1058_v7, %s1898_s27 }
  0x62   :  { %1125 = vrot.lane.b32.xlu1 %v1124_v12, %s1899_s15  ;;  %1099 = vrot.lane.b32.xlu0 %v1098_v13, %s1899_s15 }
  0x66   :  { %1177 = vrot.lane.b32.xlu1 %v1176_v18, %s1899_s15  ;;  %1151 = vrot.lane.b32.xlu0 %v1150_v19, %s1899_s15 }
  0x6a   :  { %1217 = vrot.lane.b32.xlu1 %v1216_v24, %s1900_s9  ;;  %1191 = vrot.lane.b32.xlu0 %v1190_v25, %s1900_s9 }
  0x6e   :  { %1269 = vrot.lane.b32.xlu1 %v1268_v34, %s1900_s9  ;;  %1243 = vrot.lane.b32.xlu0 %v1242_v35, %s1900_s9 }
  0x72   :  { %1308 = vrot.lane.b32.xlu1 %v1307_v40, %s1901_s0  ;;  %1282 = vrot.lane.b32.xlu0 %v1281_v41, %s1901_s0 }
  0x74   :  { %v64_v48 = vpop.permute.xlu1 %63   ;;  %v38_v49 = vpop.permute.xlu0 %37  }
  0x75   :  { %1391 = vst.msk [vmem:[%s3889_s1 + $0x10f] ss:$16 sm:$0x3] %vm3_vm13, %v64_v48   ;;  %1392 = vst.msk [vmem:[%s3889_s1 + $0x10f] ss:$16 sm:$0xc] %vm3_vm13, %v64_v48  }
  0x76   :  { %1393 = vst.msk [vmem:[%s3889_s1 + $0x10f] ss:$16 sm:$0x30] %vm3_vm13, %v64_v48   ;;  %1394 = vst.msk [vmem:[%s3889_s1 + $0x10f] ss:$16 sm:$0xc0] %vm3_vm13, %v64_v48   ;;  %1360 = vrot.lane.b32.xlu1 %v1359_v46, %s1901_s0  ;;  %1334 = vrot.lane.b32.xlu0 %v1333_v47, %s1901_s0 }
  0x77   :  { %1381 = vst.msk [vmem:[%s3889_s1 + $0xf] ss:$16 sm:$0x3] %vm3_vm13, %v38_v49   ;;  %1382 = vst.msk [vmem:[%s3889_s1 + $0xf] ss:$16 sm:$0xc] %vm3_vm13, %v38_v49  }
  0x78   :  { %1383 = vst.msk [vmem:[%s3889_s1 + $0xf] ss:$16 sm:$0x30] %vm3_vm13, %v38_v49   ;;  %1384 = vst.msk [vmem:[%s3889_s1 + $0xf] ss:$16 sm:$0xc0] %vm3_vm13, %v38_v49   ;;  %v77_v50 = vpop.permute.xlu1 %76   ;;  %v51_v51 = vpop.permute.xlu0 %50  }
  0x79   :  { %1396 = vst.msk [vmem:[%s3889_s1 + $0x18f] sm:$0x1] %vm3_vm13, %v77_v50   ;;  %1386 = vst.msk [vmem:[%s3889_s1 + $0x8f] ss:$16 sm:$0x3] %vm3_vm13, %v51_v51  }
  0x7a   :  { %1387 = vst.msk [vmem:[%s3889_s1 + $0x8f] ss:$16 sm:$0xc] %vm3_vm13, %v51_v51   ;;  %1388 = vst.msk [vmem:[%s3889_s1 + $0x8f] ss:$16 sm:$0x30] %vm3_vm13, %v51_v51  }
  0x7b   :  { %1389 = vst.msk [vmem:[%s3889_s1 + $0x8f] ss:$16 sm:$0xc0] %vm3_vm13, %v51_v51  }
  0x7c   :  { %v114_v52 = vpop.permute.xlu1 %113   ;;  %v88_v53 = vpop.permute.xlu0 %87  }
  0x7d   :  { %1409 = vst.msk [vmem:[%s3889_s1 + $0x8e] ss:$16 sm:$0x3] %vm89_vm12, %v114_v52   ;;  %1410 = vst.msk [vmem:[%s3889_s1 + $0x8e] ss:$16 sm:$0xc] %vm89_vm12, %v114_v52  }
  0x7e   :  { %1411 = vst.msk [vmem:[%s3889_s1 + $0x8e] ss:$16 sm:$0x30] %vm89_vm12, %v114_v52   ;;  %1412 = vst.msk [vmem:[%s3889_s1 + $0x8e] ss:$16 sm:$0xc0] %vm89_vm12, %v114_v52  }
  0x7f   :  { %1399 = vst.msk [vmem:[%s3889_s1 + $0xe] ss:$16 sm:$0x3] %vm89_vm12, %v88_v53   ;;  %1400 = vst.msk [vmem:[%s3889_s1 + $0xe] ss:$16 sm:$0xc] %vm89_vm12, %v88_v53  }
  0x80   :  { %1401 = vst.msk [vmem:[%s3889_s1 + $0xe] ss:$16 sm:$0x30] %vm89_vm12, %v88_v53   ;;  %1402 = vst.msk [vmem:[%s3889_s1 + $0xe] ss:$16 sm:$0xc0] %vm89_vm12, %v88_v53   ;;  %v166_v54 = vpop.permute.xlu1 %165   ;;  %v140_v55 = vpop.permute.xlu0 %139  }
  0x81   :  { %1413 = vst.msk [vmem:[%s3889_s1 + $0x8e] ss:$16 sm:$0x3] %vm98_vm14, %v114_v52   ;;  %1414 = vst.msk [vmem:[%s3889_s1 + $0x8e] ss:$16 sm:$0xc] %vm98_vm14, %v114_v52  }
  0x82   :  { %1415 = vst.msk [vmem:[%s3889_s1 + $0x8e] ss:$16 sm:$0x30] %vm98_vm14, %v114_v52   ;;  %1416 = vst.msk [vmem:[%s3889_s1 + $0x8e] ss:$16 sm:$0xc0] %vm98_vm14, %v114_v52  }
  0x83   :  { %1403 = vst.msk [vmem:[%s3889_s1 + $0xe] ss:$16 sm:$0x3] %vm98_vm14, %v88_v53   ;;  %1404 = vst.msk [vmem:[%s3889_s1 + $0xe] ss:$16 sm:$0xc] %vm98_vm14, %v88_v53  }
  0x84   :  { %1405 = vst.msk [vmem:[%s3889_s1 + $0xe] ss:$16 sm:$0x30] %vm98_vm14, %v88_v53   ;;  %1406 = vst.msk [vmem:[%s3889_s1 + $0xe] ss:$16 sm:$0xc0] %vm98_vm14, %v88_v53   ;;  %v206_v56 = vpop.permute.xlu1 %205   ;;  %v180_v57 = vpop.permute.xlu0 %179  }
  0x85   :  { %1429 = vst.msk [vmem:[%s3889_s1 + $0x18e] sm:$0x1] %vm89_vm12, %v166_v54   ;;  %1419 = vst.msk [vmem:[%s3889_s1 + $0x10e] ss:$16 sm:$0x3] %vm89_vm12, %v140_v55  }
  0x86   :  { %1420 = vst.msk [vmem:[%s3889_s1 + $0x10e] ss:$16 sm:$0xc] %vm89_vm12, %v140_v55   ;;  %1421 = vst.msk [vmem:[%s3889_s1 + $0x10e] ss:$16 sm:$0x30] %vm89_vm12, %v140_v55  }
  0x87   :  { %1422 = vst.msk [vmem:[%s3889_s1 + $0x10e] ss:$16 sm:$0xc0] %vm89_vm12, %v140_v55   ;;  %vm1293_vm12 = vcmask 982080  }
  0x88   :  { %1430 = vst.msk [vmem:[%s3889_s1 + $0x18e] sm:$0x1] %vm98_vm14, %v166_v54   ;;  %1423 = vst.msk [vmem:[%s3889_s1 + $0x10e] ss:$16 sm:$0x3] %vm98_vm14, %v140_v55   ;;  %v258_v58 = vpop.permute.xlu1 %257   ;;  %v232_v59 = vpop.permute.xlu0 %231  }
  0x89   :  { %1424 = vst.msk [vmem:[%s3889_s1 + $0x10e] ss:$16 sm:$0xc] %vm98_vm14, %v140_v55   ;;  %1425 = vst.msk [vmem:[%s3889_s1 + $0x10e] ss:$16 sm:$0x30] %vm98_vm14, %v140_v55  }
  0x8a   :  { %1426 = vst.msk [vmem:[%s3889_s1 + $0x10e] ss:$16 sm:$0xc0] %vm98_vm14, %v140_v55  }
  0x8b   :  { %1443 = vst.msk [vmem:[%s3889_s1 + $0x8d] ss:$16 sm:$0x3] %vm181_vm11, %v206_v56   ;;  %1444 = vst.msk [vmem:[%s3889_s1 + $0x8d] ss:$16 sm:$0xc] %vm181_vm11, %v206_v56  }
  0x8c   :  { %1445 = vst.msk [vmem:[%s3889_s1 + $0x8d] ss:$16 sm:$0x30] %vm181_vm11, %v206_v56   ;;  %1446 = vst.msk [vmem:[%s3889_s1 + $0x8d] ss:$16 sm:$0xc0] %vm181_vm11, %v206_v56   ;;  %v298_v60 = vpop.permute.xlu1 %297   ;;  %v272_v61 = vpop.permute.xlu0 %271  }
  0x8d   :  { %1433 = vst.msk [vmem:[%s3889_s1 + $0xd] ss:$16 sm:$0x3] %vm181_vm11, %v180_v57   ;;  %1434 = vst.msk [vmem:[%s3889_s1 + $0xd] ss:$16 sm:$0xc] %vm181_vm11, %v180_v57  }
  0x8e   :  { %1435 = vst.msk [vmem:[%s3889_s1 + $0xd] ss:$16 sm:$0x30] %vm181_vm11, %v180_v57   ;;  %1436 = vst.msk [vmem:[%s3889_s1 + $0xd] ss:$16 sm:$0xc0] %vm181_vm11, %v180_v57  }
  0x8f   :  { %1447 = vst.msk [vmem:[%s3889_s1 + $0x8d] ss:$16 sm:$0x3] %vm190_vm15, %v206_v56   ;;  %1448 = vst.msk [vmem:[%s3889_s1 + $0x8d] ss:$16 sm:$0xc] %vm190_vm15, %v206_v56  }
  0x90   :  { %1449 = vst.msk [vmem:[%s3889_s1 + $0x8d] ss:$16 sm:$0x30] %vm190_vm15, %v206_v56   ;;  %1450 = vst.msk [vmem:[%s3889_s1 + $0x8d] ss:$16 sm:$0xc0] %vm190_vm15, %v206_v56   ;;  %v350_v62 = vpop.permute.xlu1 %349   ;;  %v324_v63 = vpop.permute.xlu0 %323  }
  0x91   :  { %1437 = vst.msk [vmem:[%s3889_s1 + $0xd] ss:$16 sm:$0x3] %vm190_vm15, %v180_v57   ;;  %1438 = vst.msk [vmem:[%s3889_s1 + $0xd] ss:$16 sm:$0xc] %vm190_vm15, %v180_v57  }
  0x92   :  { %1439 = vst.msk [vmem:[%s3889_s1 + $0xd] ss:$16 sm:$0x30] %vm190_vm15, %v180_v57   ;;  %1440 = vst.msk [vmem:[%s3889_s1 + $0xd] ss:$16 sm:$0xc0] %vm190_vm15, %v180_v57  }
  0x93   :  { %1463 = vst.msk [vmem:[%s3889_s1 + $0x18d] sm:$0x1] %vm181_vm11, %v258_v58   ;;  %1453 = vst.msk [vmem:[%s3889_s1 + $0x10d] ss:$16 sm:$0x3] %vm181_vm11, %v232_v59  }
  0x94   :  { %1454 = vst.msk [vmem:[%s3889_s1 + $0x10d] ss:$16 sm:$0xc] %vm181_vm11, %v232_v59   ;;  %1455 = vst.msk [vmem:[%s3889_s1 + $0x10d] ss:$16 sm:$0x30] %vm181_vm11, %v232_v59   ;;  %v390_v0 = vpop.permute.xlu1 %389   ;;  %v364_v1 = vpop.permute.xlu0 %363  }
  0x95   :  { %1456 = vst.msk [vmem:[%s3889_s1 + $0x10d] ss:$16 sm:$0xc0] %vm181_vm11, %v232_v59   ;;  %vm282_vm11 = vcmask 982784  }
  0x96   :  { %1464 = vst.msk [vmem:[%s3889_s1 + $0x18d] sm:$0x1] %vm190_vm15, %v258_v58   ;;  %1457 = vst.msk [vmem:[%s3889_s1 + $0x10d] ss:$16 sm:$0x3] %vm190_vm15, %v232_v59  }
  0x97   :  { %1458 = vst.msk [vmem:[%s3889_s1 + $0x10d] ss:$16 sm:$0xc] %vm190_vm15, %v232_v59   ;;  %1459 = vst.msk [vmem:[%s3889_s1 + $0x10d] ss:$16 sm:$0x30] %vm190_vm15, %v232_v59  }
  0x98   :  { %1460 = vst.msk [vmem:[%s3889_s1 + $0x10d] ss:$16 sm:$0xc0] %vm190_vm15, %v232_v59   ;;  %v442_v2 = vpop.permute.xlu1 %441   ;;  %v416_v3 = vpop.permute.xlu0 %415  }
  0x99   :  { %1477 = vst.msk [vmem:[%s3889_s1 + $0x8c] ss:$16 sm:$0x3] %vm273_vm10, %v298_v60   ;;  %1478 = vst.msk [vmem:[%s3889_s1 + $0x8c] ss:$16 sm:$0xc] %vm273_vm10, %v298_v60  }
  0x9a   :  { %1479 = vst.msk [vmem:[%s3889_s1 + $0x8c] ss:$16 sm:$0x30] %vm273_vm10, %v298_v60   ;;  %1480 = vst.msk [vmem:[%s3889_s1 + $0x8c] ss:$16 sm:$0xc0] %vm273_vm10, %v298_v60  }
  0x9b   :  { %1467 = vst.msk [vmem:[%s3889_s1 + $0xc] ss:$16 sm:$0x3] %vm273_vm10, %v272_v61   ;;  %1468 = vst.msk [vmem:[%s3889_s1 + $0xc] ss:$16 sm:$0xc] %vm273_vm10, %v272_v61  }
  0x9c   :  { %1469 = vst.msk [vmem:[%s3889_s1 + $0xc] ss:$16 sm:$0x30] %vm273_vm10, %v272_v61   ;;  %1470 = vst.msk [vmem:[%s3889_s1 + $0xc] ss:$16 sm:$0xc0] %vm273_vm10, %v272_v61   ;;  %v482_v4 = vpop.permute.xlu1 %481   ;;  %v456_v5 = vpop.permute.xlu0 %455  }
  0x9d   :  { %1481 = vst.msk [vmem:[%s3889_s1 + $0x8c] ss:$16 sm:$0x3] %vm282_vm11, %v298_v60   ;;  %1482 = vst.msk [vmem:[%s3889_s1 + $0x8c] ss:$16 sm:$0xc] %vm282_vm11, %v298_v60  }
  0x9e   :  { %1483 = vst.msk [vmem:[%s3889_s1 + $0x8c] ss:$16 sm:$0x30] %vm282_vm11, %v298_v60   ;;  %1484 = vst.msk [vmem:[%s3889_s1 + $0x8c] ss:$16 sm:$0xc0] %vm282_vm11, %v298_v60  }
  0x9f   :  { %1471 = vst.msk [vmem:[%s3889_s1 + $0xc] ss:$16 sm:$0x3] %vm282_vm11, %v272_v61   ;;  %1472 = vst.msk [vmem:[%s3889_s1 + $0xc] ss:$16 sm:$0xc] %vm282_vm11, %v272_v61  }
  0xa0   :  { %1473 = vst.msk [vmem:[%s3889_s1 + $0xc] ss:$16 sm:$0x30] %vm282_vm11, %v272_v61   ;;  %1474 = vst.msk [vmem:[%s3889_s1 + $0xc] ss:$16 sm:$0xc0] %vm282_vm11, %v272_v61   ;;  %v534_v6 = vpop.permute.xlu1 %533   ;;  %v508_v7 = vpop.permute.xlu0 %507  }
  0xa1   :  { %1497 = vst.msk [vmem:[%s3889_s1 + $0x18c] sm:$0x1] %vm273_vm10, %v350_v62   ;;  %1487 = vst.msk [vmem:[%s3889_s1 + $0x10c] ss:$16 sm:$0x3] %vm273_vm10, %v324_v63  }
  0xa2   :  { %1488 = vst.msk [vmem:[%s3889_s1 + $0x10c] ss:$16 sm:$0xc] %vm273_vm10, %v324_v63   ;;  %1489 = vst.msk [vmem:[%s3889_s1 + $0x10c] ss:$16 sm:$0x30] %vm273_vm10, %v324_v63  }
  0xa3   :  { %1490 = vst.msk [vmem:[%s3889_s1 + $0x10c] ss:$16 sm:$0xc0] %vm273_vm10, %v324_v63   ;;  %vm374_vm10 = vcmask 982720  }
  0xa4   :  { %1498 = vst.msk [vmem:[%s3889_s1 + $0x18c] sm:$0x1] %vm282_vm11, %v350_v62   ;;  %1491 = vst.msk [vmem:[%s3889_s1 + $0x10c] ss:$16 sm:$0x3] %vm282_vm11, %v324_v63   ;;  %v574_v8 = vpop.permute.xlu1 %573   ;;  %v548_v9 = vpop.permute.xlu0 %547  }
  0xa5   :  { %1492 = vst.msk [vmem:[%s3889_s1 + $0x10c] ss:$16 sm:$0xc] %vm282_vm11, %v324_v63   ;;  %1493 = vst.msk [vmem:[%s3889_s1 + $0x10c] ss:$16 sm:$0x30] %vm282_vm11, %v324_v63  }
  0xa6   :  { %1494 = vst.msk [vmem:[%s3889_s1 + $0x10c] ss:$16 sm:$0xc0] %vm282_vm11, %v324_v63  }
  0xa7   :  { %1511 = vst.msk [vmem:[%s3889_s1 + $0x8b] ss:$16 sm:$0x3] %vm365_vm9, %v390_v0   ;;  %1512 = vst.msk [vmem:[%s3889_s1 + $0x8b] ss:$16 sm:$0xc] %vm365_vm9, %v390_v0  }
  0xa8   :  { %1513 = vst.msk [vmem:[%s3889_s1 + $0x8b] ss:$16 sm:$0x30] %vm365_vm9, %v390_v0   ;;  %1514 = vst.msk [vmem:[%s3889_s1 + $0x8b] ss:$16 sm:$0xc0] %vm365_vm9, %v390_v0   ;;  %v626_v10 = vpop.permute.xlu1 %625   ;;  %v600_v11 = vpop.permute.xlu0 %599  }
  0xa9   :  { %1501 = vst.msk [vmem:[%s3889_s1 + $0xb] ss:$16 sm:$0x3] %vm365_vm9, %v364_v1   ;;  %1502 = vst.msk [vmem:[%s3889_s1 + $0xb] ss:$16 sm:$0xc] %vm365_vm9, %v364_v1  }
  0xaa   :  { %1503 = vst.msk [vmem:[%s3889_s1 + $0xb] ss:$16 sm:$0x30] %vm365_vm9, %v364_v1   ;;  %1504 = vst.msk [vmem:[%s3889_s1 + $0xb] ss:$16 sm:$0xc0] %vm365_vm9, %v364_v1  }
  0xab   :  { %1515 = vst.msk [vmem:[%s3889_s1 + $0x8b] ss:$16 sm:$0x3] %vm374_vm10, %v390_v0   ;;  %1516 = vst.msk [vmem:[%s3889_s1 + $0x8b] ss:$16 sm:$0xc] %vm374_vm10, %v390_v0  }
  0xac   :  { %1517 = vst.msk [vmem:[%s3889_s1 + $0x8b] ss:$16 sm:$0x30] %vm374_vm10, %v390_v0   ;;  %1518 = vst.msk [vmem:[%s3889_s1 + $0x8b] ss:$16 sm:$0xc0] %vm374_vm10, %v390_v0   ;;  %v666_v12 = vpop.permute.xlu1 %665   ;;  %v640_v13 = vpop.permute.xlu0 %639  }
  0xad   :  { %1505 = vst.msk [vmem:[%s3889_s1 + $0xb] ss:$16 sm:$0x3] %vm374_vm10, %v364_v1   ;;  %1506 = vst.msk [vmem:[%s3889_s1 + $0xb] ss:$16 sm:$0xc] %vm374_vm10, %v364_v1  }
  0xae   :  { %1507 = vst.msk [vmem:[%s3889_s1 + $0xb] ss:$16 sm:$0x30] %vm374_vm10, %v364_v1   ;;  %1508 = vst.msk [vmem:[%s3889_s1 + $0xb] ss:$16 sm:$0xc0] %vm374_vm10, %v364_v1  }
  0xaf   :  { %1531 = vst.msk [vmem:[%s3889_s1 + $0x18b] sm:$0x1] %vm365_vm9, %v442_v2   ;;  %1521 = vst.msk [vmem:[%s3889_s1 + $0x10b] ss:$16 sm:$0x3] %vm365_vm9, %v416_v3  }
  0xb0   :  { %1522 = vst.msk [vmem:[%s3889_s1 + $0x10b] ss:$16 sm:$0xc] %vm365_vm9, %v416_v3   ;;  %1523 = vst.msk [vmem:[%s3889_s1 + $0x10b] ss:$16 sm:$0x30] %vm365_vm9, %v416_v3   ;;  %v718_v14 = vpop.permute.xlu1 %717   ;;  %v692_v15 = vpop.permute.xlu0 %691  }
  0xb1   :  { %1524 = vst.msk [vmem:[%s3889_s1 + $0x10b] ss:$16 sm:$0xc0] %vm365_vm9, %v416_v3   ;;  %vm466_vm9 = vcmask 982656  }
  0xb2   :  { %1532 = vst.msk [vmem:[%s3889_s1 + $0x18b] sm:$0x1] %vm374_vm10, %v442_v2   ;;  %1525 = vst.msk [vmem:[%s3889_s1 + $0x10b] ss:$16 sm:$0x3] %vm374_vm10, %v416_v3  }
  0xb3   :  { %1526 = vst.msk [vmem:[%s3889_s1 + $0x10b] ss:$16 sm:$0xc] %vm374_vm10, %v416_v3   ;;  %1527 = vst.msk [vmem:[%s3889_s1 + $0x10b] ss:$16 sm:$0x30] %vm374_vm10, %v416_v3  }
  0xb4   :  { %1528 = vst.msk [vmem:[%s3889_s1 + $0x10b] ss:$16 sm:$0xc0] %vm374_vm10, %v416_v3   ;;  %v758_v16 = vpop.permute.xlu1 %757   ;;  %v732_v17 = vpop.permute.xlu0 %731  }
  0xb5   :  { %1545 = vst.msk [vmem:[%s3889_s1 + $0x8a] ss:$16 sm:$0x3] %vm457_vm8, %v482_v4   ;;  %1546 = vst.msk [vmem:[%s3889_s1 + $0x8a] ss:$16 sm:$0xc] %vm457_vm8, %v482_v4  }
  0xb6   :  { %1547 = vst.msk [vmem:[%s3889_s1 + $0x8a] ss:$16 sm:$0x30] %vm457_vm8, %v482_v4   ;;  %1548 = vst.msk [vmem:[%s3889_s1 + $0x8a] ss:$16 sm:$0xc0] %vm457_vm8, %v482_v4  }
  0xb7   :  { %1535 = vst.msk [vmem:[%s3889_s1 + $0xa] ss:$16 sm:$0x3] %vm457_vm8, %v456_v5   ;;  %1536 = vst.msk [vmem:[%s3889_s1 + $0xa] ss:$16 sm:$0xc] %vm457_vm8, %v456_v5  }
  0xb8   :  { %1537 = vst.msk [vmem:[%s3889_s1 + $0xa] ss:$16 sm:$0x30] %vm457_vm8, %v456_v5   ;;  %1538 = vst.msk [vmem:[%s3889_s1 + $0xa] ss:$16 sm:$0xc0] %vm457_vm8, %v456_v5   ;;  %v810_v18 = vpop.permute.xlu1 %809   ;;  %v784_v19 = vpop.permute.xlu0 %783  }
  0xb9   :  { %1549 = vst.msk [vmem:[%s3889_s1 + $0x8a] ss:$16 sm:$0x3] %vm466_vm9, %v482_v4   ;;  %1550 = vst.msk [vmem:[%s3889_s1 + $0x8a] ss:$16 sm:$0xc] %vm466_vm9, %v482_v4  }
  0xba   :  { %1551 = vst.msk [vmem:[%s3889_s1 + $0x8a] ss:$16 sm:$0x30] %vm466_vm9, %v482_v4   ;;  %1552 = vst.msk [vmem:[%s3889_s1 + $0x8a] ss:$16 sm:$0xc0] %vm466_vm9, %v482_v4  }
  0xbb   :  { %1539 = vst.msk [vmem:[%s3889_s1 + $0xa] ss:$16 sm:$0x3] %vm466_vm9, %v456_v5   ;;  %1540 = vst.msk [vmem:[%s3889_s1 + $0xa] ss:$16 sm:$0xc] %vm466_vm9, %v456_v5  }
  0xbc   :  { %1541 = vst.msk [vmem:[%s3889_s1 + $0xa] ss:$16 sm:$0x30] %vm466_vm9, %v456_v5   ;;  %1542 = vst.msk [vmem:[%s3889_s1 + $0xa] ss:$16 sm:$0xc0] %vm466_vm9, %v456_v5   ;;  %v850_v20 = vpop.permute.xlu1 %849   ;;  %v824_v21 = vpop.permute.xlu0 %823  }
  0xbd   :  { %1565 = vst.msk [vmem:[%s3889_s1 + $0x18a] sm:$0x1] %vm457_vm8, %v534_v6   ;;  %1555 = vst.msk [vmem:[%s3889_s1 + $0x10a] ss:$16 sm:$0x3] %vm457_vm8, %v508_v7  }
  0xbe   :  { %1556 = vst.msk [vmem:[%s3889_s1 + $0x10a] ss:$16 sm:$0xc] %vm457_vm8, %v508_v7   ;;  %1557 = vst.msk [vmem:[%s3889_s1 + $0x10a] ss:$16 sm:$0x30] %vm457_vm8, %v508_v7  }
  0xbf   :  { %1558 = vst.msk [vmem:[%s3889_s1 + $0x10a] ss:$16 sm:$0xc0] %vm457_vm8, %v508_v7   ;;  %vm558_vm8 = vcmask 982592  }
  0xc0   :  { %1566 = vst.msk [vmem:[%s3889_s1 + $0x18a] sm:$0x1] %vm466_vm9, %v534_v6   ;;  %1559 = vst.msk [vmem:[%s3889_s1 + $0x10a] ss:$16 sm:$0x3] %vm466_vm9, %v508_v7   ;;  %v902_v22 = vpop.permute.xlu1 %901   ;;  %v876_v23 = vpop.permute.xlu0 %875  }
  0xc1   :  { %1560 = vst.msk [vmem:[%s3889_s1 + $0x10a] ss:$16 sm:$0xc] %vm466_vm9, %v508_v7   ;;  %1561 = vst.msk [vmem:[%s3889_s1 + $0x10a] ss:$16 sm:$0x30] %vm466_vm9, %v508_v7  }
  0xc2   :  { %1562 = vst.msk [vmem:[%s3889_s1 + $0x10a] ss:$16 sm:$0xc0] %vm466_vm9, %v508_v7  }
  0xc3   :  { %1579 = vst.msk [vmem:[%s3889_s1 + $0x89] ss:$16 sm:$0x3] %vm549_vm7, %v574_v8   ;;  %1580 = vst.msk [vmem:[%s3889_s1 + $0x89] ss:$16 sm:$0xc] %vm549_vm7, %v574_v8  }
  0xc4   :  { %1581 = vst.msk [vmem:[%s3889_s1 + $0x89] ss:$16 sm:$0x30] %vm549_vm7, %v574_v8   ;;  %1582 = vst.msk [vmem:[%s3889_s1 + $0x89] ss:$16 sm:$0xc0] %vm549_vm7, %v574_v8   ;;  %v942_v24 = vpop.permute.xlu1 %941   ;;  %v916_v25 = vpop.permute.xlu0 %915  }
  0xc5   :  { %1569 = vst.msk [vmem:[%s3889_s1 + $0x9] ss:$16 sm:$0x3] %vm549_vm7, %v548_v9   ;;  %1570 = vst.msk [vmem:[%s3889_s1 + $0x9] ss:$16 sm:$0xc] %vm549_vm7, %v548_v9  }
  0xc6   :  { %1571 = vst.msk [vmem:[%s3889_s1 + $0x9] ss:$16 sm:$0x30] %vm549_vm7, %v548_v9   ;;  %1572 = vst.msk [vmem:[%s3889_s1 + $0x9] ss:$16 sm:$0xc0] %vm549_vm7, %v548_v9  }
  0xc7   :  { %1583 = vst.msk [vmem:[%s3889_s1 + $0x89] ss:$16 sm:$0x3] %vm558_vm8, %v574_v8   ;;  %1584 = vst.msk [vmem:[%s3889_s1 + $0x89] ss:$16 sm:$0xc] %vm558_vm8, %v574_v8  }
  0xc8   :  { %1585 = vst.msk [vmem:[%s3889_s1 + $0x89] ss:$16 sm:$0x30] %vm558_vm8, %v574_v8   ;;  %1586 = vst.msk [vmem:[%s3889_s1 + $0x89] ss:$16 sm:$0xc0] %vm558_vm8, %v574_v8   ;;  %v994_v26 = vpop.permute.xlu1 %993   ;;  %v968_v27 = vpop.permute.xlu0 %967  }
  0xc9   :  { %1573 = vst.msk [vmem:[%s3889_s1 + $0x9] ss:$16 sm:$0x3] %vm558_vm8, %v548_v9   ;;  %1574 = vst.msk [vmem:[%s3889_s1 + $0x9] ss:$16 sm:$0xc] %vm558_vm8, %v548_v9  }
  0xca   :  { %1575 = vst.msk [vmem:[%s3889_s1 + $0x9] ss:$16 sm:$0x30] %vm558_vm8, %v548_v9   ;;  %1576 = vst.msk [vmem:[%s3889_s1 + $0x9] ss:$16 sm:$0xc0] %vm558_vm8, %v548_v9  }
  0xcb   :  { %1599 = vst.msk [vmem:[%s3889_s1 + $0x189] sm:$0x1] %vm549_vm7, %v626_v10   ;;  %1589 = vst.msk [vmem:[%s3889_s1 + $0x109] ss:$16 sm:$0x3] %vm549_vm7, %v600_v11  }
  0xcc   :  { %1590 = vst.msk [vmem:[%s3889_s1 + $0x109] ss:$16 sm:$0xc] %vm549_vm7, %v600_v11   ;;  %1591 = vst.msk [vmem:[%s3889_s1 + $0x109] ss:$16 sm:$0x30] %vm549_vm7, %v600_v11   ;;  %v1034_v28 = vpop.permute.xlu1 %1033   ;;  %v1008_v29 = vpop.permute.xlu0 %1007  }
  0xcd   :  { %1592 = vst.msk [vmem:[%s3889_s1 + $0x109] ss:$16 sm:$0xc0] %vm549_vm7, %v600_v11   ;;  %vm650_vm7 = vcmask 982528  }
  0xce   :  { %1600 = vst.msk [vmem:[%s3889_s1 + $0x189] sm:$0x1] %vm558_vm8, %v626_v10   ;;  %1593 = vst.msk [vmem:[%s3889_s1 + $0x109] ss:$16 sm:$0x3] %vm558_vm8, %v600_v11  }
  0xcf   :  { %1594 = vst.msk [vmem:[%s3889_s1 + $0x109] ss:$16 sm:$0xc] %vm558_vm8, %v600_v11   ;;  %1595 = vst.msk [vmem:[%s3889_s1 + $0x109] ss:$16 sm:$0x30] %vm558_vm8, %v600_v11  }
  0xd0   :  { %1596 = vst.msk [vmem:[%s3889_s1 + $0x109] ss:$16 sm:$0xc0] %vm558_vm8, %v600_v11   ;;  %v1086_v30 = vpop.permute.xlu1 %1085   ;;  %v1060_v31 = vpop.permute.xlu0 %1059  }
  0xd1   :  { %1613 = vst.msk [vmem:[%s3889_s1 + $0x88] ss:$16 sm:$0x3] %vm637_vm6, %v666_v12   ;;  %1614 = vst.msk [vmem:[%s3889_s1 + $0x88] ss:$16 sm:$0xc] %vm637_vm6, %v666_v12  }
  0xd2   :  { %1615 = vst.msk [vmem:[%s3889_s1 + $0x88] ss:$16 sm:$0x30] %vm637_vm6, %v666_v12   ;;  %1616 = vst.msk [vmem:[%s3889_s1 + $0x88] ss:$16 sm:$0xc0] %vm637_vm6, %v666_v12  }
  0xd3   :  { %1603 = vst.msk [vmem:[%s3889_s1 + $0x8] ss:$16 sm:$0x3] %vm637_vm6, %v640_v13   ;;  %1604 = vst.msk [vmem:[%s3889_s1 + $0x8] ss:$16 sm:$0xc] %vm637_vm6, %v640_v13  }
  0xd4   :  { %1605 = vst.msk [vmem:[%s3889_s1 + $0x8] ss:$16 sm:$0x30] %vm637_vm6, %v640_v13   ;;  %1606 = vst.msk [vmem:[%s3889_s1 + $0x8] ss:$16 sm:$0xc0] %vm637_vm6, %v640_v13   ;;  %v1126_v32 = vpop.permute.xlu1 %1125   ;;  %v1100_v33 = vpop.permute.xlu0 %1099  }
  0xd5   :  { %1617 = vst.msk [vmem:[%s3889_s1 + $0x88] ss:$16 sm:$0x3] %vm650_vm7, %v666_v12   ;;  %1618 = vst.msk [vmem:[%s3889_s1 + $0x88] ss:$16 sm:$0xc] %vm650_vm7, %v666_v12  }
  0xd6   :  { %1619 = vst.msk [vmem:[%s3889_s1 + $0x88] ss:$16 sm:$0x30] %vm650_vm7, %v666_v12   ;;  %1620 = vst.msk [vmem:[%s3889_s1 + $0x88] ss:$16 sm:$0xc0] %vm650_vm7, %v666_v12  }
  0xd7   :  { %1607 = vst.msk [vmem:[%s3889_s1 + $0x8] ss:$16 sm:$0x3] %vm650_vm7, %v640_v13   ;;  %1608 = vst.msk [vmem:[%s3889_s1 + $0x8] ss:$16 sm:$0xc] %vm650_vm7, %v640_v13  }
  0xd8   :  { %1609 = vst.msk [vmem:[%s3889_s1 + $0x8] ss:$16 sm:$0x30] %vm650_vm7, %v640_v13   ;;  %1610 = vst.msk [vmem:[%s3889_s1 + $0x8] ss:$16 sm:$0xc0] %vm650_vm7, %v640_v13   ;;  %v1178_v34 = vpop.permute.xlu1 %1177   ;;  %v1152_v35 = vpop.permute.xlu0 %1151  }
  0xd9   :  { %1633 = vst.msk [vmem:[%s3889_s1 + $0x188] sm:$0x1] %vm637_vm6, %v718_v14   ;;  %1623 = vst.msk [vmem:[%s3889_s1 + $0x108] ss:$16 sm:$0x3] %vm637_vm6, %v692_v15  }
  0xda   :  { %1624 = vst.msk [vmem:[%s3889_s1 + $0x108] ss:$16 sm:$0xc] %vm637_vm6, %v692_v15   ;;  %1625 = vst.msk [vmem:[%s3889_s1 + $0x108] ss:$16 sm:$0x30] %vm637_vm6, %v692_v15  }
  0xdb   :  { %1626 = vst.msk [vmem:[%s3889_s1 + $0x108] ss:$16 sm:$0xc0] %vm637_vm6, %v692_v15   ;;  %vm742_vm6 = vcmask 982464  }
  0xdc   :  { %1634 = vst.msk [vmem:[%s3889_s1 + $0x188] sm:$0x1] %vm650_vm7, %v718_v14   ;;  %1627 = vst.msk [vmem:[%s3889_s1 + $0x108] ss:$16 sm:$0x3] %vm650_vm7, %v692_v15   ;;  %v1218_v36 = vpop.permute.xlu1 %1217   ;;  %v1192_v37 = vpop.permute.xlu0 %1191  }
  0xdd   :  { %1628 = vst.msk [vmem:[%s3889_s1 + $0x108] ss:$16 sm:$0xc] %vm650_vm7, %v692_v15   ;;  %1629 = vst.msk [vmem:[%s3889_s1 + $0x108] ss:$16 sm:$0x30] %vm650_vm7, %v692_v15  }
  0xde   :  { %1630 = vst.msk [vmem:[%s3889_s1 + $0x108] ss:$16 sm:$0xc0] %vm650_vm7, %v692_v15  }
  0xdf   :  { %1647 = vst.msk [vmem:[%s3889_s1 + $0x87] ss:$16 sm:$0x3] %vm545_vm5, %v758_v16   ;;  %1648 = vst.msk [vmem:[%s3889_s1 + $0x87] ss:$16 sm:$0xc] %vm545_vm5, %v758_v16  }
  0xe0   :  { %1649 = vst.msk [vmem:[%s3889_s1 + $0x87] ss:$16 sm:$0x30] %vm545_vm5, %v758_v16   ;;  %1650 = vst.msk [vmem:[%s3889_s1 + $0x87] ss:$16 sm:$0xc0] %vm545_vm5, %v758_v16   ;;  %v1270_v38 = vpop.permute.xlu1 %1269   ;;  %v1244_v39 = vpop.permute.xlu0 %1243  }
  0xe1   :  { %1637 = vst.msk [vmem:[%s3889_s1 + $0x7] ss:$16 sm:$0x3] %vm545_vm5, %v732_v17   ;;  %1638 = vst.msk [vmem:[%s3889_s1 + $0x7] ss:$16 sm:$0xc] %vm545_vm5, %v732_v17  }
  0xe2   :  { %1639 = vst.msk [vmem:[%s3889_s1 + $0x7] ss:$16 sm:$0x30] %vm545_vm5, %v732_v17   ;;  %1640 = vst.msk [vmem:[%s3889_s1 + $0x7] ss:$16 sm:$0xc0] %vm545_vm5, %v732_v17  }
  0xe3   :  { %1651 = vst.msk [vmem:[%s3889_s1 + $0x87] ss:$16 sm:$0x3] %vm742_vm6, %v758_v16   ;;  %1652 = vst.msk [vmem:[%s3889_s1 + $0x87] ss:$16 sm:$0xc] %vm742_vm6, %v758_v16  }
  0xe4   :  { %1653 = vst.msk [vmem:[%s3889_s1 + $0x87] ss:$16 sm:$0x30] %vm742_vm6, %v758_v16   ;;  %1654 = vst.msk [vmem:[%s3889_s1 + $0x87] ss:$16 sm:$0xc0] %vm742_vm6, %v758_v16   ;;  %v1309_v40 = vpop.permute.xlu1 %1308   ;;  %v1283_v41 = vpop.permute.xlu0 %1282  }
  0xe5   :  { %1641 = vst.msk [vmem:[%s3889_s1 + $0x7] ss:$16 sm:$0x3] %vm742_vm6, %v732_v17   ;;  %1642 = vst.msk [vmem:[%s3889_s1 + $0x7] ss:$16 sm:$0xc] %vm742_vm6, %v732_v17  }
  0xe6   :  { %1643 = vst.msk [vmem:[%s3889_s1 + $0x7] ss:$16 sm:$0x30] %vm742_vm6, %v732_v17   ;;  %1644 = vst.msk [vmem:[%s3889_s1 + $0x7] ss:$16 sm:$0xc0] %vm742_vm6, %v732_v17  }
  0xe7   :  { %1667 = vst.msk [vmem:[%s3889_s1 + $0x187] sm:$0x1] %vm545_vm5, %v810_v18   ;;  %1657 = vst.msk [vmem:[%s3889_s1 + $0x107] ss:$16 sm:$0x3] %vm545_vm5, %v784_v19  }
  0xe8   :  { %1658 = vst.msk [vmem:[%s3889_s1 + $0x107] ss:$16 sm:$0xc] %vm545_vm5, %v784_v19   ;;  %1659 = vst.msk [vmem:[%s3889_s1 + $0x107] ss:$16 sm:$0x30] %vm545_vm5, %v784_v19   ;;  %v1361_v42 = vpop.permute.xlu1 %1360   ;;  %v1335_v43 = vpop.permute.xlu0 %1334  }
  0xe9   :  { %1660 = vst.msk [vmem:[%s3889_s1 + $0x107] ss:$16 sm:$0xc0] %vm545_vm5, %v784_v19   ;;  %vm834_vm5 = vcmask 982400  }
  0xea   :  { %1668 = vst.msk [vmem:[%s3889_s1 + $0x187] sm:$0x1] %vm742_vm6, %v810_v18   ;;  %1661 = vst.msk [vmem:[%s3889_s1 + $0x107] ss:$16 sm:$0x3] %vm742_vm6, %v784_v19  }
  0xeb   :  { %1662 = vst.msk [vmem:[%s3889_s1 + $0x107] ss:$16 sm:$0xc] %vm742_vm6, %v784_v19   ;;  %1663 = vst.msk [vmem:[%s3889_s1 + $0x107] ss:$16 sm:$0x30] %vm742_vm6, %v784_v19  }
  0xec   :  { %1664 = vst.msk [vmem:[%s3889_s1 + $0x107] ss:$16 sm:$0xc0] %vm742_vm6, %v784_v19  }
  0xed   :  { %1681 = vst.msk [vmem:[%s3889_s1 + $0x86] ss:$16 sm:$0x3] %vm453_vm4, %v850_v20   ;;  %1682 = vst.msk [vmem:[%s3889_s1 + $0x86] ss:$16 sm:$0xc] %vm453_vm4, %v850_v20  }
  0xee   :  { %1683 = vst.msk [vmem:[%s3889_s1 + $0x86] ss:$16 sm:$0x30] %vm453_vm4, %v850_v20   ;;  %1684 = vst.msk [vmem:[%s3889_s1 + $0x86] ss:$16 sm:$0xc0] %vm453_vm4, %v850_v20  }
  0xef   :  { %1671 = vst.msk [vmem:[%s3889_s1 + $0x6] ss:$16 sm:$0x3] %vm453_vm4, %v824_v21   ;;  %1672 = vst.msk [vmem:[%s3889_s1 + $0x6] ss:$16 sm:$0xc] %vm453_vm4, %v824_v21  }
  0xf0   :  { %1673 = vst.msk [vmem:[%s3889_s1 + $0x6] ss:$16 sm:$0x30] %vm453_vm4, %v824_v21   ;;  %1674 = vst.msk [vmem:[%s3889_s1 + $0x6] ss:$16 sm:$0xc0] %vm453_vm4, %v824_v21  }
  0xf1   :  { %1685 = vst.msk [vmem:[%s3889_s1 + $0x86] ss:$16 sm:$0x3] %vm834_vm5, %v850_v20   ;;  %1686 = vst.msk [vmem:[%s3889_s1 + $0x86] ss:$16 sm:$0xc] %vm834_vm5, %v850_v20  }
  0xf2   :  { %1687 = vst.msk [vmem:[%s3889_s1 + $0x86] ss:$16 sm:$0x30] %vm834_vm5, %v850_v20   ;;  %1688 = vst.msk [vmem:[%s3889_s1 + $0x86] ss:$16 sm:$0xc0] %vm834_vm5, %v850_v20  }
  0xf3   :  { %1675 = vst.msk [vmem:[%s3889_s1 + $0x6] ss:$16 sm:$0x3] %vm834_vm5, %v824_v21   ;;  %1676 = vst.msk [vmem:[%s3889_s1 + $0x6] ss:$16 sm:$0xc] %vm834_vm5, %v824_v21  }
  0xf4   :  { %1677 = vst.msk [vmem:[%s3889_s1 + $0x6] ss:$16 sm:$0x30] %vm834_vm5, %v824_v21   ;;  %1678 = vst.msk [vmem:[%s3889_s1 + $0x6] ss:$16 sm:$0xc0] %vm834_vm5, %v824_v21  }
  0xf5   :  { %1701 = vst.msk [vmem:[%s3889_s1 + $0x186] sm:$0x1] %vm453_vm4, %v902_v22   ;;  %1691 = vst.msk [vmem:[%s3889_s1 + $0x106] ss:$16 sm:$0x3] %vm453_vm4, %v876_v23  }
  0xf6   :  { %1692 = vst.msk [vmem:[%s3889_s1 + $0x106] ss:$16 sm:$0xc] %vm453_vm4, %v876_v23   ;;  %1693 = vst.msk [vmem:[%s3889_s1 + $0x106] ss:$16 sm:$0x30] %vm453_vm4, %v876_v23  }
  0xf7   :  { %1694 = vst.msk [vmem:[%s3889_s1 + $0x106] ss:$16 sm:$0xc0] %vm453_vm4, %v876_v23   ;;  %vm926_vm4 = vcmask 982336  }
  0xf8   :  { %1702 = vst.msk [vmem:[%s3889_s1 + $0x186] sm:$0x1] %vm834_vm5, %v902_v22   ;;  %1695 = vst.msk [vmem:[%s3889_s1 + $0x106] ss:$16 sm:$0x3] %vm834_vm5, %v876_v23  }
  0xf9   :  { %1696 = vst.msk [vmem:[%s3889_s1 + $0x106] ss:$16 sm:$0xc] %vm834_vm5, %v876_v23   ;;  %1697 = vst.msk [vmem:[%s3889_s1 + $0x106] ss:$16 sm:$0x30] %vm834_vm5, %v876_v23  }
  0xfa   :  { %1698 = vst.msk [vmem:[%s3889_s1 + $0x106] ss:$16 sm:$0xc0] %vm834_vm5, %v876_v23  }
  0xfb   :  { %1715 = vst.msk [vmem:[%s3889_s1 + $0x85] ss:$16 sm:$0x3] %vm361_vm3, %v942_v24   ;;  %1716 = vst.msk [vmem:[%s3889_s1 + $0x85] ss:$16 sm:$0xc] %vm361_vm3, %v942_v24  }
  0xfc   :  { %1717 = vst.msk [vmem:[%s3889_s1 + $0x85] ss:$16 sm:$0x30] %vm361_vm3, %v942_v24   ;;  %1718 = vst.msk [vmem:[%s3889_s1 + $0x85] ss:$16 sm:$0xc0] %vm361_vm3, %v942_v24  }
  0xfd   :  { %1705 = vst.msk [vmem:[%s3889_s1 + $0x5] ss:$16 sm:$0x3] %vm361_vm3, %v916_v25   ;;  %1706 = vst.msk [vmem:[%s3889_s1 + $0x5] ss:$16 sm:$0xc] %vm361_vm3, %v916_v25  }
  0xfe   :  { %1707 = vst.msk [vmem:[%s3889_s1 + $0x5] ss:$16 sm:$0x30] %vm361_vm3, %v916_v25   ;;  %1708 = vst.msk [vmem:[%s3889_s1 + $0x5] ss:$16 sm:$0xc0] %vm361_vm3, %v916_v25  }
  0xff   :  { %1719 = vst.msk [vmem:[%s3889_s1 + $0x85] ss:$16 sm:$0x3] %vm926_vm4, %v942_v24   ;;  %1720 = vst.msk [vmem:[%s3889_s1 + $0x85] ss:$16 sm:$0xc] %vm926_vm4, %v942_v24  }
 0x100   :  { %1721 = vst.msk [vmem:[%s3889_s1 + $0x85] ss:$16 sm:$0x30] %vm926_vm4, %v942_v24   ;;  %1722 = vst.msk [vmem:[%s3889_s1 + $0x85] ss:$16 sm:$0xc0] %vm926_vm4, %v942_v24  }
 0x101   :  { %1709 = vst.msk [vmem:[%s3889_s1 + $0x5] ss:$16 sm:$0x3] %vm926_vm4, %v916_v25   ;;  %1710 = vst.msk [vmem:[%s3889_s1 + $0x5] ss:$16 sm:$0xc] %vm926_vm4, %v916_v25  }
 0x102   :  { %1711 = vst.msk [vmem:[%s3889_s1 + $0x5] ss:$16 sm:$0x30] %vm926_vm4, %v916_v25   ;;  %1712 = vst.msk [vmem:[%s3889_s1 + $0x5] ss:$16 sm:$0xc0] %vm926_vm4, %v916_v25  }
 0x103   :  { %1735 = vst.msk [vmem:[%s3889_s1 + $0x185] sm:$0x1] %vm361_vm3, %v994_v26   ;;  %1725 = vst.msk [vmem:[%s3889_s1 + $0x105] ss:$16 sm:$0x3] %vm361_vm3, %v968_v27  }
 0x104   :  { %1726 = vst.msk [vmem:[%s3889_s1 + $0x105] ss:$16 sm:$0xc] %vm361_vm3, %v968_v27   ;;  %1727 = vst.msk [vmem:[%s3889_s1 + $0x105] ss:$16 sm:$0x30] %vm361_vm3, %v968_v27  }
 0x105   :  { %1728 = vst.msk [vmem:[%s3889_s1 + $0x105] ss:$16 sm:$0xc0] %vm361_vm3, %v968_v27   ;;  %vm1018_vm3 = vcmask 982272  }
 0x106   :  { %1736 = vst.msk [vmem:[%s3889_s1 + $0x185] sm:$0x1] %vm926_vm4, %v994_v26   ;;  %1729 = vst.msk [vmem:[%s3889_s1 + $0x105] ss:$16 sm:$0x3] %vm926_vm4, %v968_v27  }
 0x107   :  { %1730 = vst.msk [vmem:[%s3889_s1 + $0x105] ss:$16 sm:$0xc] %vm926_vm4, %v968_v27   ;;  %1731 = vst.msk [vmem:[%s3889_s1 + $0x105] ss:$16 sm:$0x30] %vm926_vm4, %v968_v27  }
 0x108   :  { %1732 = vst.msk [vmem:[%s3889_s1 + $0x105] ss:$16 sm:$0xc0] %vm926_vm4, %v968_v27  }
 0x109   :  { %1749 = vst.msk [vmem:[%s3889_s1 + $0x84] ss:$16 sm:$0x3] %vm269_vm2, %v1034_v28   ;;  %1750 = vst.msk [vmem:[%s3889_s1 + $0x84] ss:$16 sm:$0xc] %vm269_vm2, %v1034_v28  }
 0x10a   :  { %1751 = vst.msk [vmem:[%s3889_s1 + $0x84] ss:$16 sm:$0x30] %vm269_vm2, %v1034_v28   ;;  %1752 = vst.msk [vmem:[%s3889_s1 + $0x84] ss:$16 sm:$0xc0] %vm269_vm2, %v1034_v28  }
 0x10b   :  { %1739 = vst.msk [vmem:[%s3889_s1 + $0x4] ss:$16 sm:$0x3] %vm269_vm2, %v1008_v29   ;;  %1740 = vst.msk [vmem:[%s3889_s1 + $0x4] ss:$16 sm:$0xc] %vm269_vm2, %v1008_v29  }
 0x10c   :  { %1741 = vst.msk [vmem:[%s3889_s1 + $0x4] ss:$16 sm:$0x30] %vm269_vm2, %v1008_v29   ;;  %1742 = vst.msk [vmem:[%s3889_s1 + $0x4] ss:$16 sm:$0xc0] %vm269_vm2, %v1008_v29  }
 0x10d   :  { %1753 = vst.msk [vmem:[%s3889_s1 + $0x84] ss:$16 sm:$0x3] %vm1018_vm3, %v1034_v28   ;;  %1754 = vst.msk [vmem:[%s3889_s1 + $0x84] ss:$16 sm:$0xc] %vm1018_vm3, %v1034_v28  }
 0x10e   :  { %1755 = vst.msk [vmem:[%s3889_s1 + $0x84] ss:$16 sm:$0x30] %vm1018_vm3, %v1034_v28   ;;  %1756 = vst.msk [vmem:[%s3889_s1 + $0x84] ss:$16 sm:$0xc0] %vm1018_vm3, %v1034_v28  }
 0x10f   :  { %1743 = vst.msk [vmem:[%s3889_s1 + $0x4] ss:$16 sm:$0x3] %vm1018_vm3, %v1008_v29   ;;  %1744 = vst.msk [vmem:[%s3889_s1 + $0x4] ss:$16 sm:$0xc] %vm1018_vm3, %v1008_v29  }
 0x110   :  { %1745 = vst.msk [vmem:[%s3889_s1 + $0x4] ss:$16 sm:$0x30] %vm1018_vm3, %v1008_v29   ;;  %1746 = vst.msk [vmem:[%s3889_s1 + $0x4] ss:$16 sm:$0xc0] %vm1018_vm3, %v1008_v29  }
 0x111   :  { %1769 = vst.msk [vmem:[%s3889_s1 + $0x184] sm:$0x1] %vm269_vm2, %v1086_v30   ;;  %1759 = vst.msk [vmem:[%s3889_s1 + $0x104] ss:$16 sm:$0x3] %vm269_vm2, %v1060_v31  }
 0x112   :  { %1760 = vst.msk [vmem:[%s3889_s1 + $0x104] ss:$16 sm:$0xc] %vm269_vm2, %v1060_v31   ;;  %1761 = vst.msk [vmem:[%s3889_s1 + $0x104] ss:$16 sm:$0x30] %vm269_vm2, %v1060_v31  }
 0x113   :  { %1762 = vst.msk [vmem:[%s3889_s1 + $0x104] ss:$16 sm:$0xc0] %vm269_vm2, %v1060_v31   ;;  %vm1110_vm2 = vcmask 982208  }
 0x114   :  { %1770 = vst.msk [vmem:[%s3889_s1 + $0x184] sm:$0x1] %vm1018_vm3, %v1086_v30   ;;  %1763 = vst.msk [vmem:[%s3889_s1 + $0x104] ss:$16 sm:$0x3] %vm1018_vm3, %v1060_v31  }
 0x115   :  { %1764 = vst.msk [vmem:[%s3889_s1 + $0x104] ss:$16 sm:$0xc] %vm1018_vm3, %v1060_v31   ;;  %1765 = vst.msk [vmem:[%s3889_s1 + $0x104] ss:$16 sm:$0x30] %vm1018_vm3, %v1060_v31  }
 0x116   :  { %1766 = vst.msk [vmem:[%s3889_s1 + $0x104] ss:$16 sm:$0xc0] %vm1018_vm3, %v1060_v31  }
 0x117   :  { %1783 = vst.msk [vmem:[%s3889_s1 + $0x83] ss:$16 sm:$0x3] %vm177_vm1, %v1126_v32   ;;  %1784 = vst.msk [vmem:[%s3889_s1 + $0x83] ss:$16 sm:$0xc] %vm177_vm1, %v1126_v32  }
 0x118   :  { %1785 = vst.msk [vmem:[%s3889_s1 + $0x83] ss:$16 sm:$0x30] %vm177_vm1, %v1126_v32   ;;  %1786 = vst.msk [vmem:[%s3889_s1 + $0x83] ss:$16 sm:$0xc0] %vm177_vm1, %v1126_v32  }
 0x119   :  { %1773 = vst.msk [vmem:[%s3889_s1 + $0x3] ss:$16 sm:$0x3] %vm177_vm1, %v1100_v33   ;;  %1774 = vst.msk [vmem:[%s3889_s1 + $0x3] ss:$16 sm:$0xc] %vm177_vm1, %v1100_v33  }
 0x11a   :  { %1775 = vst.msk [vmem:[%s3889_s1 + $0x3] ss:$16 sm:$0x30] %vm177_vm1, %v1100_v33   ;;  %1776 = vst.msk [vmem:[%s3889_s1 + $0x3] ss:$16 sm:$0xc0] %vm177_vm1, %v1100_v33  }
 0x11b   :  { %1787 = vst.msk [vmem:[%s3889_s1 + $0x83] ss:$16 sm:$0x3] %vm1110_vm2, %v1126_v32   ;;  %1788 = vst.msk [vmem:[%s3889_s1 + $0x83] ss:$16 sm:$0xc] %vm1110_vm2, %v1126_v32  }
 0x11c   :  { %1789 = vst.msk [vmem:[%s3889_s1 + $0x83] ss:$16 sm:$0x30] %vm1110_vm2, %v1126_v32   ;;  %1790 = vst.msk [vmem:[%s3889_s1 + $0x83] ss:$16 sm:$0xc0] %vm1110_vm2, %v1126_v32  }
 0x11d   :  { %1777 = vst.msk [vmem:[%s3889_s1 + $0x3] ss:$16 sm:$0x3] %vm1110_vm2, %v1100_v33   ;;  %1778 = vst.msk [vmem:[%s3889_s1 + $0x3] ss:$16 sm:$0xc] %vm1110_vm2, %v1100_v33  }
 0x11e   :  { %1779 = vst.msk [vmem:[%s3889_s1 + $0x3] ss:$16 sm:$0x30] %vm1110_vm2, %v1100_v33   ;;  %1780 = vst.msk [vmem:[%s3889_s1 + $0x3] ss:$16 sm:$0xc0] %vm1110_vm2, %v1100_v33  }
 0x11f   :  { %1803 = vst.msk [vmem:[%s3889_s1 + $0x183] sm:$0x1] %vm177_vm1, %v1178_v34   ;;  %1793 = vst.msk [vmem:[%s3889_s1 + $0x103] ss:$16 sm:$0x3] %vm177_vm1, %v1152_v35  }
 0x120   :  { %1794 = vst.msk [vmem:[%s3889_s1 + $0x103] ss:$16 sm:$0xc] %vm177_vm1, %v1152_v35   ;;  %1795 = vst.msk [vmem:[%s3889_s1 + $0x103] ss:$16 sm:$0x30] %vm177_vm1, %v1152_v35  }
 0x121   :  { %1796 = vst.msk [vmem:[%s3889_s1 + $0x103] ss:$16 sm:$0xc0] %vm177_vm1, %v1152_v35   ;;  %vm1202_vm1 = vcmask 982144  }
 0x122   :  { %1804 = vst.msk [vmem:[%s3889_s1 + $0x183] sm:$0x1] %vm1110_vm2, %v1178_v34   ;;  %1797 = vst.msk [vmem:[%s3889_s1 + $0x103] ss:$16 sm:$0x3] %vm1110_vm2, %v1152_v35  }
 0x123   :  { %1798 = vst.msk [vmem:[%s3889_s1 + $0x103] ss:$16 sm:$0xc] %vm1110_vm2, %v1152_v35   ;;  %1799 = vst.msk [vmem:[%s3889_s1 + $0x103] ss:$16 sm:$0x30] %vm1110_vm2, %v1152_v35  }
 0x124   :  { %1800 = vst.msk [vmem:[%s3889_s1 + $0x103] ss:$16 sm:$0xc0] %vm1110_vm2, %v1152_v35  }
 0x125   :  { %1817 = vst.msk [vmem:[%s3889_s1 + $0x82] ss:$16 sm:$0x3] %vm85_vm0, %v1218_v36   ;;  %1818 = vst.msk [vmem:[%s3889_s1 + $0x82] ss:$16 sm:$0xc] %vm85_vm0, %v1218_v36  }
 0x126   :  { %1819 = vst.msk [vmem:[%s3889_s1 + $0x82] ss:$16 sm:$0x30] %vm85_vm0, %v1218_v36   ;;  %1820 = vst.msk [vmem:[%s3889_s1 + $0x82] ss:$16 sm:$0xc0] %vm85_vm0, %v1218_v36  }
 0x127   :  { %1807 = vst.msk [vmem:[%s3889_s1 + $0x2] ss:$16 sm:$0x3] %vm85_vm0, %v1192_v37   ;;  %1808 = vst.msk [vmem:[%s3889_s1 + $0x2] ss:$16 sm:$0xc] %vm85_vm0, %v1192_v37  }
 0x128   :  { %1809 = vst.msk [vmem:[%s3889_s1 + $0x2] ss:$16 sm:$0x30] %vm85_vm0, %v1192_v37   ;;  %1810 = vst.msk [vmem:[%s3889_s1 + $0x2] ss:$16 sm:$0xc0] %vm85_vm0, %v1192_v37  }
 0x129   :  { %1821 = vst.msk [vmem:[%s3889_s1 + $0x82] ss:$16 sm:$0x3] %vm1202_vm1, %v1218_v36   ;;  %1822 = vst.msk [vmem:[%s3889_s1 + $0x82] ss:$16 sm:$0xc] %vm1202_vm1, %v1218_v36  }
 0x12a   :  { %1823 = vst.msk [vmem:[%s3889_s1 + $0x82] ss:$16 sm:$0x30] %vm1202_vm1, %v1218_v36   ;;  %1824 = vst.msk [vmem:[%s3889_s1 + $0x82] ss:$16 sm:$0xc0] %vm1202_vm1, %v1218_v36  }
 0x12b   :  { %1811 = vst.msk [vmem:[%s3889_s1 + $0x2] ss:$16 sm:$0x3] %vm1202_vm1, %v1192_v37   ;;  %1812 = vst.msk [vmem:[%s3889_s1 + $0x2] ss:$16 sm:$0xc] %vm1202_vm1, %v1192_v37  }
 0x12c   :  { %1813 = vst.msk [vmem:[%s3889_s1 + $0x2] ss:$16 sm:$0x30] %vm1202_vm1, %v1192_v37   ;;  %1814 = vst.msk [vmem:[%s3889_s1 + $0x2] ss:$16 sm:$0xc0] %vm1202_vm1, %v1192_v37  }
 0x12d   :  { %1837 = vst.msk [vmem:[%s3889_s1 + $0x182] sm:$0x1] %vm85_vm0, %v1270_v38   ;;  %1827 = vst.msk [vmem:[%s3889_s1 + $0x102] ss:$16 sm:$0x3] %vm85_vm0, %v1244_v39  }
 0x12e   :  { %1828 = vst.msk [vmem:[%s3889_s1 + $0x102] ss:$16 sm:$0xc] %vm85_vm0, %v1244_v39   ;;  %1829 = vst.msk [vmem:[%s3889_s1 + $0x102] ss:$16 sm:$0x30] %vm85_vm0, %v1244_v39  }
 0x12f   :  { %1830 = vst.msk [vmem:[%s3889_s1 + $0x102] ss:$16 sm:$0xc0] %vm85_vm0, %v1244_v39   ;;  %vm1284_vm0 = vcmask 64512  }
 0x130   :  { %1838 = vst.msk [vmem:[%s3889_s1 + $0x182] sm:$0x1] %vm1202_vm1, %v1270_v38   ;;  %1831 = vst.msk [vmem:[%s3889_s1 + $0x102] ss:$16 sm:$0x3] %vm1202_vm1, %v1244_v39  }
 0x131   :  { %1832 = vst.msk [vmem:[%s3889_s1 + $0x102] ss:$16 sm:$0xc] %vm1202_vm1, %v1244_v39   ;;  %1833 = vst.msk [vmem:[%s3889_s1 + $0x102] ss:$16 sm:$0x30] %vm1202_vm1, %v1244_v39  }
 0x132   :  { %1834 = vst.msk [vmem:[%s3889_s1 + $0x102] ss:$16 sm:$0xc0] %vm1202_vm1, %v1244_v39  }
 0x133   :  { %1850 = vst.msk [vmem:[%s3889_s1 + $0x81] ss:$16 sm:$0x3] %vm1284_vm0, %v1309_v40   ;;  %1851 = vst.msk [vmem:[%s3889_s1 + $0x81] ss:$16 sm:$0xc] %vm1284_vm0, %v1309_v40  }
 0x134   :  { %1852 = vst.msk [vmem:[%s3889_s1 + $0x81] ss:$16 sm:$0x30] %vm1284_vm0, %v1309_v40   ;;  %1853 = vst.msk [vmem:[%s3889_s1 + $0x81] ss:$16 sm:$0xc0] %vm1284_vm0, %v1309_v40  }
 0x135   :  { %1840 = vst.msk [vmem:[%s3889_s1 + $0x1] ss:$16 sm:$0x3] %vm1284_vm0, %v1283_v41   ;;  %1841 = vst.msk [vmem:[%s3889_s1 + $0x1] ss:$16 sm:$0xc] %vm1284_vm0, %v1283_v41  }
 0x136   :  { %1842 = vst.msk [vmem:[%s3889_s1 + $0x1] ss:$16 sm:$0x30] %vm1284_vm0, %v1283_v41   ;;  %1843 = vst.msk [vmem:[%s3889_s1 + $0x1] ss:$16 sm:$0xc0] %vm1284_vm0, %v1283_v41  }
 0x137   :  { %1854 = vst.msk [vmem:[%s3889_s1 + $0x81] ss:$16 sm:$0x3] %vm1293_vm12, %v1309_v40   ;;  %1855 = vst.msk [vmem:[%s3889_s1 + $0x81] ss:$16 sm:$0xc] %vm1293_vm12, %v1309_v40  }
 0x138   :  { %1856 = vst.msk [vmem:[%s3889_s1 + $0x81] ss:$16 sm:$0x30] %vm1293_vm12, %v1309_v40   ;;  %1857 = vst.msk [vmem:[%s3889_s1 + $0x81] ss:$16 sm:$0xc0] %vm1293_vm12, %v1309_v40  }
 0x139   :  { %1844 = vst.msk [vmem:[%s3889_s1 + $0x1] ss:$16 sm:$0x3] %vm1293_vm12, %v1283_v41   ;;  %1845 = vst.msk [vmem:[%s3889_s1 + $0x1] ss:$16 sm:$0xc] %vm1293_vm12, %v1283_v41  }
 0x13a   :  { %1846 = vst.msk [vmem:[%s3889_s1 + $0x1] ss:$16 sm:$0x30] %vm1293_vm12, %v1283_v41   ;;  %1847 = vst.msk [vmem:[%s3889_s1 + $0x1] ss:$16 sm:$0xc0] %vm1293_vm12, %v1283_v41  }
 0x13b   :  { %1870 = vst.msk [vmem:[%s3889_s1 + $0x181] sm:$0x1] %vm1284_vm0, %v1361_v42   ;;  %1860 = vst.msk [vmem:[%s3889_s1 + $0x101] ss:$16 sm:$0x3] %vm1284_vm0, %v1335_v43  }
 0x13c   :  { %1861 = vst.msk [vmem:[%s3889_s1 + $0x101] ss:$16 sm:$0xc] %vm1284_vm0, %v1335_v43   ;;  %1862 = vst.msk [vmem:[%s3889_s1 + $0x101] ss:$16 sm:$0x30] %vm1284_vm0, %v1335_v43  }
 0x13d   :  { %1863 = vst.msk [vmem:[%s3889_s1 + $0x101] ss:$16 sm:$0xc0] %vm1284_vm0, %v1335_v43  }
 0x13e   :  { %1871 = vst.msk [vmem:[%s3889_s1 + $0x181] sm:$0x1] %vm1293_vm12, %v1361_v42   ;;  %1864 = vst.msk [vmem:[%s3889_s1 + $0x101] ss:$16 sm:$0x3] %vm1293_vm12, %v1335_v43  }
 0x13f   :  { %1865 = vst.msk [vmem:[%s3889_s1 + $0x101] ss:$16 sm:$0xc] %vm1293_vm12, %v1335_v43   ;;  %1866 = vst.msk [vmem:[%s3889_s1 + $0x101] ss:$16 sm:$0x30] %vm1293_vm12, %v1335_v43  }
 0x140   :  { %1867 = vst.msk [vmem:[%s3889_s1 + $0x101] ss:$16 sm:$0xc0] %vm1293_vm12, %v1335_v43  }

// kernel: squeeze.9
= control target key start
LH: loop header
LB: loop body
LE: loop exit
PB: predicated region body
PF: predicated region fallthrough
CT: control target
= control target key end

     0   :  { %vm152_vm0 = vcmask 392192   ;;  %vm174_vm1 = vcmask 424960   ;;  %s922_s10 = smov 124   ;;  %vm196_vm2 = vcmask 457728   ;;  %s923_s17 = smov 80   ;;  %vm222_vm3 = vcmask 490496   ;;  %s1821_s0 = inlined_call_operand.vmem [shape: f32[10080], index: 0, kind: input, shape index: {}]   ;;  %s1822_s1 = inlined_call_operand.vmem [shape: f32[120,84], index: 1, kind: output, shape index: {}]  }
   0x1   :  { %v650_v0 = vld [vmem:[%s1821_s0 + $0x13] ss:$21 sm:$0x7]   ;;  %v702_v1 = vld [vmem:[%s1821_s0 + $0x12] ss:$21 sm:$0x7]  }
   0x2   :  { %13 = vrot.lane.b32.xlu0 %v650_v0, %s922_s10  ;;  %v703_v2 = vld [vmem:[%s1821_s0 + $0x13] ss:$21 sm:$0x7]   ;;  %v654_v3 = vld [vmem:[%s1821_s0 + $0x11] ss:$21 sm:$0x7]  }
   0x3   :  { %v153_v4 = vsel %vm152_vm0, %v703_v2, %v702_v1  ;;  %v710_v5 = vld [vmem:[%s1821_s0 + $0x10] ss:$21 sm:$0x7]   ;;  %v711_v6 = vld [vmem:[%s1821_s0 + $0x11] ss:$21 sm:$0x7]  }
   0x4   :  { %154 = vrot.lane.b32.xlu1 %v153_v4, %s923_s17  ;;  %v718_v7 = vld [vmem:[%s1821_s0 + $0xe] ss:$21 sm:$0xf]   ;;  %v175_v8 = vsel %vm174_vm1, %v711_v6, %v710_v5  ;;  %s924_s24 = smov 120   ;;  %s925_s2 = smov 76   ;;  %vm248_vm4 = vcmask 523264  }
   0x5   :  { %v719_v9 = vld [vmem:[%s1821_s0 + $0xf] ss:$21 sm:$0xf]   ;;  %v728_v10 = vld [vmem:[%s1821_s0 + $0xc] ss:$21 sm:$0xf]  }
   0x6   :  { %24 = vrot.lane.b32.xlu0 %v654_v3, %s924_s24  ;;  %v729_v11 = vld [vmem:[%s1821_s0 + $0xd] ss:$21 sm:$0xf]   ;;  %v197_v12 = vsel %vm196_vm2, %v719_v9, %v718_v7  ;;  %v738_v13 = vld [vmem:[%s1821_s0 + $0xa] ss:$21 sm:$0xf]  }
   0x7   :  { %v739_v14 = vld [vmem:[%s1821_s0 + $0xb] ss:$21 sm:$0xf]   ;;  %v223_v15 = vsel %vm222_vm3, %v729_v11, %v728_v10  ;;  %vm226_vm5 = vcmask 556032   ;;  %s926_s5 = smov 72   ;;  %vm200_vm6 = vcmask 588800  }
   0x8   :  { %176 = vrot.lane.b32.xlu1 %v175_v8, %s925_s2  ;;  %v748_v16 = vld [vmem:[%s1821_s0 + $0x8] ss:$21 sm:$0xf]   ;;  %v249_v18 = vsel %vm248_vm4, %v739_v14, %v738_v13  ;;  %s927_s10 = smov 68   ;;  %vm178_vm7 = vcmask 621568   ;;  %s928_s15 = smov 64  }
   0x9   :  { %v749_v17 = vld [vmem:[%s1821_s0 + $0x9] ss:$21 sm:$0xf]   ;;  %v758_v19 = vld [vmem:[%s1821_s0 + $0x6] ss:$21 sm:$0xf]  }
   0xa   :  { %198 = vrot.lane.b32.xlu0 %v197_v12, %s926_s5  ;;  %v759_v20 = vld [vmem:[%s1821_s0 + $0x7] ss:$21 sm:$0xf]   ;;  %v275_v21 = vsel %vm226_vm5, %v749_v17, %v748_v16  ;;  %v768_v22 = vld [vmem:[%s1821_s0 + $0x4] ss:$21 sm:$0xf]  }
   0xb   :  { %v769_v23 = vld [vmem:[%s1821_s0 + $0x5] ss:$21 sm:$0xf]   ;;  %v301_v24 = vsel %vm200_vm6, %v759_v20, %v758_v19  ;;  %vm156_vm8 = vcmask 654336   ;;  %s929_s20 = smov 60   ;;  %vm3_vm9 = vcmask 687104  }
   0xc   :  { %224 = vrot.lane.b32.xlu1 %v223_v15, %s927_s10  ;;  %v778_v25 = vld [vmem:[%s1821_s0 + $0x2] ss:$21 sm:$0xf]   ;;  %v327_v27 = vsel %vm178_vm7, %v769_v23, %v768_v22  ;;  %s930_s25 = smov 56   ;;  %vm403_vm10 = vcmask 719872   ;;  %s931_s30 = smov 52  }
   0xd   :  { %v779_v26 = vld [vmem:[%s1821_s0 + $0x3] ss:$21 sm:$0xf]   ;;  %v374_v28 = vld [vmem:[%s1821_s0] ss:$21 sm:$0xf]  }
   0xe   :  { %250 = vrot.lane.b32.xlu0 %v249_v18, %s928_s15  ;;  %v788_v29 = vld [vmem:[%s1821_s0 + $0x1] ss:$21 sm:$0xf]   ;;  %v353_v30 = vsel %vm156_vm8, %v779_v26, %v778_v25  ;;  %v797_v31 = vld [vmem:[%s1821_s0 + $0x13] ss:$21 sm:$0x7]  }
   0xf   :  { %v798_v32 = vld [vmem:[%s1821_s0 + $0x14] ss:$21 sm:$0x7]   ;;  %v378_v33 = vsel %vm3_vm9, %v788_v29, %v374_v28  ;;  %v805_v34 = vld [vmem:[%s1821_s0 + $0x11] ss:$21 sm:$0x7]  }
  0x10   :  { %276 = vrot.lane.b32.xlu1 %v275_v21, %s929_s20  ;;  %s932_s8 = smov 48   ;;  %v806_v35 = vld [vmem:[%s1821_s0 + $0x12] ss:$21 sm:$0x7]   ;;  %vm425_vm11 = vcmask 752640   ;;  %v404_v36 = vsel %vm403_vm10, %v798_v32, %v797_v31  ;;  %s933_s13 = smov 44  }
  0x11   :  { %v813_v37 = vld [vmem:[%s1821_s0 + $0xf] ss:$21 sm:$0x7]   ;;  %v814_v38 = vld [vmem:[%s1821_s0 + $0x10] ss:$21 sm:$0x7]   ;;  %v426_v39 = vsel %vm425_vm11, %v806_v35, %v805_v34 }
  0x12   :  { %302 = vrot.lane.b32.xlu0 %v301_v24, %s930_s25  ;;  %vm447_vm12 = vcmask 785408   ;;  %vm469_vm13 = vcmask 818176   ;;  %s934_s16 = smov 40   ;;  %v821_v40 = vld [vmem:[%s1821_s0 + $0xd] ss:$21 sm:$0xf]  }
  0x13   :  { %v822_v41 = vld [vmem:[%s1821_s0 + $0xe] ss:$21 sm:$0xf]   ;;  %v448_v42 = vsel %vm447_vm12, %v814_v38, %v813_v37  ;;  %v831_v43 = vld [vmem:[%s1821_s0 + $0xb] ss:$21 sm:$0xf]  }
  0x14   :  { %328 = vrot.lane.b32.xlu1 %v327_v27, %s931_s30  ;;  %s935_s23 = smov 36   ;;  %v832_v44 = vld [vmem:[%s1821_s0 + $0xc] ss:$21 sm:$0xf]   ;;  %vm495_vm14 = vcmask 850944   ;;  %v470_v45 = vsel %vm469_vm13, %v822_v41, %v821_v40  ;;  %s936_s28 = smov 32  }
  0x15   :  { %v841_v46 = vld [vmem:[%s1821_s0 + $0x9] ss:$21 sm:$0xf]   ;;  %vm521_vm15 = vcmask 883712   ;;  %v496_v48 = vsel %vm495_vm14, %v832_v44, %v831_v43  ;;  %vm547_vm10 = vcmask 916480   ;;  %s937_s2 = smov 28  }
  0x16   :  { %354 = vrot.lane.b32.xlu0 %v353_v30, %s932_s8  ;;  %v842_v47 = vld [vmem:[%s1821_s0 + $0xa] ss:$21 sm:$0xf]   ;;  %v851_v49 = vld [vmem:[%s1821_s0 + $0x7] ss:$21 sm:$0xf]  }
  0x17   :  { %v852_v50 = vld [vmem:[%s1821_s0 + $0x8] ss:$21 sm:$0xf]   ;;  %v522_v51 = vsel %vm521_vm15, %v842_v47, %v841_v46  ;;  %v861_v52 = vld [vmem:[%s1821_s0 + $0x5] ss:$21 sm:$0xf]  }
  0x18   :  { %379 = vrot.lane.b32.xlu1 %v378_v33, %s933_s13  ;;  %s938_s9 = smov 24   ;;  %v862_v53 = vld [vmem:[%s1821_s0 + $0x6] ss:$21 sm:$0xf]   ;;  %vm573_vm11 = vcmask 949248   ;;  %v548_v54 = vsel %vm547_vm10, %v852_v50, %v851_v49  ;;  %s939_s14 = smov 20  }
  0x19   :  { %v871_v55 = vld [vmem:[%s1821_s0 + $0x3] ss:$21 sm:$0xf]   ;;  %vm599_vm12 = vcmask 982016   ;;  %v574_v57 = vsel %vm573_vm11, %v862_v53, %v861_v52  ;;  %vm625_vm13 = vcmask 1014784   ;;  %s940_s17 = smov 16  }
  0x1a   :  { %405 = vrot.lane.b32.xlu0 %v404_v36, %s934_s16  ;;  %v872_v56 = vld [vmem:[%s1821_s0 + $0x4] ss:$21 sm:$0xf]   ;;  %v881_v58 = vld [vmem:[%s1821_s0 + $0x1] ss:$21 sm:$0xf]  }
  0x1b   :  { %v882_v59 = vld [vmem:[%s1821_s0 + $0x2] ss:$21 sm:$0xf]   ;;  %v600_v60 = vsel %vm599_vm12, %v872_v56, %v871_v55  ;;  %s941_s22 = smov 12   ;;  %s943_s26 = smov 4   ;;  %vm163_vm14 = vcmask 687744  }
  0x1c   :  { %427 = vrot.lane.b32.xlu1 %v426_v39, %s935_s23  ;;  %v626_v61 = vsel %vm625_vm13, %v882_v59, %v881_v58  ;;  %s942_s23 = smov 8   ;;  %v658_v62 = vld [vmem:[%s1821_s0 + $0xf] ss:$21 sm:$0xf]   ;;  %s944_s29 = smov 116   ;;  %vm209_vm15 = vcmask 687680  }
  0x1d   :  { %v663_v63 = vld [vmem:[%s1821_s0 + $0xd] ss:$21 sm:$0xf]   ;;  %v668_v0 = vld [vmem:[%s1821_s0 + $0xb] ss:$21 sm:$0xf]  }
  0x1e   :  { %449 = vrot.lane.b32.xlu0 %v448_v42, %s936_s28  ;;  %s945_s3 = smov 112   ;;  %v2_v1 = vld [vmem:[%s1821_s0] ss:$21 sm:$0xf]   ;;  %s946_s16 = smov 108   ;;  %vm407_vm10 = vcmask 326656  }
  0x1f   :  { %v673_v2 = vld [vmem:[%s1821_s0 + $0x9] ss:$21 sm:$0xf]   ;;  %4 = vst.msk [vmem:[%s1822_s1] sm:$0x1] %vm3_vm9, %v2_v1   ;;  %s947_s19 = smov 104  }
  0x20   :  { %471 = vrot.lane.b32.xlu1 %v470_v45, %s937_s2  ;;  %647 = vst.msk [vmem:[%s1822_s1 + $0x1f] sm:$0x2] %vm3_vm9, %v2_v1   ;;  %648 = vst.msk [vmem:[%s1822_s1 + $0x3e] sm:$0x4] %vm3_vm9, %v2_v1   ;;  %s949_s25 = smov 96   ;;  %s950_s28 = smov 92  }
  0x21   :  { %649 = vst.msk [vmem:[%s1822_s1 + $0x5d] sm:$0x8] %vm3_vm9, %v2_v1   ;;  %v678_v3 = vld [vmem:[%s1821_s0 + $0x7] ss:$21 sm:$0xf]   ;;  %s952_s2 = smov 84  }
  0x22   :  { %497 = vrot.lane.b32.xlu0 %v496_v48, %s938_s9  ;;  %v683_v4 = vld [vmem:[%s1821_s0 + $0x5] ss:$21 sm:$0xf]   ;;  %v688_v5 = vld [vmem:[%s1821_s0 + $0x3] ss:$21 sm:$0xf]  }
  0x23   :  { %v693_v6 = vld [vmem:[%s1821_s0 + $0x1] ss:$21 sm:$0xf]   ;;  %v698_v7 = vld [vmem:[%s1821_s0 + $0x14] ss:$21 sm:$0x7]  }
  0x24   :  { %523 = vrot.lane.b32.xlu1 %v522_v51, %s939_s14  ;;  %s951_s0 = smov 88   ;;  %vm414_vm11 = vcmask 687424   ;;  %vm429_vm12 = vcmask 293888   ;;  %vm436_vm13 = vcmask 687392  }
  0x26   :  { %549 = vrot.lane.b32.xlu0 %v548_v54, %s940_s17 }
  0x28   :  { %575 = vrot.lane.b32.xlu1 %v574_v57, %s941_s22  ;;  %s948_s22 = smov 100  }
  0x2a   :  { %601 = vrot.lane.b32.xlu0 %v600_v60, %s942_s23 }
  0x2c   :  { %627 = vrot.lane.b32.xlu1 %v626_v61, %s943_s26 }
  0x2e   :  { %35 = vrot.lane.b32.xlu0 %v658_v62, %s944_s29 }
  0x30   :  { %48 = vrot.lane.b32.xlu1 %v663_v63, %s945_s3 }
  0x32   :  { %61 = vrot.lane.b32.xlu0 %v668_v0, %s946_s16 }
  0x34   :  { %74 = vrot.lane.b32.xlu1 %v673_v2, %s947_s19 }
  0x36   :  { %87 = vrot.lane.b32.xlu0 %v678_v3, %s948_s22 }
  0x38   :  { %100 = vrot.lane.b32.xlu1 %v683_v4, %s949_s25 }
  0x3a   :  { %113 = vrot.lane.b32.xlu0 %v688_v5, %s950_s28 }
  0x3c   :  { %126 = vrot.lane.b32.xlu1 %v693_v6, %s951_s0 }
  0x3e   :  { %139 = vrot.lane.b32.xlu0 %v698_v7, %s952_s2 }
  0x74   :  { %v14_v8 = vpop.permute.xlu0 %13  }
  0x75   :  { %651 = vst.msk [vmem:[%s1822_s1 + $0x1d] sm:$0x1] %vm3_vm9, %v14_v8   ;;  %652 = vst.msk [vmem:[%s1822_s1 + $0x3c] sm:$0x2] %vm3_vm9, %v14_v8  }
  0x76   :  { %653 = vst.msk [vmem:[%s1822_s1 + $0x5b] sm:$0x4] %vm3_vm9, %v14_v8   ;;  %v155_v9 = vpop.permute.xlu1 %154  }
  0x77   :  { %704 = vst.msk [vmem:[%s1822_s1 + $0x1c] sm:$0x1] %vm156_vm8, %v155_v9   ;;  %705 = vst.msk [vmem:[%s1822_s1 + $0x3b] sm:$0x2] %vm156_vm8, %v155_v9  }
  0x78   :  { %706 = vst.msk [vmem:[%s1822_s1 + $0x5a] sm:$0x4] %vm156_vm8, %v155_v9   ;;  %v25_v10 = vpop.permute.xlu0 %24   ;;  %vm185_vm8 = vcmask 687712  }
  0x79   :  { %707 = vst.msk [vmem:[%s1822_s1 + $0x1c] sm:$0x1] %vm163_vm14, %v155_v9   ;;  %708 = vst.msk [vmem:[%s1822_s1 + $0x3b] sm:$0x2] %vm163_vm14, %v155_v9  }
  0x7a   :  { %709 = vst.msk [vmem:[%s1822_s1 + $0x5a] sm:$0x4] %vm163_vm14, %v155_v9   ;;  %v177_v11 = vpop.permute.xlu1 %176   ;;  %vm451_vm14 = vcmask 261120  }
  0x7b   :  { %655 = vst.msk [vmem:[%s1822_s1 + $0x1a] sm:$0x1] %vm3_vm9, %v25_v10   ;;  %656 = vst.msk [vmem:[%s1822_s1 + $0x39] sm:$0x2] %vm3_vm9, %v25_v10  }
  0x7c   :  { %657 = vst.msk [vmem:[%s1822_s1 + $0x58] sm:$0x4] %vm3_vm9, %v25_v10   ;;  %v199_v12 = vpop.permute.xlu0 %198  }
  0x7d   :  { %712 = vst.msk [vmem:[%s1822_s1 + $0x19] sm:$0x1] %vm178_vm7, %v177_v11   ;;  %713 = vst.msk [vmem:[%s1822_s1 + $0x38] sm:$0x2] %vm178_vm7, %v177_v11  }
  0x7e   :  { %714 = vst.msk [vmem:[%s1822_s1 + $0x57] sm:$0x4] %vm178_vm7, %v177_v11   ;;  %vm235_vm7 = vcmask 687648   ;;  %v225_v13 = vpop.permute.xlu1 %224  }
  0x7f   :  { %715 = vst.msk [vmem:[%s1822_s1 + $0x19] sm:$0x1] %vm185_vm8, %v177_v11   ;;  %716 = vst.msk [vmem:[%s1822_s1 + $0x38] sm:$0x2] %vm185_vm8, %v177_v11  }
  0x80   :  { %717 = vst.msk [vmem:[%s1822_s1 + $0x57] sm:$0x4] %vm185_vm8, %v177_v11   ;;  %v251_v14 = vpop.permute.xlu0 %250   ;;  %vm458_vm8 = vcmask 687360  }
  0x81   :  { %720 = vst.msk [vmem:[%s1822_s1 + $0x16] sm:$0x1] %vm200_vm6, %v199_v12   ;;  %721 = vst.msk [vmem:[%s1822_s1 + $0x35] sm:$0x2] %vm200_vm6, %v199_v12  }
  0x82   :  { %722 = vst.msk [vmem:[%s1822_s1 + $0x54] sm:$0x4] %vm200_vm6, %v199_v12   ;;  %723 = vst.msk [vmem:[%s1822_s1 + $0x73] sm:$0x8] %vm200_vm6, %v199_v12   ;;  %vm261_vm6 = vcmask 687616   ;;  %v277_v15 = vpop.permute.xlu1 %276  }
  0x83   :  { %724 = vst.msk [vmem:[%s1822_s1 + $0x16] sm:$0x1] %vm209_vm15, %v199_v12   ;;  %725 = vst.msk [vmem:[%s1822_s1 + $0x35] sm:$0x2] %vm209_vm15, %v199_v12  }
  0x84   :  { %726 = vst.msk [vmem:[%s1822_s1 + $0x54] sm:$0x4] %vm209_vm15, %v199_v12   ;;  %727 = vst.msk [vmem:[%s1822_s1 + $0x73] sm:$0x8] %vm209_vm15, %v199_v12   ;;  %v303_v16 = vpop.permute.xlu0 %302   ;;  %vm473_vm15 = vcmask 228352  }
  0x85   :  { %730 = vst.msk [vmem:[%s1822_s1 + $0x13] sm:$0x1] %vm226_vm5, %v225_v13   ;;  %731 = vst.msk [vmem:[%s1822_s1 + $0x32] sm:$0x2] %vm226_vm5, %v225_v13  }
  0x86   :  { %732 = vst.msk [vmem:[%s1822_s1 + $0x51] sm:$0x4] %vm226_vm5, %v225_v13   ;;  %733 = vst.msk [vmem:[%s1822_s1 + $0x70] sm:$0x8] %vm226_vm5, %v225_v13   ;;  %vm287_vm5 = vcmask 687584   ;;  %v329_v17 = vpop.permute.xlu1 %328  }
  0x87   :  { %734 = vst.msk [vmem:[%s1822_s1 + $0x13] sm:$0x1] %vm235_vm7, %v225_v13   ;;  %735 = vst.msk [vmem:[%s1822_s1 + $0x32] sm:$0x2] %vm235_vm7, %v225_v13  }
  0x88   :  { %736 = vst.msk [vmem:[%s1822_s1 + $0x51] sm:$0x4] %vm235_vm7, %v225_v13   ;;  %737 = vst.msk [vmem:[%s1822_s1 + $0x70] sm:$0x8] %vm235_vm7, %v225_v13   ;;  %v355_v18 = vpop.permute.xlu0 %354   ;;  %vm482_vm7 = vcmask 687328  }
  0x89   :  { %740 = vst.msk [vmem:[%s1822_s1 + $0x10] sm:$0x1] %vm248_vm4, %v251_v14   ;;  %741 = vst.msk [vmem:[%s1822_s1 + $0x2f] sm:$0x2] %vm248_vm4, %v251_v14  }
  0x8a   :  { %742 = vst.msk [vmem:[%s1822_s1 + $0x4e] sm:$0x4] %vm248_vm4, %v251_v14   ;;  %743 = vst.msk [vmem:[%s1822_s1 + $0x6d] sm:$0x8] %vm248_vm4, %v251_v14   ;;  %vm313_vm4 = vcmask 687552   ;;  %v380_v19 = vpop.permute.xlu1 %379  }
  0x8b   :  { %744 = vst.msk [vmem:[%s1822_s1 + $0x10] sm:$0x1] %vm261_vm6, %v251_v14   ;;  %745 = vst.msk [vmem:[%s1822_s1 + $0x2f] sm:$0x2] %vm261_vm6, %v251_v14  }
  0x8c   :  { %746 = vst.msk [vmem:[%s1822_s1 + $0x4e] sm:$0x4] %vm261_vm6, %v251_v14   ;;  %747 = vst.msk [vmem:[%s1822_s1 + $0x6d] sm:$0x8] %vm261_vm6, %v251_v14   ;;  %v406_v20 = vpop.permute.xlu0 %405   ;;  %vm499_vm6 = vcmask 195584  }
  0x8d   :  { %750 = vst.msk [vmem:[%s1822_s1 + $0xd] sm:$0x1] %vm222_vm3, %v277_v15   ;;  %751 = vst.msk [vmem:[%s1822_s1 + $0x2c] sm:$0x2] %vm222_vm3, %v277_v15  }
  0x8e   :  { %752 = vst.msk [vmem:[%s1822_s1 + $0x4b] sm:$0x4] %vm222_vm3, %v277_v15   ;;  %753 = vst.msk [vmem:[%s1822_s1 + $0x6a] sm:$0x8] %vm222_vm3, %v277_v15   ;;  %vm339_vm3 = vcmask 687520   ;;  %v428_v21 = vpop.permute.xlu1 %427  }
  0x8f   :  { %754 = vst.msk [vmem:[%s1822_s1 + $0xd] sm:$0x1] %vm287_vm5, %v277_v15   ;;  %755 = vst.msk [vmem:[%s1822_s1 + $0x2c] sm:$0x2] %vm287_vm5, %v277_v15  }
  0x90   :  { %756 = vst.msk [vmem:[%s1822_s1 + $0x4b] sm:$0x4] %vm287_vm5, %v277_v15   ;;  %757 = vst.msk [vmem:[%s1822_s1 + $0x6a] sm:$0x8] %vm287_vm5, %v277_v15   ;;  %v450_v22 = vpop.permute.xlu0 %449   ;;  %vm508_vm5 = vcmask 687296  }
  0x91   :  { %760 = vst.msk [vmem:[%s1822_s1 + $0xa] sm:$0x1] %vm196_vm2, %v303_v16   ;;  %761 = vst.msk [vmem:[%s1822_s1 + $0x29] sm:$0x2] %vm196_vm2, %v303_v16  }
  0x92   :  { %762 = vst.msk [vmem:[%s1822_s1 + $0x48] sm:$0x4] %vm196_vm2, %v303_v16   ;;  %763 = vst.msk [vmem:[%s1822_s1 + $0x67] sm:$0x8] %vm196_vm2, %v303_v16   ;;  %vm365_vm2 = vcmask 687488   ;;  %v472_v23 = vpop.permute.xlu1 %471  }
  0x93   :  { %764 = vst.msk [vmem:[%s1822_s1 + $0xa] sm:$0x1] %vm313_vm4, %v303_v16   ;;  %765 = vst.msk [vmem:[%s1822_s1 + $0x29] sm:$0x2] %vm313_vm4, %v303_v16  }
  0x94   :  { %766 = vst.msk [vmem:[%s1822_s1 + $0x48] sm:$0x4] %vm313_vm4, %v303_v16   ;;  %767 = vst.msk [vmem:[%s1822_s1 + $0x67] sm:$0x8] %vm313_vm4, %v303_v16   ;;  %v498_v24 = vpop.permute.xlu0 %497   ;;  %vm525_vm4 = vcmask 162816  }
  0x95   :  { %770 = vst.msk [vmem:[%s1822_s1 + $0x7] sm:$0x1] %vm174_vm1, %v329_v17   ;;  %771 = vst.msk [vmem:[%s1822_s1 + $0x26] sm:$0x2] %vm174_vm1, %v329_v17  }
  0x96   :  { %772 = vst.msk [vmem:[%s1822_s1 + $0x45] sm:$0x4] %vm174_vm1, %v329_v17   ;;  %773 = vst.msk [vmem:[%s1822_s1 + $0x64] sm:$0x8] %vm174_vm1, %v329_v17   ;;  %vm381_vm1 = vcmask 359424   ;;  %v524_v25 = vpop.permute.xlu1 %523  }
  0x97   :  { %774 = vst.msk [vmem:[%s1822_s1 + $0x7] sm:$0x1] %vm339_vm3, %v329_v17   ;;  %775 = vst.msk [vmem:[%s1822_s1 + $0x26] sm:$0x2] %vm339_vm3, %v329_v17  }
  0x98   :  { %776 = vst.msk [vmem:[%s1822_s1 + $0x45] sm:$0x4] %vm339_vm3, %v329_v17   ;;  %777 = vst.msk [vmem:[%s1822_s1 + $0x64] sm:$0x8] %vm339_vm3, %v329_v17   ;;  %vm534_vm3 = vcmask 687264   ;;  %v550_v26 = vpop.permute.xlu0 %549  }
  0x99   :  { %780 = vst.msk [vmem:[%s1822_s1 + $0x4] sm:$0x1] %vm152_vm0, %v355_v18   ;;  %781 = vst.msk [vmem:[%s1822_s1 + $0x23] sm:$0x2] %vm152_vm0, %v355_v18  }
  0x9a   :  { %782 = vst.msk [vmem:[%s1822_s1 + $0x42] sm:$0x4] %vm152_vm0, %v355_v18   ;;  %783 = vst.msk [vmem:[%s1822_s1 + $0x61] sm:$0x8] %vm152_vm0, %v355_v18   ;;  %vm390_vm0 = vcmask 687456   ;;  %v576_v27 = vpop.permute.xlu1 %575  }
  0x9b   :  { %784 = vst.msk [vmem:[%s1822_s1 + $0x4] sm:$0x1] %vm365_vm2, %v355_v18   ;;  %785 = vst.msk [vmem:[%s1822_s1 + $0x23] sm:$0x2] %vm365_vm2, %v355_v18  }
  0x9c   :  { %786 = vst.msk [vmem:[%s1822_s1 + $0x42] sm:$0x4] %vm365_vm2, %v355_v18   ;;  %787 = vst.msk [vmem:[%s1822_s1 + $0x61] sm:$0x8] %vm365_vm2, %v355_v18   ;;  %vm551_vm2 = vcmask 130048   ;;  %v602_v28 = vpop.permute.xlu0 %601  }
  0x9d   :  { %789 = vst.msk [vmem:[%s1822_s1 + $0x1] sm:$0x1] %vm381_vm1, %v380_v19   ;;  %790 = vst.msk [vmem:[%s1822_s1 + $0x20] sm:$0x2] %vm381_vm1, %v380_v19  }
  0x9e   :  { %791 = vst.msk [vmem:[%s1822_s1 + $0x3f] sm:$0x4] %vm381_vm1, %v380_v19   ;;  %792 = vst.msk [vmem:[%s1822_s1 + $0x5e] sm:$0x8] %vm381_vm1, %v380_v19   ;;  %vm560_vm1 = vcmask 687232   ;;  %v628_v29 = vpop.permute.xlu1 %627  }
  0x9f   :  { %793 = vst.msk [vmem:[%s1822_s1 + $0x1] sm:$0x1] %vm390_vm0, %v380_v19   ;;  %794 = vst.msk [vmem:[%s1822_s1 + $0x20] sm:$0x2] %vm390_vm0, %v380_v19  }
  0xa0   :  { %795 = vst.msk [vmem:[%s1822_s1 + $0x3f] sm:$0x4] %vm390_vm0, %v380_v19   ;;  %796 = vst.msk [vmem:[%s1822_s1 + $0x5e] sm:$0x8] %vm390_vm0, %v380_v19   ;;  %vm577_vm0 = vcmask 97280   ;;  %v36_v30 = vpop.permute.xlu0 %35  }
  0xa1   :  { %799 = vst.msk [vmem:[%s1822_s1 + $0x1e] sm:$0x1] %vm407_vm10, %v406_v20   ;;  %800 = vst.msk [vmem:[%s1822_s1 + $0x3d] sm:$0x2] %vm407_vm10, %v406_v20  }
  0xa2   :  { %801 = vst.msk [vmem:[%s1822_s1 + $0x5c] sm:$0x4] %vm407_vm10, %v406_v20   ;;  %vm586_vm10 = vcmask 687200   ;;  %v49_v31 = vpop.permute.xlu1 %48  }
  0xa3   :  { %802 = vst.msk [vmem:[%s1822_s1 + $0x1e] sm:$0x1] %vm414_vm11, %v406_v20   ;;  %803 = vst.msk [vmem:[%s1822_s1 + $0x3d] sm:$0x2] %vm414_vm11, %v406_v20  }
  0xa4   :  { %804 = vst.msk [vmem:[%s1822_s1 + $0x5c] sm:$0x4] %vm414_vm11, %v406_v20   ;;  %vm603_vm11 = vcmask 64512   ;;  %v62_v32 = vpop.permute.xlu0 %61  }
  0xa5   :  { %807 = vst.msk [vmem:[%s1822_s1 + $0x1b] sm:$0x1] %vm429_vm12, %v428_v21   ;;  %808 = vst.msk [vmem:[%s1822_s1 + $0x3a] sm:$0x2] %vm429_vm12, %v428_v21  }
  0xa6   :  { %809 = vst.msk [vmem:[%s1822_s1 + $0x59] sm:$0x4] %vm429_vm12, %v428_v21   ;;  %vm612_vm12 = vcmask 687168   ;;  %v75_v33 = vpop.permute.xlu1 %74  }
  0xa7   :  { %810 = vst.msk [vmem:[%s1822_s1 + $0x1b] sm:$0x1] %vm436_vm13, %v428_v21   ;;  %811 = vst.msk [vmem:[%s1822_s1 + $0x3a] sm:$0x2] %vm436_vm13, %v428_v21  }
  0xa8   :  { %812 = vst.msk [vmem:[%s1822_s1 + $0x59] sm:$0x4] %vm436_vm13, %v428_v21   ;;  %vm629_vm13 = vcmask 31744   ;;  %v88_v34 = vpop.permute.xlu0 %87  }
  0xa9   :  { %815 = vst.msk [vmem:[%s1822_s1 + $0x18] sm:$0x1] %vm451_vm14, %v450_v22   ;;  %816 = vst.msk [vmem:[%s1822_s1 + $0x37] sm:$0x2] %vm451_vm14, %v450_v22  }
  0xaa   :  { %817 = vst.msk [vmem:[%s1822_s1 + $0x56] sm:$0x4] %vm451_vm14, %v450_v22   ;;  %vm638_vm14 = vcmask 687136   ;;  %v101_v35 = vpop.permute.xlu1 %100  }
  0xab   :  { %818 = vst.msk [vmem:[%s1822_s1 + $0x18] sm:$0x1] %vm458_vm8, %v450_v22   ;;  %819 = vst.msk [vmem:[%s1822_s1 + $0x37] sm:$0x2] %vm458_vm8, %v450_v22  }
  0xac   :  { %820 = vst.msk [vmem:[%s1822_s1 + $0x56] sm:$0x4] %vm458_vm8, %v450_v22   ;;  %v114_v36 = vpop.permute.xlu0 %113  }
  0xad   :  { %823 = vst.msk [vmem:[%s1822_s1 + $0x15] sm:$0x1] %vm473_vm15, %v472_v23   ;;  %824 = vst.msk [vmem:[%s1822_s1 + $0x34] sm:$0x2] %vm473_vm15, %v472_v23  }
  0xae   :  { %825 = vst.msk [vmem:[%s1822_s1 + $0x53] sm:$0x4] %vm473_vm15, %v472_v23   ;;  %826 = vst.msk [vmem:[%s1822_s1 + $0x72] sm:$0x8] %vm473_vm15, %v472_v23   ;;  %v127_v37 = vpop.permute.xlu1 %126  }
  0xaf   :  { %827 = vst.msk [vmem:[%s1822_s1 + $0x15] sm:$0x1] %vm482_vm7, %v472_v23   ;;  %828 = vst.msk [vmem:[%s1822_s1 + $0x34] sm:$0x2] %vm482_vm7, %v472_v23  }
  0xb0   :  { %829 = vst.msk [vmem:[%s1822_s1 + $0x53] sm:$0x4] %vm482_vm7, %v472_v23   ;;  %830 = vst.msk [vmem:[%s1822_s1 + $0x72] sm:$0x8] %vm482_vm7, %v472_v23   ;;  %v140_v38 = vpop.permute.xlu0 %139  }
  0xb1   :  { %833 = vst.msk [vmem:[%s1822_s1 + $0x12] sm:$0x1] %vm499_vm6, %v498_v24   ;;  %834 = vst.msk [vmem:[%s1822_s1 + $0x31] sm:$0x2] %vm499_vm6, %v498_v24  }
  0xb2   :  { %835 = vst.msk [vmem:[%s1822_s1 + $0x50] sm:$0x4] %vm499_vm6, %v498_v24   ;;  %836 = vst.msk [vmem:[%s1822_s1 + $0x6f] sm:$0x8] %vm499_vm6, %v498_v24  }
  0xb3   :  { %837 = vst.msk [vmem:[%s1822_s1 + $0x12] sm:$0x1] %vm508_vm5, %v498_v24   ;;  %838 = vst.msk [vmem:[%s1822_s1 + $0x31] sm:$0x2] %vm508_vm5, %v498_v24  }
  0xb4   :  { %839 = vst.msk [vmem:[%s1822_s1 + $0x50] sm:$0x4] %vm508_vm5, %v498_v24   ;;  %840 = vst.msk [vmem:[%s1822_s1 + $0x6f] sm:$0x8] %vm508_vm5, %v498_v24  }
  0xb5   :  { %843 = vst.msk [vmem:[%s1822_s1 + $0xf] sm:$0x1] %vm525_vm4, %v524_v25   ;;  %844 = vst.msk [vmem:[%s1822_s1 + $0x2e] sm:$0x2] %vm525_vm4, %v524_v25  }
  0xb6   :  { %845 = vst.msk [vmem:[%s1822_s1 + $0x4d] sm:$0x4] %vm525_vm4, %v524_v25   ;;  %846 = vst.msk [vmem:[%s1822_s1 + $0x6c] sm:$0x8] %vm525_vm4, %v524_v25  }
  0xb7   :  { %847 = vst.msk [vmem:[%s1822_s1 + $0xf] sm:$0x1] %vm534_vm3, %v524_v25   ;;  %848 = vst.msk [vmem:[%s1822_s1 + $0x2e] sm:$0x2] %vm534_vm3, %v524_v25  }
  0xb8   :  { %849 = vst.msk [vmem:[%s1822_s1 + $0x4d] sm:$0x4] %vm534_vm3, %v524_v25   ;;  %850 = vst.msk [vmem:[%s1822_s1 + $0x6c] sm:$0x8] %vm534_vm3, %v524_v25  }
  0xb9   :  { %853 = vst.msk [vmem:[%s1822_s1 + $0xc] sm:$0x1] %vm551_vm2, %v550_v26   ;;  %854 = vst.msk [vmem:[%s1822_s1 + $0x2b] sm:$0x2] %vm551_vm2, %v550_v26  }
  0xba   :  { %855 = vst.msk [vmem:[%s1822_s1 + $0x4a] sm:$0x4] %vm551_vm2, %v550_v26   ;;  %856 = vst.msk [vmem:[%s1822_s1 + $0x69] sm:$0x8] %vm551_vm2, %v550_v26  }
  0xbb   :  { %857 = vst.msk [vmem:[%s1822_s1 + $0xc] sm:$0x1] %vm560_vm1, %v550_v26   ;;  %858 = vst.msk [vmem:[%s1822_s1 + $0x2b] sm:$0x2] %vm560_vm1, %v550_v26  }
  0xbc   :  { %859 = vst.msk [vmem:[%s1822_s1 + $0x4a] sm:$0x4] %vm560_vm1, %v550_v26   ;;  %860 = vst.msk [vmem:[%s1822_s1 + $0x69] sm:$0x8] %vm560_vm1, %v550_v26  }
  0xbd   :  { %863 = vst.msk [vmem:[%s1822_s1 + $0x9] sm:$0x1] %vm577_vm0, %v576_v27   ;;  %864 = vst.msk [vmem:[%s1822_s1 + $0x28] sm:$0x2] %vm577_vm0, %v576_v27  }
  0xbe   :  { %865 = vst.msk [vmem:[%s1822_s1 + $0x47] sm:$0x4] %vm577_vm0, %v576_v27   ;;  %866 = vst.msk [vmem:[%s1822_s1 + $0x66] sm:$0x8] %vm577_vm0, %v576_v27  }
  0xbf   :  { %867 = vst.msk [vmem:[%s1822_s1 + $0x9] sm:$0x1] %vm586_vm10, %v576_v27   ;;  %868 = vst.msk [vmem:[%s1822_s1 + $0x28] sm:$0x2] %vm586_vm10, %v576_v27  }
  0xc0   :  { %869 = vst.msk [vmem:[%s1822_s1 + $0x47] sm:$0x4] %vm586_vm10, %v576_v27   ;;  %870 = vst.msk [vmem:[%s1822_s1 + $0x66] sm:$0x8] %vm586_vm10, %v576_v27  }
  0xc1   :  { %873 = vst.msk [vmem:[%s1822_s1 + $0x6] sm:$0x1] %vm603_vm11, %v602_v28   ;;  %874 = vst.msk [vmem:[%s1822_s1 + $0x25] sm:$0x2] %vm603_vm11, %v602_v28  }
  0xc2   :  { %875 = vst.msk [vmem:[%s1822_s1 + $0x44] sm:$0x4] %vm603_vm11, %v602_v28   ;;  %876 = vst.msk [vmem:[%s1822_s1 + $0x63] sm:$0x8] %vm603_vm11, %v602_v28  }
  0xc3   :  { %877 = vst.msk [vmem:[%s1822_s1 + $0x6] sm:$0x1] %vm612_vm12, %v602_v28   ;;  %878 = vst.msk [vmem:[%s1822_s1 + $0x25] sm:$0x2] %vm612_vm12, %v602_v28  }
  0xc4   :  { %879 = vst.msk [vmem:[%s1822_s1 + $0x44] sm:$0x4] %vm612_vm12, %v602_v28   ;;  %880 = vst.msk [vmem:[%s1822_s1 + $0x63] sm:$0x8] %vm612_vm12, %v602_v28  }
  0xc5   :  { %883 = vst.msk [vmem:[%s1822_s1 + $0x3] sm:$0x1] %vm629_vm13, %v628_v29   ;;  %884 = vst.msk [vmem:[%s1822_s1 + $0x22] sm:$0x2] %vm629_vm13, %v628_v29  }
  0xc6   :  { %885 = vst.msk [vmem:[%s1822_s1 + $0x41] sm:$0x4] %vm629_vm13, %v628_v29   ;;  %886 = vst.msk [vmem:[%s1822_s1 + $0x60] sm:$0x8] %vm629_vm13, %v628_v29  }
  0xc7   :  { %887 = vst.msk [vmem:[%s1822_s1 + $0x3] sm:$0x1] %vm638_vm14, %v628_v29   ;;  %888 = vst.msk [vmem:[%s1822_s1 + $0x22] sm:$0x2] %vm638_vm14, %v628_v29  }
  0xc8   :  { %889 = vst.msk [vmem:[%s1822_s1 + $0x41] sm:$0x4] %vm638_vm14, %v628_v29   ;;  %890 = vst.msk [vmem:[%s1822_s1 + $0x60] sm:$0x8] %vm638_vm14, %v628_v29  }
  0xc9   :  { %659 = vst.msk [vmem:[%s1822_s1 + $0x17] sm:$0x1] %vm3_vm9, %v36_v30   ;;  %660 = vst.msk [vmem:[%s1822_s1 + $0x36] sm:$0x2] %vm3_vm9, %v36_v30  }
  0xca   :  { %661 = vst.msk [vmem:[%s1822_s1 + $0x55] sm:$0x4] %vm3_vm9, %v36_v30   ;;  %662 = vst.msk [vmem:[%s1822_s1 + $0x74] sm:$0x8] %vm3_vm9, %v36_v30  }
  0xcb   :  { %664 = vst.msk [vmem:[%s1822_s1 + $0x14] sm:$0x1] %vm3_vm9, %v49_v31   ;;  %665 = vst.msk [vmem:[%s1822_s1 + $0x33] sm:$0x2] %vm3_vm9, %v49_v31  }
  0xcc   :  { %666 = vst.msk [vmem:[%s1822_s1 + $0x52] sm:$0x4] %vm3_vm9, %v49_v31   ;;  %667 = vst.msk [vmem:[%s1822_s1 + $0x71] sm:$0x8] %vm3_vm9, %v49_v31  }
  0xcd   :  { %669 = vst.msk [vmem:[%s1822_s1 + $0x11] sm:$0x1] %vm3_vm9, %v62_v32   ;;  %670 = vst.msk [vmem:[%s1822_s1 + $0x30] sm:$0x2] %vm3_vm9, %v62_v32  }
  0xce   :  { %671 = vst.msk [vmem:[%s1822_s1 + $0x4f] sm:$0x4] %vm3_vm9, %v62_v32   ;;  %672 = vst.msk [vmem:[%s1822_s1 + $0x6e] sm:$0x8] %vm3_vm9, %v62_v32  }
  0xcf   :  { %674 = vst.msk [vmem:[%s1822_s1 + $0xe] sm:$0x1] %vm3_vm9, %v75_v33   ;;  %675 = vst.msk [vmem:[%s1822_s1 + $0x2d] sm:$0x2] %vm3_vm9, %v75_v33  }
  0xd0   :  { %676 = vst.msk [vmem:[%s1822_s1 + $0x4c] sm:$0x4] %vm3_vm9, %v75_v33   ;;  %677 = vst.msk [vmem:[%s1822_s1 + $0x6b] sm:$0x8] %vm3_vm9, %v75_v33  }
  0xd1   :  { %679 = vst.msk [vmem:[%s1822_s1 + $0xb] sm:$0x1] %vm3_vm9, %v88_v34   ;;  %680 = vst.msk [vmem:[%s1822_s1 + $0x2a] sm:$0x2] %vm3_vm9, %v88_v34  }
  0xd2   :  { %681 = vst.msk [vmem:[%s1822_s1 + $0x49] sm:$0x4] %vm3_vm9, %v88_v34   ;;  %682 = vst.msk [vmem:[%s1822_s1 + $0x68] sm:$0x8] %vm3_vm9, %v88_v34  }
  0xd3   :  { %684 = vst.msk [vmem:[%s1822_s1 + $0x8] sm:$0x1] %vm3_vm9, %v101_v35   ;;  %685 = vst.msk [vmem:[%s1822_s1 + $0x27] sm:$0x2] %vm3_vm9, %v101_v35  }
  0xd4   :  { %686 = vst.msk [vmem:[%s1822_s1 + $0x46] sm:$0x4] %vm3_vm9, %v101_v35   ;;  %687 = vst.msk [vmem:[%s1822_s1 + $0x65] sm:$0x8] %vm3_vm9, %v101_v35  }
  0xd5   :  { %689 = vst.msk [vmem:[%s1822_s1 + $0x5] sm:$0x1] %vm3_vm9, %v114_v36   ;;  %690 = vst.msk [vmem:[%s1822_s1 + $0x24] sm:$0x2] %vm3_vm9, %v114_v36  }
  0xd6   :  { %691 = vst.msk [vmem:[%s1822_s1 + $0x43] sm:$0x4] %vm3_vm9, %v114_v36   ;;  %692 = vst.msk [vmem:[%s1822_s1 + $0x62] sm:$0x8] %vm3_vm9, %v114_v36  }
  0xd7   :  { %694 = vst.msk [vmem:[%s1822_s1 + $0x2] sm:$0x1] %vm3_vm9, %v127_v37   ;;  %695 = vst.msk [vmem:[%s1822_s1 + $0x21] sm:$0x2] %vm3_vm9, %v127_v37  }
  0xd8   :  { %696 = vst.msk [vmem:[%s1822_s1 + $0x40] sm:$0x4] %vm3_vm9, %v127_v37   ;;  %697 = vst.msk [vmem:[%s1822_s1 + $0x5f] sm:$0x8] %vm3_vm9, %v127_v37  }
  0xd9   :  { %699 = vst.msk [vmem:[%s1822_s1 + $0x1f] sm:$0x1] %vm3_vm9, %v140_v38   ;;  %700 = vst.msk [vmem:[%s1822_s1 + $0x3e] sm:$0x2] %vm3_vm9, %v140_v38  }
  0xda   :  { %701 = vst.msk [vmem:[%s1822_s1 + $0x5d] sm:$0x4] %vm3_vm9, %v140_v38  }

// kernel: squeeze.10
= control target key start
LH: loop header
LB: loop body
LE: loop exit
PB: predicated region body
PF: predicated region fallthrough
CT: control target
= control target key end

     0   :  { %vm3_vm0 = vcmask 130048   ;;  %s153_s8 = smov 96   ;;  %s154_s9 = smov 112   ;;  %s293_s0 = inlined_call_operand.vmem [shape: f32[1344], index: 0, kind: input, shape index: {}]   ;;  %s294_s1 = inlined_call_operand.vmem [shape: f32[84,16], index: 1, kind: output, shape index: {}]  }
   0x1   :  { %v26_v0 = vld [vmem:[%s293_s0] sm:$0xff]   ;;  %v124_v1 = vld [vmem:[%s293_s0 + $0x8] sm:$0x7]   ;;  %s155_s20 = smov 80   ;;  %s156_s27 = smov 64  }
   0x2   :  { %27 = vrot.lane.b32.xlu1 %v26_v0, %s153_s8  ;;  %12 = vrot.lane.b32.xlu0 %v26_v0, %s154_s9  ;;  %4 = vst.msk [vmem:[%s294_s1] ss:$8 sm:$0xf] %vm3_vm0, %v26_v0   ;;  %5 = vst.msk [vmem:[%s294_s1] ss:$8 sm:$0xf0] %vm3_vm0, %v26_v0  }
   0x3   :  { %v120_v2 = vld [vmem:[%s293_s0 + $0x8] sm:$0x7]   ;;  %s157_s30 = smov 48   ;;  %s158_s4 = smov 32  }
   0x4   :  { %v128_v3 = vld [vmem:[%s293_s0 + $0x8] sm:$0x7]  }
   0x5   :  { %v132_v4 = vld [vmem:[%s293_s0 + $0x8] sm:$0x3]  }
   0x6   :  { %36 = vrot.lane.b32.xlu1 %v124_v1, %s153_s8  ;;  %21 = vrot.lane.b32.xlu0 %v120_v2, %s154_s9  ;;  %v116_v5 = vld [vmem:[%s293_s0 + $0x8] sm:$0x7]  }
   0x7   :  { %117 = vst.msk [vmem:[%s294_s1 + $0x40] ss:$8 sm:$0x7] %vm3_vm0, %v116_v5   ;;  %v136_v6 = vld [vmem:[%s293_s0 + $0x8] sm:$0x3]  }
   0x8   :  { %v140_v7 = vld [vmem:[%s293_s0 + $0x8] sm:$0x3]  }
   0x9   :  { %v144_v8 = vld [vmem:[%s293_s0 + $0x8] sm:$0x3]   ;;  %s159_s0 = smov 16  }
   0xa   :  { %51 = vrot.lane.b32.xlu1 %v128_v3, %s155_s20  ;;  %42 = vrot.lane.b32.xlu0 %v26_v0, %s155_s20 }
   0xe   :  { %66 = vrot.lane.b32.xlu1 %v132_v4, %s156_s27  ;;  %57 = vrot.lane.b32.xlu0 %v26_v0, %s156_s27 }
  0x12   :  { %81 = vrot.lane.b32.xlu1 %v136_v6, %s157_s30  ;;  %72 = vrot.lane.b32.xlu0 %v26_v0, %s157_s30 }
  0x16   :  { %96 = vrot.lane.b32.xlu1 %v140_v7, %s158_s4  ;;  %87 = vrot.lane.b32.xlu0 %v26_v0, %s158_s4 }
  0x1a   :  { %111 = vrot.lane.b32.xlu1 %v144_v8, %s159_s0  ;;  %102 = vrot.lane.b32.xlu0 %v26_v0, %s159_s0 }
  0x74   :  { %v28_v9 = vpop.permute.xlu1 %27   ;;  %v13_v10 = vpop.permute.xlu0 %12  }
  0x75   :  { %122 = vst.msk [vmem:[%s294_s1 + $0x2] ss:$8 sm:$0xf] %vm3_vm0, %v28_v9   ;;  %123 = vst.msk [vmem:[%s294_s1 + $0x2] ss:$8 sm:$0xf0] %vm3_vm0, %v28_v9  }
  0x76   :  { %118 = vst.msk [vmem:[%s294_s1 + $0x1] ss:$8 sm:$0xf] %vm3_vm0, %v13_v10   ;;  %119 = vst.msk [vmem:[%s294_s1 + $0x1] ss:$8 sm:$0xf0] %vm3_vm0, %v13_v10  }
  0x78   :  { %v37_v11 = vpop.permute.xlu1 %36   ;;  %v22_v12 = vpop.permute.xlu0 %21  }
  0x79   :  { %125 = vst.msk [vmem:[%s294_s1 + $0x42] ss:$8 sm:$0x7] %vm3_vm0, %v37_v11   ;;  %121 = vst.msk [vmem:[%s294_s1 + $0x41] ss:$8 sm:$0x7] %vm3_vm0, %v22_v12  }
  0x7c   :  { %v52_v13 = vpop.permute.xlu1 %51   ;;  %v43_v14 = vpop.permute.xlu0 %42  }
  0x7d   :  { %129 = vst.msk [vmem:[%s294_s1 + $0x43] ss:$8 sm:$0x7] %vm3_vm0, %v52_v13   ;;  %126 = vst.msk [vmem:[%s294_s1 + $0x3] ss:$8 sm:$0xf] %vm3_vm0, %v43_v14  }
  0x7e   :  { %127 = vst.msk [vmem:[%s294_s1 + $0x3] ss:$8 sm:$0xf0] %vm3_vm0, %v43_v14  }
  0x80   :  { %v67_v15 = vpop.permute.xlu1 %66   ;;  %v58_v16 = vpop.permute.xlu0 %57  }
  0x81   :  { %133 = vst.msk [vmem:[%s294_s1 + $0x44] ss:$8 sm:$0x3] %vm3_vm0, %v67_v15   ;;  %130 = vst.msk [vmem:[%s294_s1 + $0x4] ss:$8 sm:$0xf] %vm3_vm0, %v58_v16  }
  0x82   :  { %131 = vst.msk [vmem:[%s294_s1 + $0x4] ss:$8 sm:$0xf0] %vm3_vm0, %v58_v16  }
  0x84   :  { %v82_v17 = vpop.permute.xlu1 %81   ;;  %v73_v18 = vpop.permute.xlu0 %72  }
  0x85   :  { %137 = vst.msk [vmem:[%s294_s1 + $0x45] ss:$8 sm:$0x3] %vm3_vm0, %v82_v17   ;;  %134 = vst.msk [vmem:[%s294_s1 + $0x5] ss:$8 sm:$0xf] %vm3_vm0, %v73_v18  }
  0x86   :  { %135 = vst.msk [vmem:[%s294_s1 + $0x5] ss:$8 sm:$0xf0] %vm3_vm0, %v73_v18  }
  0x88   :  { %v97_v19 = vpop.permute.xlu1 %96   ;;  %v88_v20 = vpop.permute.xlu0 %87  }
  0x89   :  { %141 = vst.msk [vmem:[%s294_s1 + $0x46] ss:$8 sm:$0x3] %vm3_vm0, %v97_v19   ;;  %138 = vst.msk [vmem:[%s294_s1 + $0x6] ss:$8 sm:$0xf] %vm3_vm0, %v88_v20  }
  0x8a   :  { %139 = vst.msk [vmem:[%s294_s1 + $0x6] ss:$8 sm:$0xf0] %vm3_vm0, %v88_v20  }
  0x8c   :  { %v112_v21 = vpop.permute.xlu1 %111   ;;  %v103_v22 = vpop.permute.xlu0 %102  }
  0x8d   :  { %145 = vst.msk [vmem:[%s294_s1 + $0x47] ss:$8 sm:$0x3] %vm3_vm0, %v112_v21   ;;  %142 = vst.msk [vmem:[%s294_s1 + $0x7] ss:$8 sm:$0xf] %vm3_vm0, %v103_v22  }
  0x8e   :  { %143 = vst.msk [vmem:[%s294_s1 + $0x7] ss:$8 sm:$0xf0] %vm3_vm0, %v103_v22  }

// kernel: forward.9
= control target key start
LH: loop header
LB: loop body
LE: loop exit
PB: predicated region body
PF: predicated region fallthrough
CT: control target
= control target key end

     0   :  { %15 = vsyncpa [#allocation3], 0  ;;  %v801_v4 = vmov 0.0|0.0   ;;  %v802_v26 = vmov 1983009808   ;;  %v96_v28 = vlaneseq  ;;  %vm112_vm0 = vcmask 130048   ;;  %s1157_s0 = inlined_call_operand.vmem [shape: f32[2,400], index: 0, kind: input, shape index: {}]   ;;  %s1158_s1 = inlined_call_operand.vmem [shape: f32[400,120], index: 1, kind: input, shape index: {}]   ;;  %s1159_s2 = inlined_call_operand.vmem [shape: f32[1,120], index: 2, kind: input, shape index: {}]   ;;  %s1160_s3 = inlined_call_operand.vmem [shape: f32[120,84], index: 3, kind: input, shape index: {}]   ;;  %s1161_s4 = inlined_call_operand.vmem [shape: f32[1,84], index: 4, kind: input, shape index: {}]   ;;  %s1162_s5 = inlined_call_operand.vmem [shape: f32[84,16], index: 5, kind: input, shape index: {}]   ;;  %s1163_s6 = inlined_call_operand.vmem [shape: f32[1,16], index: 6, kind: input, shape index: {}]   ;;  %s1164_s7 = inlined_call_operand.vmem [shape: s32[2,1], index: 7, kind: input, shape index: {}]   ;;  %s1165_s8 = inlined_call_operand.hbm [shape: f32[2,16], index: 8, kind: output, shape index: {0}]   ;;  %s1166_s9 = inlined_call_operand.hbm [shape: f32[1,1], index: 9, kind: output, shape index: {1}]  }
   0x1   :  { %v50_v0 = vld [vmem:[%s1158_s1 + $0x80] sm:$0xff]  ;;  %v51_v1 = vld [vmem:[%s1158_s1 + $0x88] sm:$0xff]  ;;  %677 = vmatprep.subr.bf16.mxu1 %v801_v4  ;;  %v52_v10 = vld [vmem:[%s1158_s1 + $0x90] sm:$0xff]  ;;  %v94_v27 = vunpack.c.l.s4 %v802_v26 }
   0x2   :  { %v34_v2 = vld [vmem:[%s1158_s1] sm:$0xff]  ;;  %v645_v3 = vpack.c.bf16 %v51_v1, %v50_v0  ;;  %v35_v5 = vld [vmem:[%s1158_s1 + $0x8] sm:$0xff]  ;;  %v53_v11 = vld [vmem:[%s1158_s1 + $0x98] sm:$0xff]  ;;  %v97_v39 = vshrl.u32 %v96_v28, 7 }
   0x3   :  { %v66_v6 = vld [vmem:[%s1158_s1 + $0x100] sm:$0xff]  ;;  %v67_v7 = vld [vmem:[%s1158_s1 + $0x108] sm:$0xff]  ;;  %v647_v8 = vpack.c.bf16 %v35_v5, %v34_v2  ;;  %v36_v12 = vld [vmem:[%s1158_s1 + $0x10] sm:$0xff]  ;;  %v649_v13 = vpack.c.bf16 %v53_v11, %v52_v10  ;;  %v95_v38 = vunpack.c.0.s8 %v94_v27 }
   0x4   :  { %v678_v9 = vpack.c.bf16 %v67_v7, %v66_v6  ;;  %646 = vmatprep.subr.bf16.mxu0 %v645_v3  ;;  %v37_v14 = vld [vmem:[%s1158_s1 + $0x18] sm:$0xff]  ;;  %v68_v15 = vld [vmem:[%s1158_s1 + $0x110] sm:$0xff]  ;;  %v54_v19 = vld [vmem:[%s1158_s1 + $0xa0] sm:$0xff] }
   0x5   :  { %v69_v16 = vld [vmem:[%s1158_s1 + $0x118] sm:$0xff]  ;;  %648 = vmatpush3.bf16.msra.mxu0 %v647_v8  ;;  %v651_v17 = vpack.c.bf16 %v37_v14, %v36_v12  ;;  %v55_v20 = vld [vmem:[%s1158_s1 + $0xa8] sm:$0xff]  ;;  %v38_v21 = vld [vmem:[%s1158_s1 + $0x20] sm:$0xff]  ;;  %v98_v49 = vsub.s32 %v95_v38, %v97_v39 }
   0x6   :  { %679 = vmatpush1.bf16.msra.mxu1 %v678_v9  ;;  %v681_v18 = vpack.c.bf16 %v69_v16, %v68_v15  ;;  %650 = vmatprep.subr.bf16.mxu0 %v649_v13  ;;  %v653_v22 = vpack.c.bf16 %v55_v20, %v54_v19  ;;  %v39_v23 = vld [vmem:[%s1158_s1 + $0x28] sm:$0xff]  ;;  %v70_v24 = vld [vmem:[%s1158_s1 + $0x120] sm:$0xff]  ;;  %v56_v29 = vld [vmem:[%s1158_s1 + $0xb0] sm:$0xff] }
   0x7   :  { %680 = vmatprep.subr.bf16.mxu1 %v801_v4  ;;  %v71_v25 = vld [vmem:[%s1158_s1 + $0x128] sm:$0xff]  ;;  %v57_v30 = vld [vmem:[%s1158_s1 + $0xb8] sm:$0xff]  ;;  %v655_v31 = vpack.c.bf16 %v39_v23, %v38_v21  ;;  %v40_v33 = vld [vmem:[%s1158_s1 + $0x30] sm:$0xff] }
   0x8   :  { %v684_v32 = vpack.c.bf16 %v71_v25, %v70_v24  ;;  %v657_v34 = vpack.c.bf16 %v57_v30, %v56_v29  ;;  %v41_v35 = vld [vmem:[%s1158_s1 + $0x38] sm:$0xff]  ;;  %v72_v36 = vld [vmem:[%s1158_s1 + $0x130] sm:$0xff]  ;;  %v58_v40 = vld [vmem:[%s1158_s1 + $0xc0] sm:$0xff] }
   0x9   :  { %652 = vmatpush3.bf16.msra.mxu0 %v651_v17  ;;  %v73_v37 = vld [vmem:[%s1158_s1 + $0x138] sm:$0xff]  ;;  %v59_v41 = vld [vmem:[%s1158_s1 + $0xc8] sm:$0xff]  ;;  %v659_v42 = vpack.c.bf16 %v41_v35, %v40_v33  ;;  %v42_v44 = vld [vmem:[%s1158_s1 + $0x40] sm:$0xff] }
   0xa   :  { %682 = vmatpush1.bf16.msra.mxu1 %v681_v18  ;;  %654 = vmatprep.subr.bf16.mxu0 %v653_v22  ;;  %v687_v43 = vpack.c.bf16 %v73_v37, %v72_v36  ;;  %v661_v45 = vpack.c.bf16 %v59_v41, %v58_v40  ;;  %v43_v46 = vld [vmem:[%s1158_s1 + $0x48] sm:$0xff]  ;;  %v74_v47 = vld [vmem:[%s1158_s1 + $0x140] sm:$0xff]  ;;  %v60_v50 = vld [vmem:[%s1158_s1 + $0xd0] sm:$0xff] }
   0xb   :  { %683 = vmatprep.subr.bf16.mxu1 %v801_v4  ;;  %v75_v48 = vld [vmem:[%s1158_s1 + $0x148] sm:$0xff]  ;;  %v61_v51 = vld [vmem:[%s1158_s1 + $0xd8] sm:$0xff]  ;;  %v663_v52 = vpack.c.bf16 %v43_v46, %v42_v44  ;;  %v44_v54 = vld [vmem:[%s1158_s1 + $0x50] sm:$0xff] }
   0xc   :  { %v690_v53 = vpack.c.bf16 %v75_v48, %v74_v47  ;;  %v33_v55 = vld [vmem:[%s1157_s0] sm:$0xff]  ;;  %v665_v56 = vpack.c.bf16 %v61_v51, %v60_v50  ;;  %v45_v57 = vld [vmem:[%s1158_s1 + $0x58] sm:$0xff]  ;;  %v76_v58 = vld [vmem:[%s1158_s1 + $0x150] sm:$0xff] }
   0xd   :  { %656 = vmatpush3.bf16.msra.mxu0 %v655_v31  ;;  %v77_v59 = vld [vmem:[%s1158_s1 + $0x158] sm:$0xff]  ;;  %v92_v60 = vcombine.high %v33_v55, %v33_v55  ;;  %v99_v61 = vrot.slane %v33_v55, %v98_v49  ;;  %v62_v62 = vld [vmem:[%s1158_s1 + $0xe0] sm:$0xff]  ;;  %v63_v63 = vld [vmem:[%s1158_s1 + $0xe8] sm:$0xff]  ;;  %v667_v2 = vpack.c.bf16 %v45_v57, %v44_v54 }
   0xe   :  { %685 = vmatpush1.bf16.msra.mxu1 %v684_v32  ;;  %658 = vmatprep.subr.bf16.mxu0 %v657_v34  ;;  %v693_v3 = vpack.c.bf16 %v77_v59, %v76_v58  ;;  %v46_v5 = vld [vmem:[%s1158_s1 + $0x60] sm:$0xff] }
   0xf   :  { %686 = vmatprep.subr.bf16.mxu1 %v801_v4  ;;  %v107_v0 = vcombine.high %v99_v61, %v99_v61  ;;  %v106_v1 = vrot.slane %v92_v60, %v98_v49 }
  0x11   :  { %660 = vmatpush3.bf16.msra.mxu0 %v659_v42 }
  0x12   :  { %688 = vmatpush1.bf16.msra.mxu1 %v687_v43  ;;  %662 = vmatprep.subr.bf16.mxu0 %v661_v45 }
  0x13   :  { %689 = vmatprep.subr.bf16.mxu1 %v801_v4 }
  0x15   :  { %664 = vmatpush3.bf16.msra.mxu0 %v663_v52 }
  0x16   :  { %691 = vmatpush1.bf16.msra.mxu1 %v690_v53 }
  0x17   :  { %16 = vsyncpa [#allocation5], 0  ;;  %666 = vmatprep.subr.bf16.mxu0 %v665_v56  ;;  %692 = vmatprep.subr.bf16.mxu1 %v801_v4  ;;  %v669_v6 = vpack.c.bf16 %v63_v63, %v62_v62  ;;  %v47_v7 = vld [vmem:[%s1158_s1 + $0x68] sm:$0xff]  ;;  %v78_v8 = vld [vmem:[%s1158_s1 + $0x160] sm:$0xff]  ;;  %v108_v10 = vcombine.high %v106_v1, %v106_v1  ;;  %v803_v47 = vmov 0.0   ;;  %vm804_vm1 = vmmov 0  }
  0x18   :  { %v79_v9 = vld [vmem:[%s1158_s1 + $0x168] sm:$0xff]  ;;  %v64_v11 = vld [vmem:[%s1158_s1 + $0xf0] sm:$0xff]  ;;  %v65_v12 = vld [vmem:[%s1158_s1 + $0xf8] sm:$0xff]  ;;  %179 = vmatprep.mubr.f32.mxu0 %v107_v0  ;;  %v671_v13 = vpack.c.bf16 %v47_v7, %v46_v5  ;;  %vm278_vm2 = vcmask 982016   ;;  %vm375_vm3 = vcmask 1043456   ;;  %vm371_vm4 = vcmask 687104  }
  0x19   :  { %517 = vmatprep.mubr.msk.f32.mxu1 %vm112_vm0, %v108_v10  ;;  %668 = vmatpush3.bf16.msra.mxu0 %v667_v2  ;;  %v696_v14 = vpack.c.bf16 %v79_v9, %v78_v8  ;;  %v48_v15 = vld [vmem:[%s1158_s1 + $0x70] sm:$0xff]  ;;  %v673_v16 = vpack.c.bf16 %v65_v12, %v64_v11  ;;  %v49_v17 = vld [vmem:[%s1158_s1 + $0x78] sm:$0xff]  ;;  %v82_v22 = vld [vmem:[%s1158_s1 + $0x180] sm:$0xff]  ;;  %vm449_vm5 = vcmask 123904  }
  0x1a   :  { %694 = vmatpush1.bf16.msra.mxu1 %v693_v3  ;;  %670 = vmatprep.subr.bf16.mxu0 %v669_v6  ;;  %v80_v18 = vld [vmem:[%s1158_s1 + $0x170] sm:$0xff]  ;;  %v81_v19 = vld [vmem:[%s1158_s1 + $0x178] sm:$0xff]  ;;  %v675_v20 = vpack.c.bf16 %v49_v17, %v48_v15  ;;  %v83_v23 = vld [vmem:[%s1158_s1 + $0x188] sm:$0xff]  ;;  %v805_v15 = vmov 0  }
  0x1b   :  { %695 = vmatprep.subr.bf16.mxu1 %v801_v4  ;;  %v699_v21 = vpack.c.bf16 %v81_v19, %v80_v18  ;;  %v256_v24 = vld [vmem:[%s1160_s3] sm:$0xff]  ;;  %v257_v25 = vld [vmem:[%s1160_s3 + $0x8] sm:$0xff]  ;;  %v702_v26 = vpack.c.bf16 %v83_v23, %v82_v22  ;;  %v258_v29 = vld [vmem:[%s1160_s3 + $0x10] sm:$0xff]  ;;  %747 = vset.pattern.permute.xlu0 %v805_v15 }
  0x1c   :  { %v705_v27 = vpack.c.bf16 %v257_v25, %v256_v24  ;;  %v259_v30 = vld [vmem:[%s1160_s3 + $0x18] sm:$0xff]  ;;  %v260_v32 = vld [vmem:[%s1160_s3 + $0x20] sm:$0xff]  ;;  %v261_v33 = vld [vmem:[%s1160_s3 + $0x28] sm:$0xff]  ;;  %v464_v25 = vand.u32 127, %v96_v28 }
  0x1d   :  { %672 = vmatpush3.bf16.msra.mxu0 %v671_v13  ;;  %v708_v31 = vpack.c.bf16 %v259_v30, %v258_v29  ;;  %v711_v34 = vpack.c.bf16 %v261_v33, %v260_v32  ;;  %v262_v35 = vld [vmem:[%s1160_s3 + $0x30] sm:$0xff]  ;;  %v263_v36 = vld [vmem:[%s1160_s3 + $0x38] sm:$0xff]  ;;  %v264_v38 = vld [vmem:[%s1160_s3 + $0x40] sm:$0xff] }
  0x1e   :  { %697 = vmatpush1.bf16.msra.mxu1 %v696_v14  ;;  %674 = vmatprep.subr.bf16.mxu0 %v673_v16  ;;  %v714_v37 = vpack.c.bf16 %v263_v36, %v262_v35  ;;  %v265_v39 = vld [vmem:[%s1160_s3 + $0x48] sm:$0xff]  ;;  %v266_v41 = vld [vmem:[%s1160_s3 + $0x50] sm:$0xff]  ;;  %v267_v42 = vld [vmem:[%s1160_s3 + $0x58] sm:$0xff] }
  0x1f   :  { %698 = vmatprep.subr.bf16.mxu1 %v801_v4  ;;  %v717_v40 = vpack.c.bf16 %v265_v39, %v264_v38  ;;  %v720_v43 = vpack.c.bf16 %v267_v42, %v266_v41  ;;  %v268_v44 = vld [vmem:[%s1160_s3 + $0x60] sm:$0xff]  ;;  %v269_v45 = vld [vmem:[%s1160_s3 + $0x68] sm:$0xff]  ;;  %v270_v48 = vld [vmem:[%s1160_s3 + $0x70] sm:$0xff] }
  0x20   :  { %v723_v46 = vpack.c.bf16 %v269_v45, %v268_v44  ;;  %v353_v49 = vld [vmem:[%s1162_s5] sm:$0xff]  ;;  %v354_v50 = vld [vmem:[%s1162_s5 + $0x8] sm:$0xff]  ;;  %v355_v51 = vld [vmem:[%s1162_s5 + $0x10] sm:$0xff] }
  0x21   :  { %676 = vmatpush3.bf16.msra.mxu0 %v675_v20  ;;  %v726_v52 = vpack.c.bf16 %v354_v50, %v353_v49  ;;  %v356_v53 = vld [vmem:[%s1162_s5 + $0x18] sm:$0xff]  ;;  %v357_v55 = vld [vmem:[%s1162_s5 + $0x20] sm:$0xff]  ;;  %v358_v56 = vld [vmem:[%s1162_s5 + $0x28] sm:$0xff] }
  0x22   :  { %700 = vmatpush1.bf16.msra.mxu1 %v699_v21  ;;  %704 = vmatprep.subr.bf16.mxu0 %v801_v4  ;;  %v729_v54 = vpack.c.bf16 %v356_v53, %v355_v51  ;;  %v732_v57 = vpack.c.bf16 %v358_v56, %v357_v55  ;;  %v359_v58 = vld [vmem:[%s1162_s5 + $0x30] sm:$0xff]  ;;  %v360_v59 = vld [vmem:[%s1162_s5 + $0x38] sm:$0xff]  ;;  %v516_v63 = vld [vmem:[%s1159_s2] ss:$0 sm:$0xff] }
  0x23   :  { %701 = vmatprep.subr.bf16.mxu1 %v801_v4  ;;  %v735_v60 = vpack.c.bf16 %v360_v59, %v359_v58  ;;  %v361_v7 = vld [vmem:[%s1162_s5 + $0x40] sm:$0xff]  ;;  %v363_v9 = vld [vmem:[%s1162_s5 + $0x50] sm:$0xf] }
  0x24   :  { %180 = vmatmul.mubr.f32.vlgmr.msra.gmra.mrb[0].mxu0 %v99_v61  ;;  %v518_v10 = vld [vmem:[%s1161_s4] ss:$0 sm:$0xff] }
  0x25   :  { %706 = vmatpush3.bf16.msra.mxu0 %v705_v27  ;;  %617 = vmatprep.mubr.msk.f32.mxu0 %vm804_vm1, %v803_v47  ;;  %v520_v16 = vld [vmem:[%s1163_s6] ss:$0 sm:$0xff]  ;;  %s806_s6 = smov [#allocation2]  }
  0x26   :  { %703 = vmatpush1.bf16.msra.mxu1 %v702_v26  ;;  %707 = vmatprep.subr.bf16.mxu0 %v801_v4  ;;  %v465_v21 = vld [vmem:[%s1164_s7] sm:$0x3]  ;;  %s494_s7 = sshll.u32 %s806_s6, 4  ;;  %s495_s7 = int_to_ptr.vmem [resolvable:$true] %s494_s7 }
  0x27   :  { %725 = vmatprep.subr.bf16.mxu1 %v801_v4  ;;  %s753_s13 = scalar_lea.vmem %s495_s7, 32  ;;  %p758_p1 = scmp.lt.s32.totalorder %s495_s7, %s495_s7 }
  0x28   :  { %p754_p0 = scmp.ne.s32.totalorder %s495_s7, %s753_s13  ;;  %p759_p2 = scmp.lt.s32.totalorder %s753_s13, %s753_s13 }
  0x29   :  { %250 = vmatmul.mubr.f32.vlgmr.msra.gmra.mrb[0].mxu1 %v106_v1  ;;  %709 = vmatpush3.bf16.msra.mxu0 %v708_v31 }
  0x2a   :  { %710 = vmatprep.subr.bf16.mxu0 %v801_v4  ;;  %642 = vmatprep.mubr.msk.f32.mxu1 %vm804_vm1, %v803_v47  ;;  %p760_p3 = por %p759_p2, %p758_p1 }
  0x2b   :  { %727 = vmatpush3.bf16.msra.mxu1 %v726_v52 }
  0x2c   :  { %728 = vmatprep.subr.bf16.mxu1 %v801_v4  ;;  %p761_p4 = pnand %p760_p3, %p754_p0 }
  0x2d   :  { %712 = vmatpush3.bf16.msra.mxu0 %v711_v34 }
  0x2e   :  { %713 = vmatprep.subr.bf16.mxu0 %v801_v4 }
  0x2f   :  { %730 = vmatpush3.bf16.msra.mxu1 %v729_v54 }
  0x30   :  { %731 = vmatprep.subr.bf16.mxu1 %v801_v4 }
  0x31   :  { %715 = vmatpush3.bf16.msra.mxu0 %v714_v37 }
  0x32   :  { %716 = vmatprep.subr.bf16.mxu0 %v801_v4 }
  0x33   :  { %733 = vmatpush3.bf16.msra.mxu1 %v732_v57 }
  0x34   :  { %734 = vmatprep.subr.bf16.mxu1 %v801_v4 }
  0x35   :  { %718 = vmatpush3.bf16.msra.mxu0 %v717_v40 }
  0x36   :  { %719 = vmatprep.subr.bf16.mxu0 %v801_v4 }
  0x37   :  { %736 = vmatpush3.bf16.msra.mxu1 %v735_v60 }
  0x38   :  { %737 = vmatprep.subr.bf16.mxu1 %v801_v4 }
  0x39   :  { %721 = vmatpush3.bf16.msra.mxu0 %v720_v43 }
  0x3a   :  { %722 = vmatprep.subr.bf16.mxu0 %v801_v4  ;;  %v362_v4 = vld [vmem:[%s1162_s5 + $0x48] sm:$0xff] }
  0x3b   :  { %v738_v8 = vpack.c.bf16 %v362_v4, %v361_v7 }
  0x3d   :  { %724 = vmatpush3.bf16.msra.mxu0 %v723_v46  ;;  %739 = vmatpush3.bf16.msra.mxu1 %v738_v8 }
  0x3e   :  { %615 = vmatprep.subr.mxu0 %v803_v47  ;;  %640 = vmatprep.subr.mxu1 %v803_v47 }
  0x41   :  { %616 = vmatpush3.msra.mxu0 %v270_v48  ;;  %641 = vmatpush3.msk.msra.mxu1 %vm375_vm3, %v363_v9 }
  0xf7   :  { %v556_v61 = vpop.f32.mrb[0].mxu0 }
  0xf8   :  { %v557_v62 = vpop.f32.mrb[1].mxu0 }
  0xf9   :  { %v558_v0 = vadd.f32 %v557_v62, %v556_v61 }
  0xfb   :  { %v182_v1 = vadd.f32 %v558_v0, %v516_v63 }
  0xfc   :  { %v251_v2 = vpop.f32.mrb[0].mxu1 }
  0xfd   :  { %v253_v3 = vpop.f32.mrb[1].mxu1  ;;  %v252_v5 = vadd.f32 %v251_v2, %v182_v1 }
  0xff   :  { %v255_v6 = vmax.f32 %v252_v5, 0.0 }
 0x101   :  { %618 = vmatmul.mubr.msk.f32.vlgmr.msra.gmra.mrb[2].mxu0 %vm278_vm2, %v255_v6 }
 0x1d4   :  { %v348_v11 = vpop.f32.mrb[2].mxu0 }
 0x1d5   :  { %v349_v12 = vadd.f32 %v518_v10, %v348_v11  ;;  %v619_v13 = vpop.f32.mrb[3].mxu0 }
 0x1d7   :  { %v352_v14 = vmax.f32 %v349_v12, 0.0 }
 0x1d9   :  { %643 = vmatmul.mubr.msk.f32.vlgmr.msra.gmra.mrb[2].mxu1 %vm371_vm4, %v352_v14 }
 0x2ac   :  { %v445_v17 = vpop.f32.mrb[2].mxu1 }
 0x2ad   :  { %v446_v18 = vadd.f32 %v520_v16, %v445_v17  ;;  %v644_v19 = vpop.f32.mrb[3].mxu1 }
 0x2af   :  { %v451_v20 = vsel %vm449_vm5, %v446_v18, -inf  ;;  %450 = vst.msk [vmem:[#allocation2] sm:$0x3] %vm449_vm5, %v446_v18 }
 0x2b0   :  { %452 = vmax.xlane.f32.xlu0 %v451_v20 }
 0x2c6   :  { %467 = vperm.xlu0 %747, %v465_v21  }
 0x33d   :  { %v453_v22 = vpop.xlane.xlu0 %452 }
 0x33e   :  { %v454_v23 = vsub.f32 %v446_v18, %v453_v22 }
 0x340   :  { %v455_v24 = vmul.f32 1.442695, %v454_v23 }
 0x342   :  { %749 = vpow2.f32 %v455_v24 }
 0x345   :  { %v468_v26 = vpop.permute.xlu0 %467 }
 0x346   :  { %vm469_vm6 = vcmp.eq.s32.totalorder %v464_v25, %v468_v26 }
 0x347   :  { %v523_v27 = vsel %vm469_vm6, 1.0, %v803_v47 }
 0x348   :  { %v472_v31 = vmul.f32 %v523_v27, %v446_v18 }
 0x34a   :  { %v473_v32 = vsel %vm449_vm5, %v472_v31, 0.0 }
 0x34c   :  { %v750_v29 = vpop.eup %749 }
 0x34d   :  { %v457_v30 = vsel %vm449_vm5, %v750_v29, 0.0 }
 0x34e   :  { %458 = vadd.xlane.f32.xlu1 %v457_v30 }
 0x352   :  { %474 = vadd.xlane.f32.xlu1 %v473_v32 }
 0x353   :  { %764 = shalt.err (!%p761_p4)
}
 0x354   :  { %s765_s3 = scalar_lea.hbm %s1165_s8, 32 }
 0x355   :  { %p766_p5 = scmp.ne.s32.totalorder %s1165_s8, %s765_s3  ;;  %p769_p6 = scmp.lt.u32.totalorder %s765_s3, %s1165_s8 }
 0x357   :  { %p771_p7 = pnand %p769_p6, %p766_p5 }
 0x359   :  { %774 = shalt.err (!%p771_p7)
}
 0x35a   :  { %497 = dma.vmem_to_hbm [thread:$0]  %s495_s7, 32, %s1165_s8, [#allocation3]   ;;  %vm477_vm7 = vcmask 1041408   ;;  %vm486_vm8 = vcmask 0  }
 0x35b   :  { %s807_s21 = smov [#allocation4]  }
 0x35c   :  { %s504_s22 = sshll.u32 %s807_s21, 4  ;;  %s505_s22 = int_to_ptr.vmem [resolvable:$true] %s504_s22 }
 0x35d   :  { %s775_s8 = scalar_lea.vmem %s505_s22, 16  ;;  %s779_s23 = scalar_lea.vmem %s505_s22, 32 }
 0x35e   :  { %p776_p8 = scmp.ne.s32.totalorder %s505_s22, %s775_s8  ;;  %p780_p9 = scmp.lt.s32.totalorder %s505_s22, %s505_s22 }
 0x35f   :  { %p781_p10 = scmp.lt.s32.totalorder %s779_s23, %s775_s8 }
 0x361   :  { %p782_p11 = por %p781_p10, %p780_p9 }
 0x363   :  { %p783_p12 = pnand %p782_p11, %p776_p8 }
 0x3db   :  { %v459_v28 = vpop.xlane.xlu1 %458 }
 0x3dc   :  { %751 = vlog2.f32 %v459_v28 }
 0x3df   :  { %v475_v36 = vpop.xlane.xlu1 %474 }
 0x3e6   :  { %v752_v33 = vpop.eup %751 }
 0x3e7   :  { %v461_v34 = vmul.f32 0.6931472, %v752_v33 }
 0x3e9   :  { %v462_v35 = vadd.f32 %v461_v34, %v453_v22 }
 0x3eb   :  { %v476_v37 = vsub.f32 %v462_v35, %v475_v36 }
 0x3ed   :  { %v478_v38 = vsel %vm477_vm7, %v476_v37, 0.0 }
 0x3ee   :  { %v479_v39 = vrot.slane %v478_v38, 4 }
 0x3f0   :  { %v480_v40 = vadd.f32 %v479_v39, %v478_v38 }
 0x3f2   :  { %v481_v41 = vrot.slane %v480_v40, 2 }
 0x3f4   :  { %v482_v42 = vadd.f32 %v481_v41, %v480_v40 }
 0x3f6   :  { %v483_v43 = vrot.slane %v482_v42, 1 }
 0x3f8   :  { %v484_v44 = vadd.f32 %v483_v43, %v482_v42 }
 0x3fa   :  { %v485_v45 = vmul.f32 0.5, %v484_v44 }
 0x3fc   :  { %487 = vst.msk [vmem:[#allocation4] sm:$0x1] %vm486_vm8, %v485_v45 }
 0x3fd   :  { %786 = shalt.err (!%p783_p12)
}
 0x3fe   :  { %s787_s26 = scalar_lea.hbm %s1166_s9, 16 }
 0x3ff   :  { %p788_p13 = scmp.ne.s32.totalorder %s1166_s9, %s787_s26  ;;  %p791_p0 = scmp.lt.u32.totalorder %s787_s26, %s1166_s9 }
 0x401   :  { %p793_p1 = pnand %p791_p0, %p788_p13 }
 0x403   :  { %796 = shalt.err (!%p793_p1)
}
 0x404   :  { %507 = dma.vmem_to_hbm [thread:$0]  %s505_s22, 16, %s1166_s9, [#allocation5]  }
 0x405   :  { %797 = dma.done.wait [#allocation3], 32  }
 0x406   :  { %798 = vsyncadd [#allocation3], 4294967264 }
 0x407   :  { %799 = dma.done.wait [#allocation5], 16  }
 0x408   :  { %800 = vsyncadd [#allocation5], 4294967280 }
 0x409   :  { %514 = vsyncpa [#allocation3], 1 }
 0x40a   :  { %515 = vsyncpa [#allocation5], 1 }

</bundles_post_ra>
